<compile_context>
chip_gen: v7x
topology: tpu7x:2x2x1
jax: 0.10.0
libtpu: 0.0.40
codegen_flags: <defaults>
</compile_context>

<pallas_src>
import jax
import jax.numpy as jnp
import numpy as np
from jax import lax
from jax.experimental import pallas as pl
from jax.experimental.pallas import tpu as pltpu


# ----------------------------------------------------------------------------
# Kernels
# ----------------------------------------------------------------------------
def _conv_relu_pool_kernel(p_ref, w_ref, b_ref, o_ref):
    """Fused 3x3 'same' conv + bias + ReLU + 2x2/stride-2 max pool (one tile).

    p_ref: (1, 4, THW, Kp) bf16 im2col patches; leading axis = pool tap (dy,dx),
           rows within a tap are (ho, wo) of the POOLED output tile.
    w_ref: (Kp, Cout) bf16 reshaped (zero-padded) HWIO weights
    b_ref: (1, Cout)  f32
    o_ref: (1, THW, Cout) f32 pooled output tile.

    relu(x + b) and max commute, so we max the per-tap matmul results first and
    apply bias+ReLU once (bitwise identical to pool(relu(conv+b))).
    """
    w = w_ref[...]
    y = jnp.dot(p_ref[0, 0], w, preferred_element_type=jnp.float32)
    for t in range(1, 4):
        y = jnp.maximum(y, jnp.dot(p_ref[0, t], w,
                                   preferred_element_type=jnp.float32))
    o_ref[0] = jnp.maximum(y + b_ref[...], 0.0).astype(o_ref.dtype)


def _mlp_kernel(x_ref, w1_ref, b1_ref, w2_ref, b2_ref, w3_ref, b3_ref,
                o_ref, acc_ref):
    """Linear(F,1024)->ReLU->Linear(1024,1024)->ReLU->Linear(1024,136),
    gridded over the first hidden dimension so the bf16 fc1/fc2 weight DMA is
    double-buffered against compute.  Activations cast to bf16 at each dot,
    f32 accumulation, f32 elementwise math.
    """
    j = pl.program_id(0)

    @pl.when(j == 0)
    def _():
        acc_ref[...] = jnp.zeros_like(acc_ref)

    xb = x_ref[...].astype(jnp.bfloat16)
    h = jnp.dot(xb, w1_ref[...], preferred_element_type=jnp.float32)
    h = jnp.maximum(h + b1_ref[...], 0.0)
    # TODO(synk): Dropout(0.1) is identity in eval mode; train-mode RNG dropout omitted.
    acc_ref[...] += jnp.dot(h.astype(jnp.bfloat16), w2_ref[...],
                            preferred_element_type=jnp.float32)

    @pl.when(j == pl.num_programs(0) - 1)
    def _():
        h2 = jnp.maximum(acc_ref[...] + b2_ref[...], 0.0)
        out = jnp.dot(h2.astype(jnp.bfloat16), w3_ref[...],
                      preferred_element_type=jnp.float32) + b3_ref[...]
        o_ref[...] = out.astype(o_ref.dtype)


# ----------------------------------------------------------------------------
# Wrappers (glue: im2col, padding, layout plumbing, pallas_call setup)
# ----------------------------------------------------------------------------
def _im2col_pool_tap_major(x_nhwc, k_pad):
    """(N, 4, Ho*Wo, k_pad) bf16 patches; leading axis = pool tap (dy, dx)."""
    N, H, W, Cin = x_nhwc.shape
    Ho, Wo = H // 2, W // 2
    K = 9 * Cin
    xp = jnp.pad(x_nhwc, ((0, 0), (1, 1), (1, 1), (0, 0)))
    taps = [xp[:, ky:ky + H, kx:kx + W, :]
            for ky in range(3) for kx in range(3)]
    cols = jnp.concatenate(taps, axis=-1)               # (N, H, W, 9*Cin)
    if k_pad > K:
        cols = jnp.pad(cols, ((0, 0), (0, 0), (0, 0), (0, k_pad - K)))
    # (N, Ho, dy, Wo, dx, K) -> (N, dy, dx, Ho, Wo, K)
    cols = cols.reshape(N, Ho, 2, Wo, 2, k_pad).transpose(0, 2, 4, 1, 3, 5)
    return cols.reshape(N, 4, Ho * Wo, k_pad).astype(jnp.bfloat16)


def conv3x3_relu_pool(x_nhwc, w2d_bf16, b2d_f32, *, thw):
    """Fused conv3x3(same)+ReLU+maxpool2: returns (N, H//2, W//2, Cout) f32."""
    N, H, W, _ = x_nhwc.shape
    Kp, Cout = w2d_bf16.shape
    Ho, Wo = H // 2, W // 2
    M1 = Ho * Wo
    assert M1 % thw == 0 and thw % 8 == 0

    cols = _im2col_pool_tap_major(x_nhwc, Kp)            # (N, 4, M1, Kp) bf16

    out = pl.pallas_call(
        _conv_relu_pool_kernel,
        out_shape=jax.ShapeDtypeStruct((N, M1, Cout), jnp.float32),
        grid=(N, M1 // thw),
        in_specs=[
            pl.BlockSpec((1, 4, thw, Kp), lambda n, m: (n, 0, m, 0)),
            pl.BlockSpec((Kp, Cout), lambda n, m: (0, 0)),
            pl.BlockSpec((1, Cout), lambda n, m: (0, 0)),
        ],
        out_specs=pl.BlockSpec((1, thw, Cout), lambda n, m: (n, m, 0)),
        compiler_params=pltpu.CompilerParams(
            dimension_semantics=("parallel", "parallel")),
    )(cols, w2d_bf16, b2d_f32)
    return out.reshape(N, Ho, Wo, Cout)


def keypoints_mlp(x, w1, b1, w2, b2, w3, b3, *, jt=512):
    """3-layer MLP with bf16 fc1/fc2 weights streamed in jt-wide hidden tiles."""
    N, F = x.shape
    H1 = w1.shape[1]
    H2 = w2.shape[1]
    O = w3.shape[1]
    assert H1 % jt == 0 and w2.shape[0] == H1

    flops = 2 * N * (F * H1 + H1 * H2 + H2 * O)
    bytes_accessed = (2 * (w1.size + w2.size + w3.size)          # bf16 weights
                      + 4 * (x.size + N * O + H1 + H2 + O))      # f32 act/bias

    return pl.pallas_call(
        _mlp_kernel,
        out_shape=jax.ShapeDtypeStruct((N, O), jnp.float32),
        grid_spec=pltpu.PrefetchScalarGridSpec(
            num_scalar_prefetch=0,
            grid=(H1 // jt,),
            in_specs=[
                pl.BlockSpec((N, F), lambda j: (0, 0)),      # x (fetched once)
                pl.BlockSpec((F, jt), lambda j: (0, j)),     # fc1 weight tile
                pl.BlockSpec((1, jt), lambda j: (0, j)),     # fc1 bias tile
                pl.BlockSpec((jt, H2), lambda j: (j, 0)),    # fc2 weight tile
                pl.BlockSpec((1, H2), lambda j: (0, 0)),     # fc2 bias
                pl.BlockSpec((H2, O), lambda j: (0, 0)),     # fc3 weight
                pl.BlockSpec((1, O), lambda j: (0, 0)),      # fc3 bias
            ],
            out_specs=pl.BlockSpec((N, O), lambda j: (0, 0)),
            scratch_shapes=[pltpu.VMEM((N, H2), jnp.float32)],
        ),
        compiler_params=pltpu.CompilerParams(
            dimension_semantics=("arbitrary",),
            vmem_limit_bytes=32 * 1024 * 1024),
        cost_estimate=pl.CostEstimate(flops=flops, transcendentals=0,
                                      bytes_accessed=bytes_accessed),
    )(x, w1, b1, w2, b2, w3, b3)


@jax.jit
def vgg11_maxp2_forward(x_nchw, kparams):
    """Forward pass. x_nchw: (N, 3, H, W) float32 (PyTorch layout)."""
    x = jnp.transpose(x_nchw, (0, 2, 3, 1))                  # NCHW -> NHWC
    x = conv3x3_relu_pool(x, kparams["conv1_w2d"], kparams["conv1_b2d"], thw=32)
    # drop conv1's zero pad channels (Cout was padded 64 -> 128 for lane density)
    x = conv3x3_relu_pool(x[..., :64], kparams["conv2_w2d"],
                          kparams["conv2_b2d"], thw=8)
    # NHWC flatten directly: fc1 weight rows were permuted once at prep time,
    # so no per-forward activation transpose is needed.
    x = x.reshape(x.shape[0], -1)
    return keypoints_mlp(x, kparams["fc1_w"], kparams["fc1_b"],
                         kparams["fc2_w"], kparams["fc2_b"],
                         kparams["fc3_w"], kparams["fc3_b"])


# ----------------------------------------------------------------------------
# Parameter init + kernel-side parameter preparation
# ----------------------------------------------------------------------------
def init_params(key, in_h, in_w):
    # TODO(synk): no pretrained VGG11 checkpoint load — deterministic synthetic init.
    feat_dim = 128 * (in_h // 4) * (in_w // 4)
    shapes = {
        "conv1_w": (3, 3, 3, 64), "conv1_b": (64,),
        "conv2_w": (3, 3, 64, 128), "conv2_b": (128,),
        "fc1_w": (feat_dim, 1024), "fc1_b": (1024,),
        "fc2_w": (1024, 1024), "fc2_b": (1024,),
        "fc3_w": (1024, 136), "fc3_b": (136,),
    }
    params = {}
    keys = jax.random.split(key, len(shapes))
    for k, (name, shp) in zip(keys, sorted(shapes.items())):
        if name.endswith("_w"):
            fan_in = int(np.prod(shp[:-1]))
            params[name] = (jax.random.normal(k, shp, jnp.float32)
                            / np.sqrt(fan_in))
        else:
            params[name] = 0.01 * jax.random.normal(k, shp, jnp.float32)
    return params


def prepare_kernel_params(params, in_h, in_w):
    """One-time layout/dtype prep: bf16 weights, lane padding, fc1 row permute."""
    kp = {}
    # conv1: HWIO (3,3,3,64) -> (27,64), zero-pad K->128 and Cout->128 (lane-dense)
    w1 = params["conv1_w"].reshape(27, 64)
    w1 = jnp.pad(w1, ((0, 128 - 27), (0, 128 - 64)))
    kp["conv1_w2d"] = w1.astype(jnp.bfloat16)
    kp["conv1_b2d"] = jnp.pad(params["conv1_b"], (0, 64)).reshape(1, 128)
    # conv2: HWIO (3,3,64,128) -> (576,128)
    kp["conv2_w2d"] = params["conv2_w"].reshape(576, 128).astype(jnp.bfloat16)
    kp["conv2_b2d"] = params["conv2_b"].reshape(1, 128)
    # fc1: permute rows from CHW-flatten order (PyTorch .view) to HWC-flatten
    # order so the NHWC conv output can be flattened with zero relayout.
    C2, Ho2, Wo2 = 128, in_h // 4, in_w // 4
    perm = np.arange(C2 * Ho2 * Wo2).reshape(C2, Ho2, Wo2)
    perm = perm.transpose(1, 2, 0).reshape(-1)
    kp["fc1_w"] = params["fc1_w"][perm].astype(jnp.bfloat16)
    kp["fc1_b"] = params["fc1_b"].reshape(1, -1)
    kp["fc2_w"] = params["fc2_w"].astype(jnp.bfloat16)
    kp["fc2_b"] = params["fc2_b"].reshape(1, -1)
    kp["fc3_w"] = params["fc3_w"].astype(jnp.bfloat16)
    kp["fc3_b"] = params["fc3_b"].reshape(1, -1)
    return kp


# ----------------------------------------------------------------------------
# Pure-JAX reference (bf16-operand matched, f32 accumulation) for correctness
# ----------------------------------------------------------------------------
def reference_forward(x_nchw, params):
    x = jnp.transpose(x_nchw, (0, 2, 3, 1))

    def conv(x, w, b):
        y = lax.conv_general_dilated(
            x.astype(jnp.bfloat16), w.astype(jnp.bfloat16),
            window_strides=(1, 1), padding=((1, 1), (1, 1)),
            dimension_numbers=("NHWC", "HWIO", "NHWC"),
            preferred_element_type=jnp.float32)
        return jnp.maximum(y + b[None, None, None, :], 0.0)

    def pool(x):
        return lax.reduce_window(x, -jnp.inf, lax.max,
                                 (1, 2, 2, 1), (1, 2, 2, 1), "VALID")

    def lin(a, w, b):
        return jnp.dot(a.astype(jnp.bfloat16), w.astype(jnp.bfloat16),
                       preferred_element_type=jnp.float32) + b

    x = pool(conv(x, params["conv1_w"], params["conv1_b"]))
    x = pool(conv(x, params["conv2_w"], params["conv2_b"]))
    x = jnp.transpose(x, (0, 3, 1, 2)).reshape(x.shape[0], -1)  # NCHW flatten
    h = jnp.maximum(lin(x, params["fc1_w"], params["fc1_b"]), 0.0)
    h = jnp.maximum(lin(h, params["fc2_w"], params["fc2_b"]), 0.0)
    return lin(h, params["fc3_w"], params["fc3_b"])


if __name__ == "__main__":
    key = jax.random.PRNGKey(0)
    k_x, k_p = jax.random.split(key)

    N, C, H, W = 2, 3, 16, 16           # small shapes consistent with the module
    x = jax.random.normal(k_x, (N, C, H, W), jnp.float32)
    params = init_params(k_p, H, W)
    kparams = prepare_kernel_params(params, H, W)

    out = jax.block_until_ready(vgg11_maxp2_forward(x, kparams))
    assert out.shape == (N, 136), out.shape

    ref = jax.block_until_ready(reference_forward(x, params))
    # bf16 matmul operands on both sides; tolerance covers accumulation-order
    # and bf16 rounding differences between the tiled kernel and XLA reference.
    np.testing.assert_allclose(np.asarray(out), np.asarray(ref),
                               rtol=1e-2, atol=1e-2)

    print("KERNEL_OK")
</pallas_src>

<mosaic_0001>
module attributes {stable_mosaic.version = 11 : i64} {
  func.func @_conv_relu_pool_kernel(%arg0: i32, %arg1: i32, %arg2: memref<1x4x32x128xbf16, #tpu.memory_space<vmem>>, %arg3: memref<128x128xbf16, #tpu.memory_space<vmem>>, %arg4: memref<1x128xf32, #tpu.memory_space<vmem>>, %arg5: memref<1x32x128xf32, #tpu.memory_space<vmem>>) attributes {dimension_semantics = [#tpu.dimension_semantics<parallel>, #tpu.dimension_semantics<parallel>], iteration_bounds = array<i64: 2, 2>, scalar_prefetch = 0 : i64, scratch_operands = 0 : i64, tpu.core_type = #tpu.core_type<tc>, window_params = [{transform_indices = @transform_0, window_bounds = array<i64: 1, 4, 32, 128>}, {pipeline_mode = #tpu.pipeline_mode<synchronous>, transform_indices = @transform_1, window_bounds = array<i64: 128, 128>}, {pipeline_mode = #tpu.pipeline_mode<synchronous>, transform_indices = @transform_2, window_bounds = array<i64: 1, 128>}, {transform_indices = @transform_3, window_bounds = array<i64: 1, 32, 128>}]} {
    %c0 = arith.constant 0 : index
    %c0_0 = arith.constant 0 : index
    %0 = vector.load %arg3[%c0, %c0_0] : memref<128x128xbf16, #tpu.memory_space<vmem>>, vector<128x128xbf16>
    %c0_1 = arith.constant 0 : index
    %c0_2 = arith.constant 0 : index
    %c0_3 = arith.constant 0 : index
    %c0_4 = arith.constant 0 : index
    %1 = vector.load %arg2[%c0_1, %c0_2, %c0_3, %c0_4] : memref<1x4x32x128xbf16, #tpu.memory_space<vmem>>, vector<1x1x32x128xbf16>
    %2 = vector.shape_cast %1 : vector<1x1x32x128xbf16> to vector<32x128xbf16>
    %cst = arith.constant dense<0.000000e+00> : vector<32x128xf32>
    %3 = tpu.matmul %2, %0, %cst {dimension_numbers = #tpu.dot_dimension_numbers<[1], [0], [0], [1], [0, 0, 1, 1], [], []>} : vector<32x128xbf16>, vector<128x128xbf16>, vector<32x128xf32> -> vector<32x128xf32>
    %c0_5 = arith.constant 0 : index
    %c1 = arith.constant 1 : index
    %c0_6 = arith.constant 0 : index
    %c0_7 = arith.constant 0 : index
    %4 = vector.load %arg2[%c0_5, %c1, %c0_6, %c0_7] : memref<1x4x32x128xbf16, #tpu.memory_space<vmem>>, vector<1x1x32x128xbf16>
    %5 = vector.shape_cast %4 : vector<1x1x32x128xbf16> to vector<32x128xbf16>
    %cst_8 = arith.constant dense<0.000000e+00> : vector<32x128xf32>
    %6 = tpu.matmul %5, %0, %cst_8 {dimension_numbers = #tpu.dot_dimension_numbers<[1], [0], [0], [1], [0, 0, 1, 1], [], []>} : vector<32x128xbf16>, vector<128x128xbf16>, vector<32x128xf32> -> vector<32x128xf32>
    %7 = arith.maximumf %3, %6 : vector<32x128xf32>
    %c0_9 = arith.constant 0 : index
    %c2 = arith.constant 2 : index
    %c0_10 = arith.constant 0 : index
    %c0_11 = arith.constant 0 : index
    %8 = vector.load %arg2[%c0_9, %c2, %c0_10, %c0_11] : memref<1x4x32x128xbf16, #tpu.memory_space<vmem>>, vector<1x1x32x128xbf16>
    %9 = vector.shape_cast %8 : vector<1x1x32x128xbf16> to vector<32x128xbf16>
    %cst_12 = arith.constant dense<0.000000e+00> : vector<32x128xf32>
    %10 = tpu.matmul %9, %0, %cst_12 {dimension_numbers = #tpu.dot_dimension_numbers<[1], [0], [0], [1], [0, 0, 1, 1], [], []>} : vector<32x128xbf16>, vector<128x128xbf16>, vector<32x128xf32> -> vector<32x128xf32>
    %11 = arith.maximumf %7, %10 : vector<32x128xf32>
    %c0_13 = arith.constant 0 : index
    %c3 = arith.constant 3 : index
    %c0_14 = arith.constant 0 : index
    %c0_15 = arith.constant 0 : index
    %12 = vector.load %arg2[%c0_13, %c3, %c0_14, %c0_15] : memref<1x4x32x128xbf16, #tpu.memory_space<vmem>>, vector<1x1x32x128xbf16>
    %13 = vector.shape_cast %12 : vector<1x1x32x128xbf16> to vector<32x128xbf16>
    %cst_16 = arith.constant dense<0.000000e+00> : vector<32x128xf32>
    %14 = tpu.matmul %13, %0, %cst_16 {dimension_numbers = #tpu.dot_dimension_numbers<[1], [0], [0], [1], [0, 0, 1, 1], [], []>} : vector<32x128xbf16>, vector<128x128xbf16>, vector<32x128xf32> -> vector<32x128xf32>
    %15 = arith.maximumf %11, %14 : vector<32x128xf32>
    %c0_17 = arith.constant 0 : index
    %c0_18 = arith.constant 0 : index
    %16 = vector.load %arg4[%c0_17, %c0_18] : memref<1x128xf32, #tpu.memory_space<vmem>>, vector<1x128xf32>
    %17 = vector.broadcast %16 : vector<1x128xf32> to vector<32x128xf32>
    %18 = arith.addf %15, %17 : vector<32x128xf32>
    %cst_19 = arith.constant 0.000000e+00 : f32
    %19 = vector.broadcast %cst_19 : f32 to vector<32x128xf32>
    %20 = arith.maximumf %18, %19 : vector<32x128xf32>
    %c0_20 = arith.constant 0 : index
    %c0_21 = arith.constant 0 : index
    %c0_22 = arith.constant 0 : index
    %21 = vector.load %arg5[%c0_20, %c0_21, %c0_22] : memref<1x32x128xf32, #tpu.memory_space<vmem>>, vector<1x32x128xf32>
    %22 = vector.shape_cast %21 : vector<1x32x128xf32> to vector<32x128xf32>
    %23 = vector.shape_cast %20 : vector<32x128xf32> to vector<1x32x128xf32>
    tpu.vector_store %arg5[%c0_20, %c0_21, %c0_22], %23 {strides = array<i32>} : memref<1x32x128xf32, #tpu.memory_space<vmem>>, vector<1x32x128xf32>,
    return
  }
  func.func @transform_0(%arg0: i32, %arg1: i32) -> (i32, i32, i32, i32) {
    %c0_i32 = arith.constant 0 : i32
    %c0_i32_0 = arith.constant 0 : i32
    %c0_i32_1 = arith.constant 0 : i32
    return %arg0, %c0_i32, %arg1, %c0_i32_0 : i32, i32, i32, i32
  }
  func.func @transform_1(%arg0: i32, %arg1: i32) -> (i32, i32) {
    %c0_i32 = arith.constant 0 : i32
    %c0_i32_0 = arith.constant 0 : i32
    %c0_i32_1 = arith.constant 0 : i32
    return %c0_i32, %c0_i32_0 : i32, i32
  }
  func.func @transform_2(%arg0: i32, %arg1: i32) -> (i32, i32) {
    %c0_i32 = arith.constant 0 : i32
    %c0_i32_0 = arith.constant 0 : i32
    %c0_i32_1 = arith.constant 0 : i32
    return %c0_i32, %c0_i32_0 : i32, i32
  }
  func.func @transform_3(%arg0: i32, %arg1: i32) -> (i32, i32, i32) {
    %c0_i32 = arith.constant 0 : i32
    %c0_i32_0 = arith.constant 0 : i32
    return %arg0, %arg1, %c0_i32 : i32, i32, i32
  }
}

module attributes {stable_mosaic.version = 11 : i64} {
  func.func @_conv_relu_pool_kernel(%arg0: i32, %arg1: i32, %arg2: memref<1x4x8x576xbf16, #tpu.memory_space<vmem>>, %arg3: memref<576x128xbf16, #tpu.memory_space<vmem>>, %arg4: memref<1x128xf32, #tpu.memory_space<vmem>>, %arg5: memref<1x8x128xf32, #tpu.memory_space<vmem>>) attributes {dimension_semantics = [#tpu.dimension_semantics<parallel>, #tpu.dimension_semantics<parallel>], iteration_bounds = array<i64: 2, 2>, scalar_prefetch = 0 : i64, scratch_operands = 0 : i64, tpu.core_type = #tpu.core_type<tc>, window_params = [{transform_indices = @transform_0, window_bounds = array<i64: 1, 4, 8, 576>}, {pipeline_mode = #tpu.pipeline_mode<synchronous>, transform_indices = @transform_1, window_bounds = array<i64: 576, 128>}, {pipeline_mode = #tpu.pipeline_mode<synchronous>, transform_indices = @transform_2, window_bounds = array<i64: 1, 128>}, {transform_indices = @transform_3, window_bounds = array<i64: 1, 8, 128>}]} {
    %c0 = arith.constant 0 : index
    %c0_0 = arith.constant 0 : index
    %0 = vector.load %arg3[%c0, %c0_0] : memref<576x128xbf16, #tpu.memory_space<vmem>>, vector<576x128xbf16>
    %c0_1 = arith.constant 0 : index
    %c0_2 = arith.constant 0 : index
    %c0_3 = arith.constant 0 : index
    %c0_4 = arith.constant 0 : index
    %1 = vector.load %arg2[%c0_1, %c0_2, %c0_3, %c0_4] : memref<1x4x8x576xbf16, #tpu.memory_space<vmem>>, vector<1x1x8x576xbf16>
    %2 = vector.shape_cast %1 : vector<1x1x8x576xbf16> to vector<8x576xbf16>
    %cst = arith.constant dense<0.000000e+00> : vector<8x128xf32>
    %3 = tpu.matmul %2, %0, %cst {dimension_numbers = #tpu.dot_dimension_numbers<[1], [0], [0], [1], [0, 0, 1, 1], [], []>} : vector<8x576xbf16>, vector<576x128xbf16>, vector<8x128xf32> -> vector<8x128xf32>
    %c0_5 = arith.constant 0 : index
    %c1 = arith.constant 1 : index
    %c0_6 = arith.constant 0 : index
    %c0_7 = arith.constant 0 : index
    %4 = vector.load %arg2[%c0_5, %c1, %c0_6, %c0_7] : memref<1x4x8x576xbf16, #tpu.memory_space<vmem>>, vector<1x1x8x576xbf16>
    %5 = vector.shape_cast %4 : vector<1x1x8x576xbf16> to vector<8x576xbf16>
    %cst_8 = arith.constant dense<0.000000e+00> : vector<8x128xf32>
    %6 = tpu.matmul %5, %0, %cst_8 {dimension_numbers = #tpu.dot_dimension_numbers<[1], [0], [0], [1], [0, 0, 1, 1], [], []>} : vector<8x576xbf16>, vector<576x128xbf16>, vector<8x128xf32> -> vector<8x128xf32>
    %7 = arith.maximumf %3, %6 : vector<8x128xf32>
    %c0_9 = arith.constant 0 : index
    %c2 = arith.constant 2 : index
    %c0_10 = arith.constant 0 : index
    %c0_11 = arith.constant 0 : index
    %8 = vector.load %arg2[%c0_9, %c2, %c0_10, %c0_11] : memref<1x4x8x576xbf16, #tpu.memory_space<vmem>>, vector<1x1x8x576xbf16>
    %9 = vector.shape_cast %8 : vector<1x1x8x576xbf16> to vector<8x576xbf16>
    %cst_12 = arith.constant dense<0.000000e+00> : vector<8x128xf32>
    %10 = tpu.matmul %9, %0, %cst_12 {dimension_numbers = #tpu.dot_dimension_numbers<[1], [0], [0], [1], [0, 0, 1, 1], [], []>} : vector<8x576xbf16>, vector<576x128xbf16>, vector<8x128xf32> -> vector<8x128xf32>
    %11 = arith.maximumf %7, %10 : vector<8x128xf32>
    %c0_13 = arith.constant 0 : index
    %c3 = arith.constant 3 : index
    %c0_14 = arith.constant 0 : index
    %c0_15 = arith.constant 0 : index
    %12 = vector.load %arg2[%c0_13, %c3, %c0_14, %c0_15] : memref<1x4x8x576xbf16, #tpu.memory_space<vmem>>, vector<1x1x8x576xbf16>
    %13 = vector.shape_cast %12 : vector<1x1x8x576xbf16> to vector<8x576xbf16>
    %cst_16 = arith.constant dense<0.000000e+00> : vector<8x128xf32>
    %14 = tpu.matmul %13, %0, %cst_16 {dimension_numbers = #tpu.dot_dimension_numbers<[1], [0], [0], [1], [0, 0, 1, 1], [], []>} : vector<8x576xbf16>, vector<576x128xbf16>, vector<8x128xf32> -> vector<8x128xf32>
    %15 = arith.maximumf %11, %14 : vector<8x128xf32>
    %c0_17 = arith.constant 0 : index
    %c0_18 = arith.constant 0 : index
    %16 = vector.load %arg4[%c0_17, %c0_18] : memref<1x128xf32, #tpu.memory_space<vmem>>, vector<1x128xf32>
    %17 = vector.broadcast %16 : vector<1x128xf32> to vector<8x128xf32>
    %18 = arith.addf %15, %17 : vector<8x128xf32>
    %cst_19 = arith.constant 0.000000e+00 : f32
    %19 = vector.broadcast %cst_19 : f32 to vector<8x128xf32>
    %20 = arith.maximumf %18, %19 : vector<8x128xf32>
    %c0_20 = arith.constant 0 : index
    %c0_21 = arith.constant 0 : index
    %c0_22 = arith.constant 0 : index
    %21 = vector.load %arg5[%c0_20, %c0_21, %c0_22] : memref<1x8x128xf32, #tpu.memory_space<vmem>>, vector<1x8x128xf32>
    %22 = vector.shape_cast %21 : vector<1x8x128xf32> to vector<8x128xf32>
    %23 = vector.shape_cast %20 : vector<8x128xf32> to vector<1x8x128xf32>
    tpu.vector_store %arg5[%c0_20, %c0_21, %c0_22], %23 {strides = array<i32>} : memref<1x8x128xf32, #tpu.memory_space<vmem>>, vector<1x8x128xf32>,
    return
  }
  func.func @transform_0(%arg0: i32, %arg1: i32) -> (i32, i32, i32, i32) {
    %c0_i32 = arith.constant 0 : i32
    %c0_i32_0 = arith.constant 0 : i32
    %c0_i32_1 = arith.constant 0 : i32
    return %arg0, %c0_i32, %arg1, %c0_i32_0 : i32, i32, i32, i32
  }
  func.func @transform_1(%arg0: i32, %arg1: i32) -> (i32, i32) {
    %c0_i32 = arith.constant 0 : i32
    %c0_i32_0 = arith.constant 0 : i32
    %c0_i32_1 = arith.constant 0 : i32
    return %c0_i32, %c0_i32_0 : i32, i32
  }
  func.func @transform_2(%arg0: i32, %arg1: i32) -> (i32, i32) {
    %c0_i32 = arith.constant 0 : i32
    %c0_i32_0 = arith.constant 0 : i32
    %c0_i32_1 = arith.constant 0 : i32
    return %c0_i32, %c0_i32_0 : i32, i32
  }
  func.func @transform_3(%arg0: i32, %arg1: i32) -> (i32, i32, i32) {
    %c0_i32 = arith.constant 0 : i32
    %c0_i32_0 = arith.constant 0 : i32
    return %arg0, %arg1, %c0_i32 : i32, i32, i32
  }
}

module attributes {stable_mosaic.version = 11 : i64} {
  func.func @_mlp_kernel(%arg0: i32, %arg1: memref<2x2048xf32, #tpu.memory_space<vmem>>, %arg2: memref<2048x512xbf16, #tpu.memory_space<vmem>>, %arg3: memref<1x512xf32, #tpu.memory_space<vmem>>, %arg4: memref<512x1024xbf16, #tpu.memory_space<vmem>>, %arg5: memref<1x1024xf32, #tpu.memory_space<vmem>>, %arg6: memref<1024x136xbf16, #tpu.memory_space<vmem>>, %arg7: memref<1x136xf32, #tpu.memory_space<vmem>>, %arg8: memref<2x136xf32, #tpu.memory_space<vmem>>, %arg9: memref<2x1024xf32, #tpu.memory_space<vmem>>) attributes {dimension_semantics = [#tpu.dimension_semantics<arbitrary>], iteration_bounds = array<i64: 2>, scalar_prefetch = 0 : i64, scratch_operands = 1 : i64, tpu.core_type = #tpu.core_type<tc>, window_params = [{pipeline_mode = #tpu.pipeline_mode<synchronous>, transform_indices = @transform_0, window_bounds = array<i64: 2, 2048>}, {transform_indices = @transform_1, window_bounds = array<i64: 2048, 512>}, {transform_indices = @transform_2, window_bounds = array<i64: 1, 512>}, {transform_indices = @transform_3, window_bounds = array<i64: 512, 1024>}, {pipeline_mode = #tpu.pipeline_mode<synchronous>, transform_indices = @transform_4, window_bounds = array<i64: 1, 1024>}, {pipeline_mode = #tpu.pipeline_mode<synchronous>, transform_indices = @transform_5, window_bounds = array<i64: 1024, 136>}, {pipeline_mode = #tpu.pipeline_mode<synchronous>, transform_indices = @transform_6, window_bounds = array<i64: 1, 136>}, {pipeline_mode = #tpu.pipeline_mode<synchronous>, transform_indices = @transform_7, window_bounds = array<i64: 2, 136>}]} {
    %c0_i32 = arith.constant 0 : i32
    %0 = arith.cmpi eq, %arg0, %c0_i32 : i32
    %1 = arith.extui %0 : i1 to i32
    %c0_i32_0 = arith.constant 0 : i32
    %2 = arith.cmpi ne, %1, %c0_i32_0 : i32
    scf.if %2 {
      %cst_15 = arith.constant 0.000000e+00 : f32
      %21 = vector.broadcast %cst_15 : f32 to vector<2x1024xf32>
      %c0_16 = arith.constant 0 : index
      %c0_17 = arith.constant 0 : index
      %22 = vector.load %arg9[%c0_16, %c0_17] : memref<2x1024xf32, #tpu.memory_space<vmem>>, vector<2x1024xf32>
      tpu.vector_store %arg9[%c0_16, %c0_17], %21 {strides = array<i32>} : memref<2x1024xf32, #tpu.memory_space<vmem>>, vector<2x1024xf32>,
    } else {
    }
    %c0 = arith.constant 0 : index
    %c0_1 = arith.constant 0 : index
    %3 = vector.load %arg1[%c0, %c0_1] : memref<2x2048xf32, #tpu.memory_space<vmem>>, vector<2x2048xf32>
    %4 = arith.truncf %3 : vector<2x2048xf32> to vector<2x2048xbf16>
    %c0_2 = arith.constant 0 : index
    %c0_3 = arith.constant 0 : index
    %5 = vector.load %arg2[%c0_2, %c0_3] : memref<2048x512xbf16, #tpu.memory_space<vmem>>, vector<2048x512xbf16>
    %cst = arith.constant dense<0.000000e+00> : vector<2x512xf32>
    %6 = tpu.matmul %4, %5, %cst {dimension_numbers = #tpu.dot_dimension_numbers<[1], [0], [0], [1], [0, 0, 1, 1], [], []>} : vector<2x2048xbf16>, vector<2048x512xbf16>, vector<2x512xf32> -> vector<2x512xf32>
    %c0_4 = arith.constant 0 : index
    %c0_5 = arith.constant 0 : index
    %7 = vector.load %arg3[%c0_4, %c0_5] : memref<1x512xf32, #tpu.memory_space<vmem>>, vector<1x512xf32>
    %8 = vector.broadcast %7 : vector<1x512xf32> to vector<2x512xf32>
    %9 = arith.addf %6, %8 : vector<2x512xf32>
    %cst_6 = arith.constant 0.000000e+00 : f32
    %10 = vector.broadcast %cst_6 : f32 to vector<2x512xf32>
    %11 = arith.maximumf %9, %10 : vector<2x512xf32>
    %c0_7 = arith.constant 0 : index
    %c0_8 = arith.constant 0 : index
    %12 = vector.load %arg9[%c0_7, %c0_8] : memref<2x1024xf32, #tpu.memory_space<vmem>>, vector<2x1024xf32>
    %13 = arith.truncf %11 : vector<2x512xf32> to vector<2x512xbf16>
    %c0_9 = arith.constant 0 : index
    %c0_10 = arith.constant 0 : index
    %14 = vector.load %arg4[%c0_9, %c0_10] : memref<512x1024xbf16, #tpu.memory_space<vmem>>, vector<512x1024xbf16>
    %cst_11 = arith.constant dense<0.000000e+00> : vector<2x1024xf32>
    %15 = tpu.matmul %13, %14, %cst_11 {dimension_numbers = #tpu.dot_dimension_numbers<[1], [0], [0], [1], [0, 0, 1, 1], [], []>} : vector<2x512xbf16>, vector<512x1024xbf16>, vector<2x1024xf32> -> vector<2x1024xf32>
    %16 = arith.addf %12, %15 : vector<2x1024xf32>
    %c0_12 = arith.constant 0 : index
    %c0_13 = arith.constant 0 : index
    %17 = vector.load %arg9[%c0_12, %c0_13] : memref<2x1024xf32, #tpu.memory_space<vmem>>, vector<2x1024xf32>
    tpu.vector_store %arg9[%c0_12, %c0_13], %16 {strides = array<i32>} : memref<2x1024xf32, #tpu.memory_space<vmem>>, vector<2x1024xf32>,
    %c1_i32 = arith.constant 1 : i32
    %18 = arith.cmpi eq, %arg0, %c1_i32 : i32
    %19 = arith.extui %18 : i1 to i32
    %c0_i32_14 = arith.constant 0 : i32
    %20 = arith.cmpi ne, %19, %c0_i32_14 : i32
    scf.if %20 {
      %c0_15 = arith.constant 0 : index
      %c0_16 = arith.constant 0 : index
      %21 = vector.load %arg9[%c0_15, %c0_16] : memref<2x1024xf32, #tpu.memory_space<vmem>>, vector<2x1024xf32>
      %c0_17 = arith.constant 0 : index
      %c0_18 = arith.constant 0 : index
      %22 = vector.load %arg5[%c0_17, %c0_18] : memref<1x1024xf32, #tpu.memory_space<vmem>>, vector<1x1024xf32>
      %23 = vector.broadcast %22 : vector<1x1024xf32> to vector<2x1024xf32>
      %24 = arith.addf %21, %23 : vector<2x1024xf32>
      %cst_19 = arith.constant 0.000000e+00 : f32
      %25 = vector.broadcast %cst_19 : f32 to vector<2x1024xf32>
      %26 = arith.maximumf %24, %25 : vector<2x1024xf32>
      %27 = arith.truncf %26 : vector<2x1024xf32> to vector<2x1024xbf16>
      %c0_20 = arith.constant 0 : index
      %c0_21 = arith.constant 0 : index
      %28 = vector.load %arg6[%c0_20, %c0_21] : memref<1024x136xbf16, #tpu.memory_space<vmem>>, vector<1024x136xbf16>
      %cst_22 = arith.constant dense<0.000000e+00> : vector<2x136xf32>
      %29 = tpu.matmul %27, %28, %cst_22 {dimension_numbers = #tpu.dot_dimension_numbers<[1], [0], [0], [1], [0, 0, 1, 1], [], []>} : vector<2x1024xbf16>, vector<1024x136xbf16>, vector<2x136xf32> -> vector<2x136xf32>
      %c0_23 = arith.constant 0 : index
      %c0_24 = arith.constant 0 : index
      %30 = vector.load %arg7[%c0_23, %c0_24] : memref<1x136xf32, #tpu.memory_space<vmem>>, vector<1x136xf32>
      %31 = vector.broadcast %30 : vector<1x136xf32> to vector<2x136xf32>
      %32 = arith.addf %29, %31 : vector<2x136xf32>
      %c0_25 = arith.constant 0 : index
      %c0_26 = arith.constant 0 : index
      %33 = vector.load %arg8[%c0_25, %c0_26] : memref<2x136xf32, #tpu.memory_space<vmem>>, vector<2x136xf32>
      tpu.vector_store %arg8[%c0_25, %c0_26], %32 {strides = array<i32>} : memref<2x136xf32, #tpu.memory_space<vmem>>, vector<2x136xf32>,
    } else {
    }
    return
  }
  func.func @transform_0(%arg0: i32) -> (i32, i32) {
    %c0_i32 = arith.constant 0 : i32
    %c0_i32_0 = arith.constant 0 : i32
    %c0_i32_1 = arith.constant 0 : i32
    return %c0_i32, %c0_i32_0 : i32, i32
  }
  func.func @transform_1(%arg0: i32) -> (i32, i32) {
    %c0_i32 = arith.constant 0 : i32
    %c0_i32_0 = arith.constant 0 : i32
    return %c0_i32, %arg0 : i32, i32
  }
  func.func @transform_2(%arg0: i32) -> (i32, i32) {
    %c0_i32 = arith.constant 0 : i32
    %c0_i32_0 = arith.constant 0 : i32
    return %c0_i32, %arg0 : i32, i32
  }
  func.func @transform_3(%arg0: i32) -> (i32, i32) {
    %c0_i32 = arith.constant 0 : i32
    %c0_i32_0 = arith.constant 0 : i32
    return %arg0, %c0_i32 : i32, i32
  }
  func.func @transform_4(%arg0: i32) -> (i32, i32) {
    %c0_i32 = arith.constant 0 : i32
    %c0_i32_0 = arith.constant 0 : i32
    %c0_i32_1 = arith.constant 0 : i32
    return %c0_i32, %c0_i32_0 : i32, i32
  }
  func.func @transform_5(%arg0: i32) -> (i32, i32) {
    %c0_i32 = arith.constant 0 : i32
    %c0_i32_0 = arith.constant 0 : i32
    %c0_i32_1 = arith.constant 0 : i32
    return %c0_i32, %c0_i32_0 : i32, i32
  }
  func.func @transform_6(%arg0: i32) -> (i32, i32) {
    %c0_i32 = arith.constant 0 : i32
    %c0_i32_0 = arith.constant 0 : i32
    %c0_i32_1 = arith.constant 0 : i32
    return %c0_i32, %c0_i32_0 : i32, i32
  }
  func.func @transform_7(%arg0: i32) -> (i32, i32) {
    %c0_i32 = arith.constant 0 : i32
    %c0_i32_0 = arith.constant 0 : i32
    %c0_i32_1 = arith.constant 0 : i32
    return %c0_i32, %c0_i32_0 : i32, i32
  }
}

</mosaic_0001>

<bundles_post_ra>
// kernel: vgg11_maxp2_forward.3
= control target key start
LH: loop header
LB: loop body
LE: loop exit
PB: predicated region body
PF: predicated region fallthrough
CT: control target
= control target key end

     0   :  { %s1065_s12 = smov 0   ;;  %s1067_s13 = smov 0   ;;  %s1192_s0 = inlined_call_operand.vmem [shape: bf16[2,4,64,128], index: 0, kind: input, shape index: {}]   ;;  %s1193_s1 = inlined_call_operand.vmem [shape: bf16[128,128], index: 1, kind: input, shape index: {}]   ;;  %s1194_s2 = inlined_call_operand.vmem [shape: f32[1,128], index: 2, kind: input, shape index: {}]   ;;  %s1195_s3 = inlined_call_operand.vmem [shape: f32[2,64,128], index: 3, kind: output, shape index: {}]  }
   0x1   :  { %s1069_s14 = smov 0   ;;  %s1071_s15 = smov 0  }
   0x2   :  { %s1073_s16 = smov 0   ;;  %s1075_s17 = smov 0  }
   0x3   :  { %s1077_s18 = smov 0  }
   0x4 LB: > { %s22_s19 = sadd.s32 1, %s1035_s16  ;;  %s25_s20 = sadd.s32 1, %s1039_s17  ;;  %s1043_s18 = sphi %s1077_s18, %s13_s18   ;;  %s1039_s17 = sphi %s1075_s17, %s1201_s17   ;;  %s1035_s16 = sphi %s1073_s16, %s1200_s16   ;;  %s1031_s15 = sphi %s1071_s15, %s1199_s15   ;;  %s1027_s14 = sphi %s1069_s14, %s1198_s14   ;;  %s1023_s13 = sphi %s1067_s13, %s1197_s13   ;;  %s1019_s12 = sphi %s1065_s12, %s1196_s12  }
   0x5   : > { %p23_p0 = scmp.ge.s32.totalorder %s22_s19, 2  ;;  %p41_p1 = scmp.ne.s32.totalorder %s1023_s13, %s1019_s12 }
   0x6   : > { %p42_p2 = scmp.eq.s32.totalorder %s1043_s18, 0  ;;  %s34_s24 = sadd.s32 1, %s1023_s13 }
   0x7   : > { %s1203_s19 = smov (%p23_p0, %s22_s19), 0  ;;  %s1205_s20 = smov (!%p23_p0, %s25_s20), %s1039_s17 }
   0x8   : > { %p43_p3 = por %p42_p2, %p41_p1  ;;  %p27_p4 = scmp.ge.s32.totalorder %s1205_s20, 2 }
   0x9   : > { %s30_s21 = ssub.s32 %s1035_s16, %s1203_s19  ;;  %p756_p6 = scmp.ge.s32.totalorder %s1043_s18, 4 }
   0xa   : > { %s1207_s20 = smov (%p27_p4, %s1205_s20), 0 }
   0xb   : > { %s29_s22 = ssub.s32 %s1039_s17, %s1207_s20  ;;  %143 = sbr.rel (%p756_p6) target bundleno = 29 (0x1d), region = 24 }
   0xc   : > { %s31_s23 = sor.u32 %s30_s21, %s29_s22 }
   0xd   : > { %p32_p5 = scmp.eq.s32.totalorder %s31_s23, 0 }
   0xf   : > { %s1116_s25 = scalar_select %p32_p5, %s1023_s13, %s34_s24  }
  0x12   : > { %146 = sbr.rel (!%p43_p3) target bundleno = 29 (0x1d), region = 28  ;;  %s148_s26 = sand.u32 (%p43_p3), 1, %s1023_s13  }
  0x13   : > { %s758_s27 = sshll.u32 (%p43_p3), %s1035_s16, 2  ;;  %s757_s28 = sshll.u32 (%p43_p3), %s148_s26, 6 }
  0x14   : > { %s759_s29 = sshll.u32 (%p43_p3), %s1039_s17, 5  ;;  %s150_s8 = scalar_lea.vmem (%p43_p3), [#allocation2], %s757_s28 }
  0x15   : > { %s153_s30 = sadd.s32 (%p43_p3), %s759_s29, %s758_s27 }
  0x16   : > { %s760_s4 = sshll.u32 (%p43_p3), %s153_s30, 2 }
  0x17   : > { %s155_s7 = scalar_lea.vmem (%p43_p3), %s1192_s0, %s760_s4 }
  0x18   : > { %v171_v0 = vld [vmem:[%s155_s7] sm:$0xff] (%p43_p3)   ;;  %v175_v1 = vld [vmem:[%s155_s7 + $0x8] sm:$0xff] (%p43_p3)  }
  0x19   : > { %v179_v2 = vld [vmem:[%s155_s7 + $0x20] sm:$0xff]   ;;  %172 = vst [vmem:[%s150_s8] sm:$0xff] %v171_v0   ;;  %176 = vst [vmem:[%s150_s8 + $0x8] sm:$0xff] %v175_v1   ;;  %v183_v3 = vld [vmem:[%s155_s7 + $0x28] sm:$0xff]  }
  0x1a   : > { %180 = vst [vmem:[%s150_s8 + $0x10] sm:$0xff] %v179_v2   ;;  %v187_v4 = vld [vmem:[%s155_s7 + $0x40] sm:$0xff]   ;;  %v191_v5 = vld [vmem:[%s155_s7 + $0x48] sm:$0xff]   ;;  %184 = vst [vmem:[%s150_s8 + $0x18] sm:$0xff] %v183_v3  }
  0x1b   : > { %188 = vst [vmem:[%s150_s8 + $0x20] sm:$0xff] %v187_v4   ;;  %192 = vst [vmem:[%s150_s8 + $0x28] sm:$0xff] %v191_v5   ;;  %v195_v6 = vld [vmem:[%s155_s7 + $0x60] sm:$0xff]   ;;  %v199_v7 = vld [vmem:[%s155_s7 + $0x68] sm:$0xff]  }
  0x1c   : > { %196 = vst [vmem:[%s150_s8 + $0x30] sm:$0xff] %v195_v6   ;;  %200 = vst [vmem:[%s150_s8 + $0x38] sm:$0xff] %v199_v7  }
  0x1d PF: > { %p761_p7 = scmp.ge.s32.totalorder %s1043_s18, 1  ;;  %p256_p8 = scmp.lt.s32.totalorder %s1043_s18, 5 }
  0x1f   : > { %p257_p9 = pnand %p761_p7, %p256_p8 }
  0x20   : > { %v973_v8 = vld [vmem:[%s1193_s1] sm:$0xff] (!%p257_p9)   ;;  %s263_s11 = sand.u32 (!%p257_p9), 1, %s1019_s12   ;;  %v974_v9 = vld [vmem:[%s1193_s1 + $0x8] sm:$0xff] (!%p257_p9)   ;;  %v975_v10 = vld [vmem:[%s1193_s1 + $0x10] sm:$0xff] (!%p257_p9)   ;;  %s763_s10 = sshll.u32 (!%p257_p9), %s1027_s14, 2 }
  0x21   : > { %260 = sbr.rel (%p257_p9) target bundleno = 321 (0x141), region = 69  ;;  %837 = vmatprep.subr.bf16.mxu0 (!%p257_p9), %v973_v8  ;;  %857 = vmatprep.subr.bf16.mxu1 (!%p257_p9), %v973_v8  ;;  %s762_s23 = sshll.u32 (!%p257_p9), %s263_s11, 6  ;;  %v976_v11 = vld [vmem:[%s1193_s1 + $0x18] sm:$0xff] (!%p257_p9)   ;;  %v977_v14 = vld [vmem:[%s1193_s1 + $0x20] sm:$0xff] (!%p257_p9)   ;;  %v978_v15 = vld [vmem:[%s1193_s1 + $0x28] sm:$0xff] (!%p257_p9)  }
  0x22   : > { %838 = vmatpush3.bf16.msra.mxu0 (!%p257_p9), %v973_v8  ;;  %858 = vmatpush3.bf16.msra.mxu1 (!%p257_p9), %v973_v8  ;;  %s1140_s12 = scalar_lea.vmem (!%p257_p9), [#allocation2], %s762_s23  ;;  %v979_v16 = vld [vmem:[%s1193_s1 + $0x30] sm:$0xff] (!%p257_p9)   ;;  %v980_v17 = vld [vmem:[%s1193_s1 + $0x38] sm:$0xff] (!%p257_p9)   ;;  %p292_p10 = scmp.lt.s32.totalorder (!%p257_p9), %s1031_s15, 1  ;;  %v794_v41 = vld [vmem:[%s1194_s2] ss:$0 sm:$0xff] (!%p257_p9) }
  0x23   : > { %839 = vmatprep.subr.bf16.mxu0 (!%p257_p9), %v974_v9  ;;  %859 = vmatprep.subr.bf16.mxu1 (!%p257_p9), %v974_v9  ;;  %v981_v12 = vld [vmem:[%s1140_s12] sm:$0xff] (!%p257_p9)   ;;  %v982_v13 = vld [vmem:[%s1140_s12 + $0x10] sm:$0xff] (!%p257_p9)   ;;  %v983_v18 = vld [vmem:[%s1140_s12 + $0x8] sm:$0xff] (!%p257_p9)   ;;  %p294_p11 = scmp.lt.s32.totalorder (!%p257_p9), %s763_s10, 7 }
  0x24   : > { %853 = vmatprep.mubr.bf16.mxu0 (!%p257_p9), %v981_v12  ;;  %873 = vmatprep.mubr.bf16.mxu1 (!%p257_p9), %v982_v13  ;;  %v984_v19 = vld [vmem:[%s1140_s12 + $0x18] sm:$0xff] (!%p257_p9)   ;;  %v985_v20 = vld [vmem:[%s1140_s12 + $0x20] sm:$0xff] (!%p257_p9)   ;;  %v986_v21 = vld [vmem:[%s1140_s12 + $0x30] sm:$0xff] (!%p257_p9)  }
  0x25   : > { %v987_v22 = vld [vmem:[%s1140_s12 + $0x28] sm:$0xff] (!%p257_p9)   ;;  %v988_v23 = vld [vmem:[%s1140_s12 + $0x38] sm:$0xff] (!%p257_p9)  }
  0x26   : > { %840 = vmatpush3.bf16.msra.mxu0 (!%p257_p9), %v974_v9  ;;  %860 = vmatpush3.bf16.msra.mxu1 (!%p257_p9), %v974_v9 }
  0x27   : > { %841 = vmatprep.subr.bf16.mxu0 (!%p257_p9), %v975_v10  ;;  %861 = vmatprep.subr.bf16.mxu1 (!%p257_p9), %v975_v10 }
  0x28   : > { %s1209_s15 = smov (!%p292_p10, %s1031_s15), 1  ;;  %s1211_s10 = smov (!%p294_p11, %s763_s10), 7 }
  0x29   : > { %s764_s11 = sshll.u32 %s1209_s15, 3 }
  0x2a   : > { %842 = vmatpush3.bf16.msra.mxu0 %v975_v10  ;;  %862 = vmatpush3.bf16.msra.mxu1 %v975_v10  ;;  %s297_s21 = sadd.s32 %s764_s11, %s1211_s10 }
  0x2b   : > { %843 = vmatprep.subr.bf16.mxu0 %v976_v11  ;;  %863 = vmatprep.subr.bf16.mxu1 %v976_v11  ;;  %s765_s24 = sshll.u32 %s297_s21, 3 }
  0x2c   : > { %s299_s26 = scalar_lea.vmem %s1195_s3, %s765_s24 }
  0x2e   : > { %844 = vmatpush3.bf16.msra.mxu0 %v976_v11  ;;  %864 = vmatpush3.bf16.msra.mxu1 %v976_v11 }
  0x2f   : > { %845 = vmatprep.subr.bf16.mxu0 %v977_v14  ;;  %865 = vmatprep.subr.bf16.mxu1 %v977_v14 }
  0x32   : > { %846 = vmatpush3.bf16.msra.mxu0 %v977_v14  ;;  %866 = vmatpush3.bf16.msra.mxu1 %v977_v14 }
  0x33   : > { %847 = vmatprep.subr.bf16.mxu0 %v978_v15  ;;  %867 = vmatprep.subr.bf16.mxu1 %v978_v15 }
  0x36   : > { %848 = vmatpush3.bf16.msra.mxu0 %v978_v15  ;;  %868 = vmatpush3.bf16.msra.mxu1 %v978_v15 }
  0x37   : > { %849 = vmatprep.subr.bf16.mxu0 %v979_v16  ;;  %869 = vmatprep.subr.bf16.mxu1 %v979_v16 }
  0x3a   : > { %850 = vmatpush3.bf16.msra.mxu0 %v979_v16  ;;  %870 = vmatpush3.bf16.msra.mxu1 %v979_v16 }
  0x3b   : > { %851 = vmatprep.subr.bf16.mxu0 %v980_v17  ;;  %871 = vmatprep.subr.bf16.mxu1 %v980_v17 }
  0x3e   : > { %852 = vmatpush3.bf16.msra.mxu0 %v980_v17  ;;  %872 = vmatpush3.bf16.msra.mxu1 %v980_v17 }
  0x3f   : > { %877 = vmatprep.subr.bf16.mxu0 %v973_v8  ;;  %897 = vmatprep.subr.bf16.mxu1 %v973_v8 }
  0x41   : > { %854 = vmatmul.mubr.bf16.vlgmr.msra.gmra.mrb[0].mxu0 %v983_v18  ;;  %874 = vmatmul.mubr.bf16.vlgmr.msra.gmra.mrb[0].mxu1 %v984_v19 }
  0x42   : > { %878 = vmatpush3.bf16.msra.mxu0 %v973_v8  ;;  %898 = vmatpush3.bf16.msra.mxu1 %v973_v8 }
  0x43   : > { %879 = vmatprep.subr.bf16.mxu0 %v974_v9  ;;  %899 = vmatprep.subr.bf16.mxu1 %v974_v9 }
  0x44   : > { %893 = vmatprep.mubr.bf16.mxu0 %v985_v20  ;;  %913 = vmatprep.mubr.bf16.mxu1 %v986_v21 }
  0x46   : > { %880 = vmatpush3.bf16.msra.mxu0 %v974_v9  ;;  %900 = vmatpush3.bf16.msra.mxu1 %v974_v9 }
  0x47   : > { %881 = vmatprep.subr.bf16.mxu0 %v975_v10  ;;  %901 = vmatprep.subr.bf16.mxu1 %v975_v10 }
  0x4a   : > { %882 = vmatpush3.bf16.msra.mxu0 %v975_v10  ;;  %902 = vmatpush3.bf16.msra.mxu1 %v975_v10 }
  0x4b   : > { %883 = vmatprep.subr.bf16.mxu0 %v976_v11  ;;  %903 = vmatprep.subr.bf16.mxu1 %v976_v11 }
  0x4e   : > { %884 = vmatpush3.bf16.msra.mxu0 %v976_v11  ;;  %904 = vmatpush3.bf16.msra.mxu1 %v976_v11 }
  0x4f   : > { %885 = vmatprep.subr.bf16.mxu0 %v977_v14  ;;  %905 = vmatprep.subr.bf16.mxu1 %v977_v14 }
  0x52   : > { %886 = vmatpush3.bf16.msra.mxu0 %v977_v14  ;;  %906 = vmatpush3.bf16.msra.mxu1 %v977_v14 }
  0x53   : > { %887 = vmatprep.subr.bf16.mxu0 %v978_v15  ;;  %907 = vmatprep.subr.bf16.mxu1 %v978_v15 }
  0x56   : > { %888 = vmatpush3.bf16.msra.mxu0 %v978_v15  ;;  %908 = vmatpush3.bf16.msra.mxu1 %v978_v15 }
  0x57   : > { %889 = vmatprep.subr.bf16.mxu0 %v979_v16  ;;  %909 = vmatprep.subr.bf16.mxu1 %v979_v16 }
  0x5a   : > { %890 = vmatpush3.bf16.msra.mxu0 %v979_v16  ;;  %910 = vmatpush3.bf16.msra.mxu1 %v979_v16 }
  0x5b   : > { %891 = vmatprep.subr.bf16.mxu0 %v980_v17  ;;  %911 = vmatprep.subr.bf16.mxu1 %v980_v17 }
  0x5e   : > { %892 = vmatpush3.bf16.msra.mxu0 %v980_v17  ;;  %912 = vmatpush3.bf16.msra.mxu1 %v980_v17 }
  0x61   : > { %894 = vmatmul.mubr.bf16.vlgmr.msra.gmra.mrb[4].mxu0 %v987_v22  ;;  %914 = vmatmul.mubr.bf16.vlgmr.msra.gmra.mrb[4].mxu1 %v988_v23 }
 0x114   : > { %v855_v24 = vpop.f32.mrb[0].mxu0  ;;  %v875_v25 = vpop.f32.mrb[0].mxu1 }
 0x115   : > { %v499_v26 = vmax.f32 %v855_v24, %v875_v25  ;;  %v416_v27 = vpop.f32.mrb[1].mxu0  ;;  %v482_v28 = vpop.f32.mrb[1].mxu1 }
 0x116   : > { %v497_v29 = vmax.f32 %v416_v27, %v482_v28  ;;  %v856_v30 = vpop.f32.mrb[2].mxu0  ;;  %v876_v31 = vpop.f32.mrb[2].mxu1 }
 0x117   : > { %v500_v32 = vmax.f32 %v856_v30, %v876_v31  ;;  %v419_v33 = vpop.f32.mrb[3].mxu0  ;;  %v485_v34 = vpop.f32.mrb[3].mxu1 }
 0x118   : > { %v498_v35 = vmax.f32 %v419_v33, %v485_v34 }
 0x134   : > { %v895_v36 = vpop.f32.mrb[4].mxu0  ;;  %v915_v37 = vpop.f32.mrb[4].mxu1 }
 0x135   : > { %v569_v38 = vmax.f32 %v499_v26, %v895_v36  ;;  %v552_v39 = vpop.f32.mrb[5].mxu0  ;;  %v622_v40 = vpop.f32.mrb[5].mxu1 }
 0x136   : > { %v567_v42 = vmax.f32 %v497_v29, %v552_v39  ;;  %v896_v43 = vpop.f32.mrb[6].mxu0  ;;  %v916_v44 = vpop.f32.mrb[6].mxu1 }
 0x137   : > { %v639_v45 = vmax.f32 %v569_v38, %v915_v37  ;;  %v570_v46 = vmax.f32 %v500_v32, %v896_v43  ;;  %v555_v47 = vpop.f32.mrb[7].mxu0  ;;  %v625_v48 = vpop.f32.mrb[7].mxu1 }
 0x138   : > { %v637_v49 = vmax.f32 %v567_v42, %v622_v40  ;;  %v568_v50 = vmax.f32 %v498_v35, %v555_v47 }
 0x139   : > { %v650_v51 = vadd.f32 %v794_v41, %v639_v45  ;;  %v640_v52 = vmax.f32 %v570_v46, %v916_v44 }
 0x13a   : > { %v648_v53 = vadd.f32 %v794_v41, %v637_v49  ;;  %v638_v54 = vmax.f32 %v568_v50, %v625_v48 }
 0x13b   : > { %v654_v55 = vmax.f32 %v650_v51, 0.0  ;;  %v651_v56 = vadd.f32 %v794_v41, %v640_v52 }
 0x13c   : > { %v652_v57 = vmax.f32 %v648_v53, 0.0  ;;  %v649_v58 = vadd.f32 %v794_v41, %v638_v54 }
 0x13d   : > { %658 = vst [vmem:[%s299_s26 + $0x10] sm:$0xff] %v654_v55  ;;  %v655_v59 = vmax.f32 %v651_v56, 0.0 }
 0x13e   : > { %656 = vst [vmem:[%s299_s26] sm:$0xff] %v652_v57  ;;  %v653_v60 = vmax.f32 %v649_v58, 0.0 }
 0x13f   : > { %659 = vst [vmem:[%s299_s26 + $0x18] sm:$0xff] %v655_v59 }
 0x140   : > { %657 = vst [vmem:[%s299_s26 + $0x8] sm:$0xff] %v653_v60 }
 0x141 PF: > { %s13_s18 = sadd.s32 1, %s1043_s18   ;;  %s1196_s12 = smov %s1023_s13 }
 0x142   : > { %p10_p12 = scmp.ge.s32.totalorder %s13_s18, 6   ;;  %s1197_s13 = smov %s1116_s25 }
 0x143   : > { %s1198_s14 = smov %s1035_s16  ;;  %s1199_s15 = smov %s1039_s17 }
 0x144   : > { %s1200_s16 = smov %s1203_s19  ;;  %s1201_s17 = smov %s1207_s20 }
 0x145   :  { %12 = sbr.rel (!%p10_p12) target bundleno = 4 (0x4), region = 111 }

// kernel: vgg11_maxp2_forward.4
= control target key start
LH: loop header
LB: loop body
LE: loop exit
PB: predicated region body
PF: predicated region fallthrough
CT: control target
= control target key end

     0   :  { %s1745_s12 = smov 0   ;;  %s1747_s13 = smov 0   ;;  %s2205_s0 = inlined_call_operand.vmem [shape: bf16[2,4,16,576], index: 0, kind: input, shape index: {}]   ;;  %s2206_s1 = inlined_call_operand.vmem [shape: bf16[576,128], index: 1, kind: input, shape index: {}]   ;;  %s2207_s2 = inlined_call_operand.vmem [shape: f32[1,128], index: 2, kind: input, shape index: {}]   ;;  %s2208_s3 = inlined_call_operand.vmem [shape: f32[2,16,128], index: 3, kind: output, shape index: {}]  }
   0x1   :  { %s1749_s14 = smov 0   ;;  %s1751_s15 = smov 0  }
   0x2   :  { %s1753_s16 = smov 0   ;;  %s1755_s17 = smov 0  }
   0x3   :  { %s1757_s18 = smov 0  }
   0x4 LB: > { %s22_s19 = sadd.s32 1, %s1713_s16  ;;  %s25_s20 = sadd.s32 1, %s1717_s17  ;;  %s1721_s18 = sphi %s1757_s18, %s13_s18   ;;  %s1717_s17 = sphi %s1755_s17, %s2214_s17   ;;  %s1713_s16 = sphi %s1753_s16, %s2213_s16   ;;  %s1709_s15 = sphi %s1751_s15, %s2212_s15   ;;  %s1705_s14 = sphi %s1749_s14, %s2211_s14   ;;  %s1701_s13 = sphi %s1747_s13, %s2210_s13   ;;  %s1697_s12 = sphi %s1745_s12, %s2209_s12  }
   0x5   : > { %p23_p0 = scmp.ge.s32.totalorder %s22_s19, 2  ;;  %p41_p1 = scmp.ne.s32.totalorder %s1701_s13, %s1697_s12 }
   0x6   : > { %p42_p2 = scmp.eq.s32.totalorder %s1721_s18, 0  ;;  %s34_s24 = sadd.s32 1, %s1701_s13 }
   0x7   : > { %s2216_s19 = smov (%p23_p0, %s22_s19), 0  ;;  %s2218_s20 = smov (!%p23_p0, %s25_s20), %s1717_s17 }
   0x8   : > { %p43_p3 = por %p42_p2, %p41_p1  ;;  %p27_p4 = scmp.ge.s32.totalorder %s2218_s20, 2 }
   0x9   : > { %s30_s21 = ssub.s32 %s1713_s16, %s2216_s19  ;;  %p1220_p6 = scmp.ge.s32.totalorder %s1721_s18, 4 }
   0xa   : > { %s2220_s20 = smov (%p27_p4, %s2218_s20), 0 }
   0xb   : > { %s29_s22 = ssub.s32 %s1717_s17, %s2220_s20  ;;  %143 = sbr.rel (%p1220_p6) target bundleno = 33 (0x21), region = 24 }
   0xc   : > { %s31_s23 = sor.u32 %s30_s21, %s29_s22 }
   0xd   : > { %p32_p5 = scmp.eq.s32.totalorder %s31_s23, 0 }
   0xf   : > { %s1796_s25 = scalar_select %p32_p5, %s1701_s13, %s34_s24  }
  0x12   : > { %146 = sbr.rel (!%p43_p3) target bundleno = 33 (0x21), region = 28  ;;  %s148_s26 = sand.u32 (%p43_p3), 1, %s1701_s13  }
  0x13   : > { %s1550_s27 = smul.u32 (%p43_p3), 5, %s1713_s16 }
  0x14   : > { %s1549_s28 = smul.u32 (%p43_p3), 80, %s148_s26 }
  0x15   : > { %s1551_s29 = smul.u32 (%p43_p3), 40, %s1717_s17 }
  0x16   : > { %s150_s8 = scalar_lea.vmem (%p43_p3), [#allocation2], %s1549_s28 }
  0x17   : > { %s153_s30 = sadd.s32 (%p43_p3), %s1551_s29, %s1550_s27 }
  0x18   : > { %s1221_s4 = sshll.u32 (%p43_p3), %s153_s30, 2 }
  0x19   : > { %s155_s7 = scalar_lea.vmem %s2205_s0, %s1221_s4 }
  0x1a   : > { %v170_v0 = vld [vmem:[%s155_s7] sm:$0xff]  ;;  %v172_v1 = vld [vmem:[%s155_s7 + $0x8] sm:$0xff]  ;;  %v176_v3 = vld [vmem:[%s155_s7 + $0x30] sm:$0xff] }
  0x1b   : > { %v174_v2 = vld [vmem:[%s155_s7 + $0x28] sm:$0xff]  ;;  %171 = vst [vmem:[%s150_s8] sm:$0xff] %v170_v0  ;;  %173 = vst [vmem:[%s150_s8 + $0x8] sm:$0xff] %v172_v1  ;;  %v178_v4 = vld [vmem:[%s155_s7 + $0x50] sm:$0xff] }
  0x1c   : > { %175 = vst [vmem:[%s150_s8 + $0x14] sm:$0xff] %v174_v2  ;;  %v180_v5 = vld [vmem:[%s155_s7 + $0x58] sm:$0xff]  ;;  %177 = vst [vmem:[%s150_s8 + $0x1c] sm:$0xff] %v176_v3  ;;  %v184_v7 = vld [vmem:[%s155_s7 + $0x80] sm:$0xff] }
  0x1d   : > { %179 = vst [vmem:[%s150_s8 + $0x28] sm:$0xff] %v178_v4  ;;  %181 = vst [vmem:[%s150_s8 + $0x30] sm:$0xff] %v180_v5  ;;  %v182_v6 = vld [vmem:[%s155_s7 + $0x78] sm:$0xff]  ;;  %v1222_v8 = vld [vmem:[%s155_s7 + $0x10] sm:$0xf] }
  0x1e   : > { %183 = vst [vmem:[%s150_s8 + $0x3c] sm:$0xff] %v182_v6  ;;  %185 = vst [vmem:[%s150_s8 + $0x44] sm:$0xff] %v184_v7  ;;  %v1224_v9 = vld [vmem:[%s155_s7 + $0x38] sm:$0xf]  ;;  %v1226_v10 = vld [vmem:[%s155_s7 + $0x60] sm:$0xf] }
  0x1f   : > { %1223 = vst [vmem:[%s150_s8 + $0x10] sm:$0xf] %v1222_v8  ;;  %v1228_v11 = vld [vmem:[%s155_s7 + $0x88] sm:$0xf]  ;;  %1225 = vst [vmem:[%s150_s8 + $0x24] sm:$0xf] %v1224_v9 }
  0x20   : > { %1227 = vst [vmem:[%s150_s8 + $0x38] sm:$0xf] %v1226_v10  ;;  %1229 = vst [vmem:[%s150_s8 + $0x4c] sm:$0xf] %v1228_v11 }
  0x21 PF: > { %p1230_p7 = scmp.ge.s32.totalorder %s1721_s18, 1  ;;  %p205_p8 = scmp.lt.s32.totalorder %s1721_s18, 5 }
  0x23   : > { %p206_p9 = pnand %p1230_p7, %p205_p8 }
  0x24   : > { %v1810_v12 = vld [vmem:[%s2206_s1 + $0x40] sm:$0xff] (!%p206_p9)   ;;  %v1833_v16 = vld [vmem:[%s2206_s1 + $0x48] sm:$0xff] (!%p206_p9)   ;;  %v1857_v20 = vld [vmem:[%s2206_s1 + $0x50] sm:$0xff] (!%p206_p9)   ;;  %s212_s4 = sand.u32 (!%p206_p9), 1, %s1697_s12   ;;  %v1723_v51 = vmov (!%p206_p9), 0.0   ;;  %vm1724_vm0 = vmmov (!%p206_p9), 0  }
  0x25   : > { %209 = sbr.rel (%p206_p9) target bundleno = 424 (0x1a8), region = 54  ;;  %v1815_v13 = vld [vmem:[%s2206_s1 + $0xc0] sm:$0xff] (!%p206_p9)   ;;  %1305 = vmatprep.subr.bf16.mxu0 (!%p206_p9), %v1810_v12  ;;  %v1839_v17 = vld [vmem:[%s2206_s1 + $0xc8] sm:$0xff] (!%p206_p9)   ;;  %v1863_v21 = vld [vmem:[%s2206_s1 + $0xd0] sm:$0xff] (!%p206_p9)   ;;  %vm555_vm1 = vcmask (!%p206_p9), 523264   ;;  %p238_p10 = scmp.lt.s32.totalorder (!%p206_p9), %s1709_s15, 1 }
  0x26   : > { %v1821_v14 = vld [vmem:[%s2206_s1] sm:$0xff] (!%p206_p9)   ;;  %1327 = vmatprep.subr.bf16.mxu1 (!%p206_p9), %v1815_v13  ;;  %v1845_v18 = vld [vmem:[%s2206_s1 + $0x8] sm:$0xff] (!%p206_p9)   ;;  %v1869_v22 = vld [vmem:[%s2206_s1 + $0x10] sm:$0xff] (!%p206_p9)   ;;  %s1552_s12 = smul.u32 (!%p206_p9), 80, %s212_s4  ;;  %p240_p11 = scmp.lt.s32.totalorder (!%p206_p9), %s1705_s14, 1 }
  0x27   : > { %v1827_v15 = vld [vmem:[%s2206_s1 + $0x80] sm:$0xff] (!%p206_p9)   ;;  %1306 = vmatpush3.bf16.msra.mxu0 (!%p206_p9), %v1821_v14  ;;  %v1851_v19 = vld [vmem:[%s2206_s1 + $0x88] sm:$0xff] (!%p206_p9)   ;;  %v1875_v23 = vld [vmem:[%s2206_s1 + $0x90] sm:$0xff] (!%p206_p9)  }
  0x28   : > { %1328 = vmatpush3.bf16.msra.mxu1 (!%p206_p9), %v1827_v15  ;;  %1307 = vmatprep.subr.bf16.mxu0 (!%p206_p9), %v1833_v16  ;;  %v1881_v24 = vld [vmem:[%s2206_s1 + $0x58] sm:$0xff] (!%p206_p9)   ;;  %v1905_v28 = vld [vmem:[%s2206_s1 + $0x60] sm:$0xff] (!%p206_p9)   ;;  %v1929_v32 = vld [vmem:[%s2206_s1 + $0x68] sm:$0xff] (!%p206_p9)   ;;  %s1999_s6 = scalar_lea.vmem (!%p206_p9), [#allocation2], %s1552_s12 }
  0x29   : > { %1329 = vmatprep.subr.bf16.mxu1 (!%p206_p9), %v1839_v17  ;;  %v1887_v25 = vld [vmem:[%s2206_s1 + $0xd8] sm:$0xff] (!%p206_p9)   ;;  %v1911_v29 = vld [vmem:[%s2206_s1 + $0xe0] sm:$0xff] (!%p206_p9)   ;;  %v1935_v33 = vld [vmem:[%s2206_s1 + $0xe8] sm:$0xff] (!%p206_p9)  }
  0x2a   : > { %v1893_v26 = vld [vmem:[%s2206_s1 + $0x18] sm:$0xff] (!%p206_p9)   ;;  %v1917_v30 = vld [vmem:[%s2206_s1 + $0x20] sm:$0xff] (!%p206_p9)   ;;  %v1941_v34 = vld [vmem:[%s2206_s1 + $0x28] sm:$0xff] (!%p206_p9)  }
  0x2b   : > { %1308 = vmatpush3.bf16.msra.mxu0 (!%p206_p9), %v1845_v18  ;;  %v1899_v27 = vld [vmem:[%s2206_s1 + $0x98] sm:$0xff] (!%p206_p9)   ;;  %v1923_v31 = vld [vmem:[%s2206_s1 + $0xa0] sm:$0xff] (!%p206_p9)   ;;  %v1948_v35 = vld [vmem:[%s2206_s1 + $0xa8] sm:$0xff] (!%p206_p9)  }
  0x2c   : > { %1330 = vmatpush3.bf16.msra.mxu1 %v1851_v19  ;;  %1309 = vmatprep.subr.bf16.mxu0 %v1857_v20  ;;  %v1954_v36 = vld [vmem:[%s2206_s1 + $0x70] sm:$0xff]   ;;  %v1978_v40 = vld [vmem:[%s2206_s1 + $0x78] sm:$0xff]   ;;  %v2007_v50 = vld [vmem:[%s2206_s1 + $0x100] sm:$0xff]   ;;  %s2222_s15 = smov (!%p238_p10, %s1709_s15), 1  ;;  %s2224_s14 = smov (!%p240_p11, %s1705_s14), 1 }
  0x2d   : > { %1331 = vmatprep.subr.bf16.mxu1 %v1863_v21  ;;  %v1960_v37 = vld [vmem:[%s2206_s1 + $0xf0] sm:$0xff]   ;;  %v1984_v41 = vld [vmem:[%s2206_s1 + $0xf8] sm:$0xff]   ;;  %v2016_v52 = vld [vmem:[%s2206_s1 + $0x108] sm:$0xff]   ;;  %s1231_s23 = sshll.u32 %s2222_s15, 1 }
  0x2e   : > { %v1966_v38 = vld [vmem:[%s2206_s1 + $0x30] sm:$0xff]   ;;  %v1990_v42 = vld [vmem:[%s2206_s1 + $0x38] sm:$0xff]   ;;  %s243_s24 = sadd.s32 %s1231_s23, %s2224_s14 }
  0x2f   : > { %1310 = vmatpush3.bf16.msra.mxu0 %v1869_v22  ;;  %v1972_v39 = vld [vmem:[%s2206_s1 + $0xb0] sm:$0xff]   ;;  %v1996_v43 = vld [vmem:[%s2206_s1 + $0xb8] sm:$0xff]   ;;  %s1232_s28 = sshll.u32 %s243_s24, 3 }
  0x30   : > { %1332 = vmatpush3.bf16.msra.mxu1 %v1875_v23  ;;  %1311 = vmatprep.subr.bf16.mxu0 %v1881_v24  ;;  %v319_v44 = vld [vmem:[%s1999_s6] sm:$0xff]  ;;  %v320_v45 = vld [vmem:[%s1999_s6 + $0x8] sm:$0xff]  ;;  %v1275_v53 = vld [vmem:[%s1999_s6 + $0x14] sm:$0xff]  ;;  %s245_s4 = scalar_lea.vmem %s2208_s3, %s1232_s28 }
  0x31   : > { %1333 = vmatprep.subr.bf16.mxu1 %v1887_v25  ;;  %v1233_v46 = vcombine.low %v319_v44, %v319_v44  ;;  %v1234_v47 = vcombine.high %v319_v44, %v319_v44  ;;  %v1235_v48 = vcombine.low %v320_v45, %v320_v45  ;;  %v1236_v49 = vcombine.high %v320_v45, %v320_v45  ;;  %v2028_v55 = vld [vmem:[%s2206_s1 + $0x110] sm:$0xff]   ;;  %v2037_v56 = vld [vmem:[%s2206_s1 + $0x118] sm:$0xff]  }
  0x32   : > { %v1279_v54 = vcombine.high %v1275_v53, %v1275_v53  ;;  %v1651_v57 = vld [vmem:[%s1999_s6 + $0x10] ss:$0 sps:$4 sm:$0xff]   ;;  %v1276_v58 = vld [vmem:[%s1999_s6 + $0x1c] sm:$0xff]  ;;  %v1278_v60 = vcombine.low %v1275_v53, %v1275_v53  ;;  %v1656_v62 = vld [vmem:[%s1999_s6 + $0x24] ss:$0 sps:$4 sm:$0xff]  }
  0x33   : > { %1312 = vmatpush3.bf16.msra.mxu0 %v1893_v26  ;;  %591 = vmatprep.mubr.bf16.mxu0 %v1234_v47  ;;  %v1281_v59 = vcombine.high %v1276_v58, %v1276_v58  ;;  %v1280_v61 = vcombine.low %v1276_v58, %v1276_v58  ;;  %v1284_v63 = vld [vmem:[%s1999_s6 + $0x28] sm:$0xff]  ;;  %v1285_v0 = vld [vmem:[%s1999_s6 + $0x30] sm:$0xff]  ;;  %v1293_v5 = vld [vmem:[%s1999_s6 + $0x3c] sm:$0xff] }
  0x34   : > { %1334 = vmatpush3.bf16.msra.mxu1 %v1899_v27  ;;  %1313 = vmatprep.subr.bf16.mxu0 %v1905_v28  ;;  %v1288_v1 = vcombine.high %v1284_v63, %v1284_v63  ;;  %v1290_v2 = vcombine.high %v1285_v0, %v1285_v0  ;;  %v1287_v3 = vcombine.low %v1284_v63, %v1284_v63  ;;  %v1661_v7 = vld [vmem:[%s1999_s6 + $0x38] ss:$0 sps:$4 sm:$0xff]   ;;  %v1294_v8 = vld [vmem:[%s1999_s6 + $0x44] sm:$0xff] }
  0x35   : > { %1335 = vmatprep.subr.bf16.mxu1 %v1911_v29  ;;  %631 = vmatprep.mubr.bf16.mxu1 %v1236_v49  ;;  %v1289_v4 = vcombine.low %v1285_v0, %v1285_v0  ;;  %v1297_v6 = vcombine.high %v1293_v5, %v1293_v5  ;;  %v1299_v9 = vcombine.high %v1294_v8, %v1294_v8 }
  0x36   : > { %v1296_v10 = vcombine.low %v1293_v5, %v1293_v5  ;;  %v1298_v11 = vcombine.low %v1294_v8, %v1294_v8 }
  0x37   : > { %1314 = vmatpush3.bf16.msra.mxu0 %v1917_v30 }
  0x38   : > { %1336 = vmatpush3.bf16.msra.mxu1 %v1923_v31  ;;  %1315 = vmatprep.subr.bf16.mxu0 %v1929_v32 }
  0x39   : > { %1337 = vmatprep.subr.bf16.mxu1 %v1935_v33 }
  0x3b   : > { %1316 = vmatpush3.bf16.msra.mxu0 %v1941_v34 }
  0x3c   : > { %1338 = vmatpush3.bf16.msra.mxu1 %v1948_v35  ;;  %1317 = vmatprep.subr.bf16.mxu0 %v1954_v36 }
  0x3d   : > { %1339 = vmatprep.subr.bf16.mxu1 %v1960_v37 }
  0x3f   : > { %1318 = vmatpush3.bf16.msra.mxu0 %v1966_v38 }
  0x40   : > { %1340 = vmatpush3.bf16.msra.mxu1 %v1972_v39  ;;  %1319 = vmatprep.subr.bf16.mxu0 %v1978_v40 }
  0x41   : > { %1341 = vmatprep.subr.bf16.mxu1 %v1984_v41 }
  0x43   : > { %1320 = vmatpush3.bf16.msra.mxu0 %v1990_v42 }
  0x44   : > { %1342 = vmatpush3.bf16.msra.mxu1 %v1996_v43  ;;  %1501 = vmatprep.subr.bf16.mxu0 %v1723_v51 }
  0x45   : > { %1354 = vmatprep.subr.bf16.mxu1 %v1810_v12 }
  0x46   : > { %592 = vmatmul.mubr.bf16.vlgmr.msra.gmra.mrb[0].mxu0 %v1233_v46 }
  0x47   : > { %632 = vmatmul.mubr.bf16.vlgmr.msra.gmra.mrb[0].mxu1 %v1235_v48  ;;  %1502 = vmatpush3.bf16.msra.mxu0 %v2007_v50 }
  0x48   : > { %1355 = vmatpush3.bf16.msra.mxu1 %v1821_v14  ;;  %1503 = vmatprep.subr.bf16.mxu0 %v1723_v51 }
  0x49   : > { %1356 = vmatprep.subr.bf16.mxu1 %v1833_v16  ;;  %1509 = vmatprep.mubr.msk.bf16.mxu0 %vm1724_vm0, %v1723_v51 }
  0x4a   : > { %735 = vmatprep.mubr.bf16.mxu1 %v1279_v54 }
  0x4b   : > { %1504 = vmatpush3.bf16.msra.mxu0 %v2016_v52 }
  0x4c   : > { %1357 = vmatpush3.bf16.msra.mxu1 %v1845_v18  ;;  %1505 = vmatprep.subr.bf16.mxu0 %v1723_v51 }
  0x4d   : > { %1358 = vmatprep.subr.bf16.mxu1 %v1857_v20 }
  0x4f   : > { %1506 = vmatpush3.bf16.msra.mxu0 %v2028_v55 }
  0x50   : > { %1359 = vmatpush3.bf16.msra.mxu1 %v1869_v22  ;;  %1507 = vmatprep.subr.bf16.mxu0 %v1723_v51 }
  0x51   : > { %1360 = vmatprep.subr.bf16.mxu1 %v1881_v24 }
  0x53   : > { %1508 = vmatpush3.bf16.msra.mxu0 %v2037_v56 }
  0x54   : > { %1361 = vmatpush3.bf16.msra.mxu1 %v1893_v26  ;;  %1376 = vmatprep.subr.bf16.mxu0 %v1815_v13 }
  0x55   : > { %1362 = vmatprep.subr.bf16.mxu1 %v1905_v28 }
  0x56   : > { %1510 = vmatmul.mubr.msk.bf16.vlgmr.msra.gmra.mrb[4].mxu0 %vm555_vm1, %v1651_v57 }
  0x57   : > { %1377 = vmatpush3.bf16.msra.mxu0 %v1827_v15  ;;  %775 = vmatprep.mubr.bf16.mxu0 %v1281_v59 }
  0x58   : > { %1363 = vmatpush3.bf16.msra.mxu1 %v1917_v30  ;;  %1378 = vmatprep.subr.bf16.mxu0 %v1839_v17 }
  0x59   : > { %1364 = vmatprep.subr.bf16.mxu1 %v1929_v32 }
  0x5b   : > { %1379 = vmatpush3.bf16.msra.mxu0 %v1851_v19 }
  0x5c   : > { %1365 = vmatpush3.bf16.msra.mxu1 %v1941_v34  ;;  %1380 = vmatprep.subr.bf16.mxu0 %v1863_v21 }
  0x5d   : > { %1366 = vmatprep.subr.bf16.mxu1 %v1954_v36 }
  0x5f   : > { %1381 = vmatpush3.bf16.msra.mxu0 %v1875_v23 }
  0x60   : > { %1367 = vmatpush3.bf16.msra.mxu1 %v1966_v38  ;;  %1382 = vmatprep.subr.bf16.mxu0 %v1887_v25 }
  0x61   : > { %1368 = vmatprep.subr.bf16.mxu1 %v1978_v40 }
  0x63   : > { %1383 = vmatpush3.bf16.msra.mxu0 %v1899_v27 }
  0x64   : > { %1369 = vmatpush3.bf16.msra.mxu1 %v1990_v42  ;;  %1384 = vmatprep.subr.bf16.mxu0 %v1911_v29 }
  0x65   : > { %1513 = vmatprep.subr.bf16.mxu1 %v1723_v51 }
  0x67   : > { %736 = vmatmul.mubr.bf16.vlgmr.msra.gmra.mrb[4].mxu1 %v1278_v60  ;;  %1385 = vmatpush3.bf16.msra.mxu0 %v1923_v31 }
  0x68   : > { %1514 = vmatpush3.bf16.msra.mxu1 %v2007_v50  ;;  %1386 = vmatprep.subr.bf16.mxu0 %v1935_v33 }
  0x69   : > { %1515 = vmatprep.subr.bf16.mxu1 %v1723_v51  ;;  %1521 = vmatprep.mubr.msk.bf16.mxu1 %vm1724_vm0, %v1723_v51 }
  0x6b   : > { %1387 = vmatpush3.bf16.msra.mxu0 %v1948_v35 }
  0x6c   : > { %1516 = vmatpush3.bf16.msra.mxu1 %v2016_v52  ;;  %1388 = vmatprep.subr.bf16.mxu0 %v1960_v37 }
  0x6d   : > { %1517 = vmatprep.subr.bf16.mxu1 %v1723_v51 }
  0x6f   : > { %1389 = vmatpush3.bf16.msra.mxu0 %v1972_v39 }
  0x70   : > { %1518 = vmatpush3.bf16.msra.mxu1 %v2028_v55  ;;  %1390 = vmatprep.subr.bf16.mxu0 %v1984_v41 }
  0x71   : > { %1519 = vmatprep.subr.bf16.mxu1 %v1723_v51 }
  0x73   : > { %1391 = vmatpush3.bf16.msra.mxu0 %v1996_v43 }
  0x74   : > { %1520 = vmatpush3.bf16.msra.mxu1 %v2037_v56  ;;  %1403 = vmatprep.subr.bf16.mxu0 %v1810_v12 }
  0x75   : > { %1425 = vmatprep.subr.bf16.mxu1 %v1815_v13 }
  0x76   : > { %776 = vmatmul.mubr.bf16.vlgmr.msra.gmra.mrb[8].mxu0 %v1280_v61 }
  0x77   : > { %1522 = vmatmul.mubr.msk.bf16.vlgmr.msra.gmra.mrb[8].mxu1 %vm555_vm1, %v1656_v62  ;;  %1404 = vmatpush3.bf16.msra.mxu0 %v1821_v14 }
  0x78   : > { %1426 = vmatpush3.bf16.msra.mxu1 %v1827_v15  ;;  %1405 = vmatprep.subr.bf16.mxu0 %v1833_v16 }
  0x79   : > { %1427 = vmatprep.subr.bf16.mxu1 %v1839_v17  ;;  %880 = vmatprep.mubr.bf16.mxu0 %v1288_v1 }
  0x7a   : > { %920 = vmatprep.mubr.bf16.mxu1 %v1290_v2 }
  0x7b   : > { %1406 = vmatpush3.bf16.msra.mxu0 %v1845_v18 }
  0x7c   : > { %1428 = vmatpush3.bf16.msra.mxu1 %v1851_v19  ;;  %1407 = vmatprep.subr.bf16.mxu0 %v1857_v20 }
  0x7d   : > { %1429 = vmatprep.subr.bf16.mxu1 %v1863_v21 }
  0x7f   : > { %1408 = vmatpush3.bf16.msra.mxu0 %v1869_v22 }
  0x80   : > { %1430 = vmatpush3.bf16.msra.mxu1 %v1875_v23  ;;  %1409 = vmatprep.subr.bf16.mxu0 %v1881_v24 }
  0x81   : > { %1431 = vmatprep.subr.bf16.mxu1 %v1887_v25 }
  0x83   : > { %1410 = vmatpush3.bf16.msra.mxu0 %v1893_v26 }
  0x84   : > { %1432 = vmatpush3.bf16.msra.mxu1 %v1899_v27  ;;  %1411 = vmatprep.subr.bf16.mxu0 %v1905_v28 }
  0x85   : > { %1433 = vmatprep.subr.bf16.mxu1 %v1911_v29 }
  0x87   : > { %1412 = vmatpush3.bf16.msra.mxu0 %v1917_v30 }
  0x88   : > { %1434 = vmatpush3.bf16.msra.mxu1 %v1923_v31  ;;  %1413 = vmatprep.subr.bf16.mxu0 %v1929_v32 }
  0x89   : > { %1435 = vmatprep.subr.bf16.mxu1 %v1935_v33 }
  0x8b   : > { %1414 = vmatpush3.bf16.msra.mxu0 %v1941_v34 }
  0x8c   : > { %1436 = vmatpush3.bf16.msra.mxu1 %v1948_v35  ;;  %1415 = vmatprep.subr.bf16.mxu0 %v1954_v36 }
  0x8d   : > { %1437 = vmatprep.subr.bf16.mxu1 %v1960_v37 }
  0x8f   : > { %1416 = vmatpush3.bf16.msra.mxu0 %v1966_v38 }
  0x90   : > { %1438 = vmatpush3.bf16.msra.mxu1 %v1972_v39  ;;  %1417 = vmatprep.subr.bf16.mxu0 %v1978_v40 }
  0x91   : > { %1439 = vmatprep.subr.bf16.mxu1 %v1984_v41 }
  0x93   : > { %1418 = vmatpush3.bf16.msra.mxu0 %v1990_v42 }
  0x94   : > { %1440 = vmatpush3.bf16.msra.mxu1 %v1996_v43  ;;  %1525 = vmatprep.subr.bf16.mxu0 %v1723_v51 }
  0x95   : > { %1452 = vmatprep.subr.bf16.mxu1 %v1810_v12  ;;  %v1666_v12 = vld [vmem:[%s1999_s6 + $0x4c] ss:$0 sps:$4 sm:$0xff]  }
  0x96   : > { %881 = vmatmul.mubr.bf16.vlgmr.msra.gmra.mrb[12].mxu0 %v1287_v3 }
  0x97   : > { %921 = vmatmul.mubr.bf16.vlgmr.msra.gmra.mrb[12].mxu1 %v1289_v4  ;;  %1526 = vmatpush3.bf16.msra.mxu0 %v2007_v50 }
  0x98   : > { %1453 = vmatpush3.bf16.msra.mxu1 %v1821_v14  ;;  %1527 = vmatprep.subr.bf16.mxu0 %v1723_v51 }
  0x99   : > { %1454 = vmatprep.subr.bf16.mxu1 %v1833_v16  ;;  %1533 = vmatprep.mubr.msk.bf16.mxu0 %vm1724_vm0, %v1723_v51 }
  0x9a   : > { %1025 = vmatprep.mubr.bf16.mxu1 %v1297_v6 }
  0x9b   : > { %1528 = vmatpush3.bf16.msra.mxu0 %v2016_v52 }
  0x9c   : > { %1455 = vmatpush3.bf16.msra.mxu1 %v1845_v18  ;;  %1529 = vmatprep.subr.bf16.mxu0 %v1723_v51 }
  0x9d   : > { %1456 = vmatprep.subr.bf16.mxu1 %v1857_v20 }
  0x9f   : > { %1530 = vmatpush3.bf16.msra.mxu0 %v2028_v55 }
  0xa0   : > { %1457 = vmatpush3.bf16.msra.mxu1 %v1869_v22  ;;  %1531 = vmatprep.subr.bf16.mxu0 %v1723_v51 }
  0xa1   : > { %1458 = vmatprep.subr.bf16.mxu1 %v1881_v24 }
  0xa3   : > { %1532 = vmatpush3.bf16.msra.mxu0 %v2037_v56 }
  0xa4   : > { %1459 = vmatpush3.bf16.msra.mxu1 %v1893_v26  ;;  %1474 = vmatprep.subr.bf16.mxu0 %v1815_v13 }
  0xa5   : > { %1460 = vmatprep.subr.bf16.mxu1 %v1905_v28 }
  0xa6   : > { %1534 = vmatmul.mubr.msk.bf16.vlgmr.msra.gmra.mrb[16].mxu0 %vm555_vm1, %v1661_v7 }
  0xa7   : > { %1475 = vmatpush3.bf16.msra.mxu0 %v1827_v15  ;;  %1065 = vmatprep.mubr.bf16.mxu0 %v1299_v9 }
  0xa8   : > { %1461 = vmatpush3.bf16.msra.mxu1 %v1917_v30  ;;  %1476 = vmatprep.subr.bf16.mxu0 %v1839_v17 }
  0xa9   : > { %1462 = vmatprep.subr.bf16.mxu1 %v1929_v32 }
  0xab   : > { %1477 = vmatpush3.bf16.msra.mxu0 %v1851_v19 }
  0xac   : > { %1463 = vmatpush3.bf16.msra.mxu1 %v1941_v34  ;;  %1478 = vmatprep.subr.bf16.mxu0 %v1863_v21 }
  0xad   : > { %1464 = vmatprep.subr.bf16.mxu1 %v1954_v36 }
  0xaf   : > { %1479 = vmatpush3.bf16.msra.mxu0 %v1875_v23 }
  0xb0   : > { %1465 = vmatpush3.bf16.msra.mxu1 %v1966_v38  ;;  %1480 = vmatprep.subr.bf16.mxu0 %v1887_v25 }
  0xb1   : > { %1466 = vmatprep.subr.bf16.mxu1 %v1978_v40 }
  0xb3   : > { %1481 = vmatpush3.bf16.msra.mxu0 %v1899_v27 }
  0xb4   : > { %1467 = vmatpush3.bf16.msra.mxu1 %v1990_v42  ;;  %1482 = vmatprep.subr.bf16.mxu0 %v1911_v29 }
  0xb5   : > { %1537 = vmatprep.subr.bf16.mxu1 %v1723_v51 }
  0xb7   : > { %1026 = vmatmul.mubr.bf16.vlgmr.msra.gmra.mrb[16].mxu1 %v1296_v10  ;;  %1483 = vmatpush3.bf16.msra.mxu0 %v1923_v31 }
  0xb8   : > { %1538 = vmatpush3.bf16.msra.mxu1 %v2007_v50  ;;  %1484 = vmatprep.subr.bf16.mxu0 %v1935_v33 }
  0xb9   : > { %1539 = vmatprep.subr.bf16.mxu1 %v1723_v51  ;;  %1545 = vmatprep.mubr.msk.bf16.mxu1 %vm1724_vm0, %v1723_v51 }
  0xbb   : > { %1485 = vmatpush3.bf16.msra.mxu0 %v1948_v35 }
  0xbc   : > { %1540 = vmatpush3.bf16.msra.mxu1 %v2016_v52  ;;  %1486 = vmatprep.subr.bf16.mxu0 %v1960_v37 }
  0xbd   : > { %1541 = vmatprep.subr.bf16.mxu1 %v1723_v51 }
  0xbf   : > { %1487 = vmatpush3.bf16.msra.mxu0 %v1972_v39 }
  0xc0   : > { %1542 = vmatpush3.bf16.msra.mxu1 %v2028_v55  ;;  %1488 = vmatprep.subr.bf16.mxu0 %v1984_v41 }
  0xc1   : > { %1543 = vmatprep.subr.bf16.mxu1 %v1723_v51 }
  0xc3   : > { %1489 = vmatpush3.bf16.msra.mxu0 %v1996_v43 }
  0xc4   : > { %1544 = vmatpush3.bf16.msra.mxu1 %v2037_v56 }
  0xc6   : > { %1066 = vmatmul.mubr.bf16.vlgmr.msra.gmra.mrb[20].mxu0 %v1298_v11 }
  0xc7   : > { %1546 = vmatmul.mubr.msk.bf16.vlgmr.msra.gmra.mrb[20].mxu1 %vm555_vm1, %v1666_v12 }
 0x119   : > { %v1321_v13 = vpop.f32.mrb[0].mxu0 }
 0x11a   : > { %v1343_v14 = vpop.f32.mrb[0].mxu1  ;;  %v1322_v15 = vpop.f32.mrb[1].mxu0 }
 0x11b   : > { %v1344_v16 = vpop.f32.mrb[1].mxu1  ;;  %v1323_v17 = vadd.f32 %v1322_v15, %v1321_v13  ;;  %v1324_v19 = vpop.f32.mrb[2].mxu0  ;;  %v1302_v15 = vld [vmem:[%s2207_s2] ss:$0 sm:$0xff] }
 0x11c   : > { %v1345_v18 = vadd.f32 %v1344_v16, %v1343_v14  ;;  %v1346_v20 = vpop.f32.mrb[2].mxu1  ;;  %v1325_v21 = vpop.f32.mrb[3].mxu0 }
 0x11d   : > { %v1347_v22 = vpop.f32.mrb[3].mxu1 }
 0x11e   : > { %v634_v23 = vadd.f32 %v1345_v18, %v1323_v17 }
 0x129   : > { %v673_v24 = vpop.f32.mrb[4].mxu0 }
 0x12a   : > { %v674_v25 = vadd.f32 %v673_v24, %v634_v23  ;;  %v1511_v26 = vpop.f32.mrb[5].mxu0 }
 0x12b   : > { %v676_v27 = vpop.f32.mrb[6].mxu0 }
 0x12c   : > { %v1512_v28 = vpop.f32.mrb[7].mxu0 }
 0x13a   : > { %v1370_v29 = vpop.f32.mrb[4].mxu1 }
 0x13b   : > { %v1371_v30 = vpop.f32.mrb[5].mxu1 }
 0x13c   : > { %v1372_v31 = vadd.f32 %v1371_v30, %v1370_v29  ;;  %v1373_v32 = vpop.f32.mrb[6].mxu1 }
 0x13d   : > { %v1374_v33 = vpop.f32.mrb[7].mxu1 }
 0x149   : > { %v1392_v34 = vpop.f32.mrb[8].mxu0 }
 0x14a   : > { %v817_v35 = vpop.f32.mrb[8].mxu1  ;;  %v1393_v36 = vpop.f32.mrb[9].mxu0 }
 0x14b   : > { %v1523_v37 = vpop.f32.mrb[9].mxu1  ;;  %v1394_v38 = vadd.f32 %v1393_v36, %v1392_v34  ;;  %v1395_v39 = vpop.f32.mrb[10].mxu0 }
 0x14c   : > { %v820_v40 = vpop.f32.mrb[10].mxu1  ;;  %v1396_v41 = vpop.f32.mrb[11].mxu0 }
 0x14d   : > { %v1524_v42 = vpop.f32.mrb[11].mxu1  ;;  %v778_v43 = vadd.f32 %v1394_v38, %v1372_v31 }
 0x14f   : > { %v818_v44 = vadd.f32 %v817_v35, %v778_v43 }
 0x151   : > { %v823_v45 = vmax.f32 %v674_v25, %v818_v44 }
 0x169   : > { %v1419_v46 = vpop.f32.mrb[12].mxu0 }
 0x16a   : > { %v1441_v47 = vpop.f32.mrb[12].mxu1  ;;  %v1420_v48 = vpop.f32.mrb[13].mxu0 }
 0x16b   : > { %v1442_v49 = vpop.f32.mrb[13].mxu1  ;;  %v1421_v50 = vadd.f32 %v1420_v48, %v1419_v46  ;;  %v1422_v52 = vpop.f32.mrb[14].mxu0 }
 0x16c   : > { %v1443_v51 = vadd.f32 %v1442_v49, %v1441_v47  ;;  %v1444_v53 = vpop.f32.mrb[14].mxu1  ;;  %v1423_v54 = vpop.f32.mrb[15].mxu0 }
 0x16d   : > { %v1445_v55 = vpop.f32.mrb[15].mxu1 }
 0x16e   : > { %v923_v56 = vadd.f32 %v1443_v51, %v1421_v50 }
 0x179   : > { %v962_v57 = vpop.f32.mrb[16].mxu0 }
 0x17a   : > { %v963_v58 = vadd.f32 %v962_v57, %v923_v56  ;;  %v1535_v59 = vpop.f32.mrb[17].mxu0 }
 0x17b   : > { %v965_v60 = vpop.f32.mrb[18].mxu0 }
 0x17c   : > { %v968_v61 = vmax.f32 %v823_v45, %v963_v58  ;;  %v1536_v62 = vpop.f32.mrb[19].mxu0 }
 0x18a   : > { %v1468_v63 = vpop.f32.mrb[16].mxu1 }
 0x18b   : > { %v1469_v0 = vpop.f32.mrb[17].mxu1 }
 0x18c   : > { %v1470_v1 = vadd.f32 %v1469_v0, %v1468_v63  ;;  %v1471_v2 = vpop.f32.mrb[18].mxu1 }
 0x18d   : > { %v1472_v3 = vpop.f32.mrb[19].mxu1 }
 0x199   : > { %v1490_v4 = vpop.f32.mrb[20].mxu0 }
 0x19a   : > { %v1107_v5 = vpop.f32.mrb[20].mxu1  ;;  %v1491_v6 = vpop.f32.mrb[21].mxu0 }
 0x19b   : > { %v1547_v7 = vpop.f32.mrb[21].mxu1  ;;  %v1492_v8 = vadd.f32 %v1491_v6, %v1490_v4  ;;  %v1493_v9 = vpop.f32.mrb[22].mxu0 }
 0x19c   : > { %v1110_v10 = vpop.f32.mrb[22].mxu1  ;;  %v1494_v11 = vpop.f32.mrb[23].mxu0 }
 0x19d   : > { %v1548_v12 = vpop.f32.mrb[23].mxu1  ;;  %v1068_v13 = vadd.f32 %v1492_v8, %v1470_v1 }
 0x19f   : > { %v1108_v14 = vadd.f32 %v1107_v5, %v1068_v13 }
 0x1a1   : > { %v1113_v16 = vmax.f32 %v968_v61, %v1108_v14 }
 0x1a3   : > { %v1121_v17 = vadd.f32 %v1302_v15, %v1113_v16 }
 0x1a5   : > { %v1122_v18 = vmax.f32 %v1121_v17, 0.0 }
 0x1a7   : > { %1123 = vst [vmem:[%s245_s4] sm:$0xff] %v1122_v18 }
 0x1a8 PF: > { %s13_s18 = sadd.s32 1, %s1721_s18   ;;  %s2209_s12 = smov %s1701_s13 }
 0x1a9   : > { %p10_p12 = scmp.ge.s32.totalorder %s13_s18, 6   ;;  %s2210_s13 = smov %s1796_s25 }
 0x1aa   : > { %s2211_s14 = smov %s1713_s16  ;;  %s2212_s15 = smov %s1717_s17 }
 0x1ab   : > { %s2213_s16 = smov %s2216_s19  ;;  %s2214_s17 = smov %s2220_s20 }
 0x1ac   :  { %12 = sbr.rel (!%p10_p12) target bundleno = 4 (0x4), region = 102 }

// kernel: vgg11_maxp2_forward.5
= control target key start
LH: loop header
LB: loop body
LE: loop exit
PB: predicated region body
PF: predicated region fallthrough
CT: control target
= control target key end

     0   :  { %12 = vsyncpa [#allocation5], 0  ;;  %s10400_s24 = smov 0   ;;  %s10402_s25 = smov 0   ;;  %s12846_s0 = inlined_call_operand.vmem [shape: f32[2,2048], index: 0, kind: input, shape index: {}]   ;;  %s12847_s1 = inlined_call_operand.vmem [shape: bf16[2048,1024], index: 1, kind: input, shape index: {}]   ;;  %s12848_s2 = inlined_call_operand.vmem [shape: f32[1,1024], index: 2, kind: input, shape index: {}]   ;;  %s12849_s3 = inlined_call_operand.vmem [shape: bf16[1024,1024], index: 3, kind: input, shape index: {}]   ;;  %s12850_s4 = inlined_call_operand.vmem [shape: f32[1,1024], index: 4, kind: input, shape index: {}]   ;;  %s12851_s5 = inlined_call_operand.vmem [shape: bf16[1024,136], index: 5, kind: input, shape index: {}]   ;;  %s12852_s6 = inlined_call_operand.vmem [shape: f32[1,136], index: 6, kind: input, shape index: {}]   ;;  %s12853_s7 = inlined_call_operand.hbm [shape: f32[2,136], index: 7, kind: output, shape index: {}]  }
   0x1   :  { %s10404_s26 = smov 0  }
   0x2 LB: > { %s10416_s27 = sadd.s32 4294967295, %s10355_s26   ;;  %s10419_s28 = sadd.s32 1, %s10355_s26   ;;  %s10355_s26 = sphi %s10404_s26, %s12856_s26   ;;  %s10351_s25 = sphi %s10402_s25, %s12855_s25   ;;  %s10347_s24 = sphi %s10400_s24, %s12854_s24  }
   0x3   : > { %s43_s29 = ssub.s32 %s10355_s26, %s10419_s28  ;;  %s46_s30 = sadd.s32 1, %s10351_s25 }
   0x4   : > { %p44_p0 = scmp.eq.s32.totalorder %s43_s29, 0  ;;  %p53_p1 = scmp.ne.s32.totalorder %s10351_s25, %s10347_s24 }
   0x5   : > { %p54_p2 = scmp.eq.s32.totalorder %s10355_s26, 0  ;;  %p8304_p4 = scmp.ge.s32.totalorder %s10355_s26, 2 }
   0x6   : > { %s10428_s8 = scalar_select %p44_p0, %s10351_s25, %s46_s30  }
   0x7   : > { %p55_p3 = por %p54_p2, %p53_p1  ;;  %227 = sbr.rel (%p8304_p4) target bundleno = 274 (0x112), region = 32 }
   0xe   : > { %230 = sbr.rel (!%p55_p3) target bundleno = 274 (0x112), region = 36  ;;  %s232_s9 = sand.u32 (%p55_p3), 1, %s10351_s25  }
   0xf   : > { %s9216_s10 = sshll.u32 (%p55_p3), %s10355_s26, 4  ;;  %s8305_s11 = sshll.u32 (%p55_p3), %s232_s9, 12 }
  0x10   : > { %s10436_s14 = scalar_lea.vmem (%p55_p3), %s12847_s1, %s9216_s10  ;;  %s10441_s15 = scalar_lea.vmem (%p55_p3), [#allocation3], %s8305_s11 }
  0x11   : > { %v250_v0 = vld [vmem:[%s10436_s14] sm:$0xff] (%p55_p3)  ;;  %v252_v1 = vld [vmem:[%s10436_s14 + $0x8] sm:$0xff] (%p55_p3) }
  0x12   : > { %v254_v2 = vld [vmem:[%s10436_s14 + $0x20] sm:$0xff] (%p55_p3)  ;;  %251 = vst [vmem:[%s10441_s15] sm:$0xff] (%p55_p3), %v250_v0  ;;  %253 = vst [vmem:[%s10441_s15 + $0x8] sm:$0xff] (%p55_p3), %v252_v1  ;;  %v256_v3 = vld [vmem:[%s10436_s14 + $0x28] sm:$0xff] (%p55_p3) }
  0x13   : > { %255 = vst [vmem:[%s10441_s15 + $0x10] sm:$0xff] (%p55_p3), %v254_v2  ;;  %v258_v4 = vld [vmem:[%s10436_s14 + $0x40] sm:$0xff] (%p55_p3)  ;;  %v260_v5 = vld [vmem:[%s10436_s14 + $0x48] sm:$0xff] (%p55_p3)  ;;  %257 = vst [vmem:[%s10441_s15 + $0x18] sm:$0xff] (%p55_p3), %v256_v3 }
  0x14   : > { %259 = vst [vmem:[%s10441_s15 + $0x20] sm:$0xff] (%p55_p3), %v258_v4  ;;  %261 = vst [vmem:[%s10441_s15 + $0x28] sm:$0xff] (%p55_p3), %v260_v5  ;;  %v262_v6 = vld [vmem:[%s10436_s14 + $0x60] sm:$0xff] (%p55_p3)  ;;  %v264_v7 = vld [vmem:[%s10436_s14 + $0x68] sm:$0xff] (%p55_p3) }
  0x15   : > { %v266_v8 = vld [vmem:[%s10436_s14 + $0x80] sm:$0xff]  ;;  %263 = vst [vmem:[%s10441_s15 + $0x30] sm:$0xff] %v262_v6  ;;  %265 = vst [vmem:[%s10441_s15 + $0x38] sm:$0xff] %v264_v7  ;;  %v268_v9 = vld [vmem:[%s10436_s14 + $0x88] sm:$0xff] }
  0x16   : > { %267 = vst [vmem:[%s10441_s15 + $0x40] sm:$0xff] %v266_v8  ;;  %v270_v10 = vld [vmem:[%s10436_s14 + $0xa0] sm:$0xff]  ;;  %v272_v11 = vld [vmem:[%s10436_s14 + $0xa8] sm:$0xff]  ;;  %269 = vst [vmem:[%s10441_s15 + $0x48] sm:$0xff] %v268_v9 }
  0x17   : > { %271 = vst [vmem:[%s10441_s15 + $0x50] sm:$0xff] %v270_v10  ;;  %273 = vst [vmem:[%s10441_s15 + $0x58] sm:$0xff] %v272_v11  ;;  %v274_v12 = vld [vmem:[%s10436_s14 + $0xc0] sm:$0xff]  ;;  %v276_v13 = vld [vmem:[%s10436_s14 + $0xc8] sm:$0xff] }
  0x18   : > { %v278_v14 = vld [vmem:[%s10436_s14 + $0xe0] sm:$0xff]  ;;  %275 = vst [vmem:[%s10441_s15 + $0x60] sm:$0xff] %v274_v12  ;;  %277 = vst [vmem:[%s10441_s15 + $0x68] sm:$0xff] %v276_v13  ;;  %v280_v15 = vld [vmem:[%s10436_s14 + $0xe8] sm:$0xff] }
  0x19   : > { %279 = vst [vmem:[%s10441_s15 + $0x70] sm:$0xff] %v278_v14  ;;  %v282_v16 = vld [vmem:[%s10436_s14 + $0x100] sm:$0xff]  ;;  %v284_v17 = vld [vmem:[%s10436_s14 + $0x108] sm:$0xff]  ;;  %281 = vst [vmem:[%s10441_s15 + $0x78] sm:$0xff] %v280_v15 }
  0x1a   : > { %283 = vst [vmem:[%s10441_s15 + $0x80] sm:$0xff] %v282_v16  ;;  %285 = vst [vmem:[%s10441_s15 + $0x88] sm:$0xff] %v284_v17  ;;  %v286_v18 = vld [vmem:[%s10436_s14 + $0x120] sm:$0xff]  ;;  %v288_v19 = vld [vmem:[%s10436_s14 + $0x128] sm:$0xff] }
  0x1b   : > { %v290_v20 = vld [vmem:[%s10436_s14 + $0x140] sm:$0xff]  ;;  %287 = vst [vmem:[%s10441_s15 + $0x90] sm:$0xff] %v286_v18  ;;  %289 = vst [vmem:[%s10441_s15 + $0x98] sm:$0xff] %v288_v19  ;;  %v292_v21 = vld [vmem:[%s10436_s14 + $0x148] sm:$0xff] }
  0x1c   : > { %291 = vst [vmem:[%s10441_s15 + $0xa0] sm:$0xff] %v290_v20  ;;  %v294_v22 = vld [vmem:[%s10436_s14 + $0x160] sm:$0xff]  ;;  %v296_v23 = vld [vmem:[%s10436_s14 + $0x168] sm:$0xff]  ;;  %293 = vst [vmem:[%s10441_s15 + $0xa8] sm:$0xff] %v292_v21 }
  0x1d   : > { %295 = vst [vmem:[%s10441_s15 + $0xb0] sm:$0xff] %v294_v22  ;;  %297 = vst [vmem:[%s10441_s15 + $0xb8] sm:$0xff] %v296_v23  ;;  %v298_v24 = vld [vmem:[%s10436_s14 + $0x180] sm:$0xff]  ;;  %v300_v25 = vld [vmem:[%s10436_s14 + $0x188] sm:$0xff] }
  0x1e   : > { %v302_v26 = vld [vmem:[%s10436_s14 + $0x1a0] sm:$0xff]  ;;  %299 = vst [vmem:[%s10441_s15 + $0xc0] sm:$0xff] %v298_v24  ;;  %301 = vst [vmem:[%s10441_s15 + $0xc8] sm:$0xff] %v300_v25  ;;  %v304_v27 = vld [vmem:[%s10436_s14 + $0x1a8] sm:$0xff] }
  0x1f   : > { %303 = vst [vmem:[%s10441_s15 + $0xd0] sm:$0xff] %v302_v26  ;;  %v306_v28 = vld [vmem:[%s10436_s14 + $0x1c0] sm:$0xff]  ;;  %v308_v29 = vld [vmem:[%s10436_s14 + $0x1c8] sm:$0xff]  ;;  %305 = vst [vmem:[%s10441_s15 + $0xd8] sm:$0xff] %v304_v27 }
  0x20   : > { %307 = vst [vmem:[%s10441_s15 + $0xe0] sm:$0xff] %v306_v28  ;;  %309 = vst [vmem:[%s10441_s15 + $0xe8] sm:$0xff] %v308_v29  ;;  %v310_v30 = vld [vmem:[%s10436_s14 + $0x1e0] sm:$0xff]  ;;  %v312_v31 = vld [vmem:[%s10436_s14 + $0x1e8] sm:$0xff] }
  0x21   : > { %v314_v32 = vld [vmem:[%s10436_s14 + $0x200] sm:$0xff]  ;;  %311 = vst [vmem:[%s10441_s15 + $0xf0] sm:$0xff] %v310_v30  ;;  %313 = vst [vmem:[%s10441_s15 + $0xf8] sm:$0xff] %v312_v31  ;;  %v316_v33 = vld [vmem:[%s10436_s14 + $0x208] sm:$0xff] }
  0x22   : > { %315 = vst [vmem:[%s10441_s15 + $0x100] sm:$0xff] %v314_v32  ;;  %v318_v34 = vld [vmem:[%s10436_s14 + $0x220] sm:$0xff]  ;;  %v320_v35 = vld [vmem:[%s10436_s14 + $0x228] sm:$0xff]  ;;  %317 = vst [vmem:[%s10441_s15 + $0x108] sm:$0xff] %v316_v33 }
  0x23   : > { %319 = vst [vmem:[%s10441_s15 + $0x110] sm:$0xff] %v318_v34  ;;  %321 = vst [vmem:[%s10441_s15 + $0x118] sm:$0xff] %v320_v35  ;;  %v322_v36 = vld [vmem:[%s10436_s14 + $0x240] sm:$0xff]  ;;  %v324_v37 = vld [vmem:[%s10436_s14 + $0x248] sm:$0xff] }
  0x24   : > { %v326_v38 = vld [vmem:[%s10436_s14 + $0x260] sm:$0xff]  ;;  %323 = vst [vmem:[%s10441_s15 + $0x120] sm:$0xff] %v322_v36  ;;  %325 = vst [vmem:[%s10441_s15 + $0x128] sm:$0xff] %v324_v37  ;;  %v328_v39 = vld [vmem:[%s10436_s14 + $0x268] sm:$0xff] }
  0x25   : > { %327 = vst [vmem:[%s10441_s15 + $0x130] sm:$0xff] %v326_v38  ;;  %v330_v40 = vld [vmem:[%s10436_s14 + $0x280] sm:$0xff]  ;;  %v332_v41 = vld [vmem:[%s10436_s14 + $0x288] sm:$0xff]  ;;  %329 = vst [vmem:[%s10441_s15 + $0x138] sm:$0xff] %v328_v39 }
  0x26   : > { %331 = vst [vmem:[%s10441_s15 + $0x140] sm:$0xff] %v330_v40  ;;  %333 = vst [vmem:[%s10441_s15 + $0x148] sm:$0xff] %v332_v41  ;;  %v334_v42 = vld [vmem:[%s10436_s14 + $0x2a0] sm:$0xff]  ;;  %v336_v43 = vld [vmem:[%s10436_s14 + $0x2a8] sm:$0xff] }
  0x27   : > { %v338_v44 = vld [vmem:[%s10436_s14 + $0x2c0] sm:$0xff]  ;;  %335 = vst [vmem:[%s10441_s15 + $0x150] sm:$0xff] %v334_v42  ;;  %337 = vst [vmem:[%s10441_s15 + $0x158] sm:$0xff] %v336_v43  ;;  %v340_v45 = vld [vmem:[%s10436_s14 + $0x2c8] sm:$0xff] }
  0x28   : > { %339 = vst [vmem:[%s10441_s15 + $0x160] sm:$0xff] %v338_v44  ;;  %v342_v46 = vld [vmem:[%s10436_s14 + $0x2e0] sm:$0xff]  ;;  %v344_v47 = vld [vmem:[%s10436_s14 + $0x2e8] sm:$0xff]  ;;  %341 = vst [vmem:[%s10441_s15 + $0x168] sm:$0xff] %v340_v45 }
  0x29   : > { %343 = vst [vmem:[%s10441_s15 + $0x170] sm:$0xff] %v342_v46  ;;  %345 = vst [vmem:[%s10441_s15 + $0x178] sm:$0xff] %v344_v47  ;;  %v346_v48 = vld [vmem:[%s10436_s14 + $0x300] sm:$0xff]  ;;  %v348_v49 = vld [vmem:[%s10436_s14 + $0x308] sm:$0xff] }
  0x2a   : > { %v350_v50 = vld [vmem:[%s10436_s14 + $0x320] sm:$0xff]  ;;  %347 = vst [vmem:[%s10441_s15 + $0x180] sm:$0xff] %v346_v48  ;;  %349 = vst [vmem:[%s10441_s15 + $0x188] sm:$0xff] %v348_v49  ;;  %v352_v51 = vld [vmem:[%s10436_s14 + $0x328] sm:$0xff] }
  0x2b   : > { %351 = vst [vmem:[%s10441_s15 + $0x190] sm:$0xff] %v350_v50  ;;  %v354_v52 = vld [vmem:[%s10436_s14 + $0x340] sm:$0xff]  ;;  %v356_v53 = vld [vmem:[%s10436_s14 + $0x348] sm:$0xff]  ;;  %353 = vst [vmem:[%s10441_s15 + $0x198] sm:$0xff] %v352_v51 }
  0x2c   : > { %355 = vst [vmem:[%s10441_s15 + $0x1a0] sm:$0xff] %v354_v52  ;;  %357 = vst [vmem:[%s10441_s15 + $0x1a8] sm:$0xff] %v356_v53  ;;  %v358_v54 = vld [vmem:[%s10436_s14 + $0x360] sm:$0xff]  ;;  %v360_v55 = vld [vmem:[%s10436_s14 + $0x368] sm:$0xff] }
  0x2d   : > { %v362_v56 = vld [vmem:[%s10436_s14 + $0x380] sm:$0xff]  ;;  %359 = vst [vmem:[%s10441_s15 + $0x1b0] sm:$0xff] %v358_v54  ;;  %361 = vst [vmem:[%s10441_s15 + $0x1b8] sm:$0xff] %v360_v55  ;;  %v364_v57 = vld [vmem:[%s10436_s14 + $0x388] sm:$0xff] }
  0x2e   : > { %363 = vst [vmem:[%s10441_s15 + $0x1c0] sm:$0xff] %v362_v56  ;;  %v366_v58 = vld [vmem:[%s10436_s14 + $0x3a0] sm:$0xff]  ;;  %v368_v59 = vld [vmem:[%s10436_s14 + $0x3a8] sm:$0xff]  ;;  %365 = vst [vmem:[%s10441_s15 + $0x1c8] sm:$0xff] %v364_v57 }
  0x2f   : > { %367 = vst [vmem:[%s10441_s15 + $0x1d0] sm:$0xff] %v366_v58  ;;  %369 = vst [vmem:[%s10441_s15 + $0x1d8] sm:$0xff] %v368_v59  ;;  %v370_v60 = vld [vmem:[%s10436_s14 + $0x3c0] sm:$0xff]  ;;  %v372_v61 = vld [vmem:[%s10436_s14 + $0x3c8] sm:$0xff] }
  0x30   : > { %v374_v62 = vld [vmem:[%s10436_s14 + $0x3e0] sm:$0xff]  ;;  %371 = vst [vmem:[%s10441_s15 + $0x1e0] sm:$0xff] %v370_v60  ;;  %373 = vst [vmem:[%s10441_s15 + $0x1e8] sm:$0xff] %v372_v61  ;;  %v376_v63 = vld [vmem:[%s10436_s14 + $0x3e8] sm:$0xff] }
  0x31   : > { %375 = vst [vmem:[%s10441_s15 + $0x1f0] sm:$0xff] %v374_v62  ;;  %v378_v0 = vld [vmem:[%s10436_s14 + $0x400] sm:$0xff]  ;;  %v380_v1 = vld [vmem:[%s10436_s14 + $0x408] sm:$0xff]  ;;  %377 = vst [vmem:[%s10441_s15 + $0x1f8] sm:$0xff] %v376_v63 }
  0x32   : > { %379 = vst [vmem:[%s10441_s15 + $0x200] sm:$0xff] %v378_v0  ;;  %381 = vst [vmem:[%s10441_s15 + $0x208] sm:$0xff] %v380_v1  ;;  %v382_v2 = vld [vmem:[%s10436_s14 + $0x420] sm:$0xff]  ;;  %v384_v3 = vld [vmem:[%s10436_s14 + $0x428] sm:$0xff] }
  0x33   : > { %v386_v4 = vld [vmem:[%s10436_s14 + $0x440] sm:$0xff]  ;;  %383 = vst [vmem:[%s10441_s15 + $0x210] sm:$0xff] %v382_v2  ;;  %385 = vst [vmem:[%s10441_s15 + $0x218] sm:$0xff] %v384_v3  ;;  %v388_v5 = vld [vmem:[%s10436_s14 + $0x448] sm:$0xff] }
  0x34   : > { %387 = vst [vmem:[%s10441_s15 + $0x220] sm:$0xff] %v386_v4  ;;  %v390_v6 = vld [vmem:[%s10436_s14 + $0x460] sm:$0xff]  ;;  %v392_v7 = vld [vmem:[%s10436_s14 + $0x468] sm:$0xff]  ;;  %389 = vst [vmem:[%s10441_s15 + $0x228] sm:$0xff] %v388_v5 }
  0x35   : > { %391 = vst [vmem:[%s10441_s15 + $0x230] sm:$0xff] %v390_v6  ;;  %393 = vst [vmem:[%s10441_s15 + $0x238] sm:$0xff] %v392_v7  ;;  %v394_v8 = vld [vmem:[%s10436_s14 + $0x480] sm:$0xff]  ;;  %v396_v9 = vld [vmem:[%s10436_s14 + $0x488] sm:$0xff] }
  0x36   : > { %v398_v10 = vld [vmem:[%s10436_s14 + $0x4a0] sm:$0xff]  ;;  %395 = vst [vmem:[%s10441_s15 + $0x240] sm:$0xff] %v394_v8  ;;  %397 = vst [vmem:[%s10441_s15 + $0x248] sm:$0xff] %v396_v9  ;;  %v400_v11 = vld [vmem:[%s10436_s14 + $0x4a8] sm:$0xff] }
  0x37   : > { %399 = vst [vmem:[%s10441_s15 + $0x250] sm:$0xff] %v398_v10  ;;  %v402_v12 = vld [vmem:[%s10436_s14 + $0x4c0] sm:$0xff]  ;;  %v404_v13 = vld [vmem:[%s10436_s14 + $0x4c8] sm:$0xff]  ;;  %401 = vst [vmem:[%s10441_s15 + $0x258] sm:$0xff] %v400_v11 }
  0x38   : > { %403 = vst [vmem:[%s10441_s15 + $0x260] sm:$0xff] %v402_v12  ;;  %405 = vst [vmem:[%s10441_s15 + $0x268] sm:$0xff] %v404_v13  ;;  %v406_v14 = vld [vmem:[%s10436_s14 + $0x4e0] sm:$0xff]  ;;  %v408_v15 = vld [vmem:[%s10436_s14 + $0x4e8] sm:$0xff] }
  0x39   : > { %v410_v16 = vld [vmem:[%s10436_s14 + $0x500] sm:$0xff]  ;;  %407 = vst [vmem:[%s10441_s15 + $0x270] sm:$0xff] %v406_v14  ;;  %409 = vst [vmem:[%s10441_s15 + $0x278] sm:$0xff] %v408_v15  ;;  %v412_v17 = vld [vmem:[%s10436_s14 + $0x508] sm:$0xff] }
  0x3a   : > { %411 = vst [vmem:[%s10441_s15 + $0x280] sm:$0xff] %v410_v16  ;;  %v414_v18 = vld [vmem:[%s10436_s14 + $0x520] sm:$0xff]  ;;  %v416_v19 = vld [vmem:[%s10436_s14 + $0x528] sm:$0xff]  ;;  %413 = vst [vmem:[%s10441_s15 + $0x288] sm:$0xff] %v412_v17 }
  0x3b   : > { %415 = vst [vmem:[%s10441_s15 + $0x290] sm:$0xff] %v414_v18  ;;  %417 = vst [vmem:[%s10441_s15 + $0x298] sm:$0xff] %v416_v19  ;;  %v418_v20 = vld [vmem:[%s10436_s14 + $0x540] sm:$0xff]  ;;  %v420_v21 = vld [vmem:[%s10436_s14 + $0x548] sm:$0xff] }
  0x3c   : > { %v422_v22 = vld [vmem:[%s10436_s14 + $0x560] sm:$0xff]  ;;  %419 = vst [vmem:[%s10441_s15 + $0x2a0] sm:$0xff] %v418_v20  ;;  %421 = vst [vmem:[%s10441_s15 + $0x2a8] sm:$0xff] %v420_v21  ;;  %v424_v23 = vld [vmem:[%s10436_s14 + $0x568] sm:$0xff] }
  0x3d   : > { %423 = vst [vmem:[%s10441_s15 + $0x2b0] sm:$0xff] %v422_v22  ;;  %v426_v24 = vld [vmem:[%s10436_s14 + $0x580] sm:$0xff]  ;;  %v428_v25 = vld [vmem:[%s10436_s14 + $0x588] sm:$0xff]  ;;  %425 = vst [vmem:[%s10441_s15 + $0x2b8] sm:$0xff] %v424_v23 }
  0x3e   : > { %427 = vst [vmem:[%s10441_s15 + $0x2c0] sm:$0xff] %v426_v24  ;;  %429 = vst [vmem:[%s10441_s15 + $0x2c8] sm:$0xff] %v428_v25  ;;  %v430_v26 = vld [vmem:[%s10436_s14 + $0x5a0] sm:$0xff]  ;;  %v432_v27 = vld [vmem:[%s10436_s14 + $0x5a8] sm:$0xff] }
  0x3f   : > { %v434_v28 = vld [vmem:[%s10436_s14 + $0x5c0] sm:$0xff]  ;;  %431 = vst [vmem:[%s10441_s15 + $0x2d0] sm:$0xff] %v430_v26  ;;  %433 = vst [vmem:[%s10441_s15 + $0x2d8] sm:$0xff] %v432_v27  ;;  %v436_v29 = vld [vmem:[%s10436_s14 + $0x5c8] sm:$0xff] }
  0x40   : > { %435 = vst [vmem:[%s10441_s15 + $0x2e0] sm:$0xff] %v434_v28  ;;  %v438_v30 = vld [vmem:[%s10436_s14 + $0x5e0] sm:$0xff]  ;;  %v440_v31 = vld [vmem:[%s10436_s14 + $0x5e8] sm:$0xff]  ;;  %437 = vst [vmem:[%s10441_s15 + $0x2e8] sm:$0xff] %v436_v29 }
  0x41   : > { %439 = vst [vmem:[%s10441_s15 + $0x2f0] sm:$0xff] %v438_v30  ;;  %441 = vst [vmem:[%s10441_s15 + $0x2f8] sm:$0xff] %v440_v31  ;;  %v442_v32 = vld [vmem:[%s10436_s14 + $0x600] sm:$0xff]  ;;  %v444_v33 = vld [vmem:[%s10436_s14 + $0x608] sm:$0xff] }
  0x42   : > { %v446_v34 = vld [vmem:[%s10436_s14 + $0x620] sm:$0xff]  ;;  %443 = vst [vmem:[%s10441_s15 + $0x300] sm:$0xff] %v442_v32  ;;  %445 = vst [vmem:[%s10441_s15 + $0x308] sm:$0xff] %v444_v33  ;;  %v448_v35 = vld [vmem:[%s10436_s14 + $0x628] sm:$0xff] }
  0x43   : > { %447 = vst [vmem:[%s10441_s15 + $0x310] sm:$0xff] %v446_v34  ;;  %v450_v36 = vld [vmem:[%s10436_s14 + $0x640] sm:$0xff]  ;;  %v452_v37 = vld [vmem:[%s10436_s14 + $0x648] sm:$0xff]  ;;  %449 = vst [vmem:[%s10441_s15 + $0x318] sm:$0xff] %v448_v35 }
  0x44   : > { %451 = vst [vmem:[%s10441_s15 + $0x320] sm:$0xff] %v450_v36  ;;  %453 = vst [vmem:[%s10441_s15 + $0x328] sm:$0xff] %v452_v37  ;;  %v454_v38 = vld [vmem:[%s10436_s14 + $0x660] sm:$0xff]  ;;  %v456_v39 = vld [vmem:[%s10436_s14 + $0x668] sm:$0xff] }
  0x45   : > { %v458_v40 = vld [vmem:[%s10436_s14 + $0x680] sm:$0xff]  ;;  %455 = vst [vmem:[%s10441_s15 + $0x330] sm:$0xff] %v454_v38  ;;  %457 = vst [vmem:[%s10441_s15 + $0x338] sm:$0xff] %v456_v39  ;;  %v460_v41 = vld [vmem:[%s10436_s14 + $0x688] sm:$0xff] }
  0x46   : > { %459 = vst [vmem:[%s10441_s15 + $0x340] sm:$0xff] %v458_v40  ;;  %v462_v42 = vld [vmem:[%s10436_s14 + $0x6a0] sm:$0xff]  ;;  %v464_v43 = vld [vmem:[%s10436_s14 + $0x6a8] sm:$0xff]  ;;  %461 = vst [vmem:[%s10441_s15 + $0x348] sm:$0xff] %v460_v41 }
  0x47   : > { %463 = vst [vmem:[%s10441_s15 + $0x350] sm:$0xff] %v462_v42  ;;  %465 = vst [vmem:[%s10441_s15 + $0x358] sm:$0xff] %v464_v43  ;;  %v466_v44 = vld [vmem:[%s10436_s14 + $0x6c0] sm:$0xff]  ;;  %v468_v45 = vld [vmem:[%s10436_s14 + $0x6c8] sm:$0xff] }
  0x48   : > { %v470_v46 = vld [vmem:[%s10436_s14 + $0x6e0] sm:$0xff]  ;;  %467 = vst [vmem:[%s10441_s15 + $0x360] sm:$0xff] %v466_v44  ;;  %469 = vst [vmem:[%s10441_s15 + $0x368] sm:$0xff] %v468_v45  ;;  %v472_v47 = vld [vmem:[%s10436_s14 + $0x6e8] sm:$0xff] }
  0x49   : > { %471 = vst [vmem:[%s10441_s15 + $0x370] sm:$0xff] %v470_v46  ;;  %v474_v48 = vld [vmem:[%s10436_s14 + $0x700] sm:$0xff]  ;;  %v476_v49 = vld [vmem:[%s10436_s14 + $0x708] sm:$0xff]  ;;  %473 = vst [vmem:[%s10441_s15 + $0x378] sm:$0xff] %v472_v47 }
  0x4a   : > { %475 = vst [vmem:[%s10441_s15 + $0x380] sm:$0xff] %v474_v48  ;;  %477 = vst [vmem:[%s10441_s15 + $0x388] sm:$0xff] %v476_v49  ;;  %v478_v50 = vld [vmem:[%s10436_s14 + $0x720] sm:$0xff]  ;;  %v480_v51 = vld [vmem:[%s10436_s14 + $0x728] sm:$0xff] }
  0x4b   : > { %v482_v52 = vld [vmem:[%s10436_s14 + $0x740] sm:$0xff]  ;;  %479 = vst [vmem:[%s10441_s15 + $0x390] sm:$0xff] %v478_v50  ;;  %481 = vst [vmem:[%s10441_s15 + $0x398] sm:$0xff] %v480_v51  ;;  %v484_v53 = vld [vmem:[%s10436_s14 + $0x748] sm:$0xff] }
  0x4c   : > { %483 = vst [vmem:[%s10441_s15 + $0x3a0] sm:$0xff] %v482_v52  ;;  %v486_v54 = vld [vmem:[%s10436_s14 + $0x760] sm:$0xff]  ;;  %v488_v55 = vld [vmem:[%s10436_s14 + $0x768] sm:$0xff]  ;;  %485 = vst [vmem:[%s10441_s15 + $0x3a8] sm:$0xff] %v484_v53 }
  0x4d   : > { %487 = vst [vmem:[%s10441_s15 + $0x3b0] sm:$0xff] %v486_v54  ;;  %489 = vst [vmem:[%s10441_s15 + $0x3b8] sm:$0xff] %v488_v55  ;;  %v490_v56 = vld [vmem:[%s10436_s14 + $0x780] sm:$0xff]  ;;  %v492_v57 = vld [vmem:[%s10436_s14 + $0x788] sm:$0xff] }
  0x4e   : > { %v494_v58 = vld [vmem:[%s10436_s14 + $0x7a0] sm:$0xff]  ;;  %491 = vst [vmem:[%s10441_s15 + $0x3c0] sm:$0xff] %v490_v56  ;;  %493 = vst [vmem:[%s10441_s15 + $0x3c8] sm:$0xff] %v492_v57  ;;  %v496_v59 = vld [vmem:[%s10436_s14 + $0x7a8] sm:$0xff] }
  0x4f   : > { %495 = vst [vmem:[%s10441_s15 + $0x3d0] sm:$0xff] %v494_v58  ;;  %v498_v60 = vld [vmem:[%s10436_s14 + $0x7c0] sm:$0xff]  ;;  %v500_v61 = vld [vmem:[%s10436_s14 + $0x7c8] sm:$0xff]  ;;  %497 = vst [vmem:[%s10441_s15 + $0x3d8] sm:$0xff] %v496_v59 }
  0x50   : > { %499 = vst [vmem:[%s10441_s15 + $0x3e0] sm:$0xff] %v498_v60  ;;  %501 = vst [vmem:[%s10441_s15 + $0x3e8] sm:$0xff] %v500_v61  ;;  %v502_v62 = vld [vmem:[%s10436_s14 + $0x7e0] sm:$0xff]  ;;  %v504_v63 = vld [vmem:[%s10436_s14 + $0x7e8] sm:$0xff] }
  0x51   : > { %v506_v0 = vld [vmem:[%s10436_s14 + $0x800] sm:$0xff]  ;;  %503 = vst [vmem:[%s10441_s15 + $0x3f0] sm:$0xff] %v502_v62  ;;  %505 = vst [vmem:[%s10441_s15 + $0x3f8] sm:$0xff] %v504_v63  ;;  %v508_v1 = vld [vmem:[%s10436_s14 + $0x808] sm:$0xff] }
  0x52   : > { %507 = vst [vmem:[%s10441_s15 + $0x400] sm:$0xff] %v506_v0  ;;  %v510_v2 = vld [vmem:[%s10436_s14 + $0x820] sm:$0xff]  ;;  %v512_v3 = vld [vmem:[%s10436_s14 + $0x828] sm:$0xff]  ;;  %509 = vst [vmem:[%s10441_s15 + $0x408] sm:$0xff] %v508_v1 }
  0x53   : > { %511 = vst [vmem:[%s10441_s15 + $0x410] sm:$0xff] %v510_v2  ;;  %513 = vst [vmem:[%s10441_s15 + $0x418] sm:$0xff] %v512_v3  ;;  %v514_v4 = vld [vmem:[%s10436_s14 + $0x840] sm:$0xff]  ;;  %v516_v5 = vld [vmem:[%s10436_s14 + $0x848] sm:$0xff] }
  0x54   : > { %v518_v6 = vld [vmem:[%s10436_s14 + $0x860] sm:$0xff]  ;;  %515 = vst [vmem:[%s10441_s15 + $0x420] sm:$0xff] %v514_v4  ;;  %517 = vst [vmem:[%s10441_s15 + $0x428] sm:$0xff] %v516_v5  ;;  %v520_v7 = vld [vmem:[%s10436_s14 + $0x868] sm:$0xff] }
  0x55   : > { %519 = vst [vmem:[%s10441_s15 + $0x430] sm:$0xff] %v518_v6  ;;  %v522_v8 = vld [vmem:[%s10436_s14 + $0x880] sm:$0xff]  ;;  %v524_v9 = vld [vmem:[%s10436_s14 + $0x888] sm:$0xff]  ;;  %521 = vst [vmem:[%s10441_s15 + $0x438] sm:$0xff] %v520_v7 }
  0x56   : > { %523 = vst [vmem:[%s10441_s15 + $0x440] sm:$0xff] %v522_v8  ;;  %525 = vst [vmem:[%s10441_s15 + $0x448] sm:$0xff] %v524_v9  ;;  %v526_v10 = vld [vmem:[%s10436_s14 + $0x8a0] sm:$0xff]  ;;  %v528_v11 = vld [vmem:[%s10436_s14 + $0x8a8] sm:$0xff] }
  0x57   : > { %v530_v12 = vld [vmem:[%s10436_s14 + $0x8c0] sm:$0xff]  ;;  %527 = vst [vmem:[%s10441_s15 + $0x450] sm:$0xff] %v526_v10  ;;  %529 = vst [vmem:[%s10441_s15 + $0x458] sm:$0xff] %v528_v11  ;;  %v532_v13 = vld [vmem:[%s10436_s14 + $0x8c8] sm:$0xff] }
  0x58   : > { %531 = vst [vmem:[%s10441_s15 + $0x460] sm:$0xff] %v530_v12  ;;  %v534_v14 = vld [vmem:[%s10436_s14 + $0x8e0] sm:$0xff]  ;;  %v536_v15 = vld [vmem:[%s10436_s14 + $0x8e8] sm:$0xff]  ;;  %533 = vst [vmem:[%s10441_s15 + $0x468] sm:$0xff] %v532_v13 }
  0x59   : > { %535 = vst [vmem:[%s10441_s15 + $0x470] sm:$0xff] %v534_v14  ;;  %537 = vst [vmem:[%s10441_s15 + $0x478] sm:$0xff] %v536_v15  ;;  %v538_v16 = vld [vmem:[%s10436_s14 + $0x900] sm:$0xff]  ;;  %v540_v17 = vld [vmem:[%s10436_s14 + $0x908] sm:$0xff] }
  0x5a   : > { %v542_v18 = vld [vmem:[%s10436_s14 + $0x920] sm:$0xff]  ;;  %539 = vst [vmem:[%s10441_s15 + $0x480] sm:$0xff] %v538_v16  ;;  %541 = vst [vmem:[%s10441_s15 + $0x488] sm:$0xff] %v540_v17  ;;  %v544_v19 = vld [vmem:[%s10436_s14 + $0x928] sm:$0xff] }
  0x5b   : > { %543 = vst [vmem:[%s10441_s15 + $0x490] sm:$0xff] %v542_v18  ;;  %v546_v20 = vld [vmem:[%s10436_s14 + $0x940] sm:$0xff]  ;;  %v548_v21 = vld [vmem:[%s10436_s14 + $0x948] sm:$0xff]  ;;  %545 = vst [vmem:[%s10441_s15 + $0x498] sm:$0xff] %v544_v19 }
  0x5c   : > { %547 = vst [vmem:[%s10441_s15 + $0x4a0] sm:$0xff] %v546_v20  ;;  %549 = vst [vmem:[%s10441_s15 + $0x4a8] sm:$0xff] %v548_v21  ;;  %v550_v22 = vld [vmem:[%s10436_s14 + $0x960] sm:$0xff]  ;;  %v552_v23 = vld [vmem:[%s10436_s14 + $0x968] sm:$0xff] }
  0x5d   : > { %v554_v24 = vld [vmem:[%s10436_s14 + $0x980] sm:$0xff]  ;;  %551 = vst [vmem:[%s10441_s15 + $0x4b0] sm:$0xff] %v550_v22  ;;  %553 = vst [vmem:[%s10441_s15 + $0x4b8] sm:$0xff] %v552_v23  ;;  %v556_v25 = vld [vmem:[%s10436_s14 + $0x988] sm:$0xff] }
  0x5e   : > { %555 = vst [vmem:[%s10441_s15 + $0x4c0] sm:$0xff] %v554_v24  ;;  %v558_v26 = vld [vmem:[%s10436_s14 + $0x9a0] sm:$0xff]  ;;  %v560_v27 = vld [vmem:[%s10436_s14 + $0x9a8] sm:$0xff]  ;;  %557 = vst [vmem:[%s10441_s15 + $0x4c8] sm:$0xff] %v556_v25 }
  0x5f   : > { %559 = vst [vmem:[%s10441_s15 + $0x4d0] sm:$0xff] %v558_v26  ;;  %561 = vst [vmem:[%s10441_s15 + $0x4d8] sm:$0xff] %v560_v27  ;;  %v562_v28 = vld [vmem:[%s10436_s14 + $0x9c0] sm:$0xff]  ;;  %v564_v29 = vld [vmem:[%s10436_s14 + $0x9c8] sm:$0xff] }
  0x60   : > { %v566_v30 = vld [vmem:[%s10436_s14 + $0x9e0] sm:$0xff]  ;;  %563 = vst [vmem:[%s10441_s15 + $0x4e0] sm:$0xff] %v562_v28  ;;  %565 = vst [vmem:[%s10441_s15 + $0x4e8] sm:$0xff] %v564_v29  ;;  %v568_v31 = vld [vmem:[%s10436_s14 + $0x9e8] sm:$0xff] }
  0x61   : > { %567 = vst [vmem:[%s10441_s15 + $0x4f0] sm:$0xff] %v566_v30  ;;  %v570_v32 = vld [vmem:[%s10436_s14 + $0xa00] sm:$0xff]  ;;  %v572_v33 = vld [vmem:[%s10436_s14 + $0xa08] sm:$0xff]  ;;  %569 = vst [vmem:[%s10441_s15 + $0x4f8] sm:$0xff] %v568_v31 }
  0x62   : > { %571 = vst [vmem:[%s10441_s15 + $0x500] sm:$0xff] %v570_v32  ;;  %573 = vst [vmem:[%s10441_s15 + $0x508] sm:$0xff] %v572_v33  ;;  %v574_v34 = vld [vmem:[%s10436_s14 + $0xa20] sm:$0xff]  ;;  %v576_v35 = vld [vmem:[%s10436_s14 + $0xa28] sm:$0xff] }
  0x63   : > { %v578_v36 = vld [vmem:[%s10436_s14 + $0xa40] sm:$0xff]  ;;  %575 = vst [vmem:[%s10441_s15 + $0x510] sm:$0xff] %v574_v34  ;;  %577 = vst [vmem:[%s10441_s15 + $0x518] sm:$0xff] %v576_v35  ;;  %v580_v37 = vld [vmem:[%s10436_s14 + $0xa48] sm:$0xff] }
  0x64   : > { %579 = vst [vmem:[%s10441_s15 + $0x520] sm:$0xff] %v578_v36  ;;  %v582_v38 = vld [vmem:[%s10436_s14 + $0xa60] sm:$0xff]  ;;  %v584_v39 = vld [vmem:[%s10436_s14 + $0xa68] sm:$0xff]  ;;  %581 = vst [vmem:[%s10441_s15 + $0x528] sm:$0xff] %v580_v37 }
  0x65   : > { %583 = vst [vmem:[%s10441_s15 + $0x530] sm:$0xff] %v582_v38  ;;  %585 = vst [vmem:[%s10441_s15 + $0x538] sm:$0xff] %v584_v39  ;;  %v586_v40 = vld [vmem:[%s10436_s14 + $0xa80] sm:$0xff]  ;;  %v588_v41 = vld [vmem:[%s10436_s14 + $0xa88] sm:$0xff] }
  0x66   : > { %v590_v42 = vld [vmem:[%s10436_s14 + $0xaa0] sm:$0xff]  ;;  %587 = vst [vmem:[%s10441_s15 + $0x540] sm:$0xff] %v586_v40  ;;  %589 = vst [vmem:[%s10441_s15 + $0x548] sm:$0xff] %v588_v41  ;;  %v592_v43 = vld [vmem:[%s10436_s14 + $0xaa8] sm:$0xff] }
  0x67   : > { %591 = vst [vmem:[%s10441_s15 + $0x550] sm:$0xff] %v590_v42  ;;  %v594_v44 = vld [vmem:[%s10436_s14 + $0xac0] sm:$0xff]  ;;  %v596_v45 = vld [vmem:[%s10436_s14 + $0xac8] sm:$0xff]  ;;  %593 = vst [vmem:[%s10441_s15 + $0x558] sm:$0xff] %v592_v43 }
  0x68   : > { %595 = vst [vmem:[%s10441_s15 + $0x560] sm:$0xff] %v594_v44  ;;  %597 = vst [vmem:[%s10441_s15 + $0x568] sm:$0xff] %v596_v45  ;;  %v598_v46 = vld [vmem:[%s10436_s14 + $0xae0] sm:$0xff]  ;;  %v600_v47 = vld [vmem:[%s10436_s14 + $0xae8] sm:$0xff] }
  0x69   : > { %v602_v48 = vld [vmem:[%s10436_s14 + $0xb00] sm:$0xff]  ;;  %599 = vst [vmem:[%s10441_s15 + $0x570] sm:$0xff] %v598_v46  ;;  %601 = vst [vmem:[%s10441_s15 + $0x578] sm:$0xff] %v600_v47  ;;  %v604_v49 = vld [vmem:[%s10436_s14 + $0xb08] sm:$0xff] }
  0x6a   : > { %603 = vst [vmem:[%s10441_s15 + $0x580] sm:$0xff] %v602_v48  ;;  %v606_v50 = vld [vmem:[%s10436_s14 + $0xb20] sm:$0xff]  ;;  %v608_v51 = vld [vmem:[%s10436_s14 + $0xb28] sm:$0xff]  ;;  %605 = vst [vmem:[%s10441_s15 + $0x588] sm:$0xff] %v604_v49 }
  0x6b   : > { %607 = vst [vmem:[%s10441_s15 + $0x590] sm:$0xff] %v606_v50  ;;  %609 = vst [vmem:[%s10441_s15 + $0x598] sm:$0xff] %v608_v51  ;;  %v610_v52 = vld [vmem:[%s10436_s14 + $0xb40] sm:$0xff]  ;;  %v612_v53 = vld [vmem:[%s10436_s14 + $0xb48] sm:$0xff] }
  0x6c   : > { %v614_v54 = vld [vmem:[%s10436_s14 + $0xb60] sm:$0xff]  ;;  %611 = vst [vmem:[%s10441_s15 + $0x5a0] sm:$0xff] %v610_v52  ;;  %613 = vst [vmem:[%s10441_s15 + $0x5a8] sm:$0xff] %v612_v53  ;;  %v616_v55 = vld [vmem:[%s10436_s14 + $0xb68] sm:$0xff] }
  0x6d   : > { %615 = vst [vmem:[%s10441_s15 + $0x5b0] sm:$0xff] %v614_v54  ;;  %v618_v56 = vld [vmem:[%s10436_s14 + $0xb80] sm:$0xff]  ;;  %v620_v57 = vld [vmem:[%s10436_s14 + $0xb88] sm:$0xff]  ;;  %617 = vst [vmem:[%s10441_s15 + $0x5b8] sm:$0xff] %v616_v55 }
  0x6e   : > { %619 = vst [vmem:[%s10441_s15 + $0x5c0] sm:$0xff] %v618_v56  ;;  %621 = vst [vmem:[%s10441_s15 + $0x5c8] sm:$0xff] %v620_v57  ;;  %v622_v58 = vld [vmem:[%s10436_s14 + $0xba0] sm:$0xff]  ;;  %v624_v59 = vld [vmem:[%s10436_s14 + $0xba8] sm:$0xff] }
  0x6f   : > { %v626_v60 = vld [vmem:[%s10436_s14 + $0xbc0] sm:$0xff]  ;;  %623 = vst [vmem:[%s10441_s15 + $0x5d0] sm:$0xff] %v622_v58  ;;  %625 = vst [vmem:[%s10441_s15 + $0x5d8] sm:$0xff] %v624_v59  ;;  %v628_v61 = vld [vmem:[%s10436_s14 + $0xbc8] sm:$0xff] }
  0x70   : > { %627 = vst [vmem:[%s10441_s15 + $0x5e0] sm:$0xff] %v626_v60  ;;  %v630_v62 = vld [vmem:[%s10436_s14 + $0xbe0] sm:$0xff]  ;;  %v632_v63 = vld [vmem:[%s10436_s14 + $0xbe8] sm:$0xff]  ;;  %629 = vst [vmem:[%s10441_s15 + $0x5e8] sm:$0xff] %v628_v61 }
  0x71   : > { %631 = vst [vmem:[%s10441_s15 + $0x5f0] sm:$0xff] %v630_v62  ;;  %633 = vst [vmem:[%s10441_s15 + $0x5f8] sm:$0xff] %v632_v63  ;;  %v634_v0 = vld [vmem:[%s10436_s14 + $0xc00] sm:$0xff]  ;;  %v636_v1 = vld [vmem:[%s10436_s14 + $0xc08] sm:$0xff] }
  0x72   : > { %v638_v2 = vld [vmem:[%s10436_s14 + $0xc20] sm:$0xff]  ;;  %635 = vst [vmem:[%s10441_s15 + $0x600] sm:$0xff] %v634_v0  ;;  %637 = vst [vmem:[%s10441_s15 + $0x608] sm:$0xff] %v636_v1  ;;  %v640_v3 = vld [vmem:[%s10436_s14 + $0xc28] sm:$0xff] }
  0x73   : > { %639 = vst [vmem:[%s10441_s15 + $0x610] sm:$0xff] %v638_v2  ;;  %v642_v4 = vld [vmem:[%s10436_s14 + $0xc40] sm:$0xff]  ;;  %v644_v5 = vld [vmem:[%s10436_s14 + $0xc48] sm:$0xff]  ;;  %641 = vst [vmem:[%s10441_s15 + $0x618] sm:$0xff] %v640_v3 }
  0x74   : > { %643 = vst [vmem:[%s10441_s15 + $0x620] sm:$0xff] %v642_v4  ;;  %645 = vst [vmem:[%s10441_s15 + $0x628] sm:$0xff] %v644_v5  ;;  %v646_v6 = vld [vmem:[%s10436_s14 + $0xc60] sm:$0xff]  ;;  %v648_v7 = vld [vmem:[%s10436_s14 + $0xc68] sm:$0xff] }
  0x75   : > { %v650_v8 = vld [vmem:[%s10436_s14 + $0xc80] sm:$0xff]  ;;  %647 = vst [vmem:[%s10441_s15 + $0x630] sm:$0xff] %v646_v6  ;;  %649 = vst [vmem:[%s10441_s15 + $0x638] sm:$0xff] %v648_v7  ;;  %v652_v9 = vld [vmem:[%s10436_s14 + $0xc88] sm:$0xff] }
  0x76   : > { %651 = vst [vmem:[%s10441_s15 + $0x640] sm:$0xff] %v650_v8  ;;  %v654_v10 = vld [vmem:[%s10436_s14 + $0xca0] sm:$0xff]  ;;  %v656_v11 = vld [vmem:[%s10436_s14 + $0xca8] sm:$0xff]  ;;  %653 = vst [vmem:[%s10441_s15 + $0x648] sm:$0xff] %v652_v9 }
  0x77   : > { %655 = vst [vmem:[%s10441_s15 + $0x650] sm:$0xff] %v654_v10  ;;  %657 = vst [vmem:[%s10441_s15 + $0x658] sm:$0xff] %v656_v11  ;;  %v658_v12 = vld [vmem:[%s10436_s14 + $0xcc0] sm:$0xff]  ;;  %v660_v13 = vld [vmem:[%s10436_s14 + $0xcc8] sm:$0xff] }
  0x78   : > { %v662_v14 = vld [vmem:[%s10436_s14 + $0xce0] sm:$0xff]  ;;  %659 = vst [vmem:[%s10441_s15 + $0x660] sm:$0xff] %v658_v12  ;;  %661 = vst [vmem:[%s10441_s15 + $0x668] sm:$0xff] %v660_v13  ;;  %v664_v15 = vld [vmem:[%s10436_s14 + $0xce8] sm:$0xff] }
  0x79   : > { %663 = vst [vmem:[%s10441_s15 + $0x670] sm:$0xff] %v662_v14  ;;  %v666_v16 = vld [vmem:[%s10436_s14 + $0xd00] sm:$0xff]  ;;  %v668_v17 = vld [vmem:[%s10436_s14 + $0xd08] sm:$0xff]  ;;  %665 = vst [vmem:[%s10441_s15 + $0x678] sm:$0xff] %v664_v15 }
  0x7a   : > { %667 = vst [vmem:[%s10441_s15 + $0x680] sm:$0xff] %v666_v16  ;;  %669 = vst [vmem:[%s10441_s15 + $0x688] sm:$0xff] %v668_v17  ;;  %v670_v18 = vld [vmem:[%s10436_s14 + $0xd20] sm:$0xff]  ;;  %v672_v19 = vld [vmem:[%s10436_s14 + $0xd28] sm:$0xff] }
  0x7b   : > { %v674_v20 = vld [vmem:[%s10436_s14 + $0xd40] sm:$0xff]  ;;  %671 = vst [vmem:[%s10441_s15 + $0x690] sm:$0xff] %v670_v18  ;;  %673 = vst [vmem:[%s10441_s15 + $0x698] sm:$0xff] %v672_v19  ;;  %v676_v21 = vld [vmem:[%s10436_s14 + $0xd48] sm:$0xff] }
  0x7c   : > { %675 = vst [vmem:[%s10441_s15 + $0x6a0] sm:$0xff] %v674_v20  ;;  %v678_v22 = vld [vmem:[%s10436_s14 + $0xd60] sm:$0xff]  ;;  %v680_v23 = vld [vmem:[%s10436_s14 + $0xd68] sm:$0xff]  ;;  %677 = vst [vmem:[%s10441_s15 + $0x6a8] sm:$0xff] %v676_v21 }
  0x7d   : > { %679 = vst [vmem:[%s10441_s15 + $0x6b0] sm:$0xff] %v678_v22  ;;  %681 = vst [vmem:[%s10441_s15 + $0x6b8] sm:$0xff] %v680_v23  ;;  %v682_v24 = vld [vmem:[%s10436_s14 + $0xd80] sm:$0xff]  ;;  %v684_v25 = vld [vmem:[%s10436_s14 + $0xd88] sm:$0xff] }
  0x7e   : > { %v686_v26 = vld [vmem:[%s10436_s14 + $0xda0] sm:$0xff]  ;;  %683 = vst [vmem:[%s10441_s15 + $0x6c0] sm:$0xff] %v682_v24  ;;  %685 = vst [vmem:[%s10441_s15 + $0x6c8] sm:$0xff] %v684_v25  ;;  %v688_v27 = vld [vmem:[%s10436_s14 + $0xda8] sm:$0xff] }
  0x7f   : > { %687 = vst [vmem:[%s10441_s15 + $0x6d0] sm:$0xff] %v686_v26  ;;  %v690_v28 = vld [vmem:[%s10436_s14 + $0xdc0] sm:$0xff]  ;;  %v692_v29 = vld [vmem:[%s10436_s14 + $0xdc8] sm:$0xff]  ;;  %689 = vst [vmem:[%s10441_s15 + $0x6d8] sm:$0xff] %v688_v27 }
  0x80   : > { %691 = vst [vmem:[%s10441_s15 + $0x6e0] sm:$0xff] %v690_v28  ;;  %693 = vst [vmem:[%s10441_s15 + $0x6e8] sm:$0xff] %v692_v29  ;;  %v694_v30 = vld [vmem:[%s10436_s14 + $0xde0] sm:$0xff]  ;;  %v696_v31 = vld [vmem:[%s10436_s14 + $0xde8] sm:$0xff] }
  0x81   : > { %v698_v32 = vld [vmem:[%s10436_s14 + $0xe00] sm:$0xff]  ;;  %695 = vst [vmem:[%s10441_s15 + $0x6f0] sm:$0xff] %v694_v30  ;;  %697 = vst [vmem:[%s10441_s15 + $0x6f8] sm:$0xff] %v696_v31  ;;  %v700_v33 = vld [vmem:[%s10436_s14 + $0xe08] sm:$0xff] }
  0x82   : > { %699 = vst [vmem:[%s10441_s15 + $0x700] sm:$0xff] %v698_v32  ;;  %v702_v34 = vld [vmem:[%s10436_s14 + $0xe20] sm:$0xff]  ;;  %v704_v35 = vld [vmem:[%s10436_s14 + $0xe28] sm:$0xff]  ;;  %701 = vst [vmem:[%s10441_s15 + $0x708] sm:$0xff] %v700_v33 }
  0x83   : > { %703 = vst [vmem:[%s10441_s15 + $0x710] sm:$0xff] %v702_v34  ;;  %705 = vst [vmem:[%s10441_s15 + $0x718] sm:$0xff] %v704_v35  ;;  %v706_v36 = vld [vmem:[%s10436_s14 + $0xe40] sm:$0xff]  ;;  %v708_v37 = vld [vmem:[%s10436_s14 + $0xe48] sm:$0xff] }
  0x84   : > { %v710_v38 = vld [vmem:[%s10436_s14 + $0xe60] sm:$0xff]  ;;  %707 = vst [vmem:[%s10441_s15 + $0x720] sm:$0xff] %v706_v36  ;;  %709 = vst [vmem:[%s10441_s15 + $0x728] sm:$0xff] %v708_v37  ;;  %v712_v39 = vld [vmem:[%s10436_s14 + $0xe68] sm:$0xff] }
  0x85   : > { %711 = vst [vmem:[%s10441_s15 + $0x730] sm:$0xff] %v710_v38  ;;  %v714_v40 = vld [vmem:[%s10436_s14 + $0xe80] sm:$0xff]  ;;  %v716_v41 = vld [vmem:[%s10436_s14 + $0xe88] sm:$0xff]  ;;  %713 = vst [vmem:[%s10441_s15 + $0x738] sm:$0xff] %v712_v39 }
  0x86   : > { %715 = vst [vmem:[%s10441_s15 + $0x740] sm:$0xff] %v714_v40  ;;  %717 = vst [vmem:[%s10441_s15 + $0x748] sm:$0xff] %v716_v41  ;;  %v718_v42 = vld [vmem:[%s10436_s14 + $0xea0] sm:$0xff]  ;;  %v720_v43 = vld [vmem:[%s10436_s14 + $0xea8] sm:$0xff] }
  0x87   : > { %v722_v44 = vld [vmem:[%s10436_s14 + $0xec0] sm:$0xff]  ;;  %719 = vst [vmem:[%s10441_s15 + $0x750] sm:$0xff] %v718_v42  ;;  %721 = vst [vmem:[%s10441_s15 + $0x758] sm:$0xff] %v720_v43  ;;  %v724_v45 = vld [vmem:[%s10436_s14 + $0xec8] sm:$0xff] }
  0x88   : > { %723 = vst [vmem:[%s10441_s15 + $0x760] sm:$0xff] %v722_v44  ;;  %v726_v46 = vld [vmem:[%s10436_s14 + $0xee0] sm:$0xff]  ;;  %v728_v47 = vld [vmem:[%s10436_s14 + $0xee8] sm:$0xff]  ;;  %725 = vst [vmem:[%s10441_s15 + $0x768] sm:$0xff] %v724_v45 }
  0x89   : > { %727 = vst [vmem:[%s10441_s15 + $0x770] sm:$0xff] %v726_v46  ;;  %729 = vst [vmem:[%s10441_s15 + $0x778] sm:$0xff] %v728_v47  ;;  %v730_v48 = vld [vmem:[%s10436_s14 + $0xf00] sm:$0xff]  ;;  %v732_v49 = vld [vmem:[%s10436_s14 + $0xf08] sm:$0xff] }
  0x8a   : > { %v734_v50 = vld [vmem:[%s10436_s14 + $0xf20] sm:$0xff]  ;;  %731 = vst [vmem:[%s10441_s15 + $0x780] sm:$0xff] %v730_v48  ;;  %733 = vst [vmem:[%s10441_s15 + $0x788] sm:$0xff] %v732_v49  ;;  %v736_v51 = vld [vmem:[%s10436_s14 + $0xf28] sm:$0xff] }
  0x8b   : > { %735 = vst [vmem:[%s10441_s15 + $0x790] sm:$0xff] %v734_v50  ;;  %v738_v52 = vld [vmem:[%s10436_s14 + $0xf40] sm:$0xff]  ;;  %v740_v53 = vld [vmem:[%s10436_s14 + $0xf48] sm:$0xff]  ;;  %737 = vst [vmem:[%s10441_s15 + $0x798] sm:$0xff] %v736_v51 }
  0x8c   : > { %739 = vst [vmem:[%s10441_s15 + $0x7a0] sm:$0xff] %v738_v52  ;;  %741 = vst [vmem:[%s10441_s15 + $0x7a8] sm:$0xff] %v740_v53  ;;  %v742_v54 = vld [vmem:[%s10436_s14 + $0xf60] sm:$0xff]  ;;  %v744_v55 = vld [vmem:[%s10436_s14 + $0xf68] sm:$0xff] }
  0x8d   : > { %v746_v56 = vld [vmem:[%s10436_s14 + $0xf80] sm:$0xff]  ;;  %743 = vst [vmem:[%s10441_s15 + $0x7b0] sm:$0xff] %v742_v54  ;;  %745 = vst [vmem:[%s10441_s15 + $0x7b8] sm:$0xff] %v744_v55  ;;  %v748_v57 = vld [vmem:[%s10436_s14 + $0xf88] sm:$0xff] }
  0x8e   : > { %747 = vst [vmem:[%s10441_s15 + $0x7c0] sm:$0xff] %v746_v56  ;;  %v750_v58 = vld [vmem:[%s10436_s14 + $0xfa0] sm:$0xff]  ;;  %v752_v59 = vld [vmem:[%s10436_s14 + $0xfa8] sm:$0xff]  ;;  %749 = vst [vmem:[%s10441_s15 + $0x7c8] sm:$0xff] %v748_v57 }
  0x8f   : > { %751 = vst [vmem:[%s10441_s15 + $0x7d0] sm:$0xff] %v750_v58  ;;  %753 = vst [vmem:[%s10441_s15 + $0x7d8] sm:$0xff] %v752_v59  ;;  %v754_v60 = vld [vmem:[%s10436_s14 + $0xfc0] sm:$0xff]  ;;  %v756_v61 = vld [vmem:[%s10436_s14 + $0xfc8] sm:$0xff] }
  0x90   : > { %v758_v62 = vld [vmem:[%s10436_s14 + $0xfe0] sm:$0xff]  ;;  %755 = vst [vmem:[%s10441_s15 + $0x7e0] sm:$0xff] %v754_v60  ;;  %757 = vst [vmem:[%s10441_s15 + $0x7e8] sm:$0xff] %v756_v61  ;;  %v760_v63 = vld [vmem:[%s10436_s14 + $0xfe8] sm:$0xff] }
  0x91   : > { %759 = vst [vmem:[%s10441_s15 + $0x7f0] sm:$0xff] %v758_v62  ;;  %v762_v0 = vld [vmem:[%s10436_s14 + $0x1000] sm:$0xff]  ;;  %v764_v1 = vld [vmem:[%s10436_s14 + $0x1008] sm:$0xff]  ;;  %761 = vst [vmem:[%s10441_s15 + $0x7f8] sm:$0xff] %v760_v63 }
  0x92   : > { %763 = vst [vmem:[%s10441_s15 + $0x800] sm:$0xff] %v762_v0  ;;  %765 = vst [vmem:[%s10441_s15 + $0x808] sm:$0xff] %v764_v1  ;;  %v766_v2 = vld [vmem:[%s10436_s14 + $0x1020] sm:$0xff]  ;;  %v768_v3 = vld [vmem:[%s10436_s14 + $0x1028] sm:$0xff] }
  0x93   : > { %v770_v4 = vld [vmem:[%s10436_s14 + $0x1040] sm:$0xff]  ;;  %767 = vst [vmem:[%s10441_s15 + $0x810] sm:$0xff] %v766_v2  ;;  %769 = vst [vmem:[%s10441_s15 + $0x818] sm:$0xff] %v768_v3  ;;  %v772_v5 = vld [vmem:[%s10436_s14 + $0x1048] sm:$0xff] }
  0x94   : > { %771 = vst [vmem:[%s10441_s15 + $0x820] sm:$0xff] %v770_v4  ;;  %v774_v6 = vld [vmem:[%s10436_s14 + $0x1060] sm:$0xff]  ;;  %v776_v7 = vld [vmem:[%s10436_s14 + $0x1068] sm:$0xff]  ;;  %773 = vst [vmem:[%s10441_s15 + $0x828] sm:$0xff] %v772_v5 }
  0x95   : > { %775 = vst [vmem:[%s10441_s15 + $0x830] sm:$0xff] %v774_v6  ;;  %777 = vst [vmem:[%s10441_s15 + $0x838] sm:$0xff] %v776_v7  ;;  %v778_v8 = vld [vmem:[%s10436_s14 + $0x1080] sm:$0xff]  ;;  %v780_v9 = vld [vmem:[%s10436_s14 + $0x1088] sm:$0xff] }
  0x96   : > { %v782_v10 = vld [vmem:[%s10436_s14 + $0x10a0] sm:$0xff]  ;;  %779 = vst [vmem:[%s10441_s15 + $0x840] sm:$0xff] %v778_v8  ;;  %781 = vst [vmem:[%s10441_s15 + $0x848] sm:$0xff] %v780_v9  ;;  %v784_v11 = vld [vmem:[%s10436_s14 + $0x10a8] sm:$0xff] }
  0x97   : > { %783 = vst [vmem:[%s10441_s15 + $0x850] sm:$0xff] %v782_v10  ;;  %v786_v12 = vld [vmem:[%s10436_s14 + $0x10c0] sm:$0xff]  ;;  %v788_v13 = vld [vmem:[%s10436_s14 + $0x10c8] sm:$0xff]  ;;  %785 = vst [vmem:[%s10441_s15 + $0x858] sm:$0xff] %v784_v11 }
  0x98   : > { %787 = vst [vmem:[%s10441_s15 + $0x860] sm:$0xff] %v786_v12  ;;  %789 = vst [vmem:[%s10441_s15 + $0x868] sm:$0xff] %v788_v13  ;;  %v790_v14 = vld [vmem:[%s10436_s14 + $0x10e0] sm:$0xff]  ;;  %v792_v15 = vld [vmem:[%s10436_s14 + $0x10e8] sm:$0xff] }
  0x99   : > { %v794_v16 = vld [vmem:[%s10436_s14 + $0x1100] sm:$0xff]  ;;  %791 = vst [vmem:[%s10441_s15 + $0x870] sm:$0xff] %v790_v14  ;;  %793 = vst [vmem:[%s10441_s15 + $0x878] sm:$0xff] %v792_v15  ;;  %v796_v17 = vld [vmem:[%s10436_s14 + $0x1108] sm:$0xff] }
  0x9a   : > { %795 = vst [vmem:[%s10441_s15 + $0x880] sm:$0xff] %v794_v16  ;;  %v798_v18 = vld [vmem:[%s10436_s14 + $0x1120] sm:$0xff]  ;;  %v800_v19 = vld [vmem:[%s10436_s14 + $0x1128] sm:$0xff]  ;;  %797 = vst [vmem:[%s10441_s15 + $0x888] sm:$0xff] %v796_v17 }
  0x9b   : > { %799 = vst [vmem:[%s10441_s15 + $0x890] sm:$0xff] %v798_v18  ;;  %801 = vst [vmem:[%s10441_s15 + $0x898] sm:$0xff] %v800_v19  ;;  %v802_v20 = vld [vmem:[%s10436_s14 + $0x1140] sm:$0xff]  ;;  %v804_v21 = vld [vmem:[%s10436_s14 + $0x1148] sm:$0xff] }
  0x9c   : > { %v806_v22 = vld [vmem:[%s10436_s14 + $0x1160] sm:$0xff]  ;;  %803 = vst [vmem:[%s10441_s15 + $0x8a0] sm:$0xff] %v802_v20  ;;  %805 = vst [vmem:[%s10441_s15 + $0x8a8] sm:$0xff] %v804_v21  ;;  %v808_v23 = vld [vmem:[%s10436_s14 + $0x1168] sm:$0xff] }
  0x9d   : > { %807 = vst [vmem:[%s10441_s15 + $0x8b0] sm:$0xff] %v806_v22  ;;  %v810_v24 = vld [vmem:[%s10436_s14 + $0x1180] sm:$0xff]  ;;  %v812_v25 = vld [vmem:[%s10436_s14 + $0x1188] sm:$0xff]  ;;  %809 = vst [vmem:[%s10441_s15 + $0x8b8] sm:$0xff] %v808_v23 }
  0x9e   : > { %811 = vst [vmem:[%s10441_s15 + $0x8c0] sm:$0xff] %v810_v24  ;;  %813 = vst [vmem:[%s10441_s15 + $0x8c8] sm:$0xff] %v812_v25  ;;  %v814_v26 = vld [vmem:[%s10436_s14 + $0x11a0] sm:$0xff]  ;;  %v816_v27 = vld [vmem:[%s10436_s14 + $0x11a8] sm:$0xff] }
  0x9f   : > { %v818_v28 = vld [vmem:[%s10436_s14 + $0x11c0] sm:$0xff]  ;;  %815 = vst [vmem:[%s10441_s15 + $0x8d0] sm:$0xff] %v814_v26  ;;  %817 = vst [vmem:[%s10441_s15 + $0x8d8] sm:$0xff] %v816_v27  ;;  %v820_v29 = vld [vmem:[%s10436_s14 + $0x11c8] sm:$0xff] }
  0xa0   : > { %819 = vst [vmem:[%s10441_s15 + $0x8e0] sm:$0xff] %v818_v28  ;;  %v822_v30 = vld [vmem:[%s10436_s14 + $0x11e0] sm:$0xff]  ;;  %v824_v31 = vld [vmem:[%s10436_s14 + $0x11e8] sm:$0xff]  ;;  %821 = vst [vmem:[%s10441_s15 + $0x8e8] sm:$0xff] %v820_v29 }
  0xa1   : > { %823 = vst [vmem:[%s10441_s15 + $0x8f0] sm:$0xff] %v822_v30  ;;  %825 = vst [vmem:[%s10441_s15 + $0x8f8] sm:$0xff] %v824_v31  ;;  %v826_v32 = vld [vmem:[%s10436_s14 + $0x1200] sm:$0xff]  ;;  %v828_v33 = vld [vmem:[%s10436_s14 + $0x1208] sm:$0xff] }
  0xa2   : > { %v830_v34 = vld [vmem:[%s10436_s14 + $0x1220] sm:$0xff]  ;;  %827 = vst [vmem:[%s10441_s15 + $0x900] sm:$0xff] %v826_v32  ;;  %829 = vst [vmem:[%s10441_s15 + $0x908] sm:$0xff] %v828_v33  ;;  %v832_v35 = vld [vmem:[%s10436_s14 + $0x1228] sm:$0xff] }
  0xa3   : > { %831 = vst [vmem:[%s10441_s15 + $0x910] sm:$0xff] %v830_v34  ;;  %v834_v36 = vld [vmem:[%s10436_s14 + $0x1240] sm:$0xff]  ;;  %v836_v37 = vld [vmem:[%s10436_s14 + $0x1248] sm:$0xff]  ;;  %833 = vst [vmem:[%s10441_s15 + $0x918] sm:$0xff] %v832_v35 }
  0xa4   : > { %835 = vst [vmem:[%s10441_s15 + $0x920] sm:$0xff] %v834_v36  ;;  %837 = vst [vmem:[%s10441_s15 + $0x928] sm:$0xff] %v836_v37  ;;  %v838_v38 = vld [vmem:[%s10436_s14 + $0x1260] sm:$0xff]  ;;  %v840_v39 = vld [vmem:[%s10436_s14 + $0x1268] sm:$0xff] }
  0xa5   : > { %v842_v40 = vld [vmem:[%s10436_s14 + $0x1280] sm:$0xff]  ;;  %839 = vst [vmem:[%s10441_s15 + $0x930] sm:$0xff] %v838_v38  ;;  %841 = vst [vmem:[%s10441_s15 + $0x938] sm:$0xff] %v840_v39  ;;  %v844_v41 = vld [vmem:[%s10436_s14 + $0x1288] sm:$0xff] }
  0xa6   : > { %843 = vst [vmem:[%s10441_s15 + $0x940] sm:$0xff] %v842_v40  ;;  %v846_v42 = vld [vmem:[%s10436_s14 + $0x12a0] sm:$0xff]  ;;  %v848_v43 = vld [vmem:[%s10436_s14 + $0x12a8] sm:$0xff]  ;;  %845 = vst [vmem:[%s10441_s15 + $0x948] sm:$0xff] %v844_v41 }
  0xa7   : > { %847 = vst [vmem:[%s10441_s15 + $0x950] sm:$0xff] %v846_v42  ;;  %849 = vst [vmem:[%s10441_s15 + $0x958] sm:$0xff] %v848_v43  ;;  %v850_v44 = vld [vmem:[%s10436_s14 + $0x12c0] sm:$0xff]  ;;  %v852_v45 = vld [vmem:[%s10436_s14 + $0x12c8] sm:$0xff] }
  0xa8   : > { %v854_v46 = vld [vmem:[%s10436_s14 + $0x12e0] sm:$0xff]  ;;  %851 = vst [vmem:[%s10441_s15 + $0x960] sm:$0xff] %v850_v44  ;;  %853 = vst [vmem:[%s10441_s15 + $0x968] sm:$0xff] %v852_v45  ;;  %v856_v47 = vld [vmem:[%s10436_s14 + $0x12e8] sm:$0xff] }
  0xa9   : > { %855 = vst [vmem:[%s10441_s15 + $0x970] sm:$0xff] %v854_v46  ;;  %v858_v48 = vld [vmem:[%s10436_s14 + $0x1300] sm:$0xff]  ;;  %v860_v49 = vld [vmem:[%s10436_s14 + $0x1308] sm:$0xff]  ;;  %857 = vst [vmem:[%s10441_s15 + $0x978] sm:$0xff] %v856_v47 }
  0xaa   : > { %859 = vst [vmem:[%s10441_s15 + $0x980] sm:$0xff] %v858_v48  ;;  %861 = vst [vmem:[%s10441_s15 + $0x988] sm:$0xff] %v860_v49  ;;  %v862_v50 = vld [vmem:[%s10436_s14 + $0x1320] sm:$0xff]  ;;  %v864_v51 = vld [vmem:[%s10436_s14 + $0x1328] sm:$0xff] }
  0xab   : > { %v866_v52 = vld [vmem:[%s10436_s14 + $0x1340] sm:$0xff]  ;;  %863 = vst [vmem:[%s10441_s15 + $0x990] sm:$0xff] %v862_v50  ;;  %865 = vst [vmem:[%s10441_s15 + $0x998] sm:$0xff] %v864_v51  ;;  %v868_v53 = vld [vmem:[%s10436_s14 + $0x1348] sm:$0xff] }
  0xac   : > { %867 = vst [vmem:[%s10441_s15 + $0x9a0] sm:$0xff] %v866_v52  ;;  %v870_v54 = vld [vmem:[%s10436_s14 + $0x1360] sm:$0xff]  ;;  %v872_v55 = vld [vmem:[%s10436_s14 + $0x1368] sm:$0xff]  ;;  %869 = vst [vmem:[%s10441_s15 + $0x9a8] sm:$0xff] %v868_v53 }
  0xad   : > { %871 = vst [vmem:[%s10441_s15 + $0x9b0] sm:$0xff] %v870_v54  ;;  %873 = vst [vmem:[%s10441_s15 + $0x9b8] sm:$0xff] %v872_v55  ;;  %v874_v56 = vld [vmem:[%s10436_s14 + $0x1380] sm:$0xff]  ;;  %v876_v57 = vld [vmem:[%s10436_s14 + $0x1388] sm:$0xff] }
  0xae   : > { %v878_v58 = vld [vmem:[%s10436_s14 + $0x13a0] sm:$0xff]  ;;  %875 = vst [vmem:[%s10441_s15 + $0x9c0] sm:$0xff] %v874_v56  ;;  %877 = vst [vmem:[%s10441_s15 + $0x9c8] sm:$0xff] %v876_v57  ;;  %v880_v59 = vld [vmem:[%s10436_s14 + $0x13a8] sm:$0xff] }
  0xaf   : > { %879 = vst [vmem:[%s10441_s15 + $0x9d0] sm:$0xff] %v878_v58  ;;  %v882_v60 = vld [vmem:[%s10436_s14 + $0x13c0] sm:$0xff]  ;;  %v884_v61 = vld [vmem:[%s10436_s14 + $0x13c8] sm:$0xff]  ;;  %881 = vst [vmem:[%s10441_s15 + $0x9d8] sm:$0xff] %v880_v59 }
  0xb0   : > { %883 = vst [vmem:[%s10441_s15 + $0x9e0] sm:$0xff] %v882_v60  ;;  %885 = vst [vmem:[%s10441_s15 + $0x9e8] sm:$0xff] %v884_v61  ;;  %v886_v62 = vld [vmem:[%s10436_s14 + $0x13e0] sm:$0xff]  ;;  %v888_v63 = vld [vmem:[%s10436_s14 + $0x13e8] sm:$0xff] }
  0xb1   : > { %v890_v0 = vld [vmem:[%s10436_s14 + $0x1400] sm:$0xff]  ;;  %887 = vst [vmem:[%s10441_s15 + $0x9f0] sm:$0xff] %v886_v62  ;;  %889 = vst [vmem:[%s10441_s15 + $0x9f8] sm:$0xff] %v888_v63  ;;  %v892_v1 = vld [vmem:[%s10436_s14 + $0x1408] sm:$0xff] }
  0xb2   : > { %891 = vst [vmem:[%s10441_s15 + $0xa00] sm:$0xff] %v890_v0  ;;  %v894_v2 = vld [vmem:[%s10436_s14 + $0x1420] sm:$0xff]  ;;  %v896_v3 = vld [vmem:[%s10436_s14 + $0x1428] sm:$0xff]  ;;  %893 = vst [vmem:[%s10441_s15 + $0xa08] sm:$0xff] %v892_v1 }
  0xb3   : > { %895 = vst [vmem:[%s10441_s15 + $0xa10] sm:$0xff] %v894_v2  ;;  %897 = vst [vmem:[%s10441_s15 + $0xa18] sm:$0xff] %v896_v3  ;;  %v898_v4 = vld [vmem:[%s10436_s14 + $0x1440] sm:$0xff]  ;;  %v900_v5 = vld [vmem:[%s10436_s14 + $0x1448] sm:$0xff] }
  0xb4   : > { %v902_v6 = vld [vmem:[%s10436_s14 + $0x1460] sm:$0xff]  ;;  %899 = vst [vmem:[%s10441_s15 + $0xa20] sm:$0xff] %v898_v4  ;;  %901 = vst [vmem:[%s10441_s15 + $0xa28] sm:$0xff] %v900_v5  ;;  %v904_v7 = vld [vmem:[%s10436_s14 + $0x1468] sm:$0xff] }
  0xb5   : > { %903 = vst [vmem:[%s10441_s15 + $0xa30] sm:$0xff] %v902_v6  ;;  %v906_v8 = vld [vmem:[%s10436_s14 + $0x1480] sm:$0xff]  ;;  %v908_v9 = vld [vmem:[%s10436_s14 + $0x1488] sm:$0xff]  ;;  %905 = vst [vmem:[%s10441_s15 + $0xa38] sm:$0xff] %v904_v7 }
  0xb6   : > { %907 = vst [vmem:[%s10441_s15 + $0xa40] sm:$0xff] %v906_v8  ;;  %909 = vst [vmem:[%s10441_s15 + $0xa48] sm:$0xff] %v908_v9  ;;  %v910_v10 = vld [vmem:[%s10436_s14 + $0x14a0] sm:$0xff]  ;;  %v912_v11 = vld [vmem:[%s10436_s14 + $0x14a8] sm:$0xff] }
  0xb7   : > { %v914_v12 = vld [vmem:[%s10436_s14 + $0x14c0] sm:$0xff]  ;;  %911 = vst [vmem:[%s10441_s15 + $0xa50] sm:$0xff] %v910_v10  ;;  %913 = vst [vmem:[%s10441_s15 + $0xa58] sm:$0xff] %v912_v11  ;;  %v916_v13 = vld [vmem:[%s10436_s14 + $0x14c8] sm:$0xff] }
  0xb8   : > { %915 = vst [vmem:[%s10441_s15 + $0xa60] sm:$0xff] %v914_v12  ;;  %v918_v14 = vld [vmem:[%s10436_s14 + $0x14e0] sm:$0xff]  ;;  %v920_v15 = vld [vmem:[%s10436_s14 + $0x14e8] sm:$0xff]  ;;  %917 = vst [vmem:[%s10441_s15 + $0xa68] sm:$0xff] %v916_v13 }
  0xb9   : > { %919 = vst [vmem:[%s10441_s15 + $0xa70] sm:$0xff] %v918_v14  ;;  %921 = vst [vmem:[%s10441_s15 + $0xa78] sm:$0xff] %v920_v15  ;;  %v922_v16 = vld [vmem:[%s10436_s14 + $0x1500] sm:$0xff]  ;;  %v924_v17 = vld [vmem:[%s10436_s14 + $0x1508] sm:$0xff] }
  0xba   : > { %v926_v18 = vld [vmem:[%s10436_s14 + $0x1520] sm:$0xff]  ;;  %923 = vst [vmem:[%s10441_s15 + $0xa80] sm:$0xff] %v922_v16  ;;  %925 = vst [vmem:[%s10441_s15 + $0xa88] sm:$0xff] %v924_v17  ;;  %v928_v19 = vld [vmem:[%s10436_s14 + $0x1528] sm:$0xff] }
  0xbb   : > { %927 = vst [vmem:[%s10441_s15 + $0xa90] sm:$0xff] %v926_v18  ;;  %v930_v20 = vld [vmem:[%s10436_s14 + $0x1540] sm:$0xff]  ;;  %v932_v21 = vld [vmem:[%s10436_s14 + $0x1548] sm:$0xff]  ;;  %929 = vst [vmem:[%s10441_s15 + $0xa98] sm:$0xff] %v928_v19 }
  0xbc   : > { %931 = vst [vmem:[%s10441_s15 + $0xaa0] sm:$0xff] %v930_v20  ;;  %933 = vst [vmem:[%s10441_s15 + $0xaa8] sm:$0xff] %v932_v21  ;;  %v934_v22 = vld [vmem:[%s10436_s14 + $0x1560] sm:$0xff]  ;;  %v936_v23 = vld [vmem:[%s10436_s14 + $0x1568] sm:$0xff] }
  0xbd   : > { %v938_v24 = vld [vmem:[%s10436_s14 + $0x1580] sm:$0xff]  ;;  %935 = vst [vmem:[%s10441_s15 + $0xab0] sm:$0xff] %v934_v22  ;;  %937 = vst [vmem:[%s10441_s15 + $0xab8] sm:$0xff] %v936_v23  ;;  %v940_v25 = vld [vmem:[%s10436_s14 + $0x1588] sm:$0xff] }
  0xbe   : > { %939 = vst [vmem:[%s10441_s15 + $0xac0] sm:$0xff] %v938_v24  ;;  %v942_v26 = vld [vmem:[%s10436_s14 + $0x15a0] sm:$0xff]  ;;  %v944_v27 = vld [vmem:[%s10436_s14 + $0x15a8] sm:$0xff]  ;;  %941 = vst [vmem:[%s10441_s15 + $0xac8] sm:$0xff] %v940_v25 }
  0xbf   : > { %943 = vst [vmem:[%s10441_s15 + $0xad0] sm:$0xff] %v942_v26  ;;  %945 = vst [vmem:[%s10441_s15 + $0xad8] sm:$0xff] %v944_v27  ;;  %v946_v28 = vld [vmem:[%s10436_s14 + $0x15c0] sm:$0xff]  ;;  %v948_v29 = vld [vmem:[%s10436_s14 + $0x15c8] sm:$0xff] }
  0xc0   : > { %v950_v30 = vld [vmem:[%s10436_s14 + $0x15e0] sm:$0xff]  ;;  %947 = vst [vmem:[%s10441_s15 + $0xae0] sm:$0xff] %v946_v28  ;;  %949 = vst [vmem:[%s10441_s15 + $0xae8] sm:$0xff] %v948_v29  ;;  %v952_v31 = vld [vmem:[%s10436_s14 + $0x15e8] sm:$0xff] }
  0xc1   : > { %951 = vst [vmem:[%s10441_s15 + $0xaf0] sm:$0xff] %v950_v30  ;;  %v954_v32 = vld [vmem:[%s10436_s14 + $0x1600] sm:$0xff]  ;;  %v956_v33 = vld [vmem:[%s10436_s14 + $0x1608] sm:$0xff]  ;;  %953 = vst [vmem:[%s10441_s15 + $0xaf8] sm:$0xff] %v952_v31 }
  0xc2   : > { %955 = vst [vmem:[%s10441_s15 + $0xb00] sm:$0xff] %v954_v32  ;;  %957 = vst [vmem:[%s10441_s15 + $0xb08] sm:$0xff] %v956_v33  ;;  %v958_v34 = vld [vmem:[%s10436_s14 + $0x1620] sm:$0xff]  ;;  %v960_v35 = vld [vmem:[%s10436_s14 + $0x1628] sm:$0xff] }
  0xc3   : > { %v962_v36 = vld [vmem:[%s10436_s14 + $0x1640] sm:$0xff]  ;;  %959 = vst [vmem:[%s10441_s15 + $0xb10] sm:$0xff] %v958_v34  ;;  %961 = vst [vmem:[%s10441_s15 + $0xb18] sm:$0xff] %v960_v35  ;;  %v964_v37 = vld [vmem:[%s10436_s14 + $0x1648] sm:$0xff] }
  0xc4   : > { %963 = vst [vmem:[%s10441_s15 + $0xb20] sm:$0xff] %v962_v36  ;;  %v966_v38 = vld [vmem:[%s10436_s14 + $0x1660] sm:$0xff]  ;;  %v968_v39 = vld [vmem:[%s10436_s14 + $0x1668] sm:$0xff]  ;;  %965 = vst [vmem:[%s10441_s15 + $0xb28] sm:$0xff] %v964_v37 }
  0xc5   : > { %967 = vst [vmem:[%s10441_s15 + $0xb30] sm:$0xff] %v966_v38  ;;  %969 = vst [vmem:[%s10441_s15 + $0xb38] sm:$0xff] %v968_v39  ;;  %v970_v40 = vld [vmem:[%s10436_s14 + $0x1680] sm:$0xff]  ;;  %v972_v41 = vld [vmem:[%s10436_s14 + $0x1688] sm:$0xff] }
  0xc6   : > { %v974_v42 = vld [vmem:[%s10436_s14 + $0x16a0] sm:$0xff]  ;;  %971 = vst [vmem:[%s10441_s15 + $0xb40] sm:$0xff] %v970_v40  ;;  %973 = vst [vmem:[%s10441_s15 + $0xb48] sm:$0xff] %v972_v41  ;;  %v976_v43 = vld [vmem:[%s10436_s14 + $0x16a8] sm:$0xff] }
  0xc7   : > { %975 = vst [vmem:[%s10441_s15 + $0xb50] sm:$0xff] %v974_v42  ;;  %v978_v44 = vld [vmem:[%s10436_s14 + $0x16c0] sm:$0xff]  ;;  %v980_v45 = vld [vmem:[%s10436_s14 + $0x16c8] sm:$0xff]  ;;  %977 = vst [vmem:[%s10441_s15 + $0xb58] sm:$0xff] %v976_v43 }
  0xc8   : > { %979 = vst [vmem:[%s10441_s15 + $0xb60] sm:$0xff] %v978_v44  ;;  %981 = vst [vmem:[%s10441_s15 + $0xb68] sm:$0xff] %v980_v45  ;;  %v982_v46 = vld [vmem:[%s10436_s14 + $0x16e0] sm:$0xff]  ;;  %v984_v47 = vld [vmem:[%s10436_s14 + $0x16e8] sm:$0xff] }
  0xc9   : > { %v986_v48 = vld [vmem:[%s10436_s14 + $0x1700] sm:$0xff]  ;;  %983 = vst [vmem:[%s10441_s15 + $0xb70] sm:$0xff] %v982_v46  ;;  %985 = vst [vmem:[%s10441_s15 + $0xb78] sm:$0xff] %v984_v47  ;;  %v988_v49 = vld [vmem:[%s10436_s14 + $0x1708] sm:$0xff] }
  0xca   : > { %987 = vst [vmem:[%s10441_s15 + $0xb80] sm:$0xff] %v986_v48  ;;  %v990_v50 = vld [vmem:[%s10436_s14 + $0x1720] sm:$0xff]  ;;  %v992_v51 = vld [vmem:[%s10436_s14 + $0x1728] sm:$0xff]  ;;  %989 = vst [vmem:[%s10441_s15 + $0xb88] sm:$0xff] %v988_v49 }
  0xcb   : > { %991 = vst [vmem:[%s10441_s15 + $0xb90] sm:$0xff] %v990_v50  ;;  %993 = vst [vmem:[%s10441_s15 + $0xb98] sm:$0xff] %v992_v51  ;;  %v994_v52 = vld [vmem:[%s10436_s14 + $0x1740] sm:$0xff]  ;;  %v996_v53 = vld [vmem:[%s10436_s14 + $0x1748] sm:$0xff] }
  0xcc   : > { %v998_v54 = vld [vmem:[%s10436_s14 + $0x1760] sm:$0xff]  ;;  %995 = vst [vmem:[%s10441_s15 + $0xba0] sm:$0xff] %v994_v52  ;;  %997 = vst [vmem:[%s10441_s15 + $0xba8] sm:$0xff] %v996_v53  ;;  %v1000_v55 = vld [vmem:[%s10436_s14 + $0x1768] sm:$0xff] }
  0xcd   : > { %999 = vst [vmem:[%s10441_s15 + $0xbb0] sm:$0xff] %v998_v54  ;;  %v1002_v56 = vld [vmem:[%s10436_s14 + $0x1780] sm:$0xff]  ;;  %v1004_v57 = vld [vmem:[%s10436_s14 + $0x1788] sm:$0xff]  ;;  %1001 = vst [vmem:[%s10441_s15 + $0xbb8] sm:$0xff] %v1000_v55 }
  0xce   : > { %1003 = vst [vmem:[%s10441_s15 + $0xbc0] sm:$0xff] %v1002_v56  ;;  %1005 = vst [vmem:[%s10441_s15 + $0xbc8] sm:$0xff] %v1004_v57  ;;  %v1006_v58 = vld [vmem:[%s10436_s14 + $0x17a0] sm:$0xff]  ;;  %v1008_v59 = vld [vmem:[%s10436_s14 + $0x17a8] sm:$0xff] }
  0xcf   : > { %v1010_v60 = vld [vmem:[%s10436_s14 + $0x17c0] sm:$0xff]  ;;  %1007 = vst [vmem:[%s10441_s15 + $0xbd0] sm:$0xff] %v1006_v58  ;;  %1009 = vst [vmem:[%s10441_s15 + $0xbd8] sm:$0xff] %v1008_v59  ;;  %v1012_v61 = vld [vmem:[%s10436_s14 + $0x17c8] sm:$0xff] }
  0xd0   : > { %1011 = vst [vmem:[%s10441_s15 + $0xbe0] sm:$0xff] %v1010_v60  ;;  %v1014_v62 = vld [vmem:[%s10436_s14 + $0x17e0] sm:$0xff]  ;;  %v1016_v63 = vld [vmem:[%s10436_s14 + $0x17e8] sm:$0xff]  ;;  %1013 = vst [vmem:[%s10441_s15 + $0xbe8] sm:$0xff] %v1012_v61 }
  0xd1   : > { %1015 = vst [vmem:[%s10441_s15 + $0xbf0] sm:$0xff] %v1014_v62  ;;  %1017 = vst [vmem:[%s10441_s15 + $0xbf8] sm:$0xff] %v1016_v63  ;;  %v1018_v0 = vld [vmem:[%s10436_s14 + $0x1800] sm:$0xff]  ;;  %v1020_v1 = vld [vmem:[%s10436_s14 + $0x1808] sm:$0xff] }
  0xd2   : > { %v1022_v2 = vld [vmem:[%s10436_s14 + $0x1820] sm:$0xff]  ;;  %1019 = vst [vmem:[%s10441_s15 + $0xc00] sm:$0xff] %v1018_v0  ;;  %1021 = vst [vmem:[%s10441_s15 + $0xc08] sm:$0xff] %v1020_v1  ;;  %v1024_v3 = vld [vmem:[%s10436_s14 + $0x1828] sm:$0xff] }
  0xd3   : > { %1023 = vst [vmem:[%s10441_s15 + $0xc10] sm:$0xff] %v1022_v2  ;;  %v1026_v4 = vld [vmem:[%s10436_s14 + $0x1840] sm:$0xff]  ;;  %v1028_v5 = vld [vmem:[%s10436_s14 + $0x1848] sm:$0xff]  ;;  %1025 = vst [vmem:[%s10441_s15 + $0xc18] sm:$0xff] %v1024_v3 }
  0xd4   : > { %1027 = vst [vmem:[%s10441_s15 + $0xc20] sm:$0xff] %v1026_v4  ;;  %1029 = vst [vmem:[%s10441_s15 + $0xc28] sm:$0xff] %v1028_v5  ;;  %v1030_v6 = vld [vmem:[%s10436_s14 + $0x1860] sm:$0xff]  ;;  %v1032_v7 = vld [vmem:[%s10436_s14 + $0x1868] sm:$0xff] }
  0xd5   : > { %v1034_v8 = vld [vmem:[%s10436_s14 + $0x1880] sm:$0xff]  ;;  %1031 = vst [vmem:[%s10441_s15 + $0xc30] sm:$0xff] %v1030_v6  ;;  %1033 = vst [vmem:[%s10441_s15 + $0xc38] sm:$0xff] %v1032_v7  ;;  %v1036_v9 = vld [vmem:[%s10436_s14 + $0x1888] sm:$0xff] }
  0xd6   : > { %1035 = vst [vmem:[%s10441_s15 + $0xc40] sm:$0xff] %v1034_v8  ;;  %v1038_v10 = vld [vmem:[%s10436_s14 + $0x18a0] sm:$0xff]  ;;  %v1040_v11 = vld [vmem:[%s10436_s14 + $0x18a8] sm:$0xff]  ;;  %1037 = vst [vmem:[%s10441_s15 + $0xc48] sm:$0xff] %v1036_v9 }
  0xd7   : > { %1039 = vst [vmem:[%s10441_s15 + $0xc50] sm:$0xff] %v1038_v10  ;;  %1041 = vst [vmem:[%s10441_s15 + $0xc58] sm:$0xff] %v1040_v11  ;;  %v1042_v12 = vld [vmem:[%s10436_s14 + $0x18c0] sm:$0xff]  ;;  %v1044_v13 = vld [vmem:[%s10436_s14 + $0x18c8] sm:$0xff] }
  0xd8   : > { %v1046_v14 = vld [vmem:[%s10436_s14 + $0x18e0] sm:$0xff]  ;;  %1043 = vst [vmem:[%s10441_s15 + $0xc60] sm:$0xff] %v1042_v12  ;;  %1045 = vst [vmem:[%s10441_s15 + $0xc68] sm:$0xff] %v1044_v13  ;;  %v1048_v15 = vld [vmem:[%s10436_s14 + $0x18e8] sm:$0xff] }
  0xd9   : > { %1047 = vst [vmem:[%s10441_s15 + $0xc70] sm:$0xff] %v1046_v14  ;;  %v1050_v16 = vld [vmem:[%s10436_s14 + $0x1900] sm:$0xff]  ;;  %v1052_v17 = vld [vmem:[%s10436_s14 + $0x1908] sm:$0xff]  ;;  %1049 = vst [vmem:[%s10441_s15 + $0xc78] sm:$0xff] %v1048_v15 }
  0xda   : > { %1051 = vst [vmem:[%s10441_s15 + $0xc80] sm:$0xff] %v1050_v16  ;;  %1053 = vst [vmem:[%s10441_s15 + $0xc88] sm:$0xff] %v1052_v17  ;;  %v1054_v18 = vld [vmem:[%s10436_s14 + $0x1920] sm:$0xff]  ;;  %v1056_v19 = vld [vmem:[%s10436_s14 + $0x1928] sm:$0xff] }
  0xdb   : > { %v1058_v20 = vld [vmem:[%s10436_s14 + $0x1940] sm:$0xff]  ;;  %1055 = vst [vmem:[%s10441_s15 + $0xc90] sm:$0xff] %v1054_v18  ;;  %1057 = vst [vmem:[%s10441_s15 + $0xc98] sm:$0xff] %v1056_v19  ;;  %v1060_v21 = vld [vmem:[%s10436_s14 + $0x1948] sm:$0xff] }
  0xdc   : > { %1059 = vst [vmem:[%s10441_s15 + $0xca0] sm:$0xff] %v1058_v20  ;;  %v1062_v22 = vld [vmem:[%s10436_s14 + $0x1960] sm:$0xff]  ;;  %v1064_v23 = vld [vmem:[%s10436_s14 + $0x1968] sm:$0xff]  ;;  %1061 = vst [vmem:[%s10441_s15 + $0xca8] sm:$0xff] %v1060_v21 }
  0xdd   : > { %1063 = vst [vmem:[%s10441_s15 + $0xcb0] sm:$0xff] %v1062_v22  ;;  %1065 = vst [vmem:[%s10441_s15 + $0xcb8] sm:$0xff] %v1064_v23  ;;  %v1066_v24 = vld [vmem:[%s10436_s14 + $0x1980] sm:$0xff]  ;;  %v1068_v25 = vld [vmem:[%s10436_s14 + $0x1988] sm:$0xff] }
  0xde   : > { %v1070_v26 = vld [vmem:[%s10436_s14 + $0x19a0] sm:$0xff]  ;;  %1067 = vst [vmem:[%s10441_s15 + $0xcc0] sm:$0xff] %v1066_v24  ;;  %1069 = vst [vmem:[%s10441_s15 + $0xcc8] sm:$0xff] %v1068_v25  ;;  %v1072_v27 = vld [vmem:[%s10436_s14 + $0x19a8] sm:$0xff] }
  0xdf   : > { %1071 = vst [vmem:[%s10441_s15 + $0xcd0] sm:$0xff] %v1070_v26  ;;  %v1074_v28 = vld [vmem:[%s10436_s14 + $0x19c0] sm:$0xff]  ;;  %v1076_v29 = vld [vmem:[%s10436_s14 + $0x19c8] sm:$0xff]  ;;  %1073 = vst [vmem:[%s10441_s15 + $0xcd8] sm:$0xff] %v1072_v27 }
  0xe0   : > { %1075 = vst [vmem:[%s10441_s15 + $0xce0] sm:$0xff] %v1074_v28  ;;  %1077 = vst [vmem:[%s10441_s15 + $0xce8] sm:$0xff] %v1076_v29  ;;  %v1078_v30 = vld [vmem:[%s10436_s14 + $0x19e0] sm:$0xff]  ;;  %v1080_v31 = vld [vmem:[%s10436_s14 + $0x19e8] sm:$0xff] }
  0xe1   : > { %v1082_v32 = vld [vmem:[%s10436_s14 + $0x1a00] sm:$0xff]  ;;  %1079 = vst [vmem:[%s10441_s15 + $0xcf0] sm:$0xff] %v1078_v30  ;;  %1081 = vst [vmem:[%s10441_s15 + $0xcf8] sm:$0xff] %v1080_v31  ;;  %v1084_v33 = vld [vmem:[%s10436_s14 + $0x1a08] sm:$0xff] }
  0xe2   : > { %1083 = vst [vmem:[%s10441_s15 + $0xd00] sm:$0xff] %v1082_v32  ;;  %v1086_v34 = vld [vmem:[%s10436_s14 + $0x1a20] sm:$0xff]  ;;  %v1088_v35 = vld [vmem:[%s10436_s14 + $0x1a28] sm:$0xff]  ;;  %1085 = vst [vmem:[%s10441_s15 + $0xd08] sm:$0xff] %v1084_v33 }
  0xe3   : > { %1087 = vst [vmem:[%s10441_s15 + $0xd10] sm:$0xff] %v1086_v34  ;;  %1089 = vst [vmem:[%s10441_s15 + $0xd18] sm:$0xff] %v1088_v35  ;;  %v1090_v36 = vld [vmem:[%s10436_s14 + $0x1a40] sm:$0xff]  ;;  %v1092_v37 = vld [vmem:[%s10436_s14 + $0x1a48] sm:$0xff] }
  0xe4   : > { %v1094_v38 = vld [vmem:[%s10436_s14 + $0x1a60] sm:$0xff]  ;;  %1091 = vst [vmem:[%s10441_s15 + $0xd20] sm:$0xff] %v1090_v36  ;;  %1093 = vst [vmem:[%s10441_s15 + $0xd28] sm:$0xff] %v1092_v37  ;;  %v1096_v39 = vld [vmem:[%s10436_s14 + $0x1a68] sm:$0xff] }
  0xe5   : > { %1095 = vst [vmem:[%s10441_s15 + $0xd30] sm:$0xff] %v1094_v38  ;;  %v1098_v40 = vld [vmem:[%s10436_s14 + $0x1a80] sm:$0xff]  ;;  %v1100_v41 = vld [vmem:[%s10436_s14 + $0x1a88] sm:$0xff]  ;;  %1097 = vst [vmem:[%s10441_s15 + $0xd38] sm:$0xff] %v1096_v39 }
  0xe6   : > { %1099 = vst [vmem:[%s10441_s15 + $0xd40] sm:$0xff] %v1098_v40  ;;  %1101 = vst [vmem:[%s10441_s15 + $0xd48] sm:$0xff] %v1100_v41  ;;  %v1102_v42 = vld [vmem:[%s10436_s14 + $0x1aa0] sm:$0xff]  ;;  %v1104_v43 = vld [vmem:[%s10436_s14 + $0x1aa8] sm:$0xff] }
  0xe7   : > { %v1106_v44 = vld [vmem:[%s10436_s14 + $0x1ac0] sm:$0xff]  ;;  %1103 = vst [vmem:[%s10441_s15 + $0xd50] sm:$0xff] %v1102_v42  ;;  %1105 = vst [vmem:[%s10441_s15 + $0xd58] sm:$0xff] %v1104_v43  ;;  %v1108_v45 = vld [vmem:[%s10436_s14 + $0x1ac8] sm:$0xff] }
  0xe8   : > { %1107 = vst [vmem:[%s10441_s15 + $0xd60] sm:$0xff] %v1106_v44  ;;  %v1110_v46 = vld [vmem:[%s10436_s14 + $0x1ae0] sm:$0xff]  ;;  %v1112_v47 = vld [vmem:[%s10436_s14 + $0x1ae8] sm:$0xff]  ;;  %1109 = vst [vmem:[%s10441_s15 + $0xd68] sm:$0xff] %v1108_v45 }
  0xe9   : > { %1111 = vst [vmem:[%s10441_s15 + $0xd70] sm:$0xff] %v1110_v46  ;;  %1113 = vst [vmem:[%s10441_s15 + $0xd78] sm:$0xff] %v1112_v47  ;;  %v1114_v48 = vld [vmem:[%s10436_s14 + $0x1b00] sm:$0xff]  ;;  %v1116_v49 = vld [vmem:[%s10436_s14 + $0x1b08] sm:$0xff] }
  0xea   : > { %v1118_v50 = vld [vmem:[%s10436_s14 + $0x1b20] sm:$0xff]  ;;  %1115 = vst [vmem:[%s10441_s15 + $0xd80] sm:$0xff] %v1114_v48  ;;  %1117 = vst [vmem:[%s10441_s15 + $0xd88] sm:$0xff] %v1116_v49  ;;  %v1120_v51 = vld [vmem:[%s10436_s14 + $0x1b28] sm:$0xff] }
  0xeb   : > { %1119 = vst [vmem:[%s10441_s15 + $0xd90] sm:$0xff] %v1118_v50  ;;  %v1122_v52 = vld [vmem:[%s10436_s14 + $0x1b40] sm:$0xff]  ;;  %v1124_v53 = vld [vmem:[%s10436_s14 + $0x1b48] sm:$0xff]  ;;  %1121 = vst [vmem:[%s10441_s15 + $0xd98] sm:$0xff] %v1120_v51 }
  0xec   : > { %1123 = vst [vmem:[%s10441_s15 + $0xda0] sm:$0xff] %v1122_v52  ;;  %1125 = vst [vmem:[%s10441_s15 + $0xda8] sm:$0xff] %v1124_v53  ;;  %v1126_v54 = vld [vmem:[%s10436_s14 + $0x1b60] sm:$0xff]  ;;  %v1128_v55 = vld [vmem:[%s10436_s14 + $0x1b68] sm:$0xff] }
  0xed   : > { %v1130_v56 = vld [vmem:[%s10436_s14 + $0x1b80] sm:$0xff]  ;;  %1127 = vst [vmem:[%s10441_s15 + $0xdb0] sm:$0xff] %v1126_v54  ;;  %1129 = vst [vmem:[%s10441_s15 + $0xdb8] sm:$0xff] %v1128_v55  ;;  %v1132_v57 = vld [vmem:[%s10436_s14 + $0x1b88] sm:$0xff] }
  0xee   : > { %1131 = vst [vmem:[%s10441_s15 + $0xdc0] sm:$0xff] %v1130_v56  ;;  %v1134_v58 = vld [vmem:[%s10436_s14 + $0x1ba0] sm:$0xff]  ;;  %v1136_v59 = vld [vmem:[%s10436_s14 + $0x1ba8] sm:$0xff]  ;;  %1133 = vst [vmem:[%s10441_s15 + $0xdc8] sm:$0xff] %v1132_v57 }
  0xef   : > { %1135 = vst [vmem:[%s10441_s15 + $0xdd0] sm:$0xff] %v1134_v58  ;;  %1137 = vst [vmem:[%s10441_s15 + $0xdd8] sm:$0xff] %v1136_v59  ;;  %v1138_v60 = vld [vmem:[%s10436_s14 + $0x1bc0] sm:$0xff]  ;;  %v1140_v61 = vld [vmem:[%s10436_s14 + $0x1bc8] sm:$0xff] }
  0xf0   : > { %v1142_v62 = vld [vmem:[%s10436_s14 + $0x1be0] sm:$0xff]  ;;  %1139 = vst [vmem:[%s10441_s15 + $0xde0] sm:$0xff] %v1138_v60  ;;  %1141 = vst [vmem:[%s10441_s15 + $0xde8] sm:$0xff] %v1140_v61  ;;  %v1144_v63 = vld [vmem:[%s10436_s14 + $0x1be8] sm:$0xff] }
  0xf1   : > { %1143 = vst [vmem:[%s10441_s15 + $0xdf0] sm:$0xff] %v1142_v62  ;;  %v1146_v0 = vld [vmem:[%s10436_s14 + $0x1c00] sm:$0xff]  ;;  %v1148_v1 = vld [vmem:[%s10436_s14 + $0x1c08] sm:$0xff]  ;;  %1145 = vst [vmem:[%s10441_s15 + $0xdf8] sm:$0xff] %v1144_v63 }
  0xf2   : > { %1147 = vst [vmem:[%s10441_s15 + $0xe00] sm:$0xff] %v1146_v0  ;;  %1149 = vst [vmem:[%s10441_s15 + $0xe08] sm:$0xff] %v1148_v1  ;;  %v1150_v2 = vld [vmem:[%s10436_s14 + $0x1c20] sm:$0xff]  ;;  %v1152_v3 = vld [vmem:[%s10436_s14 + $0x1c28] sm:$0xff] }
  0xf3   : > { %v1154_v4 = vld [vmem:[%s10436_s14 + $0x1c40] sm:$0xff]  ;;  %1151 = vst [vmem:[%s10441_s15 + $0xe10] sm:$0xff] %v1150_v2  ;;  %1153 = vst [vmem:[%s10441_s15 + $0xe18] sm:$0xff] %v1152_v3  ;;  %v1156_v5 = vld [vmem:[%s10436_s14 + $0x1c48] sm:$0xff] }
  0xf4   : > { %1155 = vst [vmem:[%s10441_s15 + $0xe20] sm:$0xff] %v1154_v4  ;;  %v1158_v6 = vld [vmem:[%s10436_s14 + $0x1c60] sm:$0xff]  ;;  %v1160_v7 = vld [vmem:[%s10436_s14 + $0x1c68] sm:$0xff]  ;;  %1157 = vst [vmem:[%s10441_s15 + $0xe28] sm:$0xff] %v1156_v5 }
  0xf5   : > { %1159 = vst [vmem:[%s10441_s15 + $0xe30] sm:$0xff] %v1158_v6  ;;  %1161 = vst [vmem:[%s10441_s15 + $0xe38] sm:$0xff] %v1160_v7  ;;  %v1162_v8 = vld [vmem:[%s10436_s14 + $0x1c80] sm:$0xff]  ;;  %v1164_v9 = vld [vmem:[%s10436_s14 + $0x1c88] sm:$0xff] }
  0xf6   : > { %v1166_v10 = vld [vmem:[%s10436_s14 + $0x1ca0] sm:$0xff]  ;;  %1163 = vst [vmem:[%s10441_s15 + $0xe40] sm:$0xff] %v1162_v8  ;;  %1165 = vst [vmem:[%s10441_s15 + $0xe48] sm:$0xff] %v1164_v9  ;;  %v1168_v11 = vld [vmem:[%s10436_s14 + $0x1ca8] sm:$0xff] }
  0xf7   : > { %1167 = vst [vmem:[%s10441_s15 + $0xe50] sm:$0xff] %v1166_v10  ;;  %v1170_v12 = vld [vmem:[%s10436_s14 + $0x1cc0] sm:$0xff]  ;;  %v1172_v13 = vld [vmem:[%s10436_s14 + $0x1cc8] sm:$0xff]  ;;  %1169 = vst [vmem:[%s10441_s15 + $0xe58] sm:$0xff] %v1168_v11 }
  0xf8   : > { %1171 = vst [vmem:[%s10441_s15 + $0xe60] sm:$0xff] %v1170_v12  ;;  %1173 = vst [vmem:[%s10441_s15 + $0xe68] sm:$0xff] %v1172_v13  ;;  %v1174_v14 = vld [vmem:[%s10436_s14 + $0x1ce0] sm:$0xff]  ;;  %v1176_v15 = vld [vmem:[%s10436_s14 + $0x1ce8] sm:$0xff] }
  0xf9   : > { %v1178_v16 = vld [vmem:[%s10436_s14 + $0x1d00] sm:$0xff]  ;;  %1175 = vst [vmem:[%s10441_s15 + $0xe70] sm:$0xff] %v1174_v14  ;;  %1177 = vst [vmem:[%s10441_s15 + $0xe78] sm:$0xff] %v1176_v15  ;;  %v1180_v17 = vld [vmem:[%s10436_s14 + $0x1d08] sm:$0xff] }
  0xfa   : > { %1179 = vst [vmem:[%s10441_s15 + $0xe80] sm:$0xff] %v1178_v16  ;;  %v1182_v18 = vld [vmem:[%s10436_s14 + $0x1d20] sm:$0xff]  ;;  %v1184_v19 = vld [vmem:[%s10436_s14 + $0x1d28] sm:$0xff]  ;;  %1181 = vst [vmem:[%s10441_s15 + $0xe88] sm:$0xff] %v1180_v17 }
  0xfb   : > { %1183 = vst [vmem:[%s10441_s15 + $0xe90] sm:$0xff] %v1182_v18  ;;  %1185 = vst [vmem:[%s10441_s15 + $0xe98] sm:$0xff] %v1184_v19  ;;  %v1186_v20 = vld [vmem:[%s10436_s14 + $0x1d40] sm:$0xff]  ;;  %v1188_v21 = vld [vmem:[%s10436_s14 + $0x1d48] sm:$0xff] }
  0xfc   : > { %v1190_v22 = vld [vmem:[%s10436_s14 + $0x1d60] sm:$0xff]  ;;  %1187 = vst [vmem:[%s10441_s15 + $0xea0] sm:$0xff] %v1186_v20  ;;  %1189 = vst [vmem:[%s10441_s15 + $0xea8] sm:$0xff] %v1188_v21  ;;  %v1192_v23 = vld [vmem:[%s10436_s14 + $0x1d68] sm:$0xff] }
  0xfd   : > { %1191 = vst [vmem:[%s10441_s15 + $0xeb0] sm:$0xff] %v1190_v22  ;;  %v1194_v24 = vld [vmem:[%s10436_s14 + $0x1d80] sm:$0xff]  ;;  %v1196_v25 = vld [vmem:[%s10436_s14 + $0x1d88] sm:$0xff]  ;;  %1193 = vst [vmem:[%s10441_s15 + $0xeb8] sm:$0xff] %v1192_v23 }
  0xfe   : > { %1195 = vst [vmem:[%s10441_s15 + $0xec0] sm:$0xff] %v1194_v24  ;;  %1197 = vst [vmem:[%s10441_s15 + $0xec8] sm:$0xff] %v1196_v25  ;;  %v1198_v26 = vld [vmem:[%s10436_s14 + $0x1da0] sm:$0xff]  ;;  %v1200_v27 = vld [vmem:[%s10436_s14 + $0x1da8] sm:$0xff] }
  0xff   : > { %v1202_v28 = vld [vmem:[%s10436_s14 + $0x1dc0] sm:$0xff]  ;;  %1199 = vst [vmem:[%s10441_s15 + $0xed0] sm:$0xff] %v1198_v26  ;;  %1201 = vst [vmem:[%s10441_s15 + $0xed8] sm:$0xff] %v1200_v27  ;;  %v1204_v29 = vld [vmem:[%s10436_s14 + $0x1dc8] sm:$0xff] }
 0x100   : > { %1203 = vst [vmem:[%s10441_s15 + $0xee0] sm:$0xff] %v1202_v28  ;;  %v1206_v30 = vld [vmem:[%s10436_s14 + $0x1de0] sm:$0xff]  ;;  %v1208_v31 = vld [vmem:[%s10436_s14 + $0x1de8] sm:$0xff]  ;;  %1205 = vst [vmem:[%s10441_s15 + $0xee8] sm:$0xff] %v1204_v29 }
 0x101   : > { %1207 = vst [vmem:[%s10441_s15 + $0xef0] sm:$0xff] %v1206_v30  ;;  %1209 = vst [vmem:[%s10441_s15 + $0xef8] sm:$0xff] %v1208_v31  ;;  %v1210_v32 = vld [vmem:[%s10436_s14 + $0x1e00] sm:$0xff]  ;;  %v1212_v33 = vld [vmem:[%s10436_s14 + $0x1e08] sm:$0xff] }
 0x102   : > { %v1214_v34 = vld [vmem:[%s10436_s14 + $0x1e20] sm:$0xff]  ;;  %1211 = vst [vmem:[%s10441_s15 + $0xf00] sm:$0xff] %v1210_v32  ;;  %1213 = vst [vmem:[%s10441_s15 + $0xf08] sm:$0xff] %v1212_v33  ;;  %v1216_v35 = vld [vmem:[%s10436_s14 + $0x1e28] sm:$0xff] }
 0x103   : > { %1215 = vst [vmem:[%s10441_s15 + $0xf10] sm:$0xff] %v1214_v34  ;;  %v1218_v36 = vld [vmem:[%s10436_s14 + $0x1e40] sm:$0xff]  ;;  %v1220_v37 = vld [vmem:[%s10436_s14 + $0x1e48] sm:$0xff]  ;;  %1217 = vst [vmem:[%s10441_s15 + $0xf18] sm:$0xff] %v1216_v35 }
 0x104   : > { %1219 = vst [vmem:[%s10441_s15 + $0xf20] sm:$0xff] %v1218_v36  ;;  %1221 = vst [vmem:[%s10441_s15 + $0xf28] sm:$0xff] %v1220_v37  ;;  %v1222_v38 = vld [vmem:[%s10436_s14 + $0x1e60] sm:$0xff]  ;;  %v1224_v39 = vld [vmem:[%s10436_s14 + $0x1e68] sm:$0xff] }
 0x105   : > { %v1226_v40 = vld [vmem:[%s10436_s14 + $0x1e80] sm:$0xff]  ;;  %1223 = vst [vmem:[%s10441_s15 + $0xf30] sm:$0xff] %v1222_v38  ;;  %1225 = vst [vmem:[%s10441_s15 + $0xf38] sm:$0xff] %v1224_v39  ;;  %v1228_v41 = vld [vmem:[%s10436_s14 + $0x1e88] sm:$0xff] }
 0x106   : > { %1227 = vst [vmem:[%s10441_s15 + $0xf40] sm:$0xff] %v1226_v40  ;;  %v1230_v42 = vld [vmem:[%s10436_s14 + $0x1ea0] sm:$0xff]  ;;  %v1232_v43 = vld [vmem:[%s10436_s14 + $0x1ea8] sm:$0xff]  ;;  %1229 = vst [vmem:[%s10441_s15 + $0xf48] sm:$0xff] %v1228_v41 }
 0x107   : > { %1231 = vst [vmem:[%s10441_s15 + $0xf50] sm:$0xff] %v1230_v42  ;;  %1233 = vst [vmem:[%s10441_s15 + $0xf58] sm:$0xff] %v1232_v43  ;;  %v1234_v44 = vld [vmem:[%s10436_s14 + $0x1ec0] sm:$0xff]  ;;  %v1236_v45 = vld [vmem:[%s10436_s14 + $0x1ec8] sm:$0xff] }
 0x108   : > { %v1238_v46 = vld [vmem:[%s10436_s14 + $0x1ee0] sm:$0xff]  ;;  %1235 = vst [vmem:[%s10441_s15 + $0xf60] sm:$0xff] %v1234_v44  ;;  %1237 = vst [vmem:[%s10441_s15 + $0xf68] sm:$0xff] %v1236_v45  ;;  %v1240_v47 = vld [vmem:[%s10436_s14 + $0x1ee8] sm:$0xff] }
 0x109   : > { %1239 = vst [vmem:[%s10441_s15 + $0xf70] sm:$0xff] %v1238_v46  ;;  %v1242_v48 = vld [vmem:[%s10436_s14 + $0x1f00] sm:$0xff]  ;;  %v1244_v49 = vld [vmem:[%s10436_s14 + $0x1f08] sm:$0xff]  ;;  %1241 = vst [vmem:[%s10441_s15 + $0xf78] sm:$0xff] %v1240_v47 }
 0x10a   : > { %1243 = vst [vmem:[%s10441_s15 + $0xf80] sm:$0xff] %v1242_v48  ;;  %1245 = vst [vmem:[%s10441_s15 + $0xf88] sm:$0xff] %v1244_v49  ;;  %v1246_v50 = vld [vmem:[%s10436_s14 + $0x1f20] sm:$0xff]  ;;  %v1248_v51 = vld [vmem:[%s10436_s14 + $0x1f28] sm:$0xff] }
 0x10b   : > { %v1250_v52 = vld [vmem:[%s10436_s14 + $0x1f40] sm:$0xff]  ;;  %1247 = vst [vmem:[%s10441_s15 + $0xf90] sm:$0xff] %v1246_v50  ;;  %1249 = vst [vmem:[%s10441_s15 + $0xf98] sm:$0xff] %v1248_v51  ;;  %v1252_v53 = vld [vmem:[%s10436_s14 + $0x1f48] sm:$0xff] }
 0x10c   : > { %1251 = vst [vmem:[%s10441_s15 + $0xfa0] sm:$0xff] %v1250_v52  ;;  %v1254_v54 = vld [vmem:[%s10436_s14 + $0x1f60] sm:$0xff]  ;;  %v1256_v55 = vld [vmem:[%s10436_s14 + $0x1f68] sm:$0xff]  ;;  %1253 = vst [vmem:[%s10441_s15 + $0xfa8] sm:$0xff] %v1252_v53 }
 0x10d   : > { %1255 = vst [vmem:[%s10441_s15 + $0xfb0] sm:$0xff] %v1254_v54  ;;  %1257 = vst [vmem:[%s10441_s15 + $0xfb8] sm:$0xff] %v1256_v55  ;;  %v1258_v56 = vld [vmem:[%s10436_s14 + $0x1f80] sm:$0xff]  ;;  %v1260_v57 = vld [vmem:[%s10436_s14 + $0x1f88] sm:$0xff] }
 0x10e   : > { %v1262_v58 = vld [vmem:[%s10436_s14 + $0x1fa0] sm:$0xff]  ;;  %1259 = vst [vmem:[%s10441_s15 + $0xfc0] sm:$0xff] %v1258_v56  ;;  %1261 = vst [vmem:[%s10441_s15 + $0xfc8] sm:$0xff] %v1260_v57  ;;  %v1264_v59 = vld [vmem:[%s10436_s14 + $0x1fa8] sm:$0xff] }
 0x10f   : > { %1263 = vst [vmem:[%s10441_s15 + $0xfd0] sm:$0xff] %v1262_v58  ;;  %v1266_v60 = vld [vmem:[%s10436_s14 + $0x1fc0] sm:$0xff]  ;;  %v1268_v61 = vld [vmem:[%s10436_s14 + $0x1fc8] sm:$0xff]  ;;  %1265 = vst [vmem:[%s10441_s15 + $0xfd8] sm:$0xff] %v1264_v59 }
 0x110   : > { %1267 = vst [vmem:[%s10441_s15 + $0xfe0] sm:$0xff] %v1266_v60  ;;  %1269 = vst [vmem:[%s10441_s15 + $0xfe8] sm:$0xff] %v1268_v61  ;;  %v1270_v62 = vld [vmem:[%s10436_s14 + $0x1fe0] sm:$0xff]  ;;  %v1272_v63 = vld [vmem:[%s10436_s14 + $0x1fe8] sm:$0xff] }
 0x111   : > { %1271 = vst [vmem:[%s10441_s15 + $0xff0] sm:$0xff] %v1270_v62  ;;  %1273 = vst [vmem:[%s10441_s15 + $0xff8] sm:$0xff] %v1272_v63 }
 0x112 PF: > { %p8308_p5 = scmp.ge.s32.totalorder %s10355_s26, 1  ;;  %p1296_p6 = scmp.lt.s32.totalorder %s10355_s26, 3 }
 0x114   : > { %p1297_p7 = pnand %p8308_p5, %p1296_p6 }
 0x115   : > { %s1303_s16 = sand.u32 (!%p1297_p7), 1, %s10347_s24   ;;  %s8310_s17 = sshll.u32 (!%p1297_p7), %s10416_s27, 2 }
 0x116   : > { %1300 = sbr.rel (%p1297_p7) target bundleno = 1769 (0x6e9), region = 67  ;;  %s8309_s18 = sshll.u32 (!%p1297_p7), %s1303_s16, 12 }
 0x117   : > { %p1341_p8 = scmp.lt.s32.totalorder (!%p1297_p7), %s8310_s17, 7  ;;  %s8311_s19 = sshll.u32 (!%p1297_p7), %s10416_s27, 6 }
 0x118   : > { %p1346_p9 = scmp.lt.s32.totalorder (!%p1297_p7), %s8311_s19, 127  ;;  %s11480_s24 = scalar_lea.vmem (!%p1297_p7), [#allocation3], %s8309_s18 }
 0x119   : > { %p8314_p10 = scmp.ne.s32.totalorder (!%p1297_p7), %s10416_s27, 0 }
 0x11d   : > { %s12858_s17 = smov (!%p1341_p8, %s8310_s17), 7  ;;  %s12860_s19 = smov (!%p1346_p9, %s8311_s19), 127 }
 0x11e   : > { %s1343_s22 = scalar_lea.vmem %s12848_s2, %s12858_s17  ;;  %s9217_s23 = sshll.u32 %s12860_s19, 5  ;;  %v10357_v0 = vmov (!%p8314_p10), 0.0  }
 0x11f   : > { %s11478_s30 = scalar_lea.vmem %s12849_s3, %s9217_s23  ;;  %1355 = sbr.rel (%p8314_p10) target bundleno = 294 (0x126), region = 75  ;;  %1356 = vst [vmem:[#allocation2] sm:$0xff] (!%p8314_p10), %v10357_v0  ;;  %1357 = vst [vmem:[#allocation2 + $0x8] sm:$0xff] (!%p8314_p10), %v10357_v0 }
 0x126 PF: > { %v9339_v1 = vld [vmem:[%s11480_s24 + $0x4] ss:$16 sps:$4 sm:$0xff]   ;;  %v9341_v2 = vld [vmem:[%s11480_s24 + $0xc] ss:$16 sps:$4 sm:$0xff]   ;;  %v9343_v3 = vld [vmem:[%s11480_s24] ss:$16 sps:$4 sm:$0xff]   ;;  %v1370_v39 = vlaneseq }
 0x127   : > { %4560 = vmatprep.subr.bf16.mxu0 %v9339_v1  ;;  %v9344_v4 = vld [vmem:[%s11480_s24 + $0x8] ss:$16 sps:$4 sm:$0xff]   ;;  %4888 = vmatprep.subr.bf16.mxu1 %v9341_v2  ;;  %v9345_v5 = vld [vmem:[%s11480_s24 + $0x24] ss:$16 sps:$4 sm:$0xff]   ;;  %v9347_v6 = vld [vmem:[%s11480_s24 + $0x2c] ss:$16 sps:$4 sm:$0xff]  }
 0x128   : > { %4561 = vmatpush1.bf16.msra.mxu0 %v9343_v3  ;;  %4889 = vmatpush1.bf16.msra.mxu1 %v9344_v4  ;;  %v9349_v7 = vld [vmem:[%s11480_s24 + $0x20] ss:$16 sps:$4 sm:$0xff]   ;;  %v9350_v8 = vld [vmem:[%s11480_s24 + $0x28] ss:$16 sps:$4 sm:$0xff]   ;;  %v9351_v9 = vld [vmem:[%s11480_s24 + $0x44] ss:$16 sps:$4 sm:$0xff]  }
 0x129   : > { %4562 = vmatprep.subr.bf16.mxu0 %v9345_v5  ;;  %4890 = vmatprep.subr.bf16.mxu1 %v9347_v6  ;;  %v9353_v10 = vld [vmem:[%s11480_s24 + $0x4c] ss:$16 sps:$4 sm:$0xff]   ;;  %v9355_v11 = vld [vmem:[%s11480_s24 + $0x40] ss:$16 sps:$4 sm:$0xff]   ;;  %v9356_v12 = vld [vmem:[%s11480_s24 + $0x48] ss:$16 sps:$4 sm:$0xff]  }
 0x12a   : > { %v9357_v13 = vld [vmem:[%s11480_s24 + $0x64] ss:$16 sps:$4 sm:$0xff]   ;;  %v9359_v14 = vld [vmem:[%s11480_s24 + $0x6c] ss:$16 sps:$4 sm:$0xff]   ;;  %v9361_v15 = vld [vmem:[%s11480_s24 + $0x60] ss:$16 sps:$4 sm:$0xff]  }
 0x12b   : > { %v9362_v16 = vld [vmem:[%s11480_s24 + $0x68] ss:$16 sps:$4 sm:$0xff]   ;;  %v9363_v17 = vld [vmem:[%s11480_s24 + $0x84] ss:$16 sps:$4 sm:$0xff]   ;;  %v9365_v18 = vld [vmem:[%s11480_s24 + $0x8c] ss:$16 sps:$4 sm:$0xff]  }
 0x12c   : > { %4563 = vmatpush1.bf16.msra.mxu0 %v9349_v7  ;;  %4891 = vmatpush1.bf16.msra.mxu1 %v9350_v8  ;;  %v9367_v19 = vld [vmem:[%s11480_s24 + $0x80] ss:$16 sps:$4 sm:$0xff]   ;;  %v9368_v20 = vld [vmem:[%s11480_s24 + $0x88] ss:$16 sps:$4 sm:$0xff]   ;;  %v9369_v21 = vld [vmem:[%s11480_s24 + $0xa4] ss:$16 sps:$4 sm:$0xff]  }
 0x12d   : > { %4564 = vmatprep.subr.bf16.mxu0 %v9351_v9  ;;  %4892 = vmatprep.subr.bf16.mxu1 %v9353_v10  ;;  %v9371_v22 = vld [vmem:[%s11480_s24 + $0xac] ss:$16 sps:$4 sm:$0xff]   ;;  %v9373_v23 = vld [vmem:[%s11480_s24 + $0xa0] ss:$16 sps:$4 sm:$0xff]   ;;  %v9374_v24 = vld [vmem:[%s11480_s24 + $0xa8] ss:$16 sps:$4 sm:$0xff]  }
 0x12e   : > { %v9375_v25 = vld [vmem:[%s11480_s24 + $0xc4] ss:$16 sps:$4 sm:$0xff]   ;;  %v9377_v26 = vld [vmem:[%s11480_s24 + $0xcc] ss:$16 sps:$4 sm:$0xff]   ;;  %v9379_v27 = vld [vmem:[%s11480_s24 + $0xc0] ss:$16 sps:$4 sm:$0xff]  }
 0x12f   : > { %v9380_v28 = vld [vmem:[%s11480_s24 + $0xc8] ss:$16 sps:$4 sm:$0xff]   ;;  %v9381_v29 = vld [vmem:[%s11480_s24 + $0xe4] ss:$16 sps:$4 sm:$0xff]   ;;  %v9383_v30 = vld [vmem:[%s11480_s24 + $0xec] ss:$16 sps:$4 sm:$0xff]  }
 0x130   : > { %4565 = vmatpush1.bf16.msra.mxu0 %v9355_v11  ;;  %4893 = vmatpush1.bf16.msra.mxu1 %v9356_v12  ;;  %v9385_v31 = vld [vmem:[%s11480_s24 + $0xe0] ss:$16 sps:$4 sm:$0xff]   ;;  %v9386_v32 = vld [vmem:[%s11480_s24 + $0xe8] ss:$16 sps:$4 sm:$0xff]   ;;  %v9387_v33 = vld [vmem:[%s11480_s24 + $0x104] ss:$16 sps:$4 sm:$0xff]  }
 0x131   : > { %4566 = vmatprep.subr.bf16.mxu0 %v9357_v13  ;;  %4894 = vmatprep.subr.bf16.mxu1 %v9359_v14  ;;  %v9389_v34 = vld [vmem:[%s11480_s24 + $0x10c] ss:$16 sps:$4 sm:$0xff]   ;;  %v9391_v35 = vld [vmem:[%s11480_s24 + $0x100] ss:$16 sps:$4 sm:$0xff]   ;;  %v9392_v36 = vld [vmem:[%s11480_s24 + $0x108] ss:$16 sps:$4 sm:$0xff]  }
 0x132   : > { %v10358_v37 = vmov 1983009808   ;;  %v9393_v40 = vld [vmem:[%s11480_s24 + $0x124] ss:$16 sps:$4 sm:$0xff]   ;;  %v9395_v41 = vld [vmem:[%s11480_s24 + $0x12c] ss:$16 sps:$4 sm:$0xff]  }
 0x133   : > { %v1368_v38 = vunpack.c.l.s4 %v10358_v37  ;;  %v9397_v42 = vld [vmem:[%s11480_s24 + $0x120] ss:$16 sps:$4 sm:$0xff]   ;;  %v11522_v44 = vshrl.u32 %v1370_v39, 7  ;;  %v9398_v45 = vld [vmem:[%s11480_s24 + $0x128] ss:$16 sps:$4 sm:$0xff]   ;;  %p9083_p11 = scmp.ne.s32.totalorder %s10416_s27, 1 }
 0x134   : > { %4567 = vmatpush1.bf16.msra.mxu0 %v9361_v15  ;;  %4895 = vmatpush1.bf16.msra.mxu1 %v9362_v16  ;;  %v9399_v46 = vld [vmem:[%s11480_s24 + $0x144] ss:$16 sps:$4 sm:$0xff]   ;;  %v9401_v47 = vld [vmem:[%s11480_s24 + $0x14c] ss:$16 sps:$4 sm:$0xff]   ;;  %v9403_v48 = vld [vmem:[%s11480_s24 + $0x140] ss:$16 sps:$4 sm:$0xff]  }
 0x135   : > { %4568 = vmatprep.subr.bf16.mxu0 %v9363_v17  ;;  %4896 = vmatprep.subr.bf16.mxu1 %v9365_v18  ;;  %v1369_v43 = vunpack.c.0.s8 %v1368_v38  ;;  %v9404_v49 = vld [vmem:[%s11480_s24 + $0x148] ss:$16 sps:$4 sm:$0xff]   ;;  %v9405_v51 = vld [vmem:[%s11480_s24 + $0x164] ss:$16 sps:$4 sm:$0xff]   ;;  %v9407_v52 = vld [vmem:[%s11480_s24 + $0x16c] ss:$16 sps:$4 sm:$0xff]  }
 0x136   : > { %v1358_v53 = vld [vmem:[%s12846_s0] sm:$0xff]  ;;  %v9410_v56 = vld [vmem:[%s11480_s24 + $0x168] ss:$16 sps:$4 sm:$0xff]   ;;  %v9413_v58 = vld [vmem:[%s11480_s24 + $0x18c] ss:$16 sps:$4 sm:$0xff]   ;;  %vm8225_vm0 = vcmask (!%p9083_p11), 1041408  }
 0x137   : > { %v11530_v50 = vsub.s32 %v1369_v43, %v11522_v44  ;;  %v9409_v54 = vld [vmem:[%s11480_s24 + $0x160] ss:$16 sps:$4 sm:$0xff]   ;;  %v9411_v57 = vld [vmem:[%s11480_s24 + $0x184] ss:$16 sps:$4 sm:$0xff]   ;;  %v9416_v62 = vld [vmem:[%s11480_s24 + $0x188] ss:$16 sps:$4 sm:$0xff]   ;;  %v1366_v5 = vcombine.high %v1358_v53, %v1358_v53 }
 0x138   : > { %4569 = vmatpush1.bf16.msra.mxu0 %v9367_v19  ;;  %4897 = vmatpush1.bf16.msra.mxu1 %v9368_v20  ;;  %v9415_v60 = vld [vmem:[%s11480_s24 + $0x180] ss:$16 sps:$4 sm:$0xff]   ;;  %v9417_v63 = vld [vmem:[%s11480_s24 + $0x1a4] ss:$16 sps:$4 sm:$0xff]   ;;  %v9419_v0 = vld [vmem:[%s11480_s24 + $0x1ac] ss:$16 sps:$4 sm:$0xff]  }
 0x139   : > { %4570 = vmatprep.subr.bf16.mxu0 %v9369_v21  ;;  %4898 = vmatprep.subr.bf16.mxu1 %v9371_v22  ;;  %v1373_v55 = vrot.slane %v1358_v53, %v11530_v50  ;;  %v9421_v1 = vld [vmem:[%s11480_s24 + $0x1a0] ss:$16 sps:$4 sm:$0xff]   ;;  %v9422_v2 = vld [vmem:[%s11480_s24 + $0x1a8] ss:$16 sps:$4 sm:$0xff]   ;;  %v9423_v3 = vld [vmem:[%s11480_s24 + $0x1c4] ss:$16 sps:$4 sm:$0xff]   ;;  %v11555_v10 = vrot.slane %v1366_v5, %v11530_v50 }
 0x13a   : > { %v9425_v4 = vld [vmem:[%s11480_s24 + $0x1cc] ss:$16 sps:$4 sm:$0xff]   ;;  %v9427_v6 = vld [vmem:[%s11480_s24 + $0x1c0] ss:$16 sps:$4 sm:$0xff]   ;;  %v9428_v7 = vld [vmem:[%s11480_s24 + $0x1c8] ss:$16 sps:$4 sm:$0xff]  }
 0x13b   : > { %v1381_v59 = vcombine.high %v1373_v55, %v1373_v55  ;;  %v9429_v8 = vld [vmem:[%s11480_s24 + $0x1e4] ss:$16 sps:$4 sm:$0xff]   ;;  %v9431_v9 = vld [vmem:[%s11480_s24 + $0x1ec] ss:$16 sps:$4 sm:$0xff]   ;;  %v9433_v11 = vld [vmem:[%s11480_s24 + $0x1e0] ss:$16 sps:$4 sm:$0xff]   ;;  %v1382_v15 = vcombine.high %v11555_v10, %v11555_v10  ;;  %v1450_v17 = vpack.c.bf16 %v1373_v55, %v1373_v55 }
 0x13c   : > { %4571 = vmatpush1.bf16.msra.mxu0 %v9373_v23  ;;  %4899 = vmatpush1.bf16.msra.mxu1 %v9374_v24  ;;  %v9434_v12 = vld [vmem:[%s11480_s24 + $0x1e8] ss:$16 sps:$4 sm:$0xff]   ;;  %v9438_v13 = vld [vmem:[%s11480_s24 + $0x204] ss:$16 sps:$4 sm:$0xff]   ;;  %v9441_v14 = vld [vmem:[%s11480_s24 + $0x20c] ss:$16 sps:$4 sm:$0xff]  }
 0x13d   : > { %4572 = vmatprep.subr.bf16.mxu0 %v9375_v25  ;;  %4900 = vmatprep.subr.bf16.mxu1 %v9377_v26  ;;  %v1451_v61 = vpack.c.bf16 %v1381_v59, %v1381_v59  ;;  %v9436_v16 = vld [vmem:[%s11480_s24 + $0x200] ss:$16 sps:$4 sm:$0xff]   ;;  %v9439_v18 = vld [vmem:[%s11480_s24 + $0x208] ss:$16 sps:$4 sm:$0xff]   ;;  %v9444_v19 = vld [vmem:[%s11480_s24 + $0x224] ss:$16 sps:$4 sm:$0xff]   ;;  %v1453_v21 = vpack.c.bf16 %v1382_v15, %v1382_v15 }
 0x13e   : > { %v9447_v20 = vld [vmem:[%s11480_s24 + $0x22c] ss:$16 sps:$4 sm:$0xff]   ;;  %v9442_v22 = vld [vmem:[%s11480_s24 + $0x220] ss:$16 sps:$4 sm:$0xff]   ;;  %v9445_v23 = vld [vmem:[%s11480_s24 + $0x228] ss:$16 sps:$4 sm:$0xff]  }
 0x13f   : > { %4592 = vmatprep.mubr.bf16.mxu0 %v1451_v61  ;;  %4920 = vmatprep.mubr.bf16.mxu1 %v1451_v61  ;;  %v9450_v24 = vld [vmem:[%s11480_s24 + $0x244] ss:$16 sps:$4 sm:$0xff]   ;;  %v9453_v25 = vld [vmem:[%s11480_s24 + $0x24c] ss:$16 sps:$4 sm:$0xff]   ;;  %v9448_v26 = vld [vmem:[%s11480_s24 + $0x240] ss:$16 sps:$4 sm:$0xff]  }
 0x140   : > { %4573 = vmatpush1.bf16.msra.mxu0 %v9379_v27  ;;  %4901 = vmatpush1.bf16.msra.mxu1 %v9380_v28  ;;  %v9451_v27 = vld [vmem:[%s11480_s24 + $0x248] ss:$16 sps:$4 sm:$0xff]   ;;  %v9456_v28 = vld [vmem:[%s11480_s24 + $0x264] ss:$16 sps:$4 sm:$0xff]   ;;  %v9471_v37 = vld [vmem:[%s11480_s24 + $0x2ac] ss:$16 sps:$4 sm:$0xff]  }
 0x141   : > { %4574 = vmatprep.subr.bf16.mxu0 %v9381_v29  ;;  %4902 = vmatprep.subr.bf16.mxu1 %v9383_v30  ;;  %v9459_v29 = vld [vmem:[%s11480_s24 + $0x26c] ss:$16 sps:$4 sm:$0xff]   ;;  %v9454_v30 = vld [vmem:[%s11480_s24 + $0x260] ss:$16 sps:$4 sm:$0xff]   ;;  %v9469_v39 = vld [vmem:[%s11480_s24 + $0x2a8] ss:$16 sps:$4 sm:$0xff]  }
 0x142   : > { %v9466_v38 = vld [vmem:[%s11480_s24 + $0x2a0] ss:$16 sps:$4 sm:$0xff]   ;;  %v9475_v43 = vld [vmem:[%s11480_s24 + $0x2c8] ss:$16 sps:$4 sm:$0xff]   ;;  %v9495_v55 = vld [vmem:[%s11480_s24 + $0x32c] ss:$16 sps:$4 sm:$0xff]  }
 0x143   : > { %v9487_v53 = vld [vmem:[%s11480_s24 + $0x308] ss:$16 sps:$4 sm:$0xff]   ;;  %v9501_v59 = vld [vmem:[%s11480_s24 + $0x34c] ss:$16 sps:$4 sm:$0xff]   ;;  %v9528_v15 = vld [vmem:[%s11480_s24 + $0x3e4] ss:$16 sps:$4 sm:$0xff]  }
 0x144   : > { %4575 = vmatpush1.bf16.msra.mxu0 %v9385_v31  ;;  %4903 = vmatpush1.bf16.msra.mxu1 %v9386_v32  ;;  %v9457_v31 = vld [vmem:[%s11480_s24 + $0x268] ss:$16 sps:$4 sm:$0xff]   ;;  %v9462_v32 = vld [vmem:[%s11480_s24 + $0x284] ss:$16 sps:$4 sm:$0xff]   ;;  %vm8226_vm1 = vcmask (!%p9083_p11), 60418  }
 0x145   : > { %4576 = vmatprep.subr.bf16.mxu0 %v9387_v33  ;;  %4904 = vmatprep.subr.bf16.mxu1 %v9389_v34  ;;  %v9465_v33 = vld [vmem:[%s11480_s24 + $0x28c] ss:$16 sps:$4 sm:$0xff]   ;;  %v9460_v34 = vld [vmem:[%s11480_s24 + $0x280] ss:$16 sps:$4 sm:$0xff]   ;;  %v9499_v61 = vld [vmem:[%s11480_s24 + $0x348] ss:$16 sps:$4 sm:$0xff]  }
 0x146   : > { %v9511_v5 = vld [vmem:[%s11480_s24 + $0x388] ss:$16 sps:$4 sm:$0xff]   ;;  %vm8227_vm2 = vmor (!%p9083_p11), %vm8226_vm1, %vm8225_vm0 }
 0x148   : > { %4577 = vmatpush1.bf16.msra.mxu0 %v9391_v35  ;;  %4905 = vmatpush1.bf16.msra.mxu1 %v9392_v36  ;;  %v9463_v35 = vld [vmem:[%s11480_s24 + $0x288] ss:$16 sps:$4 sm:$0xff]   ;;  %v9468_v36 = vld [vmem:[%s11480_s24 + $0x2a4] ss:$16 sps:$4 sm:$0xff]  }
 0x149   : > { %4578 = vmatprep.subr.bf16.mxu0 %v9393_v40  ;;  %4906 = vmatprep.subr.bf16.mxu1 %v9395_v41  ;;  %v9474_v40 = vld [vmem:[%s11480_s24 + $0x2c4] ss:$16 sps:$4 sm:$0xff]   ;;  %v9477_v41 = vld [vmem:[%s11480_s24 + $0x2cc] ss:$16 sps:$4 sm:$0xff]  }
 0x14c   : > { %4579 = vmatpush1.bf16.msra.mxu0 %v9397_v42  ;;  %4907 = vmatpush1.bf16.msra.mxu1 %v9398_v45  ;;  %v9472_v42 = vld [vmem:[%s11480_s24 + $0x2c0] ss:$16 sps:$4 sm:$0xff]   ;;  %v9480_v45 = vld [vmem:[%s11480_s24 + $0x2e4] ss:$16 sps:$4 sm:$0xff]  }
 0x14d   : > { %4580 = vmatprep.subr.bf16.mxu0 %v9399_v46  ;;  %4908 = vmatprep.subr.bf16.mxu1 %v9401_v47  ;;  %v9483_v46 = vld [vmem:[%s11480_s24 + $0x2ec] ss:$16 sps:$4 sm:$0xff]   ;;  %v9478_v47 = vld [vmem:[%s11480_s24 + $0x2e0] ss:$16 sps:$4 sm:$0xff]  }
 0x150   : > { %4581 = vmatpush1.bf16.msra.mxu0 %v9403_v48  ;;  %4909 = vmatpush1.bf16.msra.mxu1 %v9404_v49  ;;  %v9481_v48 = vld [vmem:[%s11480_s24 + $0x2e8] ss:$16 sps:$4 sm:$0xff]   ;;  %v9486_v49 = vld [vmem:[%s11480_s24 + $0x304] ss:$16 sps:$4 sm:$0xff]  }
 0x151   : > { %4582 = vmatprep.subr.bf16.mxu0 %v9405_v51  ;;  %4910 = vmatprep.subr.bf16.mxu1 %v9407_v52  ;;  %v9489_v51 = vld [vmem:[%s11480_s24 + $0x30c] ss:$16 sps:$4 sm:$0xff]   ;;  %v9484_v52 = vld [vmem:[%s11480_s24 + $0x300] ss:$16 sps:$4 sm:$0xff]  }
 0x154   : > { %4583 = vmatpush1.bf16.msra.mxu0 %v9409_v54  ;;  %4911 = vmatpush1.bf16.msra.mxu1 %v9410_v56  ;;  %v9492_v54 = vld [vmem:[%s11480_s24 + $0x324] ss:$16 sps:$4 sm:$0xff]   ;;  %v9490_v56 = vld [vmem:[%s11480_s24 + $0x320] ss:$16 sps:$4 sm:$0xff]  }
 0x155   : > { %4584 = vmatprep.subr.bf16.mxu0 %v9411_v57  ;;  %4912 = vmatprep.subr.bf16.mxu1 %v9413_v58  ;;  %v9493_v57 = vld [vmem:[%s11480_s24 + $0x328] ss:$16 sps:$4 sm:$0xff]   ;;  %v9498_v58 = vld [vmem:[%s11480_s24 + $0x344] ss:$16 sps:$4 sm:$0xff]  }
 0x158   : > { %4585 = vmatpush1.bf16.msra.mxu0 %v9415_v60  ;;  %4913 = vmatpush1.bf16.msra.mxu1 %v9416_v62  ;;  %v9496_v60 = vld [vmem:[%s11480_s24 + $0x340] ss:$16 sps:$4 sm:$0xff]   ;;  %v9504_v62 = vld [vmem:[%s11480_s24 + $0x364] ss:$16 sps:$4 sm:$0xff]  }
 0x159   : > { %4586 = vmatprep.subr.bf16.mxu0 %v9417_v63  ;;  %4914 = vmatprep.subr.bf16.mxu1 %v9419_v0  ;;  %v9507_v63 = vld [vmem:[%s11480_s24 + $0x36c] ss:$16 sps:$4 sm:$0xff]   ;;  %v9502_v0 = vld [vmem:[%s11480_s24 + $0x360] ss:$16 sps:$4 sm:$0xff]  }
 0x15c   : > { %4587 = vmatpush1.bf16.msra.mxu0 %v9421_v1  ;;  %4915 = vmatpush1.bf16.msra.mxu1 %v9422_v2  ;;  %v9505_v1 = vld [vmem:[%s11480_s24 + $0x368] ss:$16 sps:$4 sm:$0xff]   ;;  %v9510_v2 = vld [vmem:[%s11480_s24 + $0x384] ss:$16 sps:$4 sm:$0xff]  }
 0x15d   : > { %4588 = vmatprep.subr.bf16.mxu0 %v9423_v3  ;;  %4916 = vmatprep.subr.bf16.mxu1 %v9425_v4  ;;  %v9513_v3 = vld [vmem:[%s11480_s24 + $0x38c] ss:$16 sps:$4 sm:$0xff]   ;;  %v9508_v4 = vld [vmem:[%s11480_s24 + $0x380] ss:$16 sps:$4 sm:$0xff]  }
 0x160   : > { %4589 = vmatpush1.bf16.msra.mxu0 %v9427_v6  ;;  %4917 = vmatpush1.bf16.msra.mxu1 %v9428_v7  ;;  %v9516_v6 = vld [vmem:[%s11480_s24 + $0x3a4] ss:$16 sps:$4 sm:$0xff]   ;;  %v9519_v7 = vld [vmem:[%s11480_s24 + $0x3ac] ss:$16 sps:$4 sm:$0xff]  }
 0x161   : > { %4590 = vmatprep.subr.bf16.mxu0 %v9429_v8  ;;  %4918 = vmatprep.subr.bf16.mxu1 %v9431_v9  ;;  %v9514_v8 = vld [vmem:[%s11480_s24 + $0x3a0] ss:$16 sps:$4 sm:$0xff]   ;;  %v9517_v9 = vld [vmem:[%s11480_s24 + $0x3a8] ss:$16 sps:$4 sm:$0xff]  }
 0x164   : > { %4591 = vmatpush1.bf16.msra.mxu0 %v9433_v11  ;;  %4919 = vmatpush1.bf16.msra.mxu1 %v9434_v12  ;;  %v9522_v11 = vld [vmem:[%s11480_s24 + $0x3c4] ss:$16 sps:$4 sm:$0xff]   ;;  %v9525_v12 = vld [vmem:[%s11480_s24 + $0x3cc] ss:$16 sps:$4 sm:$0xff]  }
 0x165   : > { %4601 = vmatprep.subr.bf16.mxu0 %v9438_v13  ;;  %4929 = vmatprep.subr.bf16.mxu1 %v9441_v14  ;;  %v9520_v13 = vld [vmem:[%s11480_s24 + $0x3c0] ss:$16 sps:$4 sm:$0xff]   ;;  %v9523_v14 = vld [vmem:[%s11480_s24 + $0x3c8] ss:$16 sps:$4 sm:$0xff]  }
 0x167   : > { %4593 = vmatmul.mubr.bf16.vlgmr.msra.gmra.mrb[0].mxu0 %v1450_v17  ;;  %4921 = vmatmul.mubr.bf16.vlgmr.msra.gmra.mrb[0].mxu1 %v1450_v17  ;;  %v9526_v17 = vld [vmem:[%s11480_s24 + $0x3e0] ss:$16 sps:$4 sm:$0xff]  }
 0x168   : > { %4602 = vmatpush1.bf16.msra.mxu0 %v9436_v16  ;;  %4930 = vmatpush1.bf16.msra.mxu1 %v9439_v18  ;;  %v9531_v16 = vld [vmem:[%s11480_s24 + $0x3ec] ss:$16 sps:$4 sm:$0xff]   ;;  %v9529_v18 = vld [vmem:[%s11480_s24 + $0x3e8] ss:$16 sps:$4 sm:$0xff]  }
 0x169   : > { %4603 = vmatprep.subr.bf16.mxu0 %v9444_v19  ;;  %4931 = vmatprep.subr.bf16.mxu1 %v9447_v20  ;;  %v9534_v19 = vld [vmem:[%s11480_s24 + $0x404] ss:$16 sps:$4 sm:$0xff]   ;;  %v9537_v20 = vld [vmem:[%s11480_s24 + $0x40c] ss:$16 sps:$4 sm:$0xff]  }
 0x16a   : > { %4633 = vmatprep.mubr.bf16.mxu0 %v1453_v21  ;;  %4961 = vmatprep.mubr.bf16.mxu1 %v1453_v21  ;;  %v9532_v21 = vld [vmem:[%s11480_s24 + $0x400] ss:$16 sps:$4 sm:$0xff]  }
 0x16c   : > { %4604 = vmatpush1.bf16.msra.mxu0 %v9442_v22  ;;  %4932 = vmatpush1.bf16.msra.mxu1 %v9445_v23  ;;  %v1452_v22 = vpack.c.bf16 %v11555_v10, %v11555_v10  ;;  %v9535_v23 = vld [vmem:[%s11480_s24 + $0x408] ss:$16 sps:$4 sm:$0xff]  }
 0x16d   : > { %4605 = vmatprep.subr.bf16.mxu0 %v9450_v24  ;;  %4933 = vmatprep.subr.bf16.mxu1 %v9453_v25  ;;  %v11634_v24 = vld [vmem:[%s12846_s0 + $0x8] sm:$0xff]  ;;  %v9540_v25 = vld [vmem:[%s11480_s24 + $0x424] ss:$16 sps:$4 sm:$0xff]  }
 0x170   : > { %4606 = vmatpush1.bf16.msra.mxu0 %v9448_v26  ;;  %4934 = vmatpush1.bf16.msra.mxu1 %v9451_v27  ;;  %v9543_v26 = vld [vmem:[%s11480_s24 + $0x42c] ss:$16 sps:$4 sm:$0xff]   ;;  %v11640_v27 = vrot.slane %v11634_v24, %v11530_v50 }
 0x171   : > { %4607 = vmatprep.subr.bf16.mxu0 %v9456_v28  ;;  %4935 = vmatprep.subr.bf16.mxu1 %v9459_v29  ;;  %v9538_v28 = vld [vmem:[%s11480_s24 + $0x420] ss:$16 sps:$4 sm:$0xff]   ;;  %v9541_v29 = vld [vmem:[%s11480_s24 + $0x428] ss:$16 sps:$4 sm:$0xff]  }
 0x172   : > { %v1398_v10 = vcombine.high %v11640_v27, %v11640_v27 }
 0x174   : > { %4608 = vmatpush1.bf16.msra.mxu0 %v9454_v30  ;;  %4936 = vmatpush1.bf16.msra.mxu1 %v9457_v31  ;;  %v9546_v30 = vld [vmem:[%s11480_s24 + $0x444] ss:$16 sps:$4 sm:$0xff]   ;;  %v9549_v31 = vld [vmem:[%s11480_s24 + $0x44c] ss:$16 sps:$4 sm:$0xff]  }
 0x175   : > { %4609 = vmatprep.subr.bf16.mxu0 %v9462_v32  ;;  %4937 = vmatprep.subr.bf16.mxu1 %v9465_v33  ;;  %v1455_v32 = vpack.c.bf16 %v1398_v10, %v1398_v10  ;;  %v9544_v33 = vld [vmem:[%s11480_s24 + $0x440] ss:$16 sps:$4 sm:$0xff]   ;;  %v9625_v10 = vld [vmem:[%s11480_s24 + $0x5e8] ss:$16 sps:$4 sm:$0xff]  }
 0x178   : > { %4610 = vmatpush1.bf16.msra.mxu0 %v9460_v34  ;;  %4938 = vmatpush1.bf16.msra.mxu1 %v9463_v35  ;;  %v9547_v34 = vld [vmem:[%s11480_s24 + $0x448] ss:$16 sps:$4 sm:$0xff]   ;;  %v9552_v35 = vld [vmem:[%s11480_s24 + $0x464] ss:$16 sps:$4 sm:$0xff]  }
 0x179   : > { %4611 = vmatprep.subr.bf16.mxu0 %v9468_v36  ;;  %4939 = vmatprep.subr.bf16.mxu1 %v9471_v37  ;;  %v9555_v36 = vld [vmem:[%s11480_s24 + $0x46c] ss:$16 sps:$4 sm:$0xff]   ;;  %v9550_v37 = vld [vmem:[%s11480_s24 + $0x460] ss:$16 sps:$4 sm:$0xff]  }
 0x17c   : > { %4612 = vmatpush1.bf16.msra.mxu0 %v9466_v38  ;;  %4940 = vmatpush1.bf16.msra.mxu1 %v9469_v39  ;;  %v9553_v38 = vld [vmem:[%s11480_s24 + $0x468] ss:$16 sps:$4 sm:$0xff]   ;;  %v9558_v39 = vld [vmem:[%s11480_s24 + $0x484] ss:$16 sps:$4 sm:$0xff]  }
 0x17d   : > { %4613 = vmatprep.subr.bf16.mxu0 %v9474_v40  ;;  %4941 = vmatprep.subr.bf16.mxu1 %v9477_v41  ;;  %v9561_v40 = vld [vmem:[%s11480_s24 + $0x48c] ss:$16 sps:$4 sm:$0xff]   ;;  %v9556_v41 = vld [vmem:[%s11480_s24 + $0x480] ss:$16 sps:$4 sm:$0xff]  }
 0x180   : > { %4614 = vmatpush1.bf16.msra.mxu0 %v9472_v42  ;;  %4942 = vmatpush1.bf16.msra.mxu1 %v9475_v43  ;;  %v9559_v42 = vld [vmem:[%s11480_s24 + $0x488] ss:$16 sps:$4 sm:$0xff]   ;;  %v9564_v43 = vld [vmem:[%s11480_s24 + $0x4a4] ss:$16 sps:$4 sm:$0xff]  }
 0x181   : > { %4615 = vmatprep.subr.bf16.mxu0 %v9480_v45  ;;  %4943 = vmatprep.subr.bf16.mxu1 %v9483_v46  ;;  %v9567_v45 = vld [vmem:[%s11480_s24 + $0x4ac] ss:$16 sps:$4 sm:$0xff]   ;;  %v9562_v46 = vld [vmem:[%s11480_s24 + $0x4a0] ss:$16 sps:$4 sm:$0xff]  }
 0x184   : > { %4616 = vmatpush1.bf16.msra.mxu0 %v9478_v47  ;;  %4944 = vmatpush1.bf16.msra.mxu1 %v9481_v48  ;;  %v9565_v47 = vld [vmem:[%s11480_s24 + $0x4a8] ss:$16 sps:$4 sm:$0xff]   ;;  %v9570_v48 = vld [vmem:[%s11480_s24 + $0x4c4] ss:$16 sps:$4 sm:$0xff]  }
 0x185   : > { %4617 = vmatprep.subr.bf16.mxu0 %v9486_v49  ;;  %4945 = vmatprep.subr.bf16.mxu1 %v9489_v51  ;;  %v9573_v49 = vld [vmem:[%s11480_s24 + $0x4cc] ss:$16 sps:$4 sm:$0xff]   ;;  %v9568_v51 = vld [vmem:[%s11480_s24 + $0x4c0] ss:$16 sps:$4 sm:$0xff]  }
 0x188   : > { %4618 = vmatpush1.bf16.msra.mxu0 %v9484_v52  ;;  %4946 = vmatpush1.bf16.msra.mxu1 %v9487_v53  ;;  %v9571_v52 = vld [vmem:[%s11480_s24 + $0x4c8] ss:$16 sps:$4 sm:$0xff]   ;;  %v9576_v53 = vld [vmem:[%s11480_s24 + $0x4e4] ss:$16 sps:$4 sm:$0xff]  }
 0x189   : > { %4619 = vmatprep.subr.bf16.mxu0 %v9492_v54  ;;  %4947 = vmatprep.subr.bf16.mxu1 %v9495_v55  ;;  %v9579_v54 = vld [vmem:[%s11480_s24 + $0x4ec] ss:$16 sps:$4 sm:$0xff]   ;;  %v9574_v55 = vld [vmem:[%s11480_s24 + $0x4e0] ss:$16 sps:$4 sm:$0xff]  }
 0x18c   : > { %4620 = vmatpush1.bf16.msra.mxu0 %v9490_v56  ;;  %4948 = vmatpush1.bf16.msra.mxu1 %v9493_v57  ;;  %v9577_v56 = vld [vmem:[%s11480_s24 + $0x4e8] ss:$16 sps:$4 sm:$0xff]   ;;  %v9582_v57 = vld [vmem:[%s11480_s24 + $0x504] ss:$16 sps:$4 sm:$0xff]  }
 0x18d   : > { %4621 = vmatprep.subr.bf16.mxu0 %v9498_v58  ;;  %4949 = vmatprep.subr.bf16.mxu1 %v9501_v59  ;;  %v9585_v58 = vld [vmem:[%s11480_s24 + $0x50c] ss:$16 sps:$4 sm:$0xff]   ;;  %v9580_v59 = vld [vmem:[%s11480_s24 + $0x500] ss:$16 sps:$4 sm:$0xff]  }
 0x190   : > { %4622 = vmatpush1.bf16.msra.mxu0 %v9496_v60  ;;  %4950 = vmatpush1.bf16.msra.mxu1 %v9499_v61  ;;  %v9583_v60 = vld [vmem:[%s11480_s24 + $0x508] ss:$16 sps:$4 sm:$0xff]   ;;  %v9588_v61 = vld [vmem:[%s11480_s24 + $0x524] ss:$16 sps:$4 sm:$0xff]  }
 0x191   : > { %4623 = vmatprep.subr.bf16.mxu0 %v9504_v62  ;;  %4951 = vmatprep.subr.bf16.mxu1 %v9507_v63  ;;  %v9591_v62 = vld [vmem:[%s11480_s24 + $0x52c] ss:$16 sps:$4 sm:$0xff]   ;;  %v9586_v63 = vld [vmem:[%s11480_s24 + $0x520] ss:$16 sps:$4 sm:$0xff]  }
 0x194   : > { %4624 = vmatpush1.bf16.msra.mxu0 %v9502_v0  ;;  %4952 = vmatpush1.bf16.msra.mxu1 %v9505_v1  ;;  %v9589_v0 = vld [vmem:[%s11480_s24 + $0x528] ss:$16 sps:$4 sm:$0xff]   ;;  %v9594_v1 = vld [vmem:[%s11480_s24 + $0x544] ss:$16 sps:$4 sm:$0xff]  }
 0x195   : > { %4625 = vmatprep.subr.bf16.mxu0 %v9510_v2  ;;  %4953 = vmatprep.subr.bf16.mxu1 %v9513_v3  ;;  %v9597_v2 = vld [vmem:[%s11480_s24 + $0x54c] ss:$16 sps:$4 sm:$0xff]   ;;  %v9592_v3 = vld [vmem:[%s11480_s24 + $0x540] ss:$16 sps:$4 sm:$0xff]  }
 0x198   : > { %4626 = vmatpush1.bf16.msra.mxu0 %v9508_v4  ;;  %4954 = vmatpush1.bf16.msra.mxu1 %v9511_v5  ;;  %v9595_v4 = vld [vmem:[%s11480_s24 + $0x548] ss:$16 sps:$4 sm:$0xff]   ;;  %v9600_v5 = vld [vmem:[%s11480_s24 + $0x564] ss:$16 sps:$4 sm:$0xff]  }
 0x199   : > { %4627 = vmatprep.subr.bf16.mxu0 %v9516_v6  ;;  %4955 = vmatprep.subr.bf16.mxu1 %v9519_v7  ;;  %v9603_v6 = vld [vmem:[%s11480_s24 + $0x56c] ss:$16 sps:$4 sm:$0xff]   ;;  %v9598_v7 = vld [vmem:[%s11480_s24 + $0x560] ss:$16 sps:$4 sm:$0xff]  }
 0x19c   : > { %4628 = vmatpush1.bf16.msra.mxu0 %v9514_v8  ;;  %4956 = vmatpush1.bf16.msra.mxu1 %v9517_v9  ;;  %v9601_v8 = vld [vmem:[%s11480_s24 + $0x568] ss:$16 sps:$4 sm:$0xff]   ;;  %v9606_v9 = vld [vmem:[%s11480_s24 + $0x584] ss:$16 sps:$4 sm:$0xff]  }
 0x19d   : > { %4629 = vmatprep.subr.bf16.mxu0 %v9522_v11  ;;  %4957 = vmatprep.subr.bf16.mxu1 %v9525_v12  ;;  %v9609_v11 = vld [vmem:[%s11480_s24 + $0x58c] ss:$16 sps:$4 sm:$0xff]   ;;  %v9604_v12 = vld [vmem:[%s11480_s24 + $0x580] ss:$16 sps:$4 sm:$0xff]  }
 0x1a0   : > { %4630 = vmatpush1.bf16.msra.mxu0 %v9520_v13  ;;  %4958 = vmatpush1.bf16.msra.mxu1 %v9523_v14  ;;  %v9607_v13 = vld [vmem:[%s11480_s24 + $0x588] ss:$16 sps:$4 sm:$0xff]   ;;  %v9612_v14 = vld [vmem:[%s11480_s24 + $0x5a4] ss:$16 sps:$4 sm:$0xff]  }
 0x1a1   : > { %4631 = vmatprep.subr.bf16.mxu0 %v9528_v15  ;;  %4959 = vmatprep.subr.bf16.mxu1 %v9531_v16  ;;  %v9615_v15 = vld [vmem:[%s11480_s24 + $0x5ac] ss:$16 sps:$4 sm:$0xff]   ;;  %v9610_v16 = vld [vmem:[%s11480_s24 + $0x5a0] ss:$16 sps:$4 sm:$0xff]  }
 0x1a4   : > { %4632 = vmatpush1.bf16.msra.mxu0 %v9526_v17  ;;  %4960 = vmatpush1.bf16.msra.mxu1 %v9529_v18  ;;  %v9613_v17 = vld [vmem:[%s11480_s24 + $0x5a8] ss:$16 sps:$4 sm:$0xff]   ;;  %v9618_v18 = vld [vmem:[%s11480_s24 + $0x5c4] ss:$16 sps:$4 sm:$0xff]  }
 0x1a5   : > { %4642 = vmatprep.subr.bf16.mxu0 %v9534_v19  ;;  %4970 = vmatprep.subr.bf16.mxu1 %v9537_v20  ;;  %v9621_v19 = vld [vmem:[%s11480_s24 + $0x5cc] ss:$16 sps:$4 sm:$0xff]   ;;  %v1383_v20 = vcombine.high %v11634_v24, %v11634_v24  ;;  %v9622_v24 = vld [vmem:[%s11480_s24 + $0x5e0] ss:$16 sps:$4 sm:$0xff]  }
 0x1a7   : > { %4634 = vmatmul.mubr.bf16.vlgmr.msra.gmra.mrb[0].mxu0 %v1452_v22  ;;  %4962 = vmatmul.mubr.bf16.vlgmr.msra.gmra.mrb[0].mxu1 %v1452_v22  ;;  %v9619_v22 = vld [vmem:[%s11480_s24 + $0x5c8] ss:$16 sps:$4 sm:$0xff]  }
 0x1a8   : > { %4643 = vmatpush1.bf16.msra.mxu0 %v9532_v21  ;;  %4971 = vmatpush1.bf16.msra.mxu1 %v9535_v23  ;;  %v9616_v21 = vld [vmem:[%s11480_s24 + $0x5c0] ss:$16 sps:$4 sm:$0xff]   ;;  %v9624_v23 = vld [vmem:[%s11480_s24 + $0x5e4] ss:$16 sps:$4 sm:$0xff]  }
 0x1a9   : > { %4644 = vmatprep.subr.bf16.mxu0 %v9540_v25  ;;  %4972 = vmatprep.subr.bf16.mxu1 %v9543_v26  ;;  %v9627_v25 = vld [vmem:[%s11480_s24 + $0x5ec] ss:$16 sps:$4 sm:$0xff]   ;;  %v11703_v26 = vrot.slane %v1383_v20, %v11530_v50  ;;  %v9703_v20 = vld [vmem:[%s11480_s24 + $0x788] ss:$16 sps:$4 sm:$0xff]  }
 0x1aa   : > { %4674 = vmatprep.mubr.bf16.mxu0 %v1455_v32  ;;  %5002 = vmatprep.mubr.bf16.mxu1 %v1455_v32  ;;  %v9628_v32 = vld [vmem:[%s11480_s24 + $0x600] ss:$16 sps:$4 sm:$0xff]  }
 0x1ac   : > { %4645 = vmatpush1.bf16.msra.mxu0 %v9538_v28  ;;  %4973 = vmatpush1.bf16.msra.mxu1 %v9541_v29  ;;  %v9630_v28 = vld [vmem:[%s11480_s24 + $0x604] ss:$16 sps:$4 sm:$0xff]   ;;  %v9633_v29 = vld [vmem:[%s11480_s24 + $0x60c] ss:$16 sps:$4 sm:$0xff]  }
 0x1ad   : > { %4646 = vmatprep.subr.bf16.mxu0 %v9546_v30  ;;  %4974 = vmatprep.subr.bf16.mxu1 %v9549_v31  ;;  %v1399_v30 = vcombine.high %v11703_v26, %v11703_v26  ;;  %v1454_v31 = vpack.c.bf16 %v11640_v27, %v11640_v27  ;;  %v9634_v27 = vld [vmem:[%s11480_s24 + $0x620] ss:$16 sps:$4 sm:$0xff]  }
 0x1b0   : > { %4647 = vmatpush1.bf16.msra.mxu0 %v9544_v33  ;;  %4975 = vmatpush1.bf16.msra.mxu1 %v9547_v34  ;;  %v9631_v33 = vld [vmem:[%s11480_s24 + $0x608] ss:$16 sps:$4 sm:$0xff]   ;;  %v9636_v34 = vld [vmem:[%s11480_s24 + $0x624] ss:$16 sps:$4 sm:$0xff]  }
 0x1b1   : > { %4648 = vmatprep.subr.bf16.mxu0 %v9552_v35  ;;  %4976 = vmatprep.subr.bf16.mxu1 %v9555_v36  ;;  %v9639_v35 = vld [vmem:[%s11480_s24 + $0x62c] ss:$16 sps:$4 sm:$0xff]   ;;  %v1457_v36 = vpack.c.bf16 %v1399_v30, %v1399_v30  ;;  %v9715_v30 = vld [vmem:[%s11480_s24 + $0x7c8] ss:$16 sps:$4 sm:$0xff]  }
 0x1b4   : > { %4649 = vmatpush1.bf16.msra.mxu0 %v9550_v37  ;;  %4977 = vmatpush1.bf16.msra.mxu1 %v9553_v38  ;;  %v9637_v37 = vld [vmem:[%s11480_s24 + $0x628] ss:$16 sps:$4 sm:$0xff]   ;;  %v9642_v38 = vld [vmem:[%s11480_s24 + $0x644] ss:$16 sps:$4 sm:$0xff]  }
 0x1b5   : > { %4650 = vmatprep.subr.bf16.mxu0 %v9558_v39  ;;  %4978 = vmatprep.subr.bf16.mxu1 %v9561_v40  ;;  %v9645_v39 = vld [vmem:[%s11480_s24 + $0x64c] ss:$16 sps:$4 sm:$0xff]   ;;  %v9640_v40 = vld [vmem:[%s11480_s24 + $0x640] ss:$16 sps:$4 sm:$0xff]  }
 0x1b8   : > { %4651 = vmatpush1.bf16.msra.mxu0 %v9556_v41  ;;  %4979 = vmatpush1.bf16.msra.mxu1 %v9559_v42  ;;  %v9643_v41 = vld [vmem:[%s11480_s24 + $0x648] ss:$16 sps:$4 sm:$0xff]   ;;  %v9648_v42 = vld [vmem:[%s11480_s24 + $0x664] ss:$16 sps:$4 sm:$0xff]  }
 0x1b9   : > { %4652 = vmatprep.subr.bf16.mxu0 %v9564_v43  ;;  %4980 = vmatprep.subr.bf16.mxu1 %v9567_v45  ;;  %v9651_v43 = vld [vmem:[%s11480_s24 + $0x66c] ss:$16 sps:$4 sm:$0xff]   ;;  %v9646_v45 = vld [vmem:[%s11480_s24 + $0x660] ss:$16 sps:$4 sm:$0xff]  }
 0x1bc   : > { %4653 = vmatpush1.bf16.msra.mxu0 %v9562_v46  ;;  %4981 = vmatpush1.bf16.msra.mxu1 %v9565_v47  ;;  %v9649_v46 = vld [vmem:[%s11480_s24 + $0x668] ss:$16 sps:$4 sm:$0xff]   ;;  %v9654_v47 = vld [vmem:[%s11480_s24 + $0x684] ss:$16 sps:$4 sm:$0xff]  }
 0x1bd   : > { %4654 = vmatprep.subr.bf16.mxu0 %v9570_v48  ;;  %4982 = vmatprep.subr.bf16.mxu1 %v9573_v49  ;;  %v9657_v48 = vld [vmem:[%s11480_s24 + $0x68c] ss:$16 sps:$4 sm:$0xff]   ;;  %v9652_v49 = vld [vmem:[%s11480_s24 + $0x680] ss:$16 sps:$4 sm:$0xff]  }
 0x1c0   : > { %4655 = vmatpush1.bf16.msra.mxu0 %v9568_v51  ;;  %4983 = vmatpush1.bf16.msra.mxu1 %v9571_v52  ;;  %v9655_v51 = vld [vmem:[%s11480_s24 + $0x688] ss:$16 sps:$4 sm:$0xff]   ;;  %v9660_v52 = vld [vmem:[%s11480_s24 + $0x6a4] ss:$16 sps:$4 sm:$0xff]  }
 0x1c1   : > { %4656 = vmatprep.subr.bf16.mxu0 %v9576_v53  ;;  %4984 = vmatprep.subr.bf16.mxu1 %v9579_v54  ;;  %v9663_v53 = vld [vmem:[%s11480_s24 + $0x6ac] ss:$16 sps:$4 sm:$0xff]   ;;  %v9658_v54 = vld [vmem:[%s11480_s24 + $0x6a0] ss:$16 sps:$4 sm:$0xff]  }
 0x1c4   : > { %4657 = vmatpush1.bf16.msra.mxu0 %v9574_v55  ;;  %4985 = vmatpush1.bf16.msra.mxu1 %v9577_v56  ;;  %v9661_v55 = vld [vmem:[%s11480_s24 + $0x6a8] ss:$16 sps:$4 sm:$0xff]   ;;  %v9666_v56 = vld [vmem:[%s11480_s24 + $0x6c4] ss:$16 sps:$4 sm:$0xff]  }
 0x1c5   : > { %4658 = vmatprep.subr.bf16.mxu0 %v9582_v57  ;;  %4986 = vmatprep.subr.bf16.mxu1 %v9585_v58  ;;  %v9669_v57 = vld [vmem:[%s11480_s24 + $0x6cc] ss:$16 sps:$4 sm:$0xff]   ;;  %v9664_v58 = vld [vmem:[%s11480_s24 + $0x6c0] ss:$16 sps:$4 sm:$0xff]  }
 0x1c8   : > { %4659 = vmatpush1.bf16.msra.mxu0 %v9580_v59  ;;  %4987 = vmatpush1.bf16.msra.mxu1 %v9583_v60  ;;  %v9667_v59 = vld [vmem:[%s11480_s24 + $0x6c8] ss:$16 sps:$4 sm:$0xff]   ;;  %v9672_v60 = vld [vmem:[%s11480_s24 + $0x6e4] ss:$16 sps:$4 sm:$0xff]  }
 0x1c9   : > { %4660 = vmatprep.subr.bf16.mxu0 %v9588_v61  ;;  %4988 = vmatprep.subr.bf16.mxu1 %v9591_v62  ;;  %v9675_v61 = vld [vmem:[%s11480_s24 + $0x6ec] ss:$16 sps:$4 sm:$0xff]   ;;  %v9670_v62 = vld [vmem:[%s11480_s24 + $0x6e0] ss:$16 sps:$4 sm:$0xff]  }
 0x1cc   : > { %4661 = vmatpush1.bf16.msra.mxu0 %v9586_v63  ;;  %4989 = vmatpush1.bf16.msra.mxu1 %v9589_v0  ;;  %v9673_v63 = vld [vmem:[%s11480_s24 + $0x6e8] ss:$16 sps:$4 sm:$0xff]   ;;  %v9678_v0 = vld [vmem:[%s11480_s24 + $0x704] ss:$16 sps:$4 sm:$0xff]  }
 0x1cd   : > { %4662 = vmatprep.subr.bf16.mxu0 %v9594_v1  ;;  %4990 = vmatprep.subr.bf16.mxu1 %v9597_v2  ;;  %v9681_v1 = vld [vmem:[%s11480_s24 + $0x70c] ss:$16 sps:$4 sm:$0xff]   ;;  %v9676_v2 = vld [vmem:[%s11480_s24 + $0x700] ss:$16 sps:$4 sm:$0xff]  }
 0x1d0   : > { %4663 = vmatpush1.bf16.msra.mxu0 %v9592_v3  ;;  %4991 = vmatpush1.bf16.msra.mxu1 %v9595_v4  ;;  %v9679_v3 = vld [vmem:[%s11480_s24 + $0x708] ss:$16 sps:$4 sm:$0xff]   ;;  %v9684_v4 = vld [vmem:[%s11480_s24 + $0x724] ss:$16 sps:$4 sm:$0xff]  }
 0x1d1   : > { %4664 = vmatprep.subr.bf16.mxu0 %v9600_v5  ;;  %4992 = vmatprep.subr.bf16.mxu1 %v9603_v6  ;;  %v9687_v5 = vld [vmem:[%s11480_s24 + $0x72c] ss:$16 sps:$4 sm:$0xff]   ;;  %v9682_v6 = vld [vmem:[%s11480_s24 + $0x720] ss:$16 sps:$4 sm:$0xff]  }
 0x1d4   : > { %4665 = vmatpush1.bf16.msra.mxu0 %v9598_v7  ;;  %4993 = vmatpush1.bf16.msra.mxu1 %v9601_v8  ;;  %v9685_v7 = vld [vmem:[%s11480_s24 + $0x728] ss:$16 sps:$4 sm:$0xff]   ;;  %v9690_v8 = vld [vmem:[%s11480_s24 + $0x744] ss:$16 sps:$4 sm:$0xff]  }
 0x1d5   : > { %4666 = vmatprep.subr.bf16.mxu0 %v9606_v9  ;;  %4994 = vmatprep.subr.bf16.mxu1 %v9609_v11  ;;  %v9693_v9 = vld [vmem:[%s11480_s24 + $0x74c] ss:$16 sps:$4 sm:$0xff]   ;;  %v9688_v11 = vld [vmem:[%s11480_s24 + $0x740] ss:$16 sps:$4 sm:$0xff]  }
 0x1d8   : > { %4667 = vmatpush1.bf16.msra.mxu0 %v9604_v12  ;;  %4995 = vmatpush1.bf16.msra.mxu1 %v9607_v13  ;;  %v9691_v12 = vld [vmem:[%s11480_s24 + $0x748] ss:$16 sps:$4 sm:$0xff]   ;;  %v9696_v13 = vld [vmem:[%s11480_s24 + $0x764] ss:$16 sps:$4 sm:$0xff]  }
 0x1d9   : > { %4668 = vmatprep.subr.bf16.mxu0 %v9612_v14  ;;  %4996 = vmatprep.subr.bf16.mxu1 %v9615_v15  ;;  %v9699_v14 = vld [vmem:[%s11480_s24 + $0x76c] ss:$16 sps:$4 sm:$0xff]   ;;  %v9694_v15 = vld [vmem:[%s11480_s24 + $0x760] ss:$16 sps:$4 sm:$0xff]  }
 0x1dc   : > { %4669 = vmatpush1.bf16.msra.mxu0 %v9610_v16  ;;  %4997 = vmatpush1.bf16.msra.mxu1 %v9613_v17  ;;  %v9697_v16 = vld [vmem:[%s11480_s24 + $0x768] ss:$16 sps:$4 sm:$0xff]   ;;  %v9702_v17 = vld [vmem:[%s11480_s24 + $0x784] ss:$16 sps:$4 sm:$0xff]  }
 0x1dd   : > { %4670 = vmatprep.subr.bf16.mxu0 %v9618_v18  ;;  %4998 = vmatprep.subr.bf16.mxu1 %v9621_v19  ;;  %v9705_v18 = vld [vmem:[%s11480_s24 + $0x78c] ss:$16 sps:$4 sm:$0xff]   ;;  %v9700_v19 = vld [vmem:[%s11480_s24 + $0x780] ss:$16 sps:$4 sm:$0xff]  }
 0x1e0   : > { %4671 = vmatpush1.bf16.msra.mxu0 %v9616_v21  ;;  %4999 = vmatpush1.bf16.msra.mxu1 %v9619_v22  ;;  %v9708_v21 = vld [vmem:[%s11480_s24 + $0x7a4] ss:$16 sps:$4 sm:$0xff]   ;;  %v9711_v22 = vld [vmem:[%s11480_s24 + $0x7ac] ss:$16 sps:$4 sm:$0xff]  }
 0x1e1   : > { %4672 = vmatprep.subr.bf16.mxu0 %v9624_v23  ;;  %5000 = vmatprep.subr.bf16.mxu1 %v9627_v25  ;;  %v9706_v23 = vld [vmem:[%s11480_s24 + $0x7a0] ss:$16 sps:$4 sm:$0xff]   ;;  %v9709_v25 = vld [vmem:[%s11480_s24 + $0x7a8] ss:$16 sps:$4 sm:$0xff]  }
 0x1e4   : > { %4673 = vmatpush1.bf16.msra.mxu0 %v9622_v24  ;;  %5001 = vmatpush1.bf16.msra.mxu1 %v9625_v10  ;;  %v9714_v24 = vld [vmem:[%s11480_s24 + $0x7c4] ss:$16 sps:$4 sm:$0xff]   ;;  %v9717_v10 = vld [vmem:[%s11480_s24 + $0x7cc] ss:$16 sps:$4 sm:$0xff]  }
 0x1e5   : > { %4683 = vmatprep.subr.bf16.mxu0 %v9630_v28  ;;  %5011 = vmatprep.subr.bf16.mxu1 %v9633_v29  ;;  %v9712_v28 = vld [vmem:[%s11480_s24 + $0x7c0] ss:$16 sps:$4 sm:$0xff]  }
 0x1e6   : > { %v11773_v29 = vld [vmem:[%s12846_s0 + $0x10] sm:$0xff] }
 0x1e7   : > { %4675 = vmatmul.mubr.bf16.vlgmr.msra.gmra.mrb[0].mxu0 %v1454_v31  ;;  %5003 = vmatmul.mubr.bf16.vlgmr.msra.gmra.mrb[0].mxu1 %v1454_v31  ;;  %v9720_v31 = vld [vmem:[%s11480_s24 + $0x7e4] ss:$16 sps:$4 sm:$0xff]  }
 0x1e8   : > { %4684 = vmatpush1.bf16.msra.mxu0 %v9628_v32  ;;  %5012 = vmatpush1.bf16.msra.mxu1 %v9631_v33  ;;  %v9723_v32 = vld [vmem:[%s11480_s24 + $0x7ec] ss:$16 sps:$4 sm:$0xff]   ;;  %v11780_v33 = vrot.slane %v11773_v29, %v11530_v50 }
 0x1e9   : > { %4685 = vmatprep.subr.bf16.mxu0 %v9636_v34  ;;  %5013 = vmatprep.subr.bf16.mxu1 %v9639_v35  ;;  %v9718_v34 = vld [vmem:[%s11480_s24 + $0x7e0] ss:$16 sps:$4 sm:$0xff]   ;;  %v9721_v35 = vld [vmem:[%s11480_s24 + $0x7e8] ss:$16 sps:$4 sm:$0xff]  }
 0x1ea   : > { %4715 = vmatprep.mubr.bf16.mxu0 %v1457_v36  ;;  %5043 = vmatprep.mubr.bf16.mxu1 %v1457_v36  ;;  %v9727_v36 = vld [vmem:[%s11480_s24 + $0x804] ss:$16 sps:$4 sm:$0xff]  }
 0x1ec   : > { %4686 = vmatpush1.bf16.msra.mxu0 %v9634_v27  ;;  %5014 = vmatpush1.bf16.msra.mxu1 %v9637_v37  ;;  %v9730_v27 = vld [vmem:[%s11480_s24 + $0x80c] ss:$16 sps:$4 sm:$0xff]   ;;  %v1415_v37 = vcombine.high %v11780_v33, %v11780_v33 }
 0x1ed   : > { %4687 = vmatprep.subr.bf16.mxu0 %v9642_v38  ;;  %5015 = vmatprep.subr.bf16.mxu1 %v9645_v39  ;;  %v9725_v38 = vld [vmem:[%s11480_s24 + $0x800] ss:$16 sps:$4 sm:$0xff]   ;;  %v1456_v39 = vpack.c.bf16 %v11703_v26, %v11703_v26  ;;  %v9739_v26 = vld [vmem:[%s11480_s24 + $0x844] ss:$16 sps:$4 sm:$0xff]  }
 0x1f0   : > { %4688 = vmatpush1.bf16.msra.mxu0 %v9640_v40  ;;  %5016 = vmatpush1.bf16.msra.mxu1 %v9643_v41  ;;  %v9728_v40 = vld [vmem:[%s11480_s24 + $0x808] ss:$16 sps:$4 sm:$0xff]   ;;  %v9733_v41 = vld [vmem:[%s11480_s24 + $0x824] ss:$16 sps:$4 sm:$0xff]  }
 0x1f1   : > { %4689 = vmatprep.subr.bf16.mxu0 %v9648_v42  ;;  %5017 = vmatprep.subr.bf16.mxu1 %v9651_v43  ;;  %v9736_v42 = vld [vmem:[%s11480_s24 + $0x82c] ss:$16 sps:$4 sm:$0xff]   ;;  %v1459_v43 = vpack.c.bf16 %v1415_v37, %v1415_v37  ;;  %v9809_v37 = vld [vmem:[%s11480_s24 + $0x9c0] ss:$16 sps:$4 sm:$0xff]  }
 0x1f4   : > { %4690 = vmatpush1.bf16.msra.mxu0 %v9646_v45  ;;  %5018 = vmatpush1.bf16.msra.mxu1 %v9649_v46  ;;  %v9731_v45 = vld [vmem:[%s11480_s24 + $0x820] ss:$16 sps:$4 sm:$0xff]   ;;  %v9734_v46 = vld [vmem:[%s11480_s24 + $0x828] ss:$16 sps:$4 sm:$0xff]  }
 0x1f5   : > { %4691 = vmatprep.subr.bf16.mxu0 %v9654_v47  ;;  %5019 = vmatprep.subr.bf16.mxu1 %v9657_v48  ;;  %v9742_v47 = vld [vmem:[%s11480_s24 + $0x84c] ss:$16 sps:$4 sm:$0xff]   ;;  %v9737_v48 = vld [vmem:[%s11480_s24 + $0x840] ss:$16 sps:$4 sm:$0xff]  }
 0x1f8   : > { %4692 = vmatpush1.bf16.msra.mxu0 %v9652_v49  ;;  %5020 = vmatpush1.bf16.msra.mxu1 %v9655_v51  ;;  %v9740_v49 = vld [vmem:[%s11480_s24 + $0x848] ss:$16 sps:$4 sm:$0xff]   ;;  %v9745_v51 = vld [vmem:[%s11480_s24 + $0x864] ss:$16 sps:$4 sm:$0xff]  }
 0x1f9   : > { %4693 = vmatprep.subr.bf16.mxu0 %v9660_v52  ;;  %5021 = vmatprep.subr.bf16.mxu1 %v9663_v53  ;;  %v9748_v52 = vld [vmem:[%s11480_s24 + $0x86c] ss:$16 sps:$4 sm:$0xff]   ;;  %v9743_v53 = vld [vmem:[%s11480_s24 + $0x860] ss:$16 sps:$4 sm:$0xff]  }
 0x1fc   : > { %4694 = vmatpush1.bf16.msra.mxu0 %v9658_v54  ;;  %5022 = vmatpush1.bf16.msra.mxu1 %v9661_v55  ;;  %v9746_v54 = vld [vmem:[%s11480_s24 + $0x868] ss:$16 sps:$4 sm:$0xff]   ;;  %v9751_v55 = vld [vmem:[%s11480_s24 + $0x884] ss:$16 sps:$4 sm:$0xff]  }
 0x1fd   : > { %4695 = vmatprep.subr.bf16.mxu0 %v9666_v56  ;;  %5023 = vmatprep.subr.bf16.mxu1 %v9669_v57  ;;  %v9754_v56 = vld [vmem:[%s11480_s24 + $0x88c] ss:$16 sps:$4 sm:$0xff]   ;;  %v9749_v57 = vld [vmem:[%s11480_s24 + $0x880] ss:$16 sps:$4 sm:$0xff]  }
 0x200   : > { %4696 = vmatpush1.bf16.msra.mxu0 %v9664_v58  ;;  %5024 = vmatpush1.bf16.msra.mxu1 %v9667_v59  ;;  %v9752_v58 = vld [vmem:[%s11480_s24 + $0x888] ss:$16 sps:$4 sm:$0xff]   ;;  %v9757_v59 = vld [vmem:[%s11480_s24 + $0x8a4] ss:$16 sps:$4 sm:$0xff]  }
 0x201   : > { %4697 = vmatprep.subr.bf16.mxu0 %v9672_v60  ;;  %5025 = vmatprep.subr.bf16.mxu1 %v9675_v61  ;;  %v9760_v60 = vld [vmem:[%s11480_s24 + $0x8ac] ss:$16 sps:$4 sm:$0xff]   ;;  %v9755_v61 = vld [vmem:[%s11480_s24 + $0x8a0] ss:$16 sps:$4 sm:$0xff]  }
 0x204   : > { %4698 = vmatpush1.bf16.msra.mxu0 %v9670_v62  ;;  %5026 = vmatpush1.bf16.msra.mxu1 %v9673_v63  ;;  %v9758_v62 = vld [vmem:[%s11480_s24 + $0x8a8] ss:$16 sps:$4 sm:$0xff]   ;;  %v9763_v63 = vld [vmem:[%s11480_s24 + $0x8c4] ss:$16 sps:$4 sm:$0xff]  }
 0x205   : > { %4699 = vmatprep.subr.bf16.mxu0 %v9678_v0  ;;  %5027 = vmatprep.subr.bf16.mxu1 %v9681_v1  ;;  %v9766_v0 = vld [vmem:[%s11480_s24 + $0x8cc] ss:$16 sps:$4 sm:$0xff]   ;;  %v9761_v1 = vld [vmem:[%s11480_s24 + $0x8c0] ss:$16 sps:$4 sm:$0xff]  }
 0x208   : > { %4700 = vmatpush1.bf16.msra.mxu0 %v9676_v2  ;;  %5028 = vmatpush1.bf16.msra.mxu1 %v9679_v3  ;;  %v9764_v2 = vld [vmem:[%s11480_s24 + $0x8c8] ss:$16 sps:$4 sm:$0xff]   ;;  %v9769_v3 = vld [vmem:[%s11480_s24 + $0x8e4] ss:$16 sps:$4 sm:$0xff]  }
 0x209   : > { %4701 = vmatprep.subr.bf16.mxu0 %v9684_v4  ;;  %5029 = vmatprep.subr.bf16.mxu1 %v9687_v5  ;;  %v9772_v4 = vld [vmem:[%s11480_s24 + $0x8ec] ss:$16 sps:$4 sm:$0xff]   ;;  %v9767_v5 = vld [vmem:[%s11480_s24 + $0x8e0] ss:$16 sps:$4 sm:$0xff]  }
 0x20c   : > { %4702 = vmatpush1.bf16.msra.mxu0 %v9682_v6  ;;  %5030 = vmatpush1.bf16.msra.mxu1 %v9685_v7  ;;  %v9770_v6 = vld [vmem:[%s11480_s24 + $0x8e8] ss:$16 sps:$4 sm:$0xff]   ;;  %v9775_v7 = vld [vmem:[%s11480_s24 + $0x904] ss:$16 sps:$4 sm:$0xff]  }
 0x20d   : > { %4703 = vmatprep.subr.bf16.mxu0 %v9690_v8  ;;  %5031 = vmatprep.subr.bf16.mxu1 %v9693_v9  ;;  %v9778_v8 = vld [vmem:[%s11480_s24 + $0x90c] ss:$16 sps:$4 sm:$0xff]   ;;  %v9773_v9 = vld [vmem:[%s11480_s24 + $0x900] ss:$16 sps:$4 sm:$0xff]  }
 0x210   : > { %4704 = vmatpush1.bf16.msra.mxu0 %v9688_v11  ;;  %5032 = vmatpush1.bf16.msra.mxu1 %v9691_v12  ;;  %v9776_v11 = vld [vmem:[%s11480_s24 + $0x908] ss:$16 sps:$4 sm:$0xff]   ;;  %v9781_v12 = vld [vmem:[%s11480_s24 + $0x924] ss:$16 sps:$4 sm:$0xff]  }
 0x211   : > { %4705 = vmatprep.subr.bf16.mxu0 %v9696_v13  ;;  %5033 = vmatprep.subr.bf16.mxu1 %v9699_v14  ;;  %v9784_v13 = vld [vmem:[%s11480_s24 + $0x92c] ss:$16 sps:$4 sm:$0xff]   ;;  %v9779_v14 = vld [vmem:[%s11480_s24 + $0x920] ss:$16 sps:$4 sm:$0xff]  }
 0x214   : > { %4706 = vmatpush1.bf16.msra.mxu0 %v9694_v15  ;;  %5034 = vmatpush1.bf16.msra.mxu1 %v9697_v16  ;;  %v9782_v15 = vld [vmem:[%s11480_s24 + $0x928] ss:$16 sps:$4 sm:$0xff]   ;;  %v9787_v16 = vld [vmem:[%s11480_s24 + $0x944] ss:$16 sps:$4 sm:$0xff]  }
 0x215   : > { %4707 = vmatprep.subr.bf16.mxu0 %v9702_v17  ;;  %5035 = vmatprep.subr.bf16.mxu1 %v9705_v18  ;;  %v9790_v17 = vld [vmem:[%s11480_s24 + $0x94c] ss:$16 sps:$4 sm:$0xff]   ;;  %v9785_v18 = vld [vmem:[%s11480_s24 + $0x940] ss:$16 sps:$4 sm:$0xff]  }
 0x218   : > { %4708 = vmatpush1.bf16.msra.mxu0 %v9700_v19  ;;  %5036 = vmatpush1.bf16.msra.mxu1 %v9703_v20  ;;  %v9788_v19 = vld [vmem:[%s11480_s24 + $0x948] ss:$16 sps:$4 sm:$0xff]   ;;  %v9793_v20 = vld [vmem:[%s11480_s24 + $0x964] ss:$16 sps:$4 sm:$0xff]  }
 0x219   : > { %4709 = vmatprep.subr.bf16.mxu0 %v9708_v21  ;;  %5037 = vmatprep.subr.bf16.mxu1 %v9711_v22  ;;  %v9796_v21 = vld [vmem:[%s11480_s24 + $0x96c] ss:$16 sps:$4 sm:$0xff]   ;;  %v9791_v22 = vld [vmem:[%s11480_s24 + $0x960] ss:$16 sps:$4 sm:$0xff]  }
 0x21c   : > { %4710 = vmatpush1.bf16.msra.mxu0 %v9706_v23  ;;  %5038 = vmatpush1.bf16.msra.mxu1 %v9709_v25  ;;  %v9794_v23 = vld [vmem:[%s11480_s24 + $0x968] ss:$16 sps:$4 sm:$0xff]   ;;  %v9799_v25 = vld [vmem:[%s11480_s24 + $0x984] ss:$16 sps:$4 sm:$0xff]  }
 0x21d   : > { %4711 = vmatprep.subr.bf16.mxu0 %v9714_v24  ;;  %5039 = vmatprep.subr.bf16.mxu1 %v9717_v10  ;;  %v9802_v24 = vld [vmem:[%s11480_s24 + $0x98c] ss:$16 sps:$4 sm:$0xff]   ;;  %v9797_v10 = vld [vmem:[%s11480_s24 + $0x980] ss:$16 sps:$4 sm:$0xff]  }
 0x220   : > { %4712 = vmatpush1.bf16.msra.mxu0 %v9712_v28  ;;  %5040 = vmatpush1.bf16.msra.mxu1 %v9715_v30  ;;  %v9800_v28 = vld [vmem:[%s11480_s24 + $0x988] ss:$16 sps:$4 sm:$0xff]   ;;  %v9805_v30 = vld [vmem:[%s11480_s24 + $0x9a4] ss:$16 sps:$4 sm:$0xff]  }
 0x221   : > { %4713 = vmatprep.subr.bf16.mxu0 %v9720_v31  ;;  %5041 = vmatprep.subr.bf16.mxu1 %v9723_v32  ;;  %v9808_v31 = vld [vmem:[%s11480_s24 + $0x9ac] ss:$16 sps:$4 sm:$0xff]   ;;  %v9803_v32 = vld [vmem:[%s11480_s24 + $0x9a0] ss:$16 sps:$4 sm:$0xff]  }
 0x224   : > { %4714 = vmatpush1.bf16.msra.mxu0 %v9718_v34  ;;  %5042 = vmatpush1.bf16.msra.mxu1 %v9721_v35  ;;  %v9806_v34 = vld [vmem:[%s11480_s24 + $0x9a8] ss:$16 sps:$4 sm:$0xff]   ;;  %v9811_v35 = vld [vmem:[%s11480_s24 + $0x9c4] ss:$16 sps:$4 sm:$0xff]  }
 0x225   : > { %4724 = vmatprep.subr.bf16.mxu0 %v9727_v36  ;;  %5052 = vmatprep.subr.bf16.mxu1 %v9730_v27  ;;  %v9814_v36 = vld [vmem:[%s11480_s24 + $0x9cc] ss:$16 sps:$4 sm:$0xff]   ;;  %v1400_v27 = vcombine.high %v11773_v29, %v11773_v29  ;;  %v9815_v29 = vld [vmem:[%s11480_s24 + $0x9e0] ss:$16 sps:$4 sm:$0xff]  }
 0x227   : > { %4716 = vmatmul.mubr.bf16.vlgmr.msra.gmra.mrb[0].mxu0 %v1456_v39  ;;  %5044 = vmatmul.mubr.bf16.vlgmr.msra.gmra.mrb[0].mxu1 %v1456_v39  ;;  %v9817_v39 = vld [vmem:[%s11480_s24 + $0x9e4] ss:$16 sps:$4 sm:$0xff]  }
 0x228   : > { %4725 = vmatpush1.bf16.msra.mxu0 %v9725_v38  ;;  %5053 = vmatpush1.bf16.msra.mxu1 %v9728_v40  ;;  %v9812_v38 = vld [vmem:[%s11480_s24 + $0x9c8] ss:$16 sps:$4 sm:$0xff]   ;;  %v9820_v40 = vld [vmem:[%s11480_s24 + $0x9ec] ss:$16 sps:$4 sm:$0xff]  }
 0x229   : > { %4726 = vmatprep.subr.bf16.mxu0 %v9733_v41  ;;  %5054 = vmatprep.subr.bf16.mxu1 %v9736_v42  ;;  %v11853_v41 = vrot.slane %v1400_v27, %v11530_v50  ;;  %v9818_v42 = vld [vmem:[%s11480_s24 + $0x9e8] ss:$16 sps:$4 sm:$0xff]  }
 0x22a   : > { %4756 = vmatprep.mubr.bf16.mxu0 %v1459_v43  ;;  %5084 = vmatprep.mubr.bf16.mxu1 %v1459_v43  ;;  %v9823_v43 = vld [vmem:[%s11480_s24 + $0xa04] ss:$16 sps:$4 sm:$0xff]   ;;  %v9896_v27 = vld [vmem:[%s11480_s24 + $0xb88] ss:$16 sps:$4 sm:$0xff]  }
 0x22c   : > { %4727 = vmatpush1.bf16.msra.mxu0 %v9731_v45  ;;  %5055 = vmatpush1.bf16.msra.mxu1 %v9734_v46  ;;  %v9826_v45 = vld [vmem:[%s11480_s24 + $0xa0c] ss:$16 sps:$4 sm:$0xff]   ;;  %v1416_v46 = vcombine.high %v11853_v41, %v11853_v41 }
 0x22d   : > { %4728 = vmatprep.subr.bf16.mxu0 %v9739_v26  ;;  %5056 = vmatprep.subr.bf16.mxu1 %v9742_v47  ;;  %v1458_v26 = vpack.c.bf16 %v11780_v33, %v11780_v33  ;;  %v9821_v47 = vld [vmem:[%s11480_s24 + $0xa00] ss:$16 sps:$4 sm:$0xff]  }
 0x22e   : > { %v9827_v33 = vld [vmem:[%s11480_s24 + $0xa20] ss:$16 sps:$4 sm:$0xff]  }
 0x230   : > { %4729 = vmatpush1.bf16.msra.mxu0 %v9737_v48  ;;  %5057 = vmatpush1.bf16.msra.mxu1 %v9740_v49  ;;  %v9824_v48 = vld [vmem:[%s11480_s24 + $0xa08] ss:$16 sps:$4 sm:$0xff]   ;;  %v9829_v49 = vld [vmem:[%s11480_s24 + $0xa24] ss:$16 sps:$4 sm:$0xff]  }
 0x231   : > { %4730 = vmatprep.subr.bf16.mxu0 %v9745_v51  ;;  %5058 = vmatprep.subr.bf16.mxu1 %v9748_v52  ;;  %v9832_v51 = vld [vmem:[%s11480_s24 + $0xa2c] ss:$16 sps:$4 sm:$0xff]   ;;  %v1461_v52 = vpack.c.bf16 %v1416_v46, %v1416_v46  ;;  %v9908_v46 = vld [vmem:[%s11480_s24 + $0xbc8] ss:$16 sps:$4 sm:$0xff]  }
 0x234   : > { %4731 = vmatpush1.bf16.msra.mxu0 %v9743_v53  ;;  %5059 = vmatpush1.bf16.msra.mxu1 %v9746_v54  ;;  %v9830_v53 = vld [vmem:[%s11480_s24 + $0xa28] ss:$16 sps:$4 sm:$0xff]   ;;  %v9835_v54 = vld [vmem:[%s11480_s24 + $0xa44] ss:$16 sps:$4 sm:$0xff]  }
 0x235   : > { %4732 = vmatprep.subr.bf16.mxu0 %v9751_v55  ;;  %5060 = vmatprep.subr.bf16.mxu1 %v9754_v56  ;;  %v9838_v55 = vld [vmem:[%s11480_s24 + $0xa4c] ss:$16 sps:$4 sm:$0xff]   ;;  %v9833_v56 = vld [vmem:[%s11480_s24 + $0xa40] ss:$16 sps:$4 sm:$0xff]  }
 0x238   : > { %4733 = vmatpush1.bf16.msra.mxu0 %v9749_v57  ;;  %5061 = vmatpush1.bf16.msra.mxu1 %v9752_v58  ;;  %v9836_v57 = vld [vmem:[%s11480_s24 + $0xa48] ss:$16 sps:$4 sm:$0xff]   ;;  %v9841_v58 = vld [vmem:[%s11480_s24 + $0xa64] ss:$16 sps:$4 sm:$0xff]  }
 0x239   : > { %4734 = vmatprep.subr.bf16.mxu0 %v9757_v59  ;;  %5062 = vmatprep.subr.bf16.mxu1 %v9760_v60  ;;  %v9844_v59 = vld [vmem:[%s11480_s24 + $0xa6c] ss:$16 sps:$4 sm:$0xff]   ;;  %v9839_v60 = vld [vmem:[%s11480_s24 + $0xa60] ss:$16 sps:$4 sm:$0xff]  }
 0x23c   : > { %4735 = vmatpush1.bf16.msra.mxu0 %v9755_v61  ;;  %5063 = vmatpush1.bf16.msra.mxu1 %v9758_v62  ;;  %v9842_v61 = vld [vmem:[%s11480_s24 + $0xa68] ss:$16 sps:$4 sm:$0xff]   ;;  %v9847_v62 = vld [vmem:[%s11480_s24 + $0xa84] ss:$16 sps:$4 sm:$0xff]  }
 0x23d   : > { %4736 = vmatprep.subr.bf16.mxu0 %v9763_v63  ;;  %5064 = vmatprep.subr.bf16.mxu1 %v9766_v0  ;;  %v9850_v63 = vld [vmem:[%s11480_s24 + $0xa8c] ss:$16 sps:$4 sm:$0xff]   ;;  %v9845_v0 = vld [vmem:[%s11480_s24 + $0xa80] ss:$16 sps:$4 sm:$0xff]  }
 0x240   : > { %4737 = vmatpush1.bf16.msra.mxu0 %v9761_v1  ;;  %5065 = vmatpush1.bf16.msra.mxu1 %v9764_v2  ;;  %v9848_v1 = vld [vmem:[%s11480_s24 + $0xa88] ss:$16 sps:$4 sm:$0xff]   ;;  %v9853_v2 = vld [vmem:[%s11480_s24 + $0xaa4] ss:$16 sps:$4 sm:$0xff]  }
 0x241   : > { %4738 = vmatprep.subr.bf16.mxu0 %v9769_v3  ;;  %5066 = vmatprep.subr.bf16.mxu1 %v9772_v4  ;;  %v9856_v3 = vld [vmem:[%s11480_s24 + $0xaac] ss:$16 sps:$4 sm:$0xff]   ;;  %v9851_v4 = vld [vmem:[%s11480_s24 + $0xaa0] ss:$16 sps:$4 sm:$0xff]  }
 0x244   : > { %4739 = vmatpush1.bf16.msra.mxu0 %v9767_v5  ;;  %5067 = vmatpush1.bf16.msra.mxu1 %v9770_v6  ;;  %v9854_v5 = vld [vmem:[%s11480_s24 + $0xaa8] ss:$16 sps:$4 sm:$0xff]   ;;  %v9859_v6 = vld [vmem:[%s11480_s24 + $0xac4] ss:$16 sps:$4 sm:$0xff]  }
 0x245   : > { %4740 = vmatprep.subr.bf16.mxu0 %v9775_v7  ;;  %5068 = vmatprep.subr.bf16.mxu1 %v9778_v8  ;;  %v9862_v7 = vld [vmem:[%s11480_s24 + $0xacc] ss:$16 sps:$4 sm:$0xff]   ;;  %v9857_v8 = vld [vmem:[%s11480_s24 + $0xac0] ss:$16 sps:$4 sm:$0xff]  }
 0x248   : > { %4741 = vmatpush1.bf16.msra.mxu0 %v9773_v9  ;;  %5069 = vmatpush1.bf16.msra.mxu1 %v9776_v11  ;;  %v9860_v9 = vld [vmem:[%s11480_s24 + $0xac8] ss:$16 sps:$4 sm:$0xff]   ;;  %v9865_v11 = vld [vmem:[%s11480_s24 + $0xae4] ss:$16 sps:$4 sm:$0xff]  }
 0x249   : > { %4742 = vmatprep.subr.bf16.mxu0 %v9781_v12  ;;  %5070 = vmatprep.subr.bf16.mxu1 %v9784_v13  ;;  %v9868_v12 = vld [vmem:[%s11480_s24 + $0xaec] ss:$16 sps:$4 sm:$0xff]   ;;  %v9863_v13 = vld [vmem:[%s11480_s24 + $0xae0] ss:$16 sps:$4 sm:$0xff]  }
 0x24c   : > { %4743 = vmatpush1.bf16.msra.mxu0 %v9779_v14  ;;  %5071 = vmatpush1.bf16.msra.mxu1 %v9782_v15  ;;  %v9866_v14 = vld [vmem:[%s11480_s24 + $0xae8] ss:$16 sps:$4 sm:$0xff]   ;;  %v9871_v15 = vld [vmem:[%s11480_s24 + $0xb04] ss:$16 sps:$4 sm:$0xff]  }
 0x24d   : > { %4744 = vmatprep.subr.bf16.mxu0 %v9787_v16  ;;  %5072 = vmatprep.subr.bf16.mxu1 %v9790_v17  ;;  %v9874_v16 = vld [vmem:[%s11480_s24 + $0xb0c] ss:$16 sps:$4 sm:$0xff]   ;;  %v9869_v17 = vld [vmem:[%s11480_s24 + $0xb00] ss:$16 sps:$4 sm:$0xff]  }
 0x250   : > { %4745 = vmatpush1.bf16.msra.mxu0 %v9785_v18  ;;  %5073 = vmatpush1.bf16.msra.mxu1 %v9788_v19  ;;  %v9872_v18 = vld [vmem:[%s11480_s24 + $0xb08] ss:$16 sps:$4 sm:$0xff]   ;;  %v9877_v19 = vld [vmem:[%s11480_s24 + $0xb24] ss:$16 sps:$4 sm:$0xff]  }
 0x251   : > { %4746 = vmatprep.subr.bf16.mxu0 %v9793_v20  ;;  %5074 = vmatprep.subr.bf16.mxu1 %v9796_v21  ;;  %v9880_v20 = vld [vmem:[%s11480_s24 + $0xb2c] ss:$16 sps:$4 sm:$0xff]   ;;  %v9875_v21 = vld [vmem:[%s11480_s24 + $0xb20] ss:$16 sps:$4 sm:$0xff]  }
 0x254   : > { %4747 = vmatpush1.bf16.msra.mxu0 %v9791_v22  ;;  %5075 = vmatpush1.bf16.msra.mxu1 %v9794_v23  ;;  %v9878_v22 = vld [vmem:[%s11480_s24 + $0xb28] ss:$16 sps:$4 sm:$0xff]   ;;  %v9883_v23 = vld [vmem:[%s11480_s24 + $0xb44] ss:$16 sps:$4 sm:$0xff]  }
 0x255   : > { %4748 = vmatprep.subr.bf16.mxu0 %v9799_v25  ;;  %5076 = vmatprep.subr.bf16.mxu1 %v9802_v24  ;;  %v9886_v25 = vld [vmem:[%s11480_s24 + $0xb4c] ss:$16 sps:$4 sm:$0xff]   ;;  %v9881_v24 = vld [vmem:[%s11480_s24 + $0xb40] ss:$16 sps:$4 sm:$0xff]  }
 0x258   : > { %4749 = vmatpush1.bf16.msra.mxu0 %v9797_v10  ;;  %5077 = vmatpush1.bf16.msra.mxu1 %v9800_v28  ;;  %v9884_v10 = vld [vmem:[%s11480_s24 + $0xb48] ss:$16 sps:$4 sm:$0xff]   ;;  %v9889_v28 = vld [vmem:[%s11480_s24 + $0xb64] ss:$16 sps:$4 sm:$0xff]  }
 0x259   : > { %4750 = vmatprep.subr.bf16.mxu0 %v9805_v30  ;;  %5078 = vmatprep.subr.bf16.mxu1 %v9808_v31  ;;  %v9892_v30 = vld [vmem:[%s11480_s24 + $0xb6c] ss:$16 sps:$4 sm:$0xff]   ;;  %v9887_v31 = vld [vmem:[%s11480_s24 + $0xb60] ss:$16 sps:$4 sm:$0xff]  }
 0x25c   : > { %4751 = vmatpush1.bf16.msra.mxu0 %v9803_v32  ;;  %5079 = vmatpush1.bf16.msra.mxu1 %v9806_v34  ;;  %v9890_v32 = vld [vmem:[%s11480_s24 + $0xb68] ss:$16 sps:$4 sm:$0xff]   ;;  %v9895_v34 = vld [vmem:[%s11480_s24 + $0xb84] ss:$16 sps:$4 sm:$0xff]  }
 0x25d   : > { %4752 = vmatprep.subr.bf16.mxu0 %v9811_v35  ;;  %5080 = vmatprep.subr.bf16.mxu1 %v9814_v36  ;;  %v9898_v35 = vld [vmem:[%s11480_s24 + $0xb8c] ss:$16 sps:$4 sm:$0xff]   ;;  %v9893_v36 = vld [vmem:[%s11480_s24 + $0xb80] ss:$16 sps:$4 sm:$0xff]  }
 0x260   : > { %4753 = vmatpush1.bf16.msra.mxu0 %v9809_v37  ;;  %5081 = vmatpush1.bf16.msra.mxu1 %v9812_v38  ;;  %v9901_v37 = vld [vmem:[%s11480_s24 + $0xba4] ss:$16 sps:$4 sm:$0xff]   ;;  %v9904_v38 = vld [vmem:[%s11480_s24 + $0xbac] ss:$16 sps:$4 sm:$0xff]  }
 0x261   : > { %4754 = vmatprep.subr.bf16.mxu0 %v9817_v39  ;;  %5082 = vmatprep.subr.bf16.mxu1 %v9820_v40  ;;  %v9899_v39 = vld [vmem:[%s11480_s24 + $0xba0] ss:$16 sps:$4 sm:$0xff]   ;;  %v9902_v40 = vld [vmem:[%s11480_s24 + $0xba8] ss:$16 sps:$4 sm:$0xff]  }
 0x264   : > { %4755 = vmatpush1.bf16.msra.mxu0 %v9815_v29  ;;  %5083 = vmatpush1.bf16.msra.mxu1 %v9818_v42  ;;  %v9907_v29 = vld [vmem:[%s11480_s24 + $0xbc4] ss:$16 sps:$4 sm:$0xff]   ;;  %v9910_v42 = vld [vmem:[%s11480_s24 + $0xbcc] ss:$16 sps:$4 sm:$0xff]  }
 0x265   : > { %4765 = vmatprep.subr.bf16.mxu0 %v9823_v43  ;;  %5093 = vmatprep.subr.bf16.mxu1 %v9826_v45  ;;  %v11922_v43 = vld [vmem:[%s12846_s0 + $0x18] sm:$0xff]  ;;  %v9905_v45 = vld [vmem:[%s11480_s24 + $0xbc0] ss:$16 sps:$4 sm:$0xff]  }
 0x267   : > { %4757 = vmatmul.mubr.bf16.vlgmr.msra.gmra.mrb[0].mxu0 %v1458_v26  ;;  %5085 = vmatmul.mubr.bf16.vlgmr.msra.gmra.mrb[0].mxu1 %v1458_v26  ;;  %v9913_v26 = vld [vmem:[%s11480_s24 + $0xbe4] ss:$16 sps:$4 sm:$0xff]  }
 0x268   : > { %4766 = vmatpush1.bf16.msra.mxu0 %v9821_v47  ;;  %5094 = vmatpush1.bf16.msra.mxu1 %v9824_v48  ;;  %v9916_v47 = vld [vmem:[%s11480_s24 + $0xbec] ss:$16 sps:$4 sm:$0xff]   ;;  %v11930_v48 = vrot.slane %v11922_v43, %v11530_v50 }
 0x269   : > { %4767 = vmatprep.subr.bf16.mxu0 %v9829_v49  ;;  %5095 = vmatprep.subr.bf16.mxu1 %v9832_v51  ;;  %v9911_v49 = vld [vmem:[%s11480_s24 + $0xbe0] ss:$16 sps:$4 sm:$0xff]   ;;  %v9914_v51 = vld [vmem:[%s11480_s24 + $0xbe8] ss:$16 sps:$4 sm:$0xff]  }
 0x26a   : > { %4797 = vmatprep.mubr.bf16.mxu0 %v1461_v52  ;;  %5125 = vmatprep.mubr.bf16.mxu1 %v1461_v52  ;;  %v9920_v52 = vld [vmem:[%s11480_s24 + $0xc04] ss:$16 sps:$4 sm:$0xff]  }
 0x26c   : > { %4768 = vmatpush1.bf16.msra.mxu0 %v9827_v33  ;;  %5096 = vmatpush1.bf16.msra.mxu1 %v9830_v53  ;;  %v9923_v33 = vld [vmem:[%s11480_s24 + $0xc0c] ss:$16 sps:$4 sm:$0xff]   ;;  %v1432_v53 = vcombine.high %v11930_v48, %v11930_v48 }
 0x26d   : > { %4769 = vmatprep.subr.bf16.mxu0 %v9835_v54  ;;  %5097 = vmatprep.subr.bf16.mxu1 %v9838_v55  ;;  %v1460_v54 = vpack.c.bf16 %v11853_v41, %v11853_v41  ;;  %v9918_v55 = vld [vmem:[%s11480_s24 + $0xc00] ss:$16 sps:$4 sm:$0xff]  }
 0x26e   : > { %v9924_v41 = vld [vmem:[%s11480_s24 + $0xc20] ss:$16 sps:$4 sm:$0xff]  }
 0x270   : > { %4770 = vmatpush1.bf16.msra.mxu0 %v9833_v56  ;;  %5098 = vmatpush1.bf16.msra.mxu1 %v9836_v57  ;;  %v9921_v56 = vld [vmem:[%s11480_s24 + $0xc08] ss:$16 sps:$4 sm:$0xff]   ;;  %v9926_v57 = vld [vmem:[%s11480_s24 + $0xc24] ss:$16 sps:$4 sm:$0xff]  }
 0x271   : > { %4771 = vmatprep.subr.bf16.mxu0 %v9841_v58  ;;  %5099 = vmatprep.subr.bf16.mxu1 %v9844_v59  ;;  %v9929_v58 = vld [vmem:[%s11480_s24 + $0xc2c] ss:$16 sps:$4 sm:$0xff]   ;;  %v1463_v59 = vpack.c.bf16 %v1432_v53, %v1432_v53  ;;  %v10002_v53 = vld [vmem:[%s11480_s24 + $0xdc0] ss:$16 sps:$4 sm:$0xff]  }
 0x274   : > { %4772 = vmatpush1.bf16.msra.mxu0 %v9839_v60  ;;  %5100 = vmatpush1.bf16.msra.mxu1 %v9842_v61  ;;  %v9927_v60 = vld [vmem:[%s11480_s24 + $0xc28] ss:$16 sps:$4 sm:$0xff]   ;;  %v9932_v61 = vld [vmem:[%s11480_s24 + $0xc44] ss:$16 sps:$4 sm:$0xff]  }
 0x275   : > { %4773 = vmatprep.subr.bf16.mxu0 %v9847_v62  ;;  %5101 = vmatprep.subr.bf16.mxu1 %v9850_v63  ;;  %v9935_v62 = vld [vmem:[%s11480_s24 + $0xc4c] ss:$16 sps:$4 sm:$0xff]   ;;  %v9930_v63 = vld [vmem:[%s11480_s24 + $0xc40] ss:$16 sps:$4 sm:$0xff]  }
 0x278   : > { %4774 = vmatpush1.bf16.msra.mxu0 %v9845_v0  ;;  %5102 = vmatpush1.bf16.msra.mxu1 %v9848_v1  ;;  %v9933_v0 = vld [vmem:[%s11480_s24 + $0xc48] ss:$16 sps:$4 sm:$0xff]   ;;  %v9938_v1 = vld [vmem:[%s11480_s24 + $0xc64] ss:$16 sps:$4 sm:$0xff]  }
 0x279   : > { %4775 = vmatprep.subr.bf16.mxu0 %v9853_v2  ;;  %5103 = vmatprep.subr.bf16.mxu1 %v9856_v3  ;;  %v9941_v2 = vld [vmem:[%s11480_s24 + $0xc6c] ss:$16 sps:$4 sm:$0xff]   ;;  %v9936_v3 = vld [vmem:[%s11480_s24 + $0xc60] ss:$16 sps:$4 sm:$0xff]  }
 0x27c   : > { %4776 = vmatpush1.bf16.msra.mxu0 %v9851_v4  ;;  %5104 = vmatpush1.bf16.msra.mxu1 %v9854_v5  ;;  %v9939_v4 = vld [vmem:[%s11480_s24 + $0xc68] ss:$16 sps:$4 sm:$0xff]   ;;  %v9944_v5 = vld [vmem:[%s11480_s24 + $0xc84] ss:$16 sps:$4 sm:$0xff]  }
 0x27d   : > { %4777 = vmatprep.subr.bf16.mxu0 %v9859_v6  ;;  %5105 = vmatprep.subr.bf16.mxu1 %v9862_v7  ;;  %v9947_v6 = vld [vmem:[%s11480_s24 + $0xc8c] ss:$16 sps:$4 sm:$0xff]   ;;  %v9942_v7 = vld [vmem:[%s11480_s24 + $0xc80] ss:$16 sps:$4 sm:$0xff]  }
 0x280   : > { %4778 = vmatpush1.bf16.msra.mxu0 %v9857_v8  ;;  %5106 = vmatpush1.bf16.msra.mxu1 %v9860_v9  ;;  %v9945_v8 = vld [vmem:[%s11480_s24 + $0xc88] ss:$16 sps:$4 sm:$0xff]   ;;  %v9950_v9 = vld [vmem:[%s11480_s24 + $0xca4] ss:$16 sps:$4 sm:$0xff]  }
 0x281   : > { %4779 = vmatprep.subr.bf16.mxu0 %v9865_v11  ;;  %5107 = vmatprep.subr.bf16.mxu1 %v9868_v12  ;;  %v9953_v11 = vld [vmem:[%s11480_s24 + $0xcac] ss:$16 sps:$4 sm:$0xff]   ;;  %v9948_v12 = vld [vmem:[%s11480_s24 + $0xca0] ss:$16 sps:$4 sm:$0xff]  }
 0x284   : > { %4780 = vmatpush1.bf16.msra.mxu0 %v9863_v13  ;;  %5108 = vmatpush1.bf16.msra.mxu1 %v9866_v14  ;;  %v9951_v13 = vld [vmem:[%s11480_s24 + $0xca8] ss:$16 sps:$4 sm:$0xff]   ;;  %v9956_v14 = vld [vmem:[%s11480_s24 + $0xcc4] ss:$16 sps:$4 sm:$0xff]  }
 0x285   : > { %4781 = vmatprep.subr.bf16.mxu0 %v9871_v15  ;;  %5109 = vmatprep.subr.bf16.mxu1 %v9874_v16  ;;  %v9959_v15 = vld [vmem:[%s11480_s24 + $0xccc] ss:$16 sps:$4 sm:$0xff]   ;;  %v9954_v16 = vld [vmem:[%s11480_s24 + $0xcc0] ss:$16 sps:$4 sm:$0xff]  }
 0x288   : > { %4782 = vmatpush1.bf16.msra.mxu0 %v9869_v17  ;;  %5110 = vmatpush1.bf16.msra.mxu1 %v9872_v18  ;;  %v9957_v17 = vld [vmem:[%s11480_s24 + $0xcc8] ss:$16 sps:$4 sm:$0xff]   ;;  %v9962_v18 = vld [vmem:[%s11480_s24 + $0xce4] ss:$16 sps:$4 sm:$0xff]  }
 0x289   : > { %4783 = vmatprep.subr.bf16.mxu0 %v9877_v19  ;;  %5111 = vmatprep.subr.bf16.mxu1 %v9880_v20  ;;  %v9965_v19 = vld [vmem:[%s11480_s24 + $0xcec] ss:$16 sps:$4 sm:$0xff]   ;;  %v9960_v20 = vld [vmem:[%s11480_s24 + $0xce0] ss:$16 sps:$4 sm:$0xff]  }
 0x28c   : > { %4784 = vmatpush1.bf16.msra.mxu0 %v9875_v21  ;;  %5112 = vmatpush1.bf16.msra.mxu1 %v9878_v22  ;;  %v9963_v21 = vld [vmem:[%s11480_s24 + $0xce8] ss:$16 sps:$4 sm:$0xff]   ;;  %v9968_v22 = vld [vmem:[%s11480_s24 + $0xd04] ss:$16 sps:$4 sm:$0xff]  }
 0x28d   : > { %4785 = vmatprep.subr.bf16.mxu0 %v9883_v23  ;;  %5113 = vmatprep.subr.bf16.mxu1 %v9886_v25  ;;  %v9971_v23 = vld [vmem:[%s11480_s24 + $0xd0c] ss:$16 sps:$4 sm:$0xff]   ;;  %v9966_v25 = vld [vmem:[%s11480_s24 + $0xd00] ss:$16 sps:$4 sm:$0xff]  }
 0x290   : > { %4786 = vmatpush1.bf16.msra.mxu0 %v9881_v24  ;;  %5114 = vmatpush1.bf16.msra.mxu1 %v9884_v10  ;;  %v9969_v24 = vld [vmem:[%s11480_s24 + $0xd08] ss:$16 sps:$4 sm:$0xff]   ;;  %v9974_v10 = vld [vmem:[%s11480_s24 + $0xd24] ss:$16 sps:$4 sm:$0xff]  }
 0x291   : > { %4787 = vmatprep.subr.bf16.mxu0 %v9889_v28  ;;  %5115 = vmatprep.subr.bf16.mxu1 %v9892_v30  ;;  %v9977_v28 = vld [vmem:[%s11480_s24 + $0xd2c] ss:$16 sps:$4 sm:$0xff]   ;;  %v9972_v30 = vld [vmem:[%s11480_s24 + $0xd20] ss:$16 sps:$4 sm:$0xff]  }
 0x294   : > { %4788 = vmatpush1.bf16.msra.mxu0 %v9887_v31  ;;  %5116 = vmatpush1.bf16.msra.mxu1 %v9890_v32  ;;  %v9975_v31 = vld [vmem:[%s11480_s24 + $0xd28] ss:$16 sps:$4 sm:$0xff]   ;;  %v9980_v32 = vld [vmem:[%s11480_s24 + $0xd44] ss:$16 sps:$4 sm:$0xff]  }
 0x295   : > { %4789 = vmatprep.subr.bf16.mxu0 %v9895_v34  ;;  %5117 = vmatprep.subr.bf16.mxu1 %v9898_v35  ;;  %v9983_v34 = vld [vmem:[%s11480_s24 + $0xd4c] ss:$16 sps:$4 sm:$0xff]   ;;  %v9978_v35 = vld [vmem:[%s11480_s24 + $0xd40] ss:$16 sps:$4 sm:$0xff]  }
 0x298   : > { %4790 = vmatpush1.bf16.msra.mxu0 %v9893_v36  ;;  %5118 = vmatpush1.bf16.msra.mxu1 %v9896_v27  ;;  %v9981_v36 = vld [vmem:[%s11480_s24 + $0xd48] ss:$16 sps:$4 sm:$0xff]   ;;  %v9986_v27 = vld [vmem:[%s11480_s24 + $0xd64] ss:$16 sps:$4 sm:$0xff]  }
 0x299   : > { %4791 = vmatprep.subr.bf16.mxu0 %v9901_v37  ;;  %5119 = vmatprep.subr.bf16.mxu1 %v9904_v38  ;;  %v9989_v37 = vld [vmem:[%s11480_s24 + $0xd6c] ss:$16 sps:$4 sm:$0xff]   ;;  %v9984_v38 = vld [vmem:[%s11480_s24 + $0xd60] ss:$16 sps:$4 sm:$0xff]  }
 0x29c   : > { %4792 = vmatpush1.bf16.msra.mxu0 %v9899_v39  ;;  %5120 = vmatpush1.bf16.msra.mxu1 %v9902_v40  ;;  %v9987_v39 = vld [vmem:[%s11480_s24 + $0xd68] ss:$16 sps:$4 sm:$0xff]   ;;  %v9992_v40 = vld [vmem:[%s11480_s24 + $0xd84] ss:$16 sps:$4 sm:$0xff]  }
 0x29d   : > { %4793 = vmatprep.subr.bf16.mxu0 %v9907_v29  ;;  %5121 = vmatprep.subr.bf16.mxu1 %v9910_v42  ;;  %v9995_v29 = vld [vmem:[%s11480_s24 + $0xd8c] ss:$16 sps:$4 sm:$0xff]   ;;  %v9990_v42 = vld [vmem:[%s11480_s24 + $0xd80] ss:$16 sps:$4 sm:$0xff]  }
 0x2a0   : > { %4794 = vmatpush1.bf16.msra.mxu0 %v9905_v45  ;;  %5122 = vmatpush1.bf16.msra.mxu1 %v9908_v46  ;;  %v9993_v45 = vld [vmem:[%s11480_s24 + $0xd88] ss:$16 sps:$4 sm:$0xff]   ;;  %v9998_v46 = vld [vmem:[%s11480_s24 + $0xda4] ss:$16 sps:$4 sm:$0xff]  }
 0x2a1   : > { %4795 = vmatprep.subr.bf16.mxu0 %v9913_v26  ;;  %5123 = vmatprep.subr.bf16.mxu1 %v9916_v47  ;;  %v10001_v26 = vld [vmem:[%s11480_s24 + $0xdac] ss:$16 sps:$4 sm:$0xff]   ;;  %v9996_v47 = vld [vmem:[%s11480_s24 + $0xda0] ss:$16 sps:$4 sm:$0xff]  }
 0x2a4   : > { %4796 = vmatpush1.bf16.msra.mxu0 %v9911_v49  ;;  %5124 = vmatpush1.bf16.msra.mxu1 %v9914_v51  ;;  %v9999_v49 = vld [vmem:[%s11480_s24 + $0xda8] ss:$16 sps:$4 sm:$0xff]   ;;  %v10004_v51 = vld [vmem:[%s11480_s24 + $0xdc4] ss:$16 sps:$4 sm:$0xff]  }
 0x2a5   : > { %4806 = vmatprep.subr.bf16.mxu0 %v9920_v52  ;;  %5134 = vmatprep.subr.bf16.mxu1 %v9923_v33  ;;  %v10007_v52 = vld [vmem:[%s11480_s24 + $0xdcc] ss:$16 sps:$4 sm:$0xff]   ;;  %v1417_v33 = vcombine.high %v11922_v43, %v11922_v43  ;;  %v10008_v43 = vld [vmem:[%s11480_s24 + $0xde0] ss:$16 sps:$4 sm:$0xff]  }
 0x2a7   : > { %4798 = vmatmul.mubr.bf16.vlgmr.msra.gmra.mrb[0].mxu0 %v1460_v54  ;;  %5126 = vmatmul.mubr.bf16.vlgmr.msra.gmra.mrb[0].mxu1 %v1460_v54  ;;  %v10005_v54 = vld [vmem:[%s11480_s24 + $0xdc8] ss:$16 sps:$4 sm:$0xff]  }
 0x2a8   : > { %4807 = vmatpush1.bf16.msra.mxu0 %v9918_v55  ;;  %5135 = vmatpush1.bf16.msra.mxu1 %v9921_v56  ;;  %v10010_v55 = vld [vmem:[%s11480_s24 + $0xde4] ss:$16 sps:$4 sm:$0xff]   ;;  %v10013_v56 = vld [vmem:[%s11480_s24 + $0xdec] ss:$16 sps:$4 sm:$0xff]  }
 0x2a9   : > { %4808 = vmatprep.subr.bf16.mxu0 %v9926_v57  ;;  %5136 = vmatprep.subr.bf16.mxu1 %v9929_v58  ;;  %v12003_v57 = vrot.slane %v1417_v33, %v11530_v50  ;;  %v10011_v58 = vld [vmem:[%s11480_s24 + $0xde8] ss:$16 sps:$4 sm:$0xff]  }
 0x2aa   : > { %4838 = vmatprep.mubr.bf16.mxu0 %v1463_v59  ;;  %5166 = vmatprep.mubr.bf16.mxu1 %v1463_v59  ;;  %v10016_v59 = vld [vmem:[%s11480_s24 + $0xe04] ss:$16 sps:$4 sm:$0xff]   ;;  %v10089_v33 = vld [vmem:[%s11480_s24 + $0xf88] ss:$16 sps:$4 sm:$0xff]  }
 0x2ac   : > { %4809 = vmatpush1.bf16.msra.mxu0 %v9924_v41  ;;  %5137 = vmatpush1.bf16.msra.mxu1 %v9927_v60  ;;  %v10019_v41 = vld [vmem:[%s11480_s24 + $0xe0c] ss:$16 sps:$4 sm:$0xff]   ;;  %v1433_v60 = vcombine.high %v12003_v57, %v12003_v57 }
 0x2ad   : > { %4810 = vmatprep.subr.bf16.mxu0 %v9932_v61  ;;  %5138 = vmatprep.subr.bf16.mxu1 %v9935_v62  ;;  %v1462_v61 = vpack.c.bf16 %v11930_v48, %v11930_v48  ;;  %v10014_v62 = vld [vmem:[%s11480_s24 + $0xe00] ss:$16 sps:$4 sm:$0xff]  }
 0x2ae   : > { %v10020_v48 = vld [vmem:[%s11480_s24 + $0xe20] ss:$16 sps:$4 sm:$0xff]  }
 0x2b0   : > { %4811 = vmatpush1.bf16.msra.mxu0 %v9930_v63  ;;  %5139 = vmatpush1.bf16.msra.mxu1 %v9933_v0  ;;  %v10017_v63 = vld [vmem:[%s11480_s24 + $0xe08] ss:$16 sps:$4 sm:$0xff]   ;;  %v10022_v0 = vld [vmem:[%s11480_s24 + $0xe24] ss:$16 sps:$4 sm:$0xff]  }
 0x2b1   : > { %4812 = vmatprep.subr.bf16.mxu0 %v9938_v1  ;;  %5140 = vmatprep.subr.bf16.mxu1 %v9941_v2  ;;  %v10025_v1 = vld [vmem:[%s11480_s24 + $0xe2c] ss:$16 sps:$4 sm:$0xff]   ;;  %v1465_v2 = vpack.c.bf16 %v1433_v60, %v1433_v60  ;;  %v10106_v60 = vld [vmem:[%s11480_s24 + $0xfe4] ss:$16 sps:$4 sm:$0xff]  }
 0x2b4   : > { %4813 = vmatpush1.bf16.msra.mxu0 %v9936_v3  ;;  %5141 = vmatpush1.bf16.msra.mxu1 %v9939_v4  ;;  %v10023_v3 = vld [vmem:[%s11480_s24 + $0xe28] ss:$16 sps:$4 sm:$0xff]   ;;  %v10028_v4 = vld [vmem:[%s11480_s24 + $0xe44] ss:$16 sps:$4 sm:$0xff]  }
 0x2b5   : > { %4814 = vmatprep.subr.bf16.mxu0 %v9944_v5  ;;  %5142 = vmatprep.subr.bf16.mxu1 %v9947_v6  ;;  %v10031_v5 = vld [vmem:[%s11480_s24 + $0xe4c] ss:$16 sps:$4 sm:$0xff]   ;;  %v10026_v6 = vld [vmem:[%s11480_s24 + $0xe40] ss:$16 sps:$4 sm:$0xff]  }
 0x2b8   : > { %4815 = vmatpush1.bf16.msra.mxu0 %v9942_v7  ;;  %5143 = vmatpush1.bf16.msra.mxu1 %v9945_v8  ;;  %v10029_v7 = vld [vmem:[%s11480_s24 + $0xe48] ss:$16 sps:$4 sm:$0xff]   ;;  %v10034_v8 = vld [vmem:[%s11480_s24 + $0xe64] ss:$16 sps:$4 sm:$0xff]  }
 0x2b9   : > { %4816 = vmatprep.subr.bf16.mxu0 %v9950_v9  ;;  %5144 = vmatprep.subr.bf16.mxu1 %v9953_v11  ;;  %v10037_v9 = vld [vmem:[%s11480_s24 + $0xe6c] ss:$16 sps:$4 sm:$0xff]   ;;  %v10032_v11 = vld [vmem:[%s11480_s24 + $0xe60] ss:$16 sps:$4 sm:$0xff]  }
 0x2bc   : > { %4817 = vmatpush1.bf16.msra.mxu0 %v9948_v12  ;;  %5145 = vmatpush1.bf16.msra.mxu1 %v9951_v13  ;;  %v10035_v12 = vld [vmem:[%s11480_s24 + $0xe68] ss:$16 sps:$4 sm:$0xff]   ;;  %v10040_v13 = vld [vmem:[%s11480_s24 + $0xe84] ss:$16 sps:$4 sm:$0xff]  }
 0x2bd   : > { %4818 = vmatprep.subr.bf16.mxu0 %v9956_v14  ;;  %5146 = vmatprep.subr.bf16.mxu1 %v9959_v15  ;;  %v10043_v14 = vld [vmem:[%s11480_s24 + $0xe8c] ss:$16 sps:$4 sm:$0xff]   ;;  %v10038_v15 = vld [vmem:[%s11480_s24 + $0xe80] ss:$16 sps:$4 sm:$0xff]  }
 0x2c0   : > { %4819 = vmatpush1.bf16.msra.mxu0 %v9954_v16  ;;  %5147 = vmatpush1.bf16.msra.mxu1 %v9957_v17  ;;  %v10041_v16 = vld [vmem:[%s11480_s24 + $0xe88] ss:$16 sps:$4 sm:$0xff]   ;;  %v10046_v17 = vld [vmem:[%s11480_s24 + $0xea4] ss:$16 sps:$4 sm:$0xff]  }
 0x2c1   : > { %4820 = vmatprep.subr.bf16.mxu0 %v9962_v18  ;;  %5148 = vmatprep.subr.bf16.mxu1 %v9965_v19  ;;  %v10049_v18 = vld [vmem:[%s11480_s24 + $0xeac] ss:$16 sps:$4 sm:$0xff]   ;;  %v10044_v19 = vld [vmem:[%s11480_s24 + $0xea0] ss:$16 sps:$4 sm:$0xff]  }
 0x2c4   : > { %4821 = vmatpush1.bf16.msra.mxu0 %v9960_v20  ;;  %5149 = vmatpush1.bf16.msra.mxu1 %v9963_v21  ;;  %v10047_v20 = vld [vmem:[%s11480_s24 + $0xea8] ss:$16 sps:$4 sm:$0xff]   ;;  %v10052_v21 = vld [vmem:[%s11480_s24 + $0xec4] ss:$16 sps:$4 sm:$0xff]  }
 0x2c5   : > { %4822 = vmatprep.subr.bf16.mxu0 %v9968_v22  ;;  %5150 = vmatprep.subr.bf16.mxu1 %v9971_v23  ;;  %v10055_v22 = vld [vmem:[%s11480_s24 + $0xecc] ss:$16 sps:$4 sm:$0xff]   ;;  %v10050_v23 = vld [vmem:[%s11480_s24 + $0xec0] ss:$16 sps:$4 sm:$0xff]  }
 0x2c8   : > { %4823 = vmatpush1.bf16.msra.mxu0 %v9966_v25  ;;  %5151 = vmatpush1.bf16.msra.mxu1 %v9969_v24  ;;  %v10053_v25 = vld [vmem:[%s11480_s24 + $0xec8] ss:$16 sps:$4 sm:$0xff]   ;;  %v10058_v24 = vld [vmem:[%s11480_s24 + $0xee4] ss:$16 sps:$4 sm:$0xff]  }
 0x2c9   : > { %4824 = vmatprep.subr.bf16.mxu0 %v9974_v10  ;;  %5152 = vmatprep.subr.bf16.mxu1 %v9977_v28  ;;  %v10061_v10 = vld [vmem:[%s11480_s24 + $0xeec] ss:$16 sps:$4 sm:$0xff]   ;;  %v10056_v28 = vld [vmem:[%s11480_s24 + $0xee0] ss:$16 sps:$4 sm:$0xff]  }
 0x2cc   : > { %4825 = vmatpush1.bf16.msra.mxu0 %v9972_v30  ;;  %5153 = vmatpush1.bf16.msra.mxu1 %v9975_v31  ;;  %v10059_v30 = vld [vmem:[%s11480_s24 + $0xee8] ss:$16 sps:$4 sm:$0xff]   ;;  %v10064_v31 = vld [vmem:[%s11480_s24 + $0xf04] ss:$16 sps:$4 sm:$0xff]  }
 0x2cd   : > { %4826 = vmatprep.subr.bf16.mxu0 %v9980_v32  ;;  %5154 = vmatprep.subr.bf16.mxu1 %v9983_v34  ;;  %v10067_v32 = vld [vmem:[%s11480_s24 + $0xf0c] ss:$16 sps:$4 sm:$0xff]   ;;  %v10062_v34 = vld [vmem:[%s11480_s24 + $0xf00] ss:$16 sps:$4 sm:$0xff]  }
 0x2d0   : > { %4827 = vmatpush1.bf16.msra.mxu0 %v9978_v35  ;;  %5155 = vmatpush1.bf16.msra.mxu1 %v9981_v36  ;;  %v10065_v35 = vld [vmem:[%s11480_s24 + $0xf08] ss:$16 sps:$4 sm:$0xff]   ;;  %v10070_v36 = vld [vmem:[%s11480_s24 + $0xf24] ss:$16 sps:$4 sm:$0xff]  }
 0x2d1   : > { %4828 = vmatprep.subr.bf16.mxu0 %v9986_v27  ;;  %5156 = vmatprep.subr.bf16.mxu1 %v9989_v37  ;;  %v10073_v27 = vld [vmem:[%s11480_s24 + $0xf2c] ss:$16 sps:$4 sm:$0xff]   ;;  %v10068_v37 = vld [vmem:[%s11480_s24 + $0xf20] ss:$16 sps:$4 sm:$0xff]  }
 0x2d4   : > { %4829 = vmatpush1.bf16.msra.mxu0 %v9984_v38  ;;  %5157 = vmatpush1.bf16.msra.mxu1 %v9987_v39  ;;  %v10071_v38 = vld [vmem:[%s11480_s24 + $0xf28] ss:$16 sps:$4 sm:$0xff]   ;;  %v10076_v39 = vld [vmem:[%s11480_s24 + $0xf44] ss:$16 sps:$4 sm:$0xff]  }
 0x2d5   : > { %4830 = vmatprep.subr.bf16.mxu0 %v9992_v40  ;;  %5158 = vmatprep.subr.bf16.mxu1 %v9995_v29  ;;  %v10079_v40 = vld [vmem:[%s11480_s24 + $0xf4c] ss:$16 sps:$4 sm:$0xff]   ;;  %v10074_v29 = vld [vmem:[%s11480_s24 + $0xf40] ss:$16 sps:$4 sm:$0xff]  }
 0x2d8   : > { %4831 = vmatpush1.bf16.msra.mxu0 %v9990_v42  ;;  %5159 = vmatpush1.bf16.msra.mxu1 %v9993_v45  ;;  %v10077_v42 = vld [vmem:[%s11480_s24 + $0xf48] ss:$16 sps:$4 sm:$0xff]   ;;  %v10082_v45 = vld [vmem:[%s11480_s24 + $0xf64] ss:$16 sps:$4 sm:$0xff]  }
 0x2d9   : > { %4832 = vmatprep.subr.bf16.mxu0 %v9998_v46  ;;  %5160 = vmatprep.subr.bf16.mxu1 %v10001_v26  ;;  %v10085_v46 = vld [vmem:[%s11480_s24 + $0xf6c] ss:$16 sps:$4 sm:$0xff]   ;;  %v10080_v26 = vld [vmem:[%s11480_s24 + $0xf60] ss:$16 sps:$4 sm:$0xff]  }
 0x2dc   : > { %4833 = vmatpush1.bf16.msra.mxu0 %v9996_v47  ;;  %5161 = vmatpush1.bf16.msra.mxu1 %v9999_v49  ;;  %v10083_v47 = vld [vmem:[%s11480_s24 + $0xf68] ss:$16 sps:$4 sm:$0xff]   ;;  %v10088_v49 = vld [vmem:[%s11480_s24 + $0xf84] ss:$16 sps:$4 sm:$0xff]  }
 0x2dd   : > { %4834 = vmatprep.subr.bf16.mxu0 %v10004_v51  ;;  %5162 = vmatprep.subr.bf16.mxu1 %v10007_v52  ;;  %v10091_v51 = vld [vmem:[%s11480_s24 + $0xf8c] ss:$16 sps:$4 sm:$0xff]   ;;  %v10086_v52 = vld [vmem:[%s11480_s24 + $0xf80] ss:$16 sps:$4 sm:$0xff]  }
 0x2e0   : > { %4835 = vmatpush1.bf16.msra.mxu0 %v10002_v53  ;;  %5163 = vmatpush1.bf16.msra.mxu1 %v10005_v54  ;;  %v10094_v53 = vld [vmem:[%s11480_s24 + $0xfa4] ss:$16 sps:$4 sm:$0xff]   ;;  %v10097_v54 = vld [vmem:[%s11480_s24 + $0xfac] ss:$16 sps:$4 sm:$0xff]  }
 0x2e1   : > { %4836 = vmatprep.subr.bf16.mxu0 %v10010_v55  ;;  %5164 = vmatprep.subr.bf16.mxu1 %v10013_v56  ;;  %v10092_v55 = vld [vmem:[%s11480_s24 + $0xfa0] ss:$16 sps:$4 sm:$0xff]   ;;  %v10095_v56 = vld [vmem:[%s11480_s24 + $0xfa8] ss:$16 sps:$4 sm:$0xff]  }
 0x2e4   : > { %4837 = vmatpush1.bf16.msra.mxu0 %v10008_v43  ;;  %5165 = vmatpush1.bf16.msra.mxu1 %v10011_v58  ;;  %v10100_v43 = vld [vmem:[%s11480_s24 + $0xfc4] ss:$16 sps:$4 sm:$0xff]   ;;  %v10103_v58 = vld [vmem:[%s11480_s24 + $0xfcc] ss:$16 sps:$4 sm:$0xff]  }
 0x2e5   : > { %4847 = vmatprep.subr.bf16.mxu0 %v10016_v59  ;;  %5175 = vmatprep.subr.bf16.mxu1 %v10019_v41  ;;  %v10098_v59 = vld [vmem:[%s11480_s24 + $0xfc0] ss:$16 sps:$4 sm:$0xff]   ;;  %v10101_v41 = vld [vmem:[%s11480_s24 + $0xfc8] ss:$16 sps:$4 sm:$0xff]  }
 0x2e7   : > { %4839 = vmatmul.mubr.bf16.vlgmr.msra.gmra.mrb[0].mxu0 %v1462_v61  ;;  %5167 = vmatmul.mubr.bf16.vlgmr.msra.gmra.mrb[0].mxu1 %v1462_v61  ;;  %v10109_v61 = vld [vmem:[%s11480_s24 + $0xfec] ss:$16 sps:$4 sm:$0xff]  }
 0x2e8   : > { %4848 = vmatpush1.bf16.msra.mxu0 %v10014_v62  ;;  %5176 = vmatpush1.bf16.msra.mxu1 %v10017_v63  ;;  %v5226_v62 = vld [vmem:[%s11478_s30] sm:$0xff] }
 0x2e9   : > { %4849 = vmatprep.subr.bf16.mxu0 %v10022_v0  ;;  %5177 = vmatprep.subr.bf16.mxu1 %v10025_v1  ;;  %v5230_v63 = vld [vmem:[%s11478_s30 + $0x20] sm:$0xff]  ;;  %v5227_v0 = vld [vmem:[%s11478_s30 + $0x8] sm:$0xff] }
 0x2ea   : > { %4879 = vmatprep.mubr.bf16.mxu0 %v1465_v2  ;;  %5207 = vmatprep.mubr.bf16.mxu1 %v1465_v2  ;;  %v5231_v1 = vld [vmem:[%s11478_s30 + $0x28] sm:$0xff]  ;;  %v10104_v2 = vld [vmem:[%s11480_s24 + $0xfe0] ss:$16 sps:$4 sm:$0xff]  }
 0x2ec   : > { %4850 = vmatpush1.bf16.msra.mxu0 %v10020_v48  ;;  %5178 = vmatpush1.bf16.msra.mxu1 %v10023_v3  ;;  %v10107_v48 = vld [vmem:[%s11480_s24 + $0xfe8] ss:$16 sps:$4 sm:$0xff]   ;;  %v8828_v3 = vcombine.high %v5226_v62, %v5230_v63 }
 0x2ed   : > { %4851 = vmatprep.subr.bf16.mxu0 %v10028_v4  ;;  %5179 = vmatprep.subr.bf16.mxu1 %v10031_v5  ;;  %v8830_v4 = vcombine.high %v5227_v0, %v5231_v1  ;;  %v5234_v5 = vld [vmem:[%s11478_s30 + $0x40] sm:$0xff] }
 0x2f0   : > { %4852 = vmatpush1.bf16.msra.mxu0 %v10026_v6  ;;  %5180 = vmatpush1.bf16.msra.mxu1 %v10029_v7  ;;  %v5238_v6 = vld [vmem:[%s11478_s30 + $0x60] sm:$0xff]  ;;  %v5235_v7 = vld [vmem:[%s11478_s30 + $0x48] sm:$0xff] }
 0x2f1   : > { %4853 = vmatprep.subr.bf16.mxu0 %v10034_v8  ;;  %5181 = vmatprep.subr.bf16.mxu1 %v10037_v9  ;;  %v5239_v8 = vld [vmem:[%s11478_s30 + $0x68] sm:$0xff]  ;;  %v1464_v9 = vpack.c.bf16 %v12003_v57, %v12003_v57  ;;  %v8835_v57 = vcombine.low %v5234_v5, %v5238_v6 }
 0x2f4   : > { %4854 = vmatpush1.bf16.msra.mxu0 %v10032_v11  ;;  %5182 = vmatpush1.bf16.msra.mxu1 %v10035_v12  ;;  %v8827_v11 = vcombine.low %v5226_v62, %v5230_v63  ;;  %v8829_v12 = vcombine.low %v5227_v0, %v5231_v1  ;;  %v5290_v1 = vld [vmem:[%s11478_s30 + $0x200] sm:$0xff] }
 0x2f5   : > { %4855 = vmatprep.subr.bf16.mxu0 %v10040_v13  ;;  %5183 = vmatprep.subr.bf16.mxu1 %v10043_v14  ;;  %v8836_v13 = vcombine.high %v5234_v5, %v5238_v6  ;;  %v8838_v14 = vcombine.high %v5235_v7, %v5239_v8 }
 0x2f8   : > { %4856 = vmatpush1.bf16.msra.mxu0 %v10038_v15  ;;  %5184 = vmatpush1.bf16.msra.mxu1 %v10041_v16  ;;  %v5242_v15 = vld [vmem:[%s11478_s30 + $0x80] sm:$0xff] }
 0x2f9   : > { %4857 = vmatprep.subr.bf16.mxu0 %v10046_v17  ;;  %5185 = vmatprep.subr.bf16.mxu1 %v10049_v18  ;;  %v5246_v16 = vld [vmem:[%s11478_s30 + $0xa0] sm:$0xff]  ;;  %v5243_v17 = vld [vmem:[%s11478_s30 + $0x88] sm:$0xff] }
 0x2fa   : > { %v5247_v18 = vld [vmem:[%s11478_s30 + $0xa8] sm:$0xff] }
 0x2fc   : > { %4858 = vmatpush1.bf16.msra.mxu0 %v10044_v19  ;;  %5186 = vmatpush1.bf16.msra.mxu1 %v10047_v20  ;;  %v8837_v19 = vcombine.low %v5235_v7, %v5239_v8  ;;  %v8844_v20 = vcombine.high %v5242_v15, %v5246_v16  ;;  %v5298_v8 = vld [vmem:[%s11478_s30 + $0x240] sm:$0xff] }
 0x2fd   : > { %4859 = vmatprep.subr.bf16.mxu0 %v10052_v21  ;;  %5187 = vmatprep.subr.bf16.mxu1 %v10055_v22  ;;  %v8846_v21 = vcombine.high %v5243_v17, %v5247_v18  ;;  %v5250_v22 = vld [vmem:[%s11478_s30 + $0xc0] sm:$0xff] }
 0x300   : > { %4860 = vmatpush1.bf16.msra.mxu0 %v10050_v23  ;;  %5188 = vmatpush1.bf16.msra.mxu1 %v10053_v25  ;;  %v5254_v23 = vld [vmem:[%s11478_s30 + $0xe0] sm:$0xff]  ;;  %v5251_v25 = vld [vmem:[%s11478_s30 + $0xc8] sm:$0xff] }
 0x301   : > { %4861 = vmatprep.subr.bf16.mxu0 %v10058_v24  ;;  %5189 = vmatprep.subr.bf16.mxu1 %v10061_v10  ;;  %v5255_v24 = vld [vmem:[%s11478_s30 + $0xe8] sm:$0xff]  ;;  %v8843_v10 = vcombine.low %v5242_v15, %v5246_v16 }
 0x304   : > { %4862 = vmatpush1.bf16.msra.mxu0 %v10056_v28  ;;  %5190 = vmatpush1.bf16.msra.mxu1 %v10059_v30  ;;  %v8845_v28 = vcombine.low %v5243_v17, %v5247_v18  ;;  %v8852_v30 = vcombine.high %v5250_v22, %v5254_v23  ;;  %v5306_v17 = vld [vmem:[%s11478_s30 + $0x280] sm:$0xff] }
 0x305   : > { %4863 = vmatprep.subr.bf16.mxu0 %v10064_v31  ;;  %5191 = vmatprep.subr.bf16.mxu1 %v10067_v32  ;;  %v8854_v31 = vcombine.high %v5251_v25, %v5255_v24  ;;  %v5258_v32 = vld [vmem:[%s11478_s30 + $0x100] sm:$0xff] }
 0x306   : > { %v5310_v18 = vld [vmem:[%s11478_s30 + $0x2a0] sm:$0xff] }
 0x308   : > { %4864 = vmatpush1.bf16.msra.mxu0 %v10062_v34  ;;  %5192 = vmatpush1.bf16.msra.mxu1 %v10065_v35  ;;  %v5262_v34 = vld [vmem:[%s11478_s30 + $0x120] sm:$0xff]  ;;  %v5259_v35 = vld [vmem:[%s11478_s30 + $0x108] sm:$0xff] }
 0x309   : > { %4865 = vmatprep.subr.bf16.mxu0 %v10070_v36  ;;  %5193 = vmatprep.subr.bf16.mxu1 %v10073_v27  ;;  %v5263_v36 = vld [vmem:[%s11478_s30 + $0x128] sm:$0xff]  ;;  %v8851_v27 = vcombine.low %v5250_v22, %v5254_v23  ;;  %v8908_v22 = vcombine.high %v5306_v17, %v5310_v18 }
 0x30c   : > { %4866 = vmatpush1.bf16.msra.mxu0 %v10068_v37  ;;  %5194 = vmatpush1.bf16.msra.mxu1 %v10071_v38  ;;  %v8853_v37 = vcombine.low %v5251_v25, %v5255_v24  ;;  %v8860_v38 = vcombine.high %v5258_v32, %v5262_v34  ;;  %v5314_v25 = vld [vmem:[%s11478_s30 + $0x2c0] sm:$0xff] }
 0x30d   : > { %4867 = vmatprep.subr.bf16.mxu0 %v10076_v39  ;;  %5195 = vmatprep.subr.bf16.mxu1 %v10079_v40  ;;  %v8862_v39 = vcombine.high %v5259_v35, %v5263_v36  ;;  %v5266_v40 = vld [vmem:[%s11478_s30 + $0x140] sm:$0xff] }
 0x30e   : > { %v5318_v24 = vld [vmem:[%s11478_s30 + $0x2e0] sm:$0xff] }
 0x310   : > { %4868 = vmatpush1.bf16.msra.mxu0 %v10074_v29  ;;  %5196 = vmatpush1.bf16.msra.mxu1 %v10077_v42  ;;  %v5270_v29 = vld [vmem:[%s11478_s30 + $0x160] sm:$0xff]  ;;  %v5267_v42 = vld [vmem:[%s11478_s30 + $0x148] sm:$0xff] }
 0x311   : > { %4869 = vmatprep.subr.bf16.mxu0 %v10082_v45  ;;  %5197 = vmatprep.subr.bf16.mxu1 %v10085_v46  ;;  %v5271_v45 = vld [vmem:[%s11478_s30 + $0x168] sm:$0xff]  ;;  %v8859_v46 = vcombine.low %v5258_v32, %v5262_v34  ;;  %v8916_v32 = vcombine.high %v5314_v25, %v5318_v24 }
 0x314   : > { %4870 = vmatpush1.bf16.msra.mxu0 %v10080_v26  ;;  %5198 = vmatpush1.bf16.msra.mxu1 %v10083_v47  ;;  %v8861_v26 = vcombine.low %v5259_v35, %v5263_v36  ;;  %v8868_v47 = vcombine.high %v5266_v40, %v5270_v29  ;;  %v5322_v35 = vld [vmem:[%s11478_s30 + $0x300] sm:$0xff] }
 0x315   : > { %4871 = vmatprep.subr.bf16.mxu0 %v10088_v49  ;;  %5199 = vmatprep.subr.bf16.mxu1 %v10091_v51  ;;  %v8870_v49 = vcombine.high %v5267_v42, %v5271_v45  ;;  %v5274_v51 = vld [vmem:[%s11478_s30 + $0x180] sm:$0xff] }
 0x316   : > { %v5326_v36 = vld [vmem:[%s11478_s30 + $0x320] sm:$0xff] }
 0x318   : > { %4872 = vmatpush1.bf16.msra.mxu0 %v10086_v52  ;;  %5200 = vmatpush1.bf16.msra.mxu1 %v10089_v33  ;;  %v5278_v52 = vld [vmem:[%s11478_s30 + $0x1a0] sm:$0xff]  ;;  %v5275_v33 = vld [vmem:[%s11478_s30 + $0x188] sm:$0xff] }
 0x319   : > { %4873 = vmatprep.subr.bf16.mxu0 %v10094_v53  ;;  %5201 = vmatprep.subr.bf16.mxu1 %v10097_v54  ;;  %v5279_v53 = vld [vmem:[%s11478_s30 + $0x1a8] sm:$0xff]  ;;  %v8867_v54 = vcombine.low %v5266_v40, %v5270_v29  ;;  %v8924_v40 = vcombine.high %v5322_v35, %v5326_v36 }
 0x31a   : > { %v8877_v62 = vcombine.low %v5275_v33, %v5279_v53 }
 0x31c   : > { %4874 = vmatpush1.bf16.msra.mxu0 %v10092_v55  ;;  %5202 = vmatpush1.bf16.msra.mxu1 %v10095_v56  ;;  %v8869_v55 = vcombine.low %v5267_v42, %v5271_v45  ;;  %v8876_v56 = vcombine.high %v5274_v51, %v5278_v52  ;;  %v5330_v42 = vld [vmem:[%s11478_s30 + $0x340] sm:$0xff] }
 0x31d   : > { %4875 = vmatprep.subr.bf16.mxu0 %v10100_v43  ;;  %5203 = vmatprep.subr.bf16.mxu1 %v10103_v58  ;;  %v8878_v43 = vcombine.high %v5275_v33, %v5279_v53  ;;  %v5282_v58 = vld [vmem:[%s11478_s30 + $0x1c0] sm:$0xff] }
 0x31e   : > { %v5334_v45 = vld [vmem:[%s11478_s30 + $0x360] sm:$0xff] }
 0x31f   : > { %v8931_v33 = vcombine.low %v5330_v42, %v5334_v45 }
 0x320   : > { %4876 = vmatpush1.bf16.msra.mxu0 %v10098_v59  ;;  %5204 = vmatpush1.bf16.msra.mxu1 %v10101_v41  ;;  %v5286_v59 = vld [vmem:[%s11478_s30 + $0x1e0] sm:$0xff]  ;;  %v5283_v41 = vld [vmem:[%s11478_s30 + $0x1c8] sm:$0xff] }
 0x321   : > { %4877 = vmatprep.subr.bf16.mxu0 %v10106_v60  ;;  %5205 = vmatprep.subr.bf16.mxu1 %v10109_v61  ;;  %v5287_v60 = vld [vmem:[%s11478_s30 + $0x1e8] sm:$0xff]  ;;  %v8875_v61 = vcombine.low %v5274_v51, %v5278_v52  ;;  %v8884_v63 = vcombine.high %v5282_v58, %v5286_v59  ;;  %v8932_v51 = vcombine.high %v5330_v42, %v5334_v45 }
 0x322   : > { %v8886_v0 = vcombine.high %v5283_v41, %v5287_v60  ;;  %v8885_v5 = vcombine.low %v5283_v41, %v5287_v60 }
 0x324   : > { %4878 = vmatpush1.bf16.msra.mxu0 %v10104_v2  ;;  %5206 = vmatpush1.bf16.msra.mxu1 %v10107_v48  ;;  %v5294_v2 = vld [vmem:[%s11478_s30 + $0x220] sm:$0xff]  ;;  %v5291_v48 = vld [vmem:[%s11478_s30 + $0x208] sm:$0xff] }
 0x325   : > { %6762 = vmatprep.subr.bf16.mxu0 %v8828_v3  ;;  %6844 = vmatprep.subr.bf16.mxu1 %v8830_v4  ;;  %v5295_v3 = vld [vmem:[%s11478_s30 + $0x228] sm:$0xff]  ;;  %v8883_v4 = vcombine.low %v5282_v58, %v5286_v59  ;;  %v8892_v6 = vcombine.high %v5290_v1, %v5294_v2 }
 0x326   : > { %v8894_v7 = vcombine.high %v5291_v48, %v5295_v3  ;;  %v5343_v58 = vld [vmem:[%s11478_s30 + $0x3a8] sm:$0xff] }
 0x327   : > { %4880 = vmatmul.mubr.bf16.vlgmr.msra.gmra.mrb[0].mxu0 %v1464_v9  ;;  %5208 = vmatmul.mubr.bf16.vlgmr.msra.gmra.mrb[0].mxu1 %v1464_v9  ;;  %v5302_v9 = vld [vmem:[%s11478_s30 + $0x260] sm:$0xff] }
 0x328   : > { %6763 = vmatpush1.bf16.msra.mxu0 %v8827_v11  ;;  %6845 = vmatpush1.bf16.msra.mxu1 %v8829_v12  ;;  %v5299_v11 = vld [vmem:[%s11478_s30 + $0x248] sm:$0xff]  ;;  %v8900_v15 = vcombine.high %v5298_v8, %v5302_v9 }
 0x329   : > { %6764 = vmatprep.subr.bf16.mxu0 %v8836_v13  ;;  %6846 = vmatprep.subr.bf16.mxu1 %v8838_v14  ;;  %v5303_v12 = vld [vmem:[%s11478_s30 + $0x268] sm:$0xff]  ;;  %v8891_v13 = vcombine.low %v5290_v1, %v5294_v2  ;;  %v8893_v14 = vcombine.low %v5291_v48, %v5295_v3 }
 0x32a   : > { %v8902_v16 = vcombine.high %v5299_v11, %v5303_v12  ;;  %v5351_v1 = vld [vmem:[%s11478_s30 + $0x3e8] sm:$0xff] }
 0x32c   : > { %6765 = vmatpush1.bf16.msra.mxu0 %v8835_v57  ;;  %6847 = vmatpush1.bf16.msra.mxu1 %v8837_v19  ;;  %v5307_v57 = vld [vmem:[%s11478_s30 + $0x288] sm:$0xff] }
 0x32d   : > { %6766 = vmatprep.subr.bf16.mxu0 %v8844_v20  ;;  %6848 = vmatprep.subr.bf16.mxu1 %v8846_v21  ;;  %v5311_v19 = vld [vmem:[%s11478_s30 + $0x2a8] sm:$0xff]  ;;  %v8899_v20 = vcombine.low %v5298_v8, %v5302_v9  ;;  %v8901_v21 = vcombine.low %v5299_v11, %v5303_v12 }
 0x32e   : > { %v8910_v23 = vcombine.high %v5307_v57, %v5311_v19  ;;  %v5359_v8 = vld [vmem:[%s11478_s30 + $0x428] sm:$0xff] }
 0x330   : > { %6767 = vmatpush1.bf16.msra.mxu0 %v8843_v10  ;;  %6849 = vmatpush1.bf16.msra.mxu1 %v8845_v28  ;;  %v5315_v10 = vld [vmem:[%s11478_s30 + $0x2c8] sm:$0xff] }
 0x331   : > { %6768 = vmatprep.subr.bf16.mxu0 %v8852_v30  ;;  %6850 = vmatprep.subr.bf16.mxu1 %v8854_v31  ;;  %v5319_v28 = vld [vmem:[%s11478_s30 + $0x2e8] sm:$0xff]  ;;  %v8907_v30 = vcombine.low %v5306_v17, %v5310_v18  ;;  %v8909_v31 = vcombine.low %v5307_v57, %v5311_v19 }
 0x332   : > { %v8918_v34 = vcombine.high %v5315_v10, %v5319_v28 }
 0x334   : > { %6769 = vmatpush1.bf16.msra.mxu0 %v8851_v27  ;;  %6851 = vmatpush1.bf16.msra.mxu1 %v8853_v37  ;;  %v5323_v27 = vld [vmem:[%s11478_s30 + $0x308] sm:$0xff] }
 0x335   : > { %6770 = vmatprep.subr.bf16.mxu0 %v8860_v38  ;;  %6852 = vmatprep.subr.bf16.mxu1 %v8862_v39  ;;  %v5327_v37 = vld [vmem:[%s11478_s30 + $0x328] sm:$0xff]  ;;  %v8915_v38 = vcombine.low %v5314_v25, %v5318_v24  ;;  %v8917_v39 = vcombine.low %v5315_v10, %v5319_v28 }
 0x336   : > { %v8926_v29 = vcombine.high %v5323_v27, %v5327_v37 }
 0x338   : > { %6771 = vmatpush1.bf16.msra.mxu0 %v8859_v46  ;;  %6853 = vmatpush1.bf16.msra.mxu1 %v8861_v26  ;;  %v5331_v46 = vld [vmem:[%s11478_s30 + $0x348] sm:$0xff] }
 0x339   : > { %6772 = vmatprep.subr.bf16.mxu0 %v8868_v47  ;;  %6854 = vmatprep.subr.bf16.mxu1 %v8870_v49  ;;  %v5335_v26 = vld [vmem:[%s11478_s30 + $0x368] sm:$0xff]  ;;  %v8923_v47 = vcombine.low %v5322_v35, %v5326_v36  ;;  %v8925_v49 = vcombine.low %v5323_v27, %v5327_v37  ;;  %v5362_v35 = vld [vmem:[%s11478_s30 + $0x440] sm:$0xff] }
 0x33a   : > { %v8934_v52 = vcombine.high %v5331_v46, %v5335_v26  ;;  %v8933_v53 = vcombine.low %v5331_v46, %v5335_v26  ;;  %v5366_v27 = vld [vmem:[%s11478_s30 + $0x460] sm:$0xff]  ;;  %v5363_v37 = vld [vmem:[%s11478_s30 + $0x448] sm:$0xff] }
 0x33b   : > { %v8964_v42 = vcombine.high %v5362_v35, %v5366_v27  ;;  %v5374_v46 = vld [vmem:[%s11478_s30 + $0x4a0] sm:$0xff]  ;;  %v5371_v26 = vld [vmem:[%s11478_s30 + $0x488] sm:$0xff] }
 0x33c   : > { %6773 = vmatpush1.bf16.msra.mxu0 %v8867_v54  ;;  %6855 = vmatpush1.bf16.msra.mxu1 %v8869_v55  ;;  %v5338_v54 = vld [vmem:[%s11478_s30 + $0x380] sm:$0xff] }
 0x33d   : > { %6774 = vmatprep.subr.bf16.mxu0 %v8876_v56  ;;  %6856 = vmatprep.subr.bf16.mxu1 %v8878_v43  ;;  %v5342_v55 = vld [vmem:[%s11478_s30 + $0x3a0] sm:$0xff]  ;;  %v5339_v56 = vld [vmem:[%s11478_s30 + $0x388] sm:$0xff] }
 0x33e   : > { %v8940_v43 = vcombine.high %v5338_v54, %v5342_v55  ;;  %v8939_v59 = vcombine.low %v5338_v54, %v5342_v55  ;;  %v8941_v41 = vcombine.low %v5339_v56, %v5343_v58  ;;  %v8942_v60 = vcombine.high %v5339_v56, %v5343_v58  ;;  %v5378_v54 = vld [vmem:[%s11478_s30 + $0x4c0] sm:$0xff]  ;;  %v5379_v56 = vld [vmem:[%s11478_s30 + $0x4c8] sm:$0xff] }
 0x33f   : > { %v5382_v55 = vld [vmem:[%s11478_s30 + $0x4e0] sm:$0xff] }
 0x340   : > { %6775 = vmatpush1.bf16.msra.mxu0 %v8875_v61  ;;  %6857 = vmatpush1.bf16.msra.mxu1 %v8877_v62  ;;  %v5346_v61 = vld [vmem:[%s11478_s30 + $0x3c0] sm:$0xff] }
 0x341   : > { %6776 = vmatprep.subr.bf16.mxu0 %v8884_v63  ;;  %6858 = vmatprep.subr.bf16.mxu1 %v8886_v0  ;;  %v5350_v62 = vld [vmem:[%s11478_s30 + $0x3e0] sm:$0xff]  ;;  %v5347_v63 = vld [vmem:[%s11478_s30 + $0x3c8] sm:$0xff] }
 0x342   : > { %v8948_v0 = vcombine.high %v5346_v61, %v5350_v62  ;;  %v8947_v2 = vcombine.low %v5346_v61, %v5350_v62  ;;  %v8949_v48 = vcombine.low %v5347_v63, %v5351_v1  ;;  %v8950_v3 = vcombine.high %v5347_v63, %v5351_v1  ;;  %v5386_v61 = vld [vmem:[%s11478_s30 + $0x500] sm:$0xff]  ;;  %v5387_v63 = vld [vmem:[%s11478_s30 + $0x508] sm:$0xff] }
 0x343   : > { %v5390_v62 = vld [vmem:[%s11478_s30 + $0x520] sm:$0xff]  ;;  %v8979_v1 = vcombine.low %v5378_v54, %v5382_v55 }
 0x344   : > { %6777 = vmatpush1.bf16.msra.mxu0 %v8883_v4  ;;  %6859 = vmatpush1.bf16.msra.mxu1 %v8885_v5  ;;  %v5354_v4 = vld [vmem:[%s11478_s30 + $0x400] sm:$0xff] }
 0x345   : > { %6778 = vmatprep.subr.bf16.mxu0 %v8892_v6  ;;  %6860 = vmatprep.subr.bf16.mxu1 %v8894_v7  ;;  %v5358_v5 = vld [vmem:[%s11478_s30 + $0x420] sm:$0xff]  ;;  %v5355_v6 = vld [vmem:[%s11478_s30 + $0x408] sm:$0xff] }
 0x346   : > { %v8956_v7 = vcombine.high %v5354_v4, %v5358_v5  ;;  %v8955_v9 = vcombine.low %v5354_v4, %v5358_v5  ;;  %v8957_v11 = vcombine.low %v5355_v6, %v5359_v8  ;;  %v8958_v12 = vcombine.high %v5355_v6, %v5359_v8  ;;  %v5394_v4 = vld [vmem:[%s11478_s30 + $0x540] sm:$0xff]  ;;  %v5395_v6 = vld [vmem:[%s11478_s30 + $0x548] sm:$0xff] }
 0x347   : > { %v5398_v5 = vld [vmem:[%s11478_s30 + $0x560] sm:$0xff]  ;;  %v8987_v8 = vcombine.low %v5386_v61, %v5390_v62 }
 0x348   : > { %6779 = vmatpush1.bf16.msra.mxu0 %v8891_v13  ;;  %6861 = vmatpush1.bf16.msra.mxu1 %v8893_v14  ;;  %v12146_v13 = vsub.s32 0, %v11522_v44  ;;  %v12153_v14 = vld [vmem:[%s1343_s22] sm:$0xf] }
 0x349   : > { %6780 = vmatprep.subr.bf16.mxu0 %v8900_v15  ;;  %6862 = vmatprep.subr.bf16.mxu1 %v8902_v16  ;;  %v12156_v15 = vsub.s32 1, %v11522_v44  ;;  %v1994_v16 = vsub.s32 3, %v11522_v44 }
 0x34a   : > { %v1983_v17 = vrot.slane %v12153_v14, %v12146_v13 }
 0x34b   : > { %v1987_v18 = vrot.slane %v12153_v14, %v12156_v15  ;;  %v1995_v57 = vrot.slane %v12153_v14, %v1994_v16 }
 0x34c   : > { %6781 = vmatpush1.bf16.msra.mxu0 %v8899_v20  ;;  %6863 = vmatpush1.bf16.msra.mxu1 %v8901_v21 }
 0x34d   : > { %6782 = vmatprep.subr.bf16.mxu0 %v8908_v22  ;;  %6864 = vmatprep.subr.bf16.mxu1 %v8910_v23 }
 0x350   : > { %6783 = vmatpush1.bf16.msra.mxu0 %v8907_v30  ;;  %6865 = vmatpush1.bf16.msra.mxu1 %v8909_v31 }
 0x351   : > { %6784 = vmatprep.subr.bf16.mxu0 %v8916_v32  ;;  %6866 = vmatprep.subr.bf16.mxu1 %v8918_v34 }
 0x354   : > { %6785 = vmatpush1.bf16.msra.mxu0 %v8915_v38  ;;  %6867 = vmatpush1.bf16.msra.mxu1 %v8917_v39  ;;  %v5367_v38 = vld [vmem:[%s11478_s30 + $0x468] sm:$0xff] }
 0x355   : > { %6786 = vmatprep.subr.bf16.mxu0 %v8924_v40  ;;  %6868 = vmatprep.subr.bf16.mxu1 %v8926_v29  ;;  %v5370_v29 = vld [vmem:[%s11478_s30 + $0x480] sm:$0xff]  ;;  %v8966_v45 = vcombine.high %v5363_v37, %v5367_v38 }
 0x356   : > { %v8971_v58 = vcombine.low %v5370_v29, %v5374_v46 }
 0x358   : > { %6787 = vmatpush1.bf16.msra.mxu0 %v8923_v47  ;;  %6869 = vmatpush1.bf16.msra.mxu1 %v8925_v49  ;;  %v5375_v47 = vld [vmem:[%s11478_s30 + $0x4a8] sm:$0xff] }
 0x359   : > { %6788 = vmatprep.subr.bf16.mxu0 %v8932_v51  ;;  %6870 = vmatprep.subr.bf16.mxu1 %v8934_v52  ;;  %v8963_v51 = vcombine.low %v5362_v35, %v5366_v27  ;;  %v8965_v52 = vcombine.low %v5363_v37, %v5367_v38  ;;  %v5422_v27 = vld [vmem:[%s11478_s30 + $0x620] sm:$0xff]  ;;  %v5419_v37 = vld [vmem:[%s11478_s30 + $0x608] sm:$0xff] }
 0x35a   : > { %v5423_v38 = vld [vmem:[%s11478_s30 + $0x628] sm:$0xff] }
 0x35c   : > { %6789 = vmatpush1.bf16.msra.mxu0 %v8931_v33  ;;  %6871 = vmatpush1.bf16.msra.mxu1 %v8933_v53  ;;  %v8972_v33 = vcombine.high %v5370_v29, %v5374_v46  ;;  %v8974_v53 = vcombine.high %v5371_v26, %v5375_v47  ;;  %v9022_v46 = vcombine.high %v5419_v37, %v5423_v38 }
 0x35d   : > { %6790 = vmatprep.subr.bf16.mxu0 %v8940_v43  ;;  %6872 = vmatprep.subr.bf16.mxu1 %v8942_v60  ;;  %v5383_v43 = vld [vmem:[%s11478_s30 + $0x4e8] sm:$0xff] }
 0x35e   : > { %v8982_v60 = vcombine.high %v5379_v56, %v5383_v43 }
 0x360   : > { %6791 = vmatpush1.bf16.msra.mxu0 %v8939_v59  ;;  %6873 = vmatpush1.bf16.msra.mxu1 %v8941_v41  ;;  %v8973_v59 = vcombine.low %v5371_v26, %v5375_v47  ;;  %v8980_v41 = vcombine.high %v5378_v54, %v5382_v55  ;;  %v5426_v26 = vld [vmem:[%s11478_s30 + $0x640] sm:$0xff] }
 0x361   : > { %6792 = vmatprep.subr.bf16.mxu0 %v8948_v0  ;;  %6874 = vmatprep.subr.bf16.mxu1 %v8950_v3  ;;  %v5391_v0 = vld [vmem:[%s11478_s30 + $0x528] sm:$0xff]  ;;  %v5430_v47 = vld [vmem:[%s11478_s30 + $0x660] sm:$0xff] }
 0x362   : > { %v8990_v3 = vcombine.high %v5387_v63, %v5391_v0  ;;  %v9028_v54 = vcombine.high %v5426_v26, %v5430_v47 }
 0x364   : > { %6793 = vmatpush1.bf16.msra.mxu0 %v8947_v2  ;;  %6875 = vmatpush1.bf16.msra.mxu1 %v8949_v48  ;;  %v8981_v2 = vcombine.low %v5379_v56, %v5383_v43  ;;  %v8988_v48 = vcombine.high %v5386_v61, %v5390_v62  ;;  %v5434_v56 = vld [vmem:[%s11478_s30 + $0x680] sm:$0xff] }
 0x365   : > { %6803 = vmatprep.subr.bf16.mxu0 %v8956_v7  ;;  %6885 = vmatprep.subr.bf16.mxu1 %v8958_v12  ;;  %v5399_v7 = vld [vmem:[%s11478_s30 + $0x568] sm:$0xff]  ;;  %v5438_v43 = vld [vmem:[%s11478_s30 + $0x6a0] sm:$0xff] }
 0x366   : > { %v8998_v12 = vcombine.high %v5395_v6, %v5399_v7  ;;  %v9036_v61 = vcombine.high %v5434_v56, %v5438_v43 }
 0x3fa   : > { %v4881_v19 = vpop.f32.mrb[0].mxu0  ;;  %v12166_v20 = vpop.f32.mrb[0].mxu1 }
 0x3fb   : > { %v9218_v21 = vadd.f32 %v4881_v19, %v1983_v17  ;;  %v4883_v22 = vpop.f32.mrb[1].mxu0  ;;  %v5211_v23 = vpop.f32.mrb[1].mxu1  ;;  %v5402_v17 = vld [vmem:[%s11478_s30 + $0x580] sm:$0xff]  ;;  %v5407_v19 = vld [vmem:[%s11478_s30 + $0x5a8] sm:$0xff] }
 0x3fc   : > { %v9219_v25 = vadd.f32 %v4883_v22, %v1987_v18  ;;  %v9221_v24 = vadd.f32 %v5211_v23, %v1995_v57  ;;  %v4885_v10 = vpop.f32.mrb[2].mxu0  ;;  %v5213_v28 = vpop.f32.mrb[2].mxu1  ;;  %v5406_v18 = vld [vmem:[%s11478_s30 + $0x5a0] sm:$0xff]  ;;  %v5403_v57 = vld [vmem:[%s11478_s30 + $0x588] sm:$0xff]  ;;  %v8997_v22 = vcombine.low %v5395_v6, %v5399_v7 }
 0x3fd   : > { %v5216_v30 = vmax.f32 %v9218_v21, 0.0  ;;  %v4886_v31 = vpop.f32.mrb[3].mxu0  ;;  %v5214_v32 = vpop.f32.mrb[3].mxu1  ;;  %v8995_v21 = vcombine.low %v5394_v4, %v5398_v5  ;;  %v9004_v23 = vcombine.high %v5402_v17, %v5406_v18  ;;  %v5414_v10 = vld [vmem:[%s11478_s30 + $0x5e0] sm:$0xff]  ;;  %v5411_v28 = vld [vmem:[%s11478_s30 + $0x5c8] sm:$0xff] }
 0x3fe   : > { %v5217_v34 = vmax.f32 %v9219_v25, 0.0  ;;  %v5219_v36 = vmax.f32 %v9221_v24, 0.0  ;;  %v9006_v25 = vcombine.high %v5403_v57, %v5407_v19  ;;  %v5410_v24 = vld [vmem:[%s11478_s30 + $0x5c0] sm:$0xff]  ;;  %v9003_v31 = vcombine.low %v5402_v17, %v5406_v18 }
 0x3ff   : > { %v12174_v40 = vpack.c.bf16 %v5216_v30, %v5216_v30  ;;  %v5415_v30 = vld [vmem:[%s11478_s30 + $0x5e8] sm:$0xff]  ;;  %v9005_v32 = vcombine.low %v5403_v57, %v5407_v19  ;;  %v9011_v29 = vcombine.low %v5410_v24, %v5414_v10  ;;  %v5450_v6 = vld [vmem:[%s11478_s30 + $0x700] sm:$0xff] }
 0x400   : > { %v12172_v39 = vpack.c.bf16 %v5217_v34, %v5217_v34  ;;  %v12182_v49 = vpack.c.bf16 %v5219_v36, %v5219_v36  ;;  %v9012_v34 = vcombine.high %v5410_v24, %v5414_v10  ;;  %v9014_v35 = vcombine.high %v5411_v28, %v5415_v30  ;;  %v5418_v36 = vld [vmem:[%s11478_s30 + $0x600] sm:$0xff] }
 0x401   : > { %v5454_v7 = vld [vmem:[%s11478_s30 + $0x720] sm:$0xff]  ;;  %v1990_v24 = vsub.s32 2, %v11522_v44 }
 0x402   : > { %6794 = vmatprep.mubr.bf16.mxu0 %v12172_v39  ;;  %6876 = vmatprep.mubr.bf16.mxu1 %v12172_v39  ;;  %v9052_v17 = vcombine.high %v5450_v6, %v5454_v7  ;;  %v5458_v57 = vld [vmem:[%s11478_s30 + $0x740] sm:$0xff] }
 0x403   : > { %6795 = vmatmul.mubr.bf16.vlgmr.msra.gmra.mrb[4].mxu0 %v12174_v40  ;;  %6877 = vmatmul.mubr.bf16.vlgmr.msra.gmra.mrb[4].mxu1 %v12174_v40  ;;  %v5462_v19 = vld [vmem:[%s11478_s30 + $0x760] sm:$0xff] }
 0x404   : > { %6804 = vmatpush1.bf16.msra.mxu0 %v8955_v9  ;;  %6886 = vmatpush1.bf16.msra.mxu1 %v8957_v11  ;;  %v8989_v9 = vcombine.low %v5387_v63, %v5391_v0  ;;  %v8996_v11 = vcombine.high %v5394_v4, %v5398_v5  ;;  %v5442_v63 = vld [vmem:[%s11478_s30 + $0x6c0] sm:$0xff]  ;;  %v9060_v10 = vcombine.high %v5458_v57, %v5462_v19 }
 0x405   : > { %6835 = vmatprep.mubr.bf16.mxu0 %v12182_v49  ;;  %6917 = vmatprep.mubr.bf16.mxu1 %v12182_v49  ;;  %v5446_v0 = vld [vmem:[%s11478_s30 + $0x6e0] sm:$0xff] }
 0x406   : > { %6805 = vmatprep.subr.bf16.mxu0 %v8964_v42  ;;  %6887 = vmatprep.subr.bf16.mxu1 %v8966_v45  ;;  %v9013_v42 = vcombine.low %v5411_v28, %v5415_v30  ;;  %v9020_v45 = vcombine.high %v5418_v36, %v5422_v27  ;;  %v9044_v4 = vcombine.high %v5442_v63, %v5446_v0  ;;  %v5466_v30 = vld [vmem:[%s11478_s30 + $0x780] sm:$0xff] }
 0x408   : > { %6806 = vmatpush1.bf16.msra.mxu0 %v8963_v51  ;;  %6888 = vmatpush1.bf16.msra.mxu1 %v8965_v52  ;;  %v5427_v51 = vld [vmem:[%s11478_s30 + $0x648] sm:$0xff] }
 0x409   : > { %6807 = vmatprep.subr.bf16.mxu0 %v8972_v33  ;;  %6889 = vmatprep.subr.bf16.mxu1 %v8974_v53  ;;  %v5431_v52 = vld [vmem:[%s11478_s30 + $0x668] sm:$0xff]  ;;  %v9019_v33 = vcombine.low %v5418_v36, %v5422_v27  ;;  %v9021_v53 = vcombine.low %v5419_v37, %v5423_v38  ;;  %v1991_v27 = vrot.slane %v12153_v14, %v1990_v24 }
 0x40a   : > { %v9030_v55 = vcombine.high %v5427_v51, %v5431_v52 }
 0x40c   : > { %6808 = vmatpush1.bf16.msra.mxu0 %v8971_v58  ;;  %6890 = vmatpush1.bf16.msra.mxu1 %v8973_v59  ;;  %v5435_v58 = vld [vmem:[%s11478_s30 + $0x688] sm:$0xff] }
 0x40d   : > { %6809 = vmatprep.subr.bf16.mxu0 %v8980_v41  ;;  %6891 = vmatprep.subr.bf16.mxu1 %v8982_v60  ;;  %v5439_v59 = vld [vmem:[%s11478_s30 + $0x6a8] sm:$0xff]  ;;  %v9027_v41 = vcombine.low %v5426_v26, %v5430_v47  ;;  %v9029_v60 = vcombine.low %v5427_v51, %v5431_v52  ;;  %v9220_v51 = vadd.f32 %v12166_v20, %v1991_v27  ;;  %v5269_v27 = vld [vmem:[%s11478_s30 + $0x158] sm:$0xff] }
 0x40e   : > { %v9038_v62 = vcombine.high %v5435_v58, %v5439_v59 }
 0x410   : > { %6810 = vmatpush1.bf16.msra.mxu0 %v8979_v1  ;;  %6892 = vmatpush1.bf16.msra.mxu1 %v8981_v2  ;;  %v5443_v1 = vld [vmem:[%s11478_s30 + $0x6c8] sm:$0xff] }
 0x411   : > { %6811 = vmatprep.subr.bf16.mxu0 %v8988_v48  ;;  %6893 = vmatprep.subr.bf16.mxu1 %v8990_v3  ;;  %v5447_v2 = vld [vmem:[%s11478_s30 + $0x6e8] sm:$0xff]  ;;  %v9035_v48 = vcombine.low %v5434_v56, %v5438_v43  ;;  %v9037_v3 = vcombine.low %v5435_v58, %v5439_v59  ;;  %v5218_v58 = vmax.f32 %v9220_v51, 0.0  ;;  %v5281_v51 = vld [vmem:[%s11478_s30 + $0x1b8] sm:$0xff] }
 0x412   : > { %v9046_v5 = vcombine.high %v5443_v1, %v5447_v2 }
 0x414   : > { %6812 = vmatpush1.bf16.msra.mxu0 %v8987_v8  ;;  %6894 = vmatpush1.bf16.msra.mxu1 %v8989_v9  ;;  %v5451_v8 = vld [vmem:[%s11478_s30 + $0x708] sm:$0xff] }
 0x415   : > { %6813 = vmatprep.subr.bf16.mxu0 %v8996_v11  ;;  %6895 = vmatprep.subr.bf16.mxu1 %v8998_v12  ;;  %v5455_v9 = vld [vmem:[%s11478_s30 + $0x728] sm:$0xff]  ;;  %v9043_v11 = vcombine.low %v5442_v63, %v5446_v0  ;;  %v9045_v12 = vcombine.low %v5443_v1, %v5447_v2  ;;  %v12253_v0 = vpack.c.bf16 %v5218_v58, %v5218_v58 }
 0x416   : > { %v9054_v18 = vcombine.high %v5451_v8, %v5455_v9 }
 0x418   : > { %6814 = vmatpush1.bf16.msra.mxu0 %v8995_v21  ;;  %6896 = vmatpush1.bf16.msra.mxu1 %v8997_v22  ;;  %v5459_v21 = vld [vmem:[%s11478_s30 + $0x748] sm:$0xff] }
 0x419   : > { %6815 = vmatprep.subr.bf16.mxu0 %v9004_v23  ;;  %6897 = vmatprep.subr.bf16.mxu1 %v9006_v25  ;;  %v5463_v22 = vld [vmem:[%s11478_s30 + $0x768] sm:$0xff]  ;;  %v9051_v23 = vcombine.low %v5450_v6, %v5454_v7  ;;  %v9053_v25 = vcombine.low %v5451_v8, %v5455_v9  ;;  %v5249_v6 = vld [vmem:[%s11478_s30 + $0xb8] sm:$0xff] }
 0x41a   : > { %v9062_v28 = vcombine.high %v5459_v21, %v5463_v22  ;;  %v9061_v36 = vcombine.low %v5459_v21, %v5463_v22 }
 0x41c   : > { %6816 = vmatpush1.bf16.msra.mxu0 %v9003_v31  ;;  %6898 = vmatpush1.bf16.msra.mxu1 %v9005_v32  ;;  %v5470_v31 = vld [vmem:[%s11478_s30 + $0x7a0] sm:$0xff]  ;;  %v5467_v32 = vld [vmem:[%s11478_s30 + $0x788] sm:$0xff] }
 0x41d   : > { %6817 = vmatprep.subr.bf16.mxu0 %v9012_v34  ;;  %6899 = vmatprep.subr.bf16.mxu1 %v9014_v35  ;;  %v5471_v34 = vld [vmem:[%s11478_s30 + $0x7a8] sm:$0xff]  ;;  %v9059_v35 = vcombine.low %v5458_v57, %v5462_v19  ;;  %v9068_v37 = vcombine.high %v5466_v30, %v5470_v31  ;;  %v9067_v26 = vcombine.low %v5466_v30, %v5470_v31  ;;  %v5257_v57 = vld [vmem:[%s11478_s30 + $0xf8] sm:$0xff] }
 0x41e   : > { %v9070_v38 = vcombine.high %v5467_v32, %v5471_v34  ;;  %v9069_v47 = vcombine.low %v5467_v32, %v5471_v34 }
 0x420   : > { %6818 = vmatpush1.bf16.msra.mxu0 %v9011_v29  ;;  %6900 = vmatpush1.bf16.msra.mxu1 %v9013_v42  ;;  %v5474_v29 = vld [vmem:[%s11478_s30 + $0x7c0] sm:$0xff] }
 0x421   : > { %6819 = vmatprep.subr.bf16.mxu0 %v9020_v45  ;;  %6901 = vmatprep.subr.bf16.mxu1 %v9022_v46  ;;  %v5478_v42 = vld [vmem:[%s11478_s30 + $0x7e0] sm:$0xff]  ;;  %v5475_v45 = vld [vmem:[%s11478_s30 + $0x7c8] sm:$0xff] }
 0x422   : > { %v5479_v46 = vld [vmem:[%s11478_s30 + $0x7e8] sm:$0xff]  ;;  %v9076_v14 = vcombine.high %v5474_v29, %v5478_v42  ;;  %v9075_v56 = vcombine.low %v5474_v29, %v5478_v42 }
 0x423   : > { %v9078_v52 = vcombine.high %v5475_v45, %v5479_v46  ;;  %v9077_v43 = vcombine.low %v5475_v45, %v5479_v46  ;;  %v5276_v46 = vld [vmem:[%s11478_s30 + $0x190] sm:$0xff] }
 0x424   : > { %6820 = vmatpush1.bf16.msra.mxu0 %v9019_v33  ;;  %6902 = vmatpush1.bf16.msra.mxu1 %v9021_v53  ;;  %v5228_v33 = vld [vmem:[%s11478_s30 + $0x10] sm:$0xff] }
 0x425   : > { %6821 = vmatprep.subr.bf16.mxu0 %v9028_v54  ;;  %6903 = vmatprep.subr.bf16.mxu1 %v9030_v55  ;;  %v5232_v53 = vld [vmem:[%s11478_s30 + $0x30] sm:$0xff]  ;;  %v5229_v54 = vld [vmem:[%s11478_s30 + $0x18] sm:$0xff] }
 0x426   : > { %v5233_v55 = vld [vmem:[%s11478_s30 + $0x38] sm:$0xff]  ;;  %v8832_v20 = vcombine.high %v5228_v33, %v5232_v53  ;;  %v8831_v63 = vcombine.low %v5228_v33, %v5232_v53 }
 0x427   : > { %v8834_v59 = vcombine.high %v5229_v54, %v5233_v55  ;;  %v8833_v1 = vcombine.low %v5229_v54, %v5233_v55  ;;  %v5284_v54 = vld [vmem:[%s11478_s30 + $0x1d0] sm:$0xff] }
 0x428   : > { %6822 = vmatpush1.bf16.msra.mxu0 %v9027_v41  ;;  %6904 = vmatpush1.bf16.msra.mxu1 %v9029_v60  ;;  %v5236_v41 = vld [vmem:[%s11478_s30 + $0x50] sm:$0xff] }
 0x429   : > { %6823 = vmatprep.subr.bf16.mxu0 %v9036_v61  ;;  %6905 = vmatprep.subr.bf16.mxu1 %v9038_v62  ;;  %v5240_v60 = vld [vmem:[%s11478_s30 + $0x70] sm:$0xff]  ;;  %v5237_v61 = vld [vmem:[%s11478_s30 + $0x58] sm:$0xff] }
 0x42a   : > { %v5241_v62 = vld [vmem:[%s11478_s30 + $0x78] sm:$0xff]  ;;  %v8840_v2 = vcombine.high %v5236_v41, %v5240_v60  ;;  %v8839_v7 = vcombine.low %v5236_v41, %v5240_v60  ;;  %v5288_v55 = vld [vmem:[%s11478_s30 + $0x1f0] sm:$0xff] }
 0x42b   : > { %v8841_v8 = vcombine.low %v5237_v61, %v5241_v62  ;;  %v5292_v60 = vld [vmem:[%s11478_s30 + $0x210] sm:$0xff] }
 0x42c   : > { %6824 = vmatpush1.bf16.msra.mxu0 %v9035_v48  ;;  %6906 = vmatpush1.bf16.msra.mxu1 %v9037_v3  ;;  %v8842_v48 = vcombine.high %v5237_v61, %v5241_v62  ;;  %v5244_v3 = vld [vmem:[%s11478_s30 + $0x90] sm:$0xff]  ;;  %v5293_v62 = vld [vmem:[%s11478_s30 + $0x218] sm:$0xff] }
 0x42d   : > { %6825 = vmatprep.subr.bf16.mxu0 %v9044_v4  ;;  %6907 = vmatprep.subr.bf16.mxu1 %v9046_v5  ;;  %v5248_v4 = vld [vmem:[%s11478_s30 + $0xb0] sm:$0xff]  ;;  %v5245_v5 = vld [vmem:[%s11478_s30 + $0x98] sm:$0xff] }
 0x42e   : > { %v8848_v9 = vcombine.high %v5244_v3, %v5248_v4  ;;  %v8847_v19 = vcombine.low %v5244_v3, %v5248_v4  ;;  %v8849_v21 = vcombine.low %v5245_v5, %v5249_v6  ;;  %v5296_v61 = vld [vmem:[%s11478_s30 + $0x230] sm:$0xff] }
 0x42f   : > { %v5300_v4 = vld [vmem:[%s11478_s30 + $0x250] sm:$0xff] }
 0x430   : > { %6826 = vmatpush1.bf16.msra.mxu0 %v9043_v11  ;;  %6908 = vmatpush1.bf16.msra.mxu1 %v9045_v12  ;;  %v8850_v11 = vcombine.high %v5245_v5, %v5249_v6  ;;  %v5252_v12 = vld [vmem:[%s11478_s30 + $0xd0] sm:$0xff]  ;;  %v5301_v6 = vld [vmem:[%s11478_s30 + $0x258] sm:$0xff] }
 0x431   : > { %6827 = vmatprep.subr.bf16.mxu0 %v9052_v17  ;;  %6909 = vmatprep.subr.bf16.mxu1 %v9054_v18  ;;  %v5256_v17 = vld [vmem:[%s11478_s30 + $0xf0] sm:$0xff]  ;;  %v5253_v18 = vld [vmem:[%s11478_s30 + $0xd8] sm:$0xff] }
 0x432   : > { %v8858_v22 = vcombine.high %v5253_v18, %v5257_v57  ;;  %v8855_v30 = vcombine.low %v5252_v12, %v5256_v17  ;;  %v8857_v31 = vcombine.low %v5253_v18, %v5257_v57  ;;  %v5304_v5 = vld [vmem:[%s11478_s30 + $0x270] sm:$0xff]  ;;  %v5309_v57 = vld [vmem:[%s11478_s30 + $0x298] sm:$0xff] }
 0x433   : > { %v5312_v18 = vld [vmem:[%s11478_s30 + $0x2b0] sm:$0xff] }
 0x434   : > { %6828 = vmatpush1.bf16.msra.mxu0 %v9051_v23  ;;  %6910 = vmatpush1.bf16.msra.mxu1 %v9053_v25  ;;  %v5260_v23 = vld [vmem:[%s11478_s30 + $0x110] sm:$0xff] }
 0x435   : > { %6829 = vmatprep.subr.bf16.mxu0 %v9060_v10  ;;  %6911 = vmatprep.subr.bf16.mxu1 %v9062_v28  ;;  %v5264_v25 = vld [vmem:[%s11478_s30 + $0x130] sm:$0xff]  ;;  %v5261_v10 = vld [vmem:[%s11478_s30 + $0x118] sm:$0xff] }
 0x436   : > { %v5265_v28 = vld [vmem:[%s11478_s30 + $0x138] sm:$0xff]  ;;  %v8864_v32 = vcombine.high %v5260_v23, %v5264_v25 }
 0x437   : > { %v8866_v34 = vcombine.high %v5261_v10, %v5265_v28  ;;  %v8865_v29 = vcombine.low %v5261_v10, %v5265_v28  ;;  %v5320_v10 = vld [vmem:[%s11478_s30 + $0x2f0] sm:$0xff]  ;;  %v5317_v28 = vld [vmem:[%s11478_s30 + $0x2d8] sm:$0xff] }
 0x438   : > { %6830 = vmatpush1.bf16.msra.mxu0 %v9059_v35  ;;  %6912 = vmatpush1.bf16.msra.mxu1 %v9061_v36  ;;  %v5268_v35 = vld [vmem:[%s11478_s30 + $0x150] sm:$0xff] }
 0x439   : > { %6831 = vmatprep.subr.bf16.mxu0 %v9068_v37  ;;  %6913 = vmatprep.subr.bf16.mxu1 %v9070_v38  ;;  %v5272_v36 = vld [vmem:[%s11478_s30 + $0x170] sm:$0xff]  ;;  %v5273_v37 = vld [vmem:[%s11478_s30 + $0x178] sm:$0xff]  ;;  %v8863_v38 = vcombine.low %v5260_v23, %v5264_v25 }
 0x43a   : > { %v8872_v42 = vcombine.high %v5268_v35, %v5272_v36  ;;  %v8874_v45 = vcombine.high %v5269_v27, %v5273_v37  ;;  %v5316_v25 = vld [vmem:[%s11478_s30 + $0x2d0] sm:$0xff] }
 0x43c   : > { %6832 = vmatpush1.bf16.msra.mxu0 %v9067_v26  ;;  %6914 = vmatpush1.bf16.msra.mxu1 %v9069_v47  ;;  %v5280_v26 = vld [vmem:[%s11478_s30 + $0x1b0] sm:$0xff]  ;;  %v5277_v47 = vld [vmem:[%s11478_s30 + $0x198] sm:$0xff] }
 0x43d   : > { %6833 = vmatprep.subr.bf16.mxu0 %v9076_v14  ;;  %6915 = vmatprep.subr.bf16.mxu1 %v9078_v52  ;;  %v8871_v14 = vcombine.low %v5268_v35, %v5272_v36  ;;  %v8873_v52 = vcombine.low %v5269_v27, %v5273_v37  ;;  %v8880_v33 = vcombine.high %v5276_v46, %v5280_v26  ;;  %v5324_v36 = vld [vmem:[%s11478_s30 + $0x310] sm:$0xff]  ;;  %v5325_v37 = vld [vmem:[%s11478_s30 + $0x318] sm:$0xff] }
 0x43e   : > { %v8882_v53 = vcombine.high %v5277_v47, %v5281_v51  ;;  %v8879_v58 = vcombine.low %v5276_v46, %v5280_v26  ;;  %v5328_v27 = vld [vmem:[%s11478_s30 + $0x330] sm:$0xff] }
 0x43f   : > { %v5332_v26 = vld [vmem:[%s11478_s30 + $0x350] sm:$0xff] }
 0x440   : > { %6834 = vmatpush1.bf16.msra.mxu0 %v9075_v56  ;;  %6916 = vmatpush1.bf16.msra.mxu1 %v9077_v43  ;;  %v5285_v56 = vld [vmem:[%s11478_s30 + $0x1d8] sm:$0xff] }
 0x441   : > { %6926 = vmatprep.subr.bf16.mxu0 %v8832_v20  ;;  %7008 = vmatprep.subr.bf16.mxu1 %v8834_v59  ;;  %v5289_v43 = vld [vmem:[%s11478_s30 + $0x1f8] sm:$0xff]  ;;  %v8881_v20 = vcombine.low %v5277_v47, %v5281_v51  ;;  %v8888_v59 = vcombine.high %v5284_v54, %v5288_v55  ;;  %v5336_v47 = vld [vmem:[%s11478_s30 + $0x370] sm:$0xff] }
 0x442   : > { %v8890_v41 = vcombine.high %v5285_v56, %v5289_v43  ;;  %v5333_v51 = vld [vmem:[%s11478_s30 + $0x358] sm:$0xff] }
 0x443   : > { %6836 = vmatmul.mubr.bf16.vlgmr.msra.gmra.mrb[4].mxu0 %v12253_v0  ;;  %6918 = vmatmul.mubr.bf16.vlgmr.msra.gmra.mrb[4].mxu1 %v12253_v0 }
 0x444   : > { %6927 = vmatpush1.bf16.msra.mxu0 %v8831_v63  ;;  %6958 = vmatprep.mubr.bf16.mxu0 %v12172_v39  ;;  %v5297_v63 = vld [vmem:[%s11478_s30 + $0x238] sm:$0xff] }
 0x445   : > { %7009 = vmatpush1.bf16.msra.mxu1 %v8833_v1  ;;  %7040 = vmatprep.mubr.bf16.mxu1 %v12172_v39  ;;  %v8856_v39 = vcombine.high %v5252_v12, %v5256_v17  ;;  %v8887_v1 = vcombine.low %v5284_v54, %v5288_v55  ;;  %v8898_v3 = vcombine.high %v5293_v62, %v5297_v63  ;;  %v5308_v17 = vld [vmem:[%s11478_s30 + $0x290] sm:$0xff] }
 0x446   : > { %6928 = vmatprep.subr.bf16.mxu0 %v8840_v2  ;;  %7010 = vmatprep.subr.bf16.mxu1 %v8842_v48  ;;  %v8889_v2 = vcombine.low %v5285_v56, %v5289_v43  ;;  %v8896_v48 = vcombine.high %v5292_v60, %v5296_v61  ;;  %v5340_v55 = vld [vmem:[%s11478_s30 + $0x390] sm:$0xff]  ;;  %v5341_v43 = vld [vmem:[%s11478_s30 + $0x398] sm:$0xff] }
 0x447   : > { %v5344_v56 = vld [vmem:[%s11478_s30 + $0x3b0] sm:$0xff] }
 0x448   : > { %6929 = vmatpush1.bf16.msra.mxu0 %v8839_v7  ;;  %v5305_v7 = vld [vmem:[%s11478_s30 + $0x278] sm:$0xff] }
 0x449   : > { %7011 = vmatpush1.bf16.msra.mxu1 %v8841_v8  ;;  %6930 = vmatprep.subr.bf16.mxu0 %v8848_v9  ;;  %v8895_v8 = vcombine.low %v5292_v60, %v5296_v61  ;;  %v8897_v9 = vcombine.low %v5293_v62, %v5297_v63  ;;  %v8906_v12 = vcombine.high %v5301_v6, %v5305_v7  ;;  %v5348_v61 = vld [vmem:[%s11478_s30 + $0x3d0] sm:$0xff]  ;;  %v5349_v63 = vld [vmem:[%s11478_s30 + $0x3d8] sm:$0xff] }
 0x44a   : > { %7012 = vmatprep.subr.bf16.mxu1 %v8850_v11  ;;  %v8904_v11 = vcombine.high %v5300_v4, %v5304_v5  ;;  %v5352_v62 = vld [vmem:[%s11478_s30 + $0x3f0] sm:$0xff] }
 0x44c   : > { %6931 = vmatpush1.bf16.msra.mxu0 %v8847_v19  ;;  %v5313_v19 = vld [vmem:[%s11478_s30 + $0x2b8] sm:$0xff] }
 0x44d   : > { %7013 = vmatpush1.bf16.msra.mxu1 %v8849_v21  ;;  %6932 = vmatprep.subr.bf16.mxu0 %v8856_v39  ;;  %v8903_v21 = vcombine.low %v5300_v4, %v5304_v5  ;;  %v8905_v39 = vcombine.low %v5301_v6, %v5305_v7  ;;  %v8914_v23 = vcombine.high %v5309_v57, %v5313_v19  ;;  %v5356_v5 = vld [vmem:[%s11478_s30 + $0x410] sm:$0xff]  ;;  %v5357_v7 = vld [vmem:[%s11478_s30 + $0x418] sm:$0xff] }
 0x44e   : > { %7014 = vmatprep.subr.bf16.mxu1 %v8858_v22  ;;  %v8912_v22 = vcombine.high %v5308_v17, %v5312_v18  ;;  %v5360_v6 = vld [vmem:[%s11478_s30 + $0x430] sm:$0xff] }
 0x450   : > { %6933 = vmatpush1.bf16.msra.mxu0 %v8855_v30  ;;  %v5321_v30 = vld [vmem:[%s11478_s30 + $0x2f8] sm:$0xff] }
 0x451   : > { %7015 = vmatpush1.bf16.msra.mxu1 %v8857_v31  ;;  %6934 = vmatprep.subr.bf16.mxu0 %v8864_v32  ;;  %v8911_v31 = vcombine.low %v5308_v17, %v5312_v18  ;;  %v8913_v32 = vcombine.low %v5309_v57, %v5313_v19  ;;  %v8922_v35 = vcombine.high %v5317_v28, %v5321_v30  ;;  %v5364_v18 = vld [vmem:[%s11478_s30 + $0x450] sm:$0xff] }
 0x452   : > { %7016 = vmatprep.subr.bf16.mxu1 %v8866_v34  ;;  %v8920_v34 = vcombine.high %v5316_v25, %v5320_v10  ;;  %v5368_v57 = vld [vmem:[%s11478_s30 + $0x470] sm:$0xff]  ;;  %v8959_v19 = vcombine.low %v5356_v5, %v5360_v6 }
 0x454   : > { %6935 = vmatpush1.bf16.msra.mxu0 %v8863_v38  ;;  %v5329_v38 = vld [vmem:[%s11478_s30 + $0x338] sm:$0xff] }
 0x455   : > { %7017 = vmatpush1.bf16.msra.mxu1 %v8865_v29  ;;  %6936 = vmatprep.subr.bf16.mxu0 %v8872_v42  ;;  %v8919_v29 = vcombine.low %v5316_v25, %v5320_v10  ;;  %v8921_v42 = vcombine.low %v5317_v28, %v5321_v30  ;;  %v8930_v46 = vcombine.high %v5325_v37, %v5329_v38  ;;  %v5372_v25 = vld [vmem:[%s11478_s30 + $0x490] sm:$0xff]  ;;  %v5373_v30 = vld [vmem:[%s11478_s30 + $0x498] sm:$0xff] }
 0x456   : > { %7018 = vmatprep.subr.bf16.mxu1 %v8874_v45  ;;  %v8928_v45 = vcombine.high %v5324_v36, %v5328_v27  ;;  %v5376_v10 = vld [vmem:[%s11478_s30 + $0x4b0] sm:$0xff] }
 0x458   : > { %6937 = vmatpush1.bf16.msra.mxu0 %v8871_v14  ;;  %v5337_v14 = vld [vmem:[%s11478_s30 + $0x378] sm:$0xff] }
 0x459   : > { %7019 = vmatpush1.bf16.msra.mxu1 %v8873_v52  ;;  %6938 = vmatprep.subr.bf16.mxu0 %v8880_v33  ;;  %v8927_v52 = vcombine.low %v5324_v36, %v5328_v27  ;;  %v8929_v33 = vcombine.low %v5325_v37, %v5329_v38  ;;  %v8938_v54 = vcombine.high %v5333_v51, %v5337_v14  ;;  %v5380_v27 = vld [vmem:[%s11478_s30 + $0x4d0] sm:$0xff]  ;;  %v5381_v38 = vld [vmem:[%s11478_s30 + $0x4d8] sm:$0xff] }
 0x45a   : > { %7020 = vmatprep.subr.bf16.mxu1 %v8882_v53  ;;  %v8936_v53 = vcombine.high %v5332_v26, %v5336_v47  ;;  %v5384_v37 = vld [vmem:[%s11478_s30 + $0x4f0] sm:$0xff] }
 0x45c   : > { %6939 = vmatpush1.bf16.msra.mxu0 %v8879_v58  ;;  %v5345_v58 = vld [vmem:[%s11478_s30 + $0x3b8] sm:$0xff] }
 0x45d   : > { %7021 = vmatpush1.bf16.msra.mxu1 %v8881_v20  ;;  %6940 = vmatprep.subr.bf16.mxu0 %v8888_v59  ;;  %v8935_v20 = vcombine.low %v5332_v26, %v5336_v47  ;;  %v8937_v59 = vcombine.low %v5333_v51, %v5337_v14  ;;  %v8946_v60 = vcombine.high %v5341_v43, %v5345_v58  ;;  %v5392_v26 = vld [vmem:[%s11478_s30 + $0x530] sm:$0xff]  ;;  %v5389_v47 = vld [vmem:[%s11478_s30 + $0x518] sm:$0xff] }
 0x45e   : > { %7022 = vmatprep.subr.bf16.mxu1 %v8890_v41  ;;  %v8944_v41 = vcombine.high %v5340_v55, %v5344_v56  ;;  %v5393_v51 = vld [vmem:[%s11478_s30 + $0x538] sm:$0xff]  ;;  %v8983_v14 = vcombine.low %v5380_v27, %v5384_v37 }
 0x460   : > { %6941 = vmatpush1.bf16.msra.mxu0 %v8887_v1  ;;  %v5353_v1 = vld [vmem:[%s11478_s30 + $0x3f8] sm:$0xff] }
 0x461   : > { %7023 = vmatpush1.bf16.msra.mxu1 %v8889_v2  ;;  %6942 = vmatprep.subr.bf16.mxu0 %v8896_v48  ;;  %v8943_v2 = vcombine.low %v5340_v55, %v5344_v56  ;;  %v8945_v48 = vcombine.low %v5341_v43, %v5345_v58  ;;  %v8954_v4 = vcombine.high %v5349_v63, %v5353_v1  ;;  %v5400_v55 = vld [vmem:[%s11478_s30 + $0x570] sm:$0xff]  ;;  %v5397_v56 = vld [vmem:[%s11478_s30 + $0x558] sm:$0xff] }
 0x462   : > { %7024 = vmatprep.subr.bf16.mxu1 %v8898_v3  ;;  %v8952_v3 = vcombine.high %v5348_v61, %v5352_v62  ;;  %v5401_v43 = vld [vmem:[%s11478_s30 + $0x578] sm:$0xff] }
 0x464   : > { %6943 = vmatpush1.bf16.msra.mxu0 %v8895_v8  ;;  %v5361_v8 = vld [vmem:[%s11478_s30 + $0x438] sm:$0xff] }
 0x465   : > { %7025 = vmatpush1.bf16.msra.mxu1 %v8897_v9  ;;  %6944 = vmatprep.subr.bf16.mxu0 %v8904_v11  ;;  %v8951_v9 = vcombine.low %v5348_v61, %v5352_v62  ;;  %v8953_v11 = vcombine.low %v5349_v63, %v5353_v1  ;;  %v8962_v17 = vcombine.high %v5357_v7, %v5361_v8  ;;  %v5408_v61 = vld [vmem:[%s11478_s30 + $0x5b0] sm:$0xff]  ;;  %v5405_v62 = vld [vmem:[%s11478_s30 + $0x598] sm:$0xff] }
 0x466   : > { %7026 = vmatprep.subr.bf16.mxu1 %v8906_v12  ;;  %v8960_v12 = vcombine.high %v5356_v5, %v5360_v6  ;;  %v5409_v63 = vld [vmem:[%s11478_s30 + $0x5b8] sm:$0xff]  ;;  %v5416_v5 = vld [vmem:[%s11478_s30 + $0x5f0] sm:$0xff] }
 0x467   : > { %v5413_v6 = vld [vmem:[%s11478_s30 + $0x5d8] sm:$0xff] }
 0x468   : > { %6945 = vmatpush1.bf16.msra.mxu0 %v8903_v21  ;;  %v5365_v21 = vld [vmem:[%s11478_s30 + $0x458] sm:$0xff] }
 0x469   : > { %7027 = vmatpush1.bf16.msra.mxu1 %v8905_v39  ;;  %6946 = vmatprep.subr.bf16.mxu0 %v8912_v22  ;;  %v5369_v39 = vld [vmem:[%s11478_s30 + $0x478] sm:$0xff]  ;;  %v8961_v22 = vcombine.low %v5357_v7, %v5361_v8 }
 0x46a   : > { %7028 = vmatprep.subr.bf16.mxu1 %v8914_v23  ;;  %v8968_v23 = vcombine.high %v5364_v18, %v5368_v57  ;;  %v8970_v28 = vcombine.high %v5365_v21, %v5369_v39  ;;  %v5417_v7 = vld [vmem:[%s11478_s30 + $0x5f8] sm:$0xff] }
 0x46c   : > { %6947 = vmatpush1.bf16.msra.mxu0 %v8911_v31  ;;  %v5377_v31 = vld [vmem:[%s11478_s30 + $0x4b8] sm:$0xff] }
 0x46d   : > { %7029 = vmatpush1.bf16.msra.mxu1 %v8913_v32  ;;  %6948 = vmatprep.subr.bf16.mxu0 %v8920_v34  ;;  %v8967_v32 = vcombine.low %v5364_v18, %v5368_v57  ;;  %v8969_v34 = vcombine.low %v5365_v21, %v5369_v39  ;;  %v8978_v36 = vcombine.high %v5373_v30, %v5377_v31  ;;  %v5424_v18 = vld [vmem:[%s11478_s30 + $0x630] sm:$0xff]  ;;  %v5421_v57 = vld [vmem:[%s11478_s30 + $0x618] sm:$0xff] }
 0x46e   : > { %7030 = vmatprep.subr.bf16.mxu1 %v8922_v35  ;;  %v8976_v35 = vcombine.high %v5372_v25, %v5376_v10  ;;  %v9017_v39 = vcombine.low %v5413_v6, %v5417_v7 }
 0x470   : > { %6949 = vmatpush1.bf16.msra.mxu0 %v8919_v29  ;;  %v8975_v29 = vcombine.low %v5372_v25, %v5376_v10  ;;  %v5428_v25 = vld [vmem:[%s11478_s30 + $0x650] sm:$0xff] }
 0x471   : > { %7031 = vmatpush1.bf16.msra.mxu1 %v8921_v42  ;;  %6950 = vmatprep.subr.bf16.mxu0 %v8928_v45  ;;  %v8977_v42 = vcombine.low %v5373_v30, %v5377_v31  ;;  %v8984_v45 = vcombine.high %v5380_v27, %v5384_v37  ;;  %v5432_v10 = vld [vmem:[%s11478_s30 + $0x670] sm:$0xff]  ;;  %v5433_v30 = vld [vmem:[%s11478_s30 + $0x678] sm:$0xff] }
 0x472   : > { %7032 = vmatprep.subr.bf16.mxu1 %v8930_v46  ;;  %v5388_v46 = vld [vmem:[%s11478_s30 + $0x510] sm:$0xff]  ;;  %v5437_v37 = vld [vmem:[%s11478_s30 + $0x698] sm:$0xff] }
 0x473   : > { %v8991_v58 = vcombine.low %v5388_v46, %v5392_v26  ;;  %v5440_v27 = vld [vmem:[%s11478_s30 + $0x6b0] sm:$0xff] }
 0x474   : > { %6951 = vmatpush1.bf16.msra.mxu0 %v8927_v52 }
 0x475   : > { %7033 = vmatpush1.bf16.msra.mxu1 %v8929_v33  ;;  %6952 = vmatprep.subr.bf16.mxu0 %v8936_v53  ;;  %v8992_v33 = vcombine.high %v5388_v46, %v5392_v26  ;;  %v8994_v53 = vcombine.high %v5389_v47, %v5393_v51  ;;  %v5448_v46 = vld [vmem:[%s11478_s30 + $0x6f0] sm:$0xff]  ;;  %v5445_v26 = vld [vmem:[%s11478_s30 + $0x6d8] sm:$0xff] }
 0x476   : > { %7034 = vmatprep.subr.bf16.mxu1 %v8938_v54  ;;  %v5396_v54 = vld [vmem:[%s11478_s30 + $0x550] sm:$0xff] }
 0x477   : > { %v8999_v1 = vcombine.low %v5396_v54, %v5400_v55 }
 0x478   : > { %6953 = vmatpush1.bf16.msra.mxu0 %v8935_v20  ;;  %v8993_v20 = vcombine.low %v5389_v47, %v5393_v51  ;;  %v5449_v47 = vld [vmem:[%s11478_s30 + $0x6f8] sm:$0xff] }
 0x479   : > { %7035 = vmatpush1.bf16.msra.mxu1 %v8937_v59  ;;  %6954 = vmatprep.subr.bf16.mxu0 %v8944_v41  ;;  %v9000_v59 = vcombine.high %v5396_v54, %v5400_v55  ;;  %v9002_v41 = vcombine.high %v5397_v56, %v5401_v43  ;;  %v5456_v54 = vld [vmem:[%s11478_s30 + $0x730] sm:$0xff]  ;;  %v5453_v55 = vld [vmem:[%s11478_s30 + $0x718] sm:$0xff] }
 0x47a   : > { %7036 = vmatprep.subr.bf16.mxu1 %v8946_v60  ;;  %v5404_v60 = vld [vmem:[%s11478_s30 + $0x590] sm:$0xff] }
 0x47b   : > { %v9007_v8 = vcombine.low %v5404_v60, %v5408_v61 }
 0x47c   : > { %6955 = vmatpush1.bf16.msra.mxu0 %v8943_v2  ;;  %v9001_v2 = vcombine.low %v5397_v56, %v5401_v43  ;;  %v5457_v56 = vld [vmem:[%s11478_s30 + $0x738] sm:$0xff] }
 0x47d   : > { %7037 = vmatpush1.bf16.msra.mxu1 %v8945_v48  ;;  %6956 = vmatprep.subr.bf16.mxu0 %v8952_v3  ;;  %v9008_v48 = vcombine.high %v5404_v60, %v5408_v61  ;;  %v9010_v3 = vcombine.high %v5405_v62, %v5409_v63  ;;  %v5464_v60 = vld [vmem:[%s11478_s30 + $0x770] sm:$0xff]  ;;  %v5461_v61 = vld [vmem:[%s11478_s30 + $0x758] sm:$0xff] }
 0x47e   : > { %7038 = vmatprep.subr.bf16.mxu1 %v8954_v4  ;;  %v5412_v4 = vld [vmem:[%s11478_s30 + $0x5d0] sm:$0xff] }
 0x47f   : > { %v9015_v21 = vcombine.low %v5412_v4, %v5416_v5 }
 0x480   : > { %6957 = vmatpush1.bf16.msra.mxu0 %v8951_v9  ;;  %v9009_v9 = vcombine.low %v5405_v62, %v5409_v63  ;;  %v5465_v62 = vld [vmem:[%s11478_s30 + $0x778] sm:$0xff] }
 0x481   : > { %7039 = vmatpush1.bf16.msra.mxu1 %v8953_v11  ;;  %6967 = vmatprep.subr.bf16.mxu0 %v8960_v12  ;;  %v9016_v11 = vcombine.high %v5412_v4, %v5416_v5  ;;  %v9018_v12 = vcombine.high %v5413_v6, %v5417_v7  ;;  %v5472_v4 = vld [vmem:[%s11478_s30 + $0x7b0] sm:$0xff]  ;;  %v5469_v5 = vld [vmem:[%s11478_s30 + $0x798] sm:$0xff] }
 0x482   : > { %7049 = vmatprep.subr.bf16.mxu1 %v8962_v17  ;;  %v5420_v17 = vld [vmem:[%s11478_s30 + $0x610] sm:$0xff]  ;;  %v5473_v6 = vld [vmem:[%s11478_s30 + $0x7b8] sm:$0xff] }
 0x483   : > { %6959 = vmatmul.mubr.bf16.vlgmr.msra.gmra.mrb[8].mxu0 %v12174_v40  ;;  %v9023_v31 = vcombine.low %v5420_v17, %v5424_v18 }
 0x484   : > { %7041 = vmatmul.mubr.bf16.vlgmr.msra.gmra.mrb[8].mxu1 %v12174_v40  ;;  %6968 = vmatpush1.bf16.msra.mxu0 %v8959_v19  ;;  %v5385_v40 = vld [vmem:[%s11478_s30 + $0x4f8] sm:$0xff] }
 0x485   : > { %6999 = vmatprep.mubr.bf16.mxu0 %v12182_v49  ;;  %7050 = vmatpush1.bf16.msra.mxu1 %v8961_v22  ;;  %v8985_v52 = vcombine.low %v5381_v38, %v5385_v40  ;;  %v5425_v19 = vld [vmem:[%s11478_s30 + $0x638] sm:$0xff]  ;;  %v9024_v22 = vcombine.high %v5420_v17, %v5424_v18  ;;  %v5480_v17 = vld [vmem:[%s11478_s30 + $0x7f0] sm:$0xff] }
 0x486   : > { %7081 = vmatprep.mubr.bf16.mxu1 %v12182_v49  ;;  %6969 = vmatprep.subr.bf16.mxu0 %v8968_v23  ;;  %v8986_v49 = vcombine.high %v5381_v38, %v5385_v40  ;;  %v9026_v23 = vcombine.high %v5421_v57, %v5425_v19  ;;  %v5441_v38 = vld [vmem:[%s11478_s30 + $0x6b8] sm:$0xff]  ;;  %v9031_v40 = vcombine.low %v5428_v25, %v5432_v10 }
 0x487   : > { %7051 = vmatprep.subr.bf16.mxu1 %v8970_v28  ;;  %v5429_v28 = vld [vmem:[%s11478_s30 + $0x658] sm:$0xff] }
 0x488   : > { %6970 = vmatpush1.bf16.msra.mxu0 %v8967_v32  ;;  %v9025_v32 = vcombine.low %v5421_v57, %v5425_v19  ;;  %v5477_v18 = vld [vmem:[%s11478_s30 + $0x7d8] sm:$0xff] }
 0x489   : > { %7052 = vmatpush1.bf16.msra.mxu1 %v8969_v34  ;;  %6971 = vmatprep.subr.bf16.mxu0 %v8976_v35  ;;  %v9032_v34 = vcombine.high %v5428_v25, %v5432_v10  ;;  %v9034_v35 = vcombine.high %v5429_v28, %v5433_v30  ;;  %v5481_v57 = vld [vmem:[%s11478_s30 + $0x7f8] sm:$0xff] }
 0x48a   : > { %7053 = vmatprep.subr.bf16.mxu1 %v8978_v36  ;;  %v5436_v36 = vld [vmem:[%s11478_s30 + $0x690] sm:$0xff]  ;;  %v9081_v25 = vcombine.low %v5477_v18, %v5481_v57 }
 0x48b   : > { %v9039_v51 = vcombine.low %v5436_v36, %v5440_v27 }
 0x48c   : > { %6972 = vmatpush1.bf16.msra.mxu0 %v8975_v29  ;;  %v9033_v29 = vcombine.low %v5429_v28, %v5433_v30 }
 0x48d   : > { %7054 = vmatpush1.bf16.msra.mxu1 %v8977_v42  ;;  %6973 = vmatprep.subr.bf16.mxu0 %v8984_v45  ;;  %v9040_v42 = vcombine.high %v5436_v36, %v5440_v27  ;;  %v9042_v45 = vcombine.high %v5437_v37, %v5441_v38 }
 0x48e   : > { %7055 = vmatprep.subr.bf16.mxu1 %v8986_v49  ;;  %v5444_v49 = vld [vmem:[%s11478_s30 + $0x6d0] sm:$0xff] }
 0x48f   : > { %v9047_v43 = vcombine.low %v5444_v49, %v5448_v46 }
 0x490   : > { %6974 = vmatpush1.bf16.msra.mxu0 %v8983_v14  ;;  %v9041_v14 = vcombine.low %v5437_v37, %v5441_v38 }
 0x491   : > { %7056 = vmatpush1.bf16.msra.mxu1 %v8985_v52  ;;  %6975 = vmatprep.subr.bf16.mxu0 %v8992_v33  ;;  %v9048_v52 = vcombine.high %v5444_v49, %v5448_v46  ;;  %v9050_v33 = vcombine.high %v5445_v26, %v5449_v47 }
 0x492   : > { %7057 = vmatprep.subr.bf16.mxu1 %v8994_v53  ;;  %v5452_v53 = vld [vmem:[%s11478_s30 + $0x710] sm:$0xff] }
 0x493   : > { %v9055_v63 = vcombine.low %v5452_v53, %v5456_v54 }
 0x494   : > { %6976 = vmatpush1.bf16.msra.mxu0 %v8991_v58  ;;  %v9049_v58 = vcombine.low %v5445_v26, %v5449_v47 }
 0x495   : > { %7058 = vmatpush1.bf16.msra.mxu1 %v8993_v20  ;;  %6977 = vmatprep.subr.bf16.mxu0 %v9000_v59  ;;  %v9056_v20 = vcombine.high %v5452_v53, %v5456_v54  ;;  %v9058_v59 = vcombine.high %v5453_v55, %v5457_v56 }
 0x496   : > { %7059 = vmatprep.subr.bf16.mxu1 %v9002_v41  ;;  %v5460_v41 = vld [vmem:[%s11478_s30 + $0x750] sm:$0xff] }
 0x497   : > { %v9063_v7 = vcombine.low %v5460_v41, %v5464_v60 }
 0x498   : > { %6978 = vmatpush1.bf16.msra.mxu0 %v8999_v1  ;;  %v9057_v1 = vcombine.low %v5453_v55, %v5457_v56  ;;  %v5221_v56 = vld [vmem:[#allocation2 + $0x8] sm:$0xff] }
 0x499   : > { %7060 = vmatpush1.bf16.msra.mxu1 %v9001_v2  ;;  %6979 = vmatprep.subr.bf16.mxu0 %v9008_v48  ;;  %v9064_v2 = vcombine.high %v5460_v41, %v5464_v60  ;;  %v9066_v48 = vcombine.high %v5461_v61, %v5465_v62  ;;  %v10115_v41 = vld [vmem:[%s12851_s5] ss:$8 sps:$4 sm:$0xff] (!%p9083_p11)  }
 0x49a   : > { %7061 = vmatprep.subr.bf16.mxu1 %v9010_v3  ;;  %v5468_v3 = vld [vmem:[%s11478_s30 + $0x790] sm:$0xff]  ;;  %v10116_v60 = vld [vmem:[%s12851_s5 + $0x200] ss:$8 sps:$4 sm:$0xff] (!%p9083_p11)  }
 0x49b   : > { %v9071_v19 = vcombine.low %v5468_v3, %v5472_v4 }
 0x49c   : > { %6980 = vmatpush1.bf16.msra.mxu0 %v9007_v8  ;;  %v9065_v8 = vcombine.low %v5461_v61, %v5465_v62  ;;  %v10117_v61 = vld [vmem:[%s12851_s5 + $0x14] ss:$8 sps:$4 sm:$0xff] (!%p9083_p11)  }
 0x49d   : > { %7062 = vmatpush1.bf16.msra.mxu1 %v9009_v9  ;;  %6981 = vmatprep.subr.bf16.mxu0 %v9016_v11  ;;  %v9072_v9 = vcombine.high %v5468_v3, %v5472_v4  ;;  %v9074_v11 = vcombine.high %v5469_v5, %v5473_v6  ;;  %v10119_v62 = vld [vmem:[%s12851_s5 + $0x214] ss:$8 sps:$4 sm:$0xff] (!%p9083_p11)   ;;  %v10127_v3 = vld [vmem:[%s12851_s5 + $0x20] ss:$8 sps:$4 sm:$0xff] (!%p9083_p11)  }
 0x49e   : > { %7063 = vmatprep.subr.bf16.mxu1 %v9018_v12  ;;  %v5476_v12 = vld [vmem:[%s11478_s30 + $0x7d0] sm:$0xff]  ;;  %v10128_v4 = vld [vmem:[%s12851_s5 + $0x220] ss:$8 sps:$4 sm:$0xff] (!%p9083_p11)  }
 0x4a0   : > { %6982 = vmatpush1.bf16.msra.mxu0 %v9015_v21  ;;  %v9073_v21 = vcombine.low %v5469_v5, %v5473_v6  ;;  %v10129_v5 = vld [vmem:[%s12851_s5 + $0x34] ss:$8 sps:$4 sm:$0xff] (!%p9083_p11)  }
 0x4a1   : > { %7064 = vmatpush1.bf16.msra.mxu1 %v9017_v39  ;;  %6983 = vmatprep.subr.bf16.mxu0 %v9024_v22  ;;  %v9080_v39 = vcombine.high %v5476_v12, %v5480_v17  ;;  %v9082_v22 = vcombine.high %v5477_v18, %v5481_v57  ;;  %v10131_v6 = vld [vmem:[%s12851_s5 + $0x234] ss:$8 sps:$4 sm:$0xff] (!%p9083_p11)  }
 0x4a2   : > { %7065 = vmatprep.subr.bf16.mxu1 %v9026_v23  ;;  %v9079_v23 = vcombine.low %v5476_v12, %v5480_v17  ;;  %v10139_v12 = vld [vmem:[%s12851_s5 + $0x40] ss:$8 sps:$4 sm:$0xff] (!%p9083_p11)   ;;  %v10141_v18 = vld [vmem:[%s12851_s5 + $0x54] ss:$8 sps:$4 sm:$0xff] (!%p9083_p11)  }
 0x4a3   : > { %v10140_v17 = vld [vmem:[%s12851_s5 + $0x240] ss:$8 sps:$4 sm:$0xff] (!%p9083_p11)   ;;  %v10143_v57 = vld [vmem:[%s12851_s5 + $0x254] ss:$8 sps:$4 sm:$0xff] (!%p9083_p11)  }
 0x4a4   : > { %6984 = vmatpush1.bf16.msra.mxu0 %v9023_v31 }
 0x4a5   : > { %7066 = vmatpush1.bf16.msra.mxu1 %v9025_v32  ;;  %6985 = vmatprep.subr.bf16.mxu0 %v9032_v34 }
 0x4a6   : > { %7067 = vmatprep.subr.bf16.mxu1 %v9034_v35 }
 0x4a8   : > { %6986 = vmatpush1.bf16.msra.mxu0 %v9031_v40 }
 0x4a9   : > { %7068 = vmatpush1.bf16.msra.mxu1 %v9033_v29  ;;  %6987 = vmatprep.subr.bf16.mxu0 %v9040_v42  ;;  %v5220_v29 = vld [vmem:[#allocation2] sm:$0xff] }
 0x4aa   : > { %7069 = vmatprep.subr.bf16.mxu1 %v9042_v45 }
 0x4ac   : > { %6988 = vmatpush1.bf16.msra.mxu0 %v9039_v51 }
 0x4ad   : > { %7070 = vmatpush1.bf16.msra.mxu1 %v9041_v14  ;;  %6989 = vmatprep.subr.bf16.mxu0 %v9048_v52 }
 0x4ae   : > { %7071 = vmatprep.subr.bf16.mxu1 %v9050_v33 }
 0x4b0   : > { %6990 = vmatpush1.bf16.msra.mxu0 %v9047_v43 }
 0x4b1   : > { %7072 = vmatpush1.bf16.msra.mxu1 %v9049_v58  ;;  %6991 = vmatprep.subr.bf16.mxu0 %v9056_v20  ;;  %v10111_v20 = vld [vmem:[%s12851_s5 + $0x4] ss:$8 sps:$4 sm:$0xff] (!%p9083_p11)  }
 0x4b2   : > { %7073 = vmatprep.subr.bf16.mxu1 %v9058_v59  ;;  %v10113_v59 = vld [vmem:[%s12851_s5 + $0x204] ss:$8 sps:$4 sm:$0xff] (!%p9083_p11)  }
 0x4b4   : > { %6992 = vmatpush1.bf16.msra.mxu0 %v9055_v63  ;;  %v10121_v63 = vld [vmem:[%s12851_s5 + $0x10] ss:$8 sps:$4 sm:$0xff] (!%p9083_p11)  }
 0x4b5   : > { %7074 = vmatpush1.bf16.msra.mxu1 %v9057_v1  ;;  %6993 = vmatprep.subr.bf16.mxu0 %v9064_v2  ;;  %v10122_v1 = vld [vmem:[%s12851_s5 + $0x210] ss:$8 sps:$4 sm:$0xff] (!%p9083_p11)   ;;  %v10123_v2 = vld [vmem:[%s12851_s5 + $0x24] ss:$8 sps:$4 sm:$0xff] (!%p9083_p11)  }
 0x4b6   : > { %7075 = vmatprep.subr.bf16.mxu1 %v9066_v48  ;;  %v10125_v48 = vld [vmem:[%s12851_s5 + $0x224] ss:$8 sps:$4 sm:$0xff] (!%p9083_p11)  }
 0x4b8   : > { %6994 = vmatpush1.bf16.msra.mxu0 %v9063_v7  ;;  %v10133_v7 = vld [vmem:[%s12851_s5 + $0x30] ss:$8 sps:$4 sm:$0xff] (!%p9083_p11)  }
 0x4b9   : > { %7076 = vmatpush1.bf16.msra.mxu1 %v9065_v8  ;;  %6995 = vmatprep.subr.bf16.mxu0 %v9072_v9  ;;  %v10134_v8 = vld [vmem:[%s12851_s5 + $0x230] ss:$8 sps:$4 sm:$0xff] (!%p9083_p11)   ;;  %v10135_v9 = vld [vmem:[%s12851_s5 + $0x44] ss:$8 sps:$4 sm:$0xff] (!%p9083_p11)  }
 0x4ba   : > { %7077 = vmatprep.subr.bf16.mxu1 %v9074_v11  ;;  %v10137_v11 = vld [vmem:[%s12851_s5 + $0x244] ss:$8 sps:$4 sm:$0xff] (!%p9083_p11)  }
 0x4bc   : > { %6996 = vmatpush1.bf16.msra.mxu0 %v9071_v19  ;;  %v10145_v19 = vld [vmem:[%s12851_s5 + $0x50] ss:$8 sps:$4 sm:$0xff] (!%p9083_p11)  }
 0x4bd   : > { %7078 = vmatpush1.bf16.msra.mxu1 %v9073_v21  ;;  %6997 = vmatprep.subr.bf16.mxu0 %v9080_v39  ;;  %v10146_v21 = vld [vmem:[%s12851_s5 + $0x250] ss:$8 sps:$4 sm:$0xff] (!%p9083_p11)   ;;  %v10147_v39 = vld [vmem:[%s12851_s5 + $0x64] ss:$8 sps:$4 sm:$0xff] (!%p9083_p11)  }
 0x4be   : > { %7079 = vmatprep.subr.bf16.mxu1 %v9082_v22  ;;  %v10149_v22 = vld [vmem:[%s12851_s5 + $0x264] ss:$8 sps:$4 sm:$0xff] (!%p9083_p11)  }
 0x4c0   : > { %6998 = vmatpush1.bf16.msra.mxu0 %v9079_v23  ;;  %v10151_v23 = vld [vmem:[%s12851_s5 + $0x60] ss:$8 sps:$4 sm:$0xff] (!%p9083_p11)  }
 0x4c1   : > { %7080 = vmatpush1.bf16.msra.mxu1 %v9081_v25  ;;  %8132 = vmatprep.subr.bf16.mxu0 (!%p9083_p11), %v10113_v59  ;;  %v10152_v25 = vld [vmem:[%s12851_s5 + $0x260] ss:$8 sps:$4 sm:$0xff] (!%p9083_p11)  }
 0x4c2   : > { %8050 = vmatprep.subr.bf16.mxu1 (!%p9083_p11), %v10111_v20 }
 0x4c3   : > { %7000 = vmatmul.mubr.bf16.vlgmr.msra.gmra.mrb[8].mxu0 %v12253_v0 }
 0x4c4   : > { %7082 = vmatmul.mubr.bf16.vlgmr.msra.gmra.mrb[8].mxu1 %v12253_v0  ;;  %8133 = vmatpush1.bf16.msra.mxu0 (!%p9083_p11), %v10116_v60 }
 0x4c5   : > { %8051 = vmatpush1.bf16.msra.mxu1 (!%p9083_p11), %v10115_v41  ;;  %8134 = vmatprep.subr.bf16.mxu0 (!%p9083_p11), %v10119_v62 }
 0x4c6   : > { %8052 = vmatprep.subr.bf16.mxu1 (!%p9083_p11), %v10117_v61 }
 0x4c8   : > { %8135 = vmatpush1.bf16.msra.mxu0 (!%p9083_p11), %v10122_v1 }
 0x4c9   : > { %8053 = vmatpush1.bf16.msra.mxu1 (!%p9083_p11), %v10121_v63  ;;  %8136 = vmatprep.subr.bf16.mxu0 (!%p9083_p11), %v10125_v48  ;;  %v10187_v63 = vld [vmem:[%s12851_s5 + $0xc0] ss:$8 sps:$4 sm:$0xff] (!%p9083_p11)  }
 0x4ca   : > { %8054 = vmatprep.subr.bf16.mxu1 (!%p9083_p11), %v10123_v2  ;;  %v10188_v2 = vld [vmem:[%s12851_s5 + $0x2c0] ss:$8 sps:$4 sm:$0xff] (!%p9083_p11)  }
 0x4cc   : > { %8137 = vmatpush1.bf16.msra.mxu0 (!%p9083_p11), %v10128_v4 }
 0x4cd   : > { %8055 = vmatpush1.bf16.msra.mxu1 (!%p9083_p11), %v10127_v3  ;;  %8138 = vmatprep.subr.bf16.mxu0 (!%p9083_p11), %v10131_v6  ;;  %v10191_v3 = vld [vmem:[%s12851_s5 + $0x2d4] ss:$8 sps:$4 sm:$0xff] (!%p9083_p11)  }
 0x4ce   : > { %8056 = vmatprep.subr.bf16.mxu1 (!%p9083_p11), %v10129_v5 }
 0x4d0   : > { %8139 = vmatpush1.bf16.msra.mxu0 (!%p9083_p11), %v10134_v8  ;;  %v10193_v8 = vld [vmem:[%s12851_s5 + $0xd0] ss:$8 sps:$4 sm:$0xff] (!%p9083_p11)  }
 0x4d1   : > { %8057 = vmatpush1.bf16.msra.mxu1 (!%p9083_p11), %v10133_v7  ;;  %8140 = vmatprep.subr.bf16.mxu0 (!%p9083_p11), %v10137_v11 }
 0x4d2   : > { %8058 = vmatprep.subr.bf16.mxu1 (!%p9083_p11), %v10135_v9 }
 0x4d4   : > { %8141 = vmatpush1.bf16.msra.mxu0 (!%p9083_p11), %v10140_v17  ;;  %v10195_v17 = vld [vmem:[%s12851_s5 + $0xe4] ss:$8 sps:$4 sm:$0xff] (!%p9083_p11)  }
 0x4d5   : > { %8059 = vmatpush1.bf16.msra.mxu1 (!%p9083_p11), %v10139_v12  ;;  %8142 = vmatprep.subr.bf16.mxu0 (!%p9083_p11), %v10143_v57  ;;  %v10194_v12 = vld [vmem:[%s12851_s5 + $0x2d0] ss:$8 sps:$4 sm:$0xff] (!%p9083_p11)   ;;  %v10197_v57 = vld [vmem:[%s12851_s5 + $0x2e4] ss:$8 sps:$4 sm:$0xff] (!%p9083_p11)  }
 0x4d6   : > { %8060 = vmatprep.subr.bf16.mxu1 (!%p9083_p11), %v10141_v18 }
 0x4d8   : > { %8143 = vmatpush1.bf16.msra.mxu0 (!%p9083_p11), %v10146_v21 }
 0x4d9   : > { %8061 = vmatpush1.bf16.msra.mxu1 (!%p9083_p11), %v10145_v19  ;;  %8144 = vmatprep.subr.bf16.mxu0 (!%p9083_p11), %v10149_v22 }
 0x4da   : > { %8062 = vmatprep.subr.bf16.mxu1 (!%p9083_p11), %v10147_v39  ;;  %v10199_v39 = vld [vmem:[%s12851_s5 + $0xe0] ss:$8 sps:$4 sm:$0xff] (!%p9083_p11)  }
 0x4dc   : > { %8145 = vmatpush1.bf16.msra.mxu0 (!%p9083_p11), %v10152_v25  ;;  %v10201_v25 = vld [vmem:[%s12851_s5 + $0xf4] ss:$8 sps:$4 sm:$0xff] (!%p9083_p11)  }
 0x4dd   : > { %8063 = vmatpush1.bf16.msra.mxu1 (!%p9083_p11), %v10151_v23  ;;  %v10200_v23 = vld [vmem:[%s12851_s5 + $0x2e0] ss:$8 sps:$4 sm:$0xff] (!%p9083_p11)  }
 0x516   : > { %v6837_v10 = vpop.f32.mrb[4].mxu0  ;;  %v6919_v28 = vpop.f32.mrb[4].mxu1 }
 0x517   : > { %v6839_v30 = vpop.f32.mrb[5].mxu0  ;;  %v6921_v31 = vpop.f32.mrb[5].mxu1 }
 0x518   : > { %v7098_v32 = vcombine.low %v6837_v10, %v6839_v30  ;;  %v7099_v34 = vcombine.low %v6919_v28, %v6921_v31  ;;  %v6841_v35 = vpop.f32.mrb[6].mxu0  ;;  %v6923_v36 = vpop.f32.mrb[6].mxu1  ;;  %v10153_v10 = vld [vmem:[%s12851_s5 + $0x74] ss:$8 sps:$4 sm:$0xff] (!%p9083_p11)   ;;  %v10157_v30 = vld [vmem:[%s12851_s5 + $0x70] ss:$8 sps:$4 sm:$0xff] (!%p9083_p11)  }
 0x519   : > { %v6842_v27 = vpop.f32.mrb[7].mxu0  ;;  %v6924_v37 = vpop.f32.mrb[7].mxu1  ;;  %v10155_v28 = vld [vmem:[%s12851_s5 + $0x274] ss:$8 sps:$4 sm:$0xff] (!%p9083_p11)   ;;  %v10158_v31 = vld [vmem:[%s12851_s5 + $0x270] ss:$8 sps:$4 sm:$0xff] (!%p9083_p11)   ;;  %8064 = vmatprep.subr.bf16.mxu1 (!%p9083_p11), %v10153_v10 }
 0x51a   : > { %v7106_v38 = vrot.slane %v7098_v32, %v11530_v50  ;;  %v7113_v40 = vrot.slane %v7099_v34, %v11530_v50  ;;  %v10159_v32 = vld [vmem:[%s12851_s5 + $0x84] ss:$8 sps:$4 sm:$0xff] (!%p9083_p11)   ;;  %8146 = vmatprep.subr.bf16.mxu0 (!%p9083_p11), %v10155_v28  ;;  %v10163_v35 = vld [vmem:[%s12851_s5 + $0x80] ss:$8 sps:$4 sm:$0xff] (!%p9083_p11)   ;;  %8065 = vmatpush1.bf16.msra.mxu1 (!%p9083_p11), %v10157_v30  ;;  %v10165_v27 = vld [vmem:[%s12851_s5 + $0x94] ss:$8 sps:$4 sm:$0xff] (!%p9083_p11)  }
 0x51b   : > { %v10161_v34 = vld [vmem:[%s12851_s5 + $0x284] ss:$8 sps:$4 sm:$0xff] (!%p9083_p11)   ;;  %v10164_v36 = vld [vmem:[%s12851_s5 + $0x280] ss:$8 sps:$4 sm:$0xff] (!%p9083_p11)   ;;  %8147 = vmatpush1.bf16.msra.mxu0 (!%p9083_p11), %v10158_v31  ;;  %8066 = vmatprep.subr.bf16.mxu1 (!%p9083_p11), %v10159_v32  ;;  %v10167_v37 = vld [vmem:[%s12851_s5 + $0x294] ss:$8 sps:$4 sm:$0xff] (!%p9083_p11)  }
 0x51c   : > { %v7114_v42 = vcombine.low %v7106_v38, %v7113_v40  ;;  %8148 = vmatprep.subr.bf16.mxu0 (!%p9083_p11), %v10161_v34  ;;  %v10169_v38 = vld [vmem:[%s12851_s5 + $0x90] ss:$8 sps:$4 sm:$0xff] (!%p9083_p11)   ;;  %v10203_v28 = vld [vmem:[%s12851_s5 + $0x2f4] ss:$8 sps:$4 sm:$0xff] (!%p9083_p11)  }
 0x51d   : > { %v10170_v40 = vld [vmem:[%s12851_s5 + $0x290] ss:$8 sps:$4 sm:$0xff] (!%p9083_p11)  }
 0x51e   : > { %v7134_v45 = vadd.f32 %v7114_v42, %v5220_v29  ;;  %8067 = vmatpush1.bf16.msra.mxu1 (!%p9083_p11), %v10163_v35  ;;  %v10171_v29 = vld [vmem:[%s12851_s5 + $0xa4] ss:$8 sps:$4 sm:$0xff] (!%p9083_p11)  }
 0x51f   : > { %8149 = vmatpush1.bf16.msra.mxu0 (!%p9083_p11), %v10164_v36  ;;  %8068 = vmatprep.subr.bf16.mxu1 (!%p9083_p11), %v10165_v27  ;;  %v10173_v42 = vld [vmem:[%s12851_s5 + $0x2a4] ss:$8 sps:$4 sm:$0xff] (!%p9083_p11)   ;;  %v10205_v27 = vld [vmem:[%s12851_s5 + $0xf0] ss:$8 sps:$4 sm:$0xff] (!%p9083_p11)  }
 0x520   : > { %7136 = vst [vmem:[#allocation2] sm:$0xff] %v7134_v45  ;;  %8150 = vmatprep.subr.bf16.mxu0 (!%p9083_p11), %v10167_v37  ;;  %v10175_v45 = vld [vmem:[%s12851_s5 + $0xa0] ss:$8 sps:$4 sm:$0xff] (!%p9083_p11)   ;;  %v10206_v37 = vld [vmem:[%s12851_s5 + $0x2f0] ss:$8 sps:$4 sm:$0xff] (!%p9083_p11)  }
 0x522   : > { %8069 = vmatpush1.bf16.msra.mxu1 (!%p9083_p11), %v10169_v38 }
 0x523   : > { %8151 = vmatpush1.bf16.msra.mxu0 (!%p9083_p11), %v10170_v40  ;;  %8070 = vmatprep.subr.bf16.mxu1 (!%p9083_p11), %v10171_v29 }
 0x524   : > { %8152 = vmatprep.subr.bf16.mxu0 (!%p9083_p11), %v10173_v42  ;;  %v10209_v42 = vld [vmem:[%s12851_s5 + $0x104] ss:$8 sps:$4 sm:$0xff] (!%p9083_p11)  }
 0x526   : > { %8071 = vmatpush1.bf16.msra.mxu1 (!%p9083_p11), %v10175_v45 }
 0x527   : > { %v7142_v6 = vld [vmem:[#allocation2] sm:$0xff] (!%p9083_p11) }
 0x596   : > { %v7001_v49 = vpop.f32.mrb[8].mxu0 }
 0x597   : > { %v7083_v0 = vpop.f32.mrb[8].mxu1  ;;  %v7003_v46 = vpop.f32.mrb[9].mxu0 }
 0x598   : > { %v7115_v26 = vcombine.low %v7001_v49, %v7003_v46  ;;  %v7085_v47 = vpop.f32.mrb[9].mxu1  ;;  %v7005_v51 = vpop.f32.mrb[10].mxu0  ;;  %v10176_v49 = vld [vmem:[%s12851_s5 + $0x2a0] ss:$8 sps:$4 sm:$0xff] (!%p9083_p11)   ;;  %v10179_v46 = vld [vmem:[%s12851_s5 + $0x2b4] ss:$8 sps:$4 sm:$0xff] (!%p9083_p11)  }
 0x599   : > { %v7116_v14 = vcombine.low %v7083_v0, %v7085_v47  ;;  %v7087_v52 = vpop.f32.mrb[10].mxu1  ;;  %v7006_v33 = vpop.f32.mrb[11].mxu0  ;;  %v10177_v0 = vld [vmem:[%s12851_s5 + $0xb4] ss:$8 sps:$4 sm:$0xff] (!%p9083_p11)   ;;  %v7168_v47 = vsub.s32 (!%p9083_p11), 5, %v11522_v44  ;;  %v7172_v51 = vsub.s32 (!%p9083_p11), 6, %v11522_v44  ;;  %8153 = vmatpush1.bf16.msra.mxu0 (!%p9083_p11), %v10176_v49 }
 0x59a   : > { %v7123_v53 = vrot.slane %v7115_v26, %v11530_v50  ;;  %v7088_v54 = vpop.f32.mrb[11].mxu1  ;;  %v7164_v26 = vsub.s32 (!%p9083_p11), 4, %v11522_v44  ;;  %v7144_v52 = vld [vmem:[%s12850_s4] sm:$0xff] (!%p9083_p11)  ;;  %v10181_v33 = vld [vmem:[%s12851_s5 + $0xb0] ss:$8 sps:$4 sm:$0xff] (!%p9083_p11)   ;;  %8072 = vmatprep.subr.bf16.mxu1 (!%p9083_p11), %v10177_v0  ;;  %8154 = vmatprep.subr.bf16.mxu0 (!%p9083_p11), %v10179_v46 }
 0x59b   : > { %v7130_v55 = vrot.slane %v7116_v14, %v11530_v50  ;;  %7141 = sbr.rel (%p9083_p11) target bundleno = 1744 (0x6d0), region = 79  ;;  %v7176_v14 = vsub.s32 (!%p9083_p11), 7, %v11522_v44  ;;  %v10183_v54 = vld [vmem:[%s12851_s5 + $0xc4] ss:$8 sps:$4 sm:$0xff] (!%p9083_p11)   ;;  %v7161_v20 = vrot.slane (!%p9083_p11), %v7144_v52, %v1994_v16  ;;  %v7169_v41 = vrot.slane (!%p9083_p11), %v7144_v52, %v7168_v47  ;;  %8073 = vmatpush1.bf16.msra.mxu1 (!%p9083_p11), %v10181_v33  ;;  %v10189_v44 = vld [vmem:[%s12851_s5 + $0xd4] ss:$8 sps:$4 sm:$0xff] (!%p9083_p11)  }
 0x59c   : > { %v7165_v59 = vrot.slane (!%p9083_p11), %v7144_v52, %v7164_v26  ;;  %v7173_v61 = vrot.slane (!%p9083_p11), %v7144_v52, %v7172_v51  ;;  %8074 = vmatprep.subr.bf16.mxu1 (!%p9083_p11), %v10183_v54  ;;  %v10212_v49 = vld [vmem:[%s12851_s5 + $0x304] ss:$8 sps:$4 sm:$0xff] (!%p9083_p11)   ;;  %v10207_v26 = vld [vmem:[%s12851_s5 + $0x100] ss:$8 sps:$4 sm:$0xff] (!%p9083_p11)   ;;  %v10218_v33 = vld [vmem:[%s12851_s5 + $0x314] ss:$8 sps:$4 sm:$0xff] (!%p9083_p11)  }
 0x59d   : > { %v7131_v43 = vcombine.low %v7123_v53, %v7130_v55  ;;  %v10182_v53 = vld [vmem:[%s12851_s5 + $0x2b0] ss:$8 sps:$4 sm:$0xff] (!%p9083_p11)   ;;  %v7149_v55 = vrot.slane (!%p9083_p11), %v7144_v52, %v12146_v13  ;;  %v7177_v62 = vrot.slane (!%p9083_p11), %v7144_v52, %v7176_v14  ;;  %v10210_v14 = vld [vmem:[%s12851_s5 + $0x300] ss:$8 sps:$4 sm:$0xff] (!%p9083_p11)  }
 0x59e   : > { %8155 = vmatpush1.bf16.msra.mxu0 (!%p9083_p11), %v10182_v53 }
 0x59f   : > { %v7135_v58 = vadd.f32 %v7131_v43, %v5221_v56  ;;  %v7153_v56 = vrot.slane (!%p9083_p11), %v7144_v52, %v12156_v15  ;;  %v7157_v43 = vrot.slane (!%p9083_p11), %v7144_v52, %v1990_v24  ;;  %v7195_v24 = vcombine.low (!%p9083_p11), %v7165_v59, %v7169_v41  ;;  %8075 = vmatpush1.bf16.msra.mxu1 (!%p9083_p11), %v10187_v63  ;;  %v10215_v52 = vld [vmem:[%s12851_s5 + $0x114] ss:$8 sps:$4 sm:$0xff] (!%p9083_p11)   ;;  %v10222_v59 = vld [vmem:[%s12851_s5 + $0x320] ss:$8 sps:$4 sm:$0xff] (!%p9083_p11)   ;;  %v10233_v63 = vld [vmem:[%s12851_s5 + $0x144] ss:$8 sps:$4 sm:$0xff] (!%p9083_p11)  }
 0x5a0   : > { %v7196_v48 = vcombine.low (!%p9083_p11), %v7173_v61, %v7177_v62  ;;  %8076 = vmatprep.subr.bf16.mxu1 (!%p9083_p11), %v10189_v44  ;;  %v10227_v41 = vld [vmem:[%s12851_s5 + $0x134] ss:$8 sps:$4 sm:$0xff] (!%p9083_p11)   ;;  %v10225_v61 = vld [vmem:[%s12851_s5 + $0x130] ss:$8 sps:$4 sm:$0xff] (!%p9083_p11)  }
 0x5a1   : > { %7137 = vst [vmem:[#allocation2 + $0x8] sm:$0xff] %v7135_v58  ;;  %v10185_v58 = vld [vmem:[%s12851_s5 + $0x2c4] ss:$8 sps:$4 sm:$0xff] (!%p9083_p11)   ;;  %v7178_v60 = vcombine.low (!%p9083_p11), %v7149_v55, %v7153_v56  ;;  %v7179_v1 = vcombine.low (!%p9083_p11), %v7157_v43, %v7161_v20  ;;  %v7203_v5 = vrot.slane (!%p9083_p11), %v7195_v24, %v11530_v50  ;;  %v10213_v55 = vld [vmem:[%s12851_s5 + $0x110] ss:$8 sps:$4 sm:$0xff] (!%p9083_p11)  }
 0x5a2   : > { %8156 = vmatprep.subr.bf16.mxu0 %v10185_v58  ;;  %v7210_v7 = vrot.slane %v7196_v48, %v11530_v50  ;;  %v10216_v56 = vld [vmem:[%s12851_s5 + $0x310] ss:$8 sps:$4 sm:$0xff]   ;;  %v10221_v43 = vld [vmem:[%s12851_s5 + $0x124] ss:$8 sps:$4 sm:$0xff]   ;;  %v10219_v20 = vld [vmem:[%s12851_s5 + $0x120] ss:$8 sps:$4 sm:$0xff]  }
 0x5a3   : > { %v7186_v16 = vrot.slane %v7178_v60, %v11530_v50  ;;  %v7193_v4 = vrot.slane %v7179_v1, %v11530_v50  ;;  %8157 = vmatpush1.bf16.msra.mxu0 %v10188_v2  ;;  %8077 = vmatpush1.bf16.msra.mxu1 %v10193_v8  ;;  %v10224_v58 = vld [vmem:[%s12851_s5 + $0x324] ss:$8 sps:$4 sm:$0xff]   ;;  %v10230_v60 = vld [vmem:[%s12851_s5 + $0x334] ss:$8 sps:$4 sm:$0xff]   ;;  %v10228_v62 = vld [vmem:[%s12851_s5 + $0x330] ss:$8 sps:$4 sm:$0xff]  }
 0x5a4   : > { %v7211_v18 = vcombine.low %v7203_v5, %v7210_v7  ;;  %8158 = vmatprep.subr.bf16.mxu0 %v10191_v3  ;;  %8078 = vmatprep.subr.bf16.mxu1 %v10195_v17  ;;  %v10236_v1 = vld [vmem:[%s12851_s5 + $0x344] ss:$8 sps:$4 sm:$0xff]   ;;  %v10231_v24 = vld [vmem:[%s12851_s5 + $0x140] ss:$8 sps:$4 sm:$0xff]   ;;  %v10239_v44 = vld [vmem:[%s12851_s5 + $0x154] ss:$8 sps:$4 sm:$0xff]  }
 0x5a5   : > { %v7194_v9 = vcombine.low %v7186_v16, %v7193_v4  ;;  %v10234_v2 = vld [vmem:[%s12851_s5 + $0x340] ss:$8 sps:$4 sm:$0xff]   ;;  %v10242_v16 = vld [vmem:[%s12851_s5 + $0x354] ss:$8 sps:$4 sm:$0xff]   ;;  %v10237_v48 = vld [vmem:[%s12851_s5 + $0x150] ss:$8 sps:$4 sm:$0xff]  }
 0x5a6   : > { %v10240_v3 = vld [vmem:[%s12851_s5 + $0x350] ss:$8 sps:$4 sm:$0xff]   ;;  %v10245_v4 = vld [vmem:[%s12851_s5 + $0x164] ss:$8 sps:$4 sm:$0xff]   ;;  %v10246_v7 = vld [vmem:[%s12851_s5 + $0x360] ss:$8 sps:$4 sm:$0xff]  }
 0x5a7   : > { %v7214_v19 = vadd.f32 %v7194_v9, %v7142_v6  ;;  %8159 = vmatpush1.bf16.msra.mxu0 %v10194_v12  ;;  %8079 = vmatpush1.bf16.msra.mxu1 %v10199_v39  ;;  %v10248_v5 = vld [vmem:[%s12851_s5 + $0x364] ss:$8 sps:$4 sm:$0xff]   ;;  %v10243_v6 = vld [vmem:[%s12851_s5 + $0x160] ss:$8 sps:$4 sm:$0xff]   ;;  %v10251_v8 = vld [vmem:[%s12851_s5 + $0x174] ss:$8 sps:$4 sm:$0xff]  }
 0x5a8   : > { %v7143_v11 = vld [vmem:[#allocation2 + $0x8] sm:$0xff]  ;;  %8160 = vmatprep.subr.bf16.mxu0 %v10197_v57  ;;  %8080 = vmatprep.subr.bf16.mxu1 %v10201_v25  ;;  %v10254_v9 = vld [vmem:[%s12851_s5 + $0x374] ss:$8 sps:$4 sm:$0xff]   ;;  %v10252_v12 = vld [vmem:[%s12851_s5 + $0x370] ss:$8 sps:$4 sm:$0xff]  }
 0x5a9   : > { %v7215_v21 = vadd.f32 %v7211_v18, %v7143_v11  ;;  %v7216_v22 = vmax.f32 %v7214_v19, 0.0  ;;  %v10249_v11 = vld [vmem:[%s12851_s5 + $0x170] ss:$8 sps:$4 sm:$0xff]   ;;  %v10257_v17 = vld [vmem:[%s12851_s5 + $0x184] ss:$8 sps:$4 sm:$0xff]  }
 0x5aa   : > { %v10260_v18 = vld [vmem:[%s12851_s5 + $0x384] ss:$8 sps:$4 sm:$0xff]   ;;  %v10255_v57 = vld [vmem:[%s12851_s5 + $0x180] ss:$8 sps:$4 sm:$0xff]   ;;  %v10266_v39 = vld [vmem:[%s12851_s5 + $0x394] ss:$8 sps:$4 sm:$0xff]  }
 0x5ab   : > { %v7217_v10 = vmax.f32 %v7215_v21, 0.0  ;;  %v7220_v30 = vcombine.high %v7216_v22, %v7216_v22  ;;  %v7227_v31 = vrot.slane %v7216_v22, %v11530_v50  ;;  %8161 = vmatpush1.bf16.msra.mxu0 %v10200_v23  ;;  %8081 = vmatpush1.bf16.msra.mxu1 %v10205_v27  ;;  %v10258_v19 = vld [vmem:[%s12851_s5 + $0x380] ss:$8 sps:$4 sm:$0xff]   ;;  %v10263_v21 = vld [vmem:[%s12851_s5 + $0x194] ss:$8 sps:$4 sm:$0xff]  }
 0x5ac   : > { %8162 = vmatprep.subr.bf16.mxu0 %v10203_v28  ;;  %8091 = vmatprep.subr.bf16.mxu1 %v10209_v42  ;;  %v10261_v22 = vld [vmem:[%s12851_s5 + $0x190] ss:$8 sps:$4 sm:$0xff]   ;;  %v10269_v25 = vld [vmem:[%s12851_s5 + $0x1a4] ss:$8 sps:$4 sm:$0xff]   ;;  %v10267_v28 = vld [vmem:[%s12851_s5 + $0x1a0] ss:$8 sps:$4 sm:$0xff]  }
 0x5ad   : > { %v7237_v32 = vcombine.high %v7217_v10, %v7217_v10  ;;  %v7244_v34 = vrot.slane %v7217_v10, %v11530_v50  ;;  %v7235_v35 = vcombine.high %v7227_v31, %v7227_v31  ;;  %v12596_v36 = vrot.slane %v7220_v30, %v11530_v50  ;;  %v10264_v23 = vld [vmem:[%s12851_s5 + $0x390] ss:$8 sps:$4 sm:$0xff]   ;;  %v10272_v10 = vld [vmem:[%s12851_s5 + $0x3a4] ss:$8 sps:$4 sm:$0xff]   ;;  %v10270_v30 = vld [vmem:[%s12851_s5 + $0x3a0] ss:$8 sps:$4 sm:$0xff]  }
 0x5ae   : > { %v7262_v47 = vpack.c.bf16 %v7227_v31, %v7227_v31  ;;  %v10275_v31 = vld [vmem:[%s12851_s5 + $0x1b4] ss:$8 sps:$4 sm:$0xff]   ;;  %v10281_v27 = vld [vmem:[%s12851_s5 + $0x1c4] ss:$8 sps:$4 sm:$0xff]  }
 0x5af   : > { %v7252_v38 = vcombine.high %v7244_v34, %v7244_v34  ;;  %v12605_v40 = vrot.slane %v7237_v32, %v11530_v50  ;;  %v7263_v29 = vpack.c.bf16 %v7235_v35, %v7235_v35  ;;  %v7236_v0 = vcombine.high %v12596_v36, %v12596_v36  ;;  %8163 = vmatpush1.bf16.msra.mxu0 %v10206_v37  ;;  %v10278_v32 = vld [vmem:[%s12851_s5 + $0x3b4] ss:$8 sps:$4 sm:$0xff]   ;;  %v10276_v35 = vld [vmem:[%s12851_s5 + $0x3b0] ss:$8 sps:$4 sm:$0xff]   ;;  %v10284_v37 = vld [vmem:[%s12851_s5 + $0x3c4] ss:$8 sps:$4 sm:$0xff]  }
 0x5b0   : > { %v7266_v51 = vpack.c.bf16 %v7244_v34, %v7244_v34  ;;  %8173 = vmatprep.subr.bf16.mxu0 %v10212_v49  ;;  %v10273_v34 = vld [vmem:[%s12851_s5 + $0x1b0] ss:$8 sps:$4 sm:$0xff]   ;;  %v10287_v42 = vld [vmem:[%s12851_s5 + $0x1d4] ss:$8 sps:$4 sm:$0xff]  }
 0x5b1   : > { %v7267_v45 = vpack.c.bf16 %v7252_v38, %v7252_v38  ;;  %v7253_v46 = vcombine.high %v12605_v40, %v12605_v40  ;;  %8082 = vmatprep.mubr.bf16.mxu1 %v7263_v29  ;;  %v7265_v53 = vpack.c.bf16 %v7236_v0, %v7236_v0  ;;  %v10279_v38 = vld [vmem:[%s12851_s5 + $0x1c0] ss:$8 sps:$4 sm:$0xff]   ;;  %v10285_v49 = vld [vmem:[%s12851_s5 + $0x1d0] ss:$8 sps:$4 sm:$0xff]  }
 0x5b2   : > { %8083 = vmatmul.mubr.bf16.vlgmr.msra.gmra.mrb[0].mxu1 %v7262_v47  ;;  %v10282_v29 = vld [vmem:[%s12851_s5 + $0x3c0] ss:$8 sps:$4 sm:$0xff]   ;;  %v10288_v0 = vld [vmem:[%s12851_s5 + $0x3d0] ss:$8 sps:$4 sm:$0xff]  }
 0x5b3   : > { %8164 = vmatprep.mubr.bf16.mxu0 %v7267_v45  ;;  %v7269_v54 = vpack.c.bf16 %v7253_v46, %v7253_v46  ;;  %8092 = vmatpush1.bf16.msra.mxu1 %v10207_v26  ;;  %v10290_v45 = vld [vmem:[%s12851_s5 + $0x3d4] ss:$8 sps:$4 sm:$0xff]   ;;  %v10293_v46 = vld [vmem:[%s12851_s5 + $0x1e4] ss:$8 sps:$4 sm:$0xff]   ;;  %v10291_v47 = vld [vmem:[%s12851_s5 + $0x1e0] ss:$8 sps:$4 sm:$0xff]  }
 0x5b4   : > { %8165 = vmatmul.mubr.bf16.vlgmr.msra.gmra.mrb[0].mxu0 %v7266_v51  ;;  %8093 = vmatprep.subr.bf16.mxu1 %v10215_v52  ;;  %v10296_v26 = vld [vmem:[%s12851_s5 + $0x3e4] ss:$8 sps:$4 sm:$0xff]   ;;  %v10294_v51 = vld [vmem:[%s12851_s5 + $0x3e0] ss:$8 sps:$4 sm:$0xff]   ;;  %v10302_v52 = vld [vmem:[%s12851_s5 + $0x3f4] ss:$8 sps:$4 sm:$0xff]  }
 0x5b5   : > { %8174 = vmatpush1.bf16.msra.mxu0 %v10210_v14  ;;  %8123 = vmatprep.mubr.bf16.mxu1 %v7265_v53  ;;  %v10299_v14 = vld [vmem:[%s12851_s5 + $0x1f4] ss:$8 sps:$4 sm:$0xff]   ;;  %v10300_v53 = vld [vmem:[%s12851_s5 + $0x3f0] ss:$8 sps:$4 sm:$0xff]  }
 0x5b6   : > { %8175 = vmatprep.subr.bf16.mxu0 %v10218_v33  ;;  %8205 = vmatprep.mubr.bf16.mxu0 %v7269_v54  ;;  %v10297_v33 = vld [vmem:[%s12851_s5 + $0x1f0] ss:$8 sps:$4 sm:$0xff]   ;;  %v7264_v54 = vpack.c.bf16 %v12596_v36, %v12596_v36 }
 0x5b7   : > { %8094 = vmatpush1.bf16.msra.mxu1 %v10213_v55  ;;  %v7268_v55 = vpack.c.bf16 %v12605_v40, %v12605_v40 }
 0x5b8   : > { %8095 = vmatprep.subr.bf16.mxu1 %v10221_v43 }
 0x5b9   : > { %8176 = vmatpush1.bf16.msra.mxu0 %v10216_v56  ;;  %v7398_v56 = vld [vmem:[%s12852_s6] sm:$0x3] }
 0x5ba   : > { %8177 = vmatprep.subr.bf16.mxu0 %v10224_v58  ;;  %v7403_v43 = vrot.slane %v7398_v56, %v12146_v13  ;;  %v7407_v58 = vrot.slane %v7398_v56, %v12156_v15 }
 0x5bb   : > { %8096 = vmatpush1.bf16.msra.mxu1 %v10219_v20 }
 0x5bc   : > { %8097 = vmatprep.subr.bf16.mxu1 %v10227_v41 }
 0x5bd   : > { %8178 = vmatpush1.bf16.msra.mxu0 %v10222_v59 }
 0x5be   : > { %8179 = vmatprep.subr.bf16.mxu0 %v10230_v60 }
 0x5bf   : > { %8098 = vmatpush1.bf16.msra.mxu1 %v10225_v61 }
 0x5c0   : > { %8099 = vmatprep.subr.bf16.mxu1 %v10233_v63 }
 0x5c1   : > { %8180 = vmatpush1.bf16.msra.mxu0 %v10228_v62 }
 0x5c2   : > { %8181 = vmatprep.subr.bf16.mxu0 %v10236_v1 }
 0x5c3   : > { %8100 = vmatpush1.bf16.msra.mxu1 %v10231_v24 }
 0x5c4   : > { %8101 = vmatprep.subr.bf16.mxu1 %v10239_v44 }
 0x5c5   : > { %8182 = vmatpush1.bf16.msra.mxu0 %v10234_v2 }
 0x5c6   : > { %8183 = vmatprep.subr.bf16.mxu0 %v10242_v16 }
 0x5c7   : > { %8102 = vmatpush1.bf16.msra.mxu1 %v10237_v48 }
 0x5c8   : > { %8103 = vmatprep.subr.bf16.mxu1 %v10245_v4 }
 0x5c9   : > { %8184 = vmatpush1.bf16.msra.mxu0 %v10240_v3 }
 0x5ca   : > { %8185 = vmatprep.subr.bf16.mxu0 %v10248_v5 }
 0x5cb   : > { %8104 = vmatpush1.bf16.msra.mxu1 %v10243_v6 }
 0x5cc   : > { %8105 = vmatprep.subr.bf16.mxu1 %v10251_v8 }
 0x5cd   : > { %8186 = vmatpush1.bf16.msra.mxu0 %v10246_v7 }
 0x5ce   : > { %8187 = vmatprep.subr.bf16.mxu0 %v10254_v9 }
 0x5cf   : > { %8106 = vmatpush1.bf16.msra.mxu1 %v10249_v11 }
 0x5d0   : > { %8107 = vmatprep.subr.bf16.mxu1 %v10257_v17 }
 0x5d1   : > { %8188 = vmatpush1.bf16.msra.mxu0 %v10252_v12 }
 0x5d2   : > { %8189 = vmatprep.subr.bf16.mxu0 %v10260_v18 }
 0x5d3   : > { %8108 = vmatpush1.bf16.msra.mxu1 %v10255_v57 }
 0x5d4   : > { %8109 = vmatprep.subr.bf16.mxu1 %v10263_v21 }
 0x5d5   : > { %8190 = vmatpush1.bf16.msra.mxu0 %v10258_v19 }
 0x5d6   : > { %8191 = vmatprep.subr.bf16.mxu0 %v10266_v39 }
 0x5d7   : > { %8110 = vmatpush1.bf16.msra.mxu1 %v10261_v22 }
 0x5d8   : > { %8111 = vmatprep.subr.bf16.mxu1 %v10269_v25 }
 0x5d9   : > { %8192 = vmatpush1.bf16.msra.mxu0 %v10264_v23 }
 0x5da   : > { %8193 = vmatprep.subr.bf16.mxu0 %v10272_v10 }
 0x5db   : > { %8112 = vmatpush1.bf16.msra.mxu1 %v10267_v28 }
 0x5dc   : > { %8113 = vmatprep.subr.bf16.mxu1 %v10275_v31 }
 0x5dd   : > { %8194 = vmatpush1.bf16.msra.mxu0 %v10270_v30 }
 0x5de   : > { %8195 = vmatprep.subr.bf16.mxu0 %v10278_v32 }
 0x5df   : > { %8114 = vmatpush1.bf16.msra.mxu1 %v10273_v34 }
 0x5e0   : > { %8115 = vmatprep.subr.bf16.mxu1 %v10281_v27 }
 0x5e1   : > { %8196 = vmatpush1.bf16.msra.mxu0 %v10276_v35 }
 0x5e2   : > { %8197 = vmatprep.subr.bf16.mxu0 %v10284_v37 }
 0x5e3   : > { %8116 = vmatpush1.bf16.msra.mxu1 %v10279_v38 }
 0x5e4   : > { %8117 = vmatprep.subr.bf16.mxu1 %v10287_v42 }
 0x5e5   : > { %8198 = vmatpush1.bf16.msra.mxu0 %v10282_v29 }
 0x5e6   : > { %8199 = vmatprep.subr.bf16.mxu0 %v10290_v45 }
 0x5e7   : > { %8118 = vmatpush1.bf16.msra.mxu1 %v10285_v49 }
 0x5e8   : > { %8119 = vmatprep.subr.bf16.mxu1 %v10293_v46 }
 0x5e9   : > { %8200 = vmatpush1.bf16.msra.mxu0 %v10288_v0 }
 0x5ea   : > { %8201 = vmatprep.subr.bf16.mxu0 %v10296_v26 }
 0x5eb   : > { %8120 = vmatpush1.bf16.msra.mxu1 %v10291_v47 }
 0x5ec   : > { %8121 = vmatprep.subr.bf16.mxu1 %v10299_v14 }
 0x5ed   : > { %8202 = vmatpush1.bf16.msra.mxu0 %v10294_v51 }
 0x5ee   : > { %8203 = vmatprep.subr.bf16.mxu0 %v10302_v52 }
 0x5ef   : > { %8122 = vmatpush1.bf16.msra.mxu1 %v10297_v33 }
 0x5f1   : > { %8204 = vmatpush1.bf16.msra.mxu0 %v10300_v53 }
 0x5f2   : > { %8124 = vmatmul.mubr.bf16.vlgmr.msra.gmra.mrb[0].mxu1 %v7264_v54 }
 0x5f4   : > { %8206 = vmatmul.mubr.bf16.vlgmr.msra.gmra.mrb[0].mxu0 %v7268_v55 }
 0x6c5   : > { %v8125_v20 = vpop.f32.mrb[0].mxu1 }
 0x6c6   : > { %v9294_v41 = vadd.f32 %v8125_v20, %v7403_v43  ;;  %v8127_v60 = vpop.f32.mrb[1].mxu1 }
 0x6c7   : > { %v8207_v59 = vpop.f32.mrb[0].mxu0  ;;  %v9296_v61 = vadd.f32 %v8127_v60, %v7407_v58  ;;  %v8129_v62 = vpop.f32.mrb[2].mxu1 }
 0x6c8   : > { %v8209_v36 = vpop.f32.mrb[1].mxu0  ;;  %v9295_v63 = vadd.f32 %v9294_v41, %v8207_v59  ;;  %v8130_v1 = vpop.f32.mrb[3].mxu1 }
 0x6c9   : > { %v8211_v40 = vpop.f32.mrb[2].mxu0  ;;  %v9297_v2 = vadd.f32 %v9296_v61, %v8209_v36 }
 0x6ca   : > { %v8212_v24 = vpop.f32.mrb[3].mxu0 }
 0x6cb   : > { %v8216_v44 = vcombine.low %v9295_v63, %v9297_v2 }
 0x6cd   : > { %v8223_v13 = vrot.slane %v8216_v44, %v11530_v50 }
 0x6cf   : > { %8228 = vst.msk [vmem:[#allocation4] sm:$0xf] %vm8227_vm2, %v8223_v13 }
 0x6d0 PF: > { %p9310_p12 = scmp.eq.s32.totalorder %s10416_s27, 1  ;;  %s10359_s13 = smov [#allocation4]  }
 0x6d1   : > { %s8236_s14 = sshll.u32 %s10359_s13, 4  ;;  %s8237_s14 = int_to_ptr.vmem [resolvable:$true] %s8236_s14 }
 0x6d2   : > { %s10303_s15 = scalar_lea.vmem %s8237_s14, 64  ;;  %p10310_p2 = scmp.lt.s32.totalorder %s8237_s14, %s8237_s14 }
 0x6d3   : > { %p10304_p13 = scmp.ne.s32.totalorder %s8237_s14, %s10303_s15  ;;  %p10311_p3 = scmp.lt.s32.totalorder %s10303_s15, %s10303_s15 }
 0x6d5   : > { %p10305_p0 = pnand %p10304_p13, %p9310_p12  ;;  %p10312_p4 = por %p10311_p3, %p10310_p2 }
 0x6d7   : > { %p10306_p1 = pneg %p10305_p0 }
 0x6d9   : > { %p10313_p5 = pnand %p10312_p4, %p10306_p1 }
 0x6db   : > { %10316 = shalt.err (!%p10313_p5)
}
 0x6dc   : > { %s10317_s19 = scalar_lea.hbm %s12853_s7, 64 }
 0x6dd   : > { %p10318_p6 = scmp.ne.s32.totalorder %s12853_s7, %s10317_s19  ;;  %p10323_p9 = scmp.lt.u32.totalorder %s10317_s19, %s12853_s7 }
 0x6df   : > { %p10319_p7 = pnand %p10318_p6, %p9310_p12 }
 0x6e1   : > { %p10320_p8 = pneg %p10319_p7 }
 0x6e3   : > { %p10325_p10 = pnand %p10323_p9, %p10320_p8 }
 0x6e5   : > { %10328 = shalt.err (!%p10325_p10)
}
 0x6e6   : > { %9307 = dma.vmem_to_hbm [thread:$0]  (%p9310_p12), %s8237_s14, 64, %s12853_s7, [#allocation5]  }
 0x6e7   : > { %10342 = dma.done.wait (%p9310_p12), [#allocation5], 64  }
 0x6e8   : > { %10344 = vsyncadd (%p9310_p12), [#allocation5], 4294967232 }
 0x6e9 PF: > { %p15_p11 = scmp.ge.s32.totalorder %s10419_s28, 4   ;;  %s12854_s24 = smov %s10351_s25 }
 0x6ea   : > { %s12855_s25 = smov %s10428_s8  ;;  %s12856_s26 = smov %s10419_s28 }
 0x6eb   :  { %17 = sbr.rel (!%p15_p11) target bundleno = 2 (0x2), region = 117 }
 0x6f2   :  { %8249 = vsyncpa [#allocation5], 1 }
 0x6f3   :  { %8251 = vsyncpa [#allocation5 + $0x1], 1 }

</bundles_post_ra>
